<compile_context>
chip_gen: v7x
topology: tpu7x:2x2x1
jax: 0.10.0
libtpu: 0.0.40
codegen_flags: <defaults>
</compile_context>

<pallas_src>
import functools

import jax
import jax.numpy as jnp
from jax import lax
from jax.experimental import pallas as pl
from jax.experimental.pallas import tpu as pltpu


# ------------------------------- Kernel -------------------------------------

def _sentifier_kernel(x_ref, wih0_ref, whh0_ref, b0_ref,
                      wih1_ref, whh1_ref, b1_ref,
                      wcls_ref, bcls_ref,
                      out_ref,
                      gin_ref, hseq_ref,
                      *, T, B, H):
    """Fused 2-layer bidirectional LSTM + linear classifier (gridless, all VMEM).

    Shapes:
      x_ref:    (T*2B, E)   f32  "arranged" embeddings: step block s = [x[s]; x[T-1-s]]
      wihL_ref: (D_in, 8H)  bf16 [fwd | bwd] input->gate weights (pre-transposed)
      whhL_ref: (H,    8H)  bf16 [fwd | bwd] hidden->gate weights
      bL_ref:   (1,    8H)  f32  [fwd | bwd] combined bias (b_ih + b_hh)
      wcls_ref: (2H, C) f32, bcls_ref: (1, C) f32, out_ref: (B, C) f32
      gin_ref:  (T*2B, 8H)  f32 scratch - hoisted input projection (both directions)
      hseq_ref: (T*2B, 2H)  f32 scratch - layer-0 hidden sequence in arranged layout
    Gate order (PyTorch): i, f, g, o.  Directions are stacked on the batch axis:
    rows 0:B = forward stream (time s), rows B:2B = backward stream (time T-1-s).
    """
    H4 = 4 * H
    R = 2 * B  # stacked rows per step
    # Rows < B belong to the forward direction.
    is_fwd = lax.broadcasted_iota(jnp.int32, (R, H4), 0) < B

    def run_layer(x_flat, wih_ref, whh_ref, b_ref, hseq_out):
        # Hoisted input projection for all timesteps & both directions (bias folded once).
        gin_ref[...] = (
            jnp.dot(x_flat.astype(jnp.bfloat16), wih_ref[...],
                    preferred_element_type=jnp.float32)
            + b_ref[...])

        h = jnp.zeros((R, H), jnp.float32)
        c = jnp.zeros((R, H), jnp.float32)
        for s in range(T):  # T is small & static: fully unrolled
            g_blk = gin_ref[pl.ds(R * s, R), :]                       # (2B, 8H)
            hh = jnp.dot(h.astype(jnp.bfloat16), whh_ref[...],
                         preferred_element_type=jnp.float32)          # (2B, 8H)
            pre = g_blk + hh
            # fwd rows use the [:4H] (fwd-weight) columns, bwd rows the [4H:] ones.
            gates = jnp.where(is_fwd, pre[:, 0:H4], pre[:, H4:2 * H4])  # (2B, 4H)
            i_g = jax.nn.sigmoid(gates[:, 0 * H:1 * H])
            f_g = jax.nn.sigmoid(gates[:, 1 * H:2 * H])
            g_g = jnp.tanh(gates[:, 2 * H:3 * H])
            o_g = jax.nn.sigmoid(gates[:, 3 * H:4 * H])
            c = f_g * c + i_g * g_g
            h = o_g * jnp.tanh(c)
            if hseq_out is not None:
                # h[:B] = fwd hidden at time s      -> y[s][:, :H]
                # h[B:] = bwd hidden at time T-1-s  -> y[T-1-s][:, H:]
                # Store in the *arranged* layout consumed by the next layer
                # (each y[t] appears once in a fwd slot and once in a bwd slot).
                sr = T - 1 - s
                hseq_out[pl.ds(R * s, B), 0:H] = h[0:B]
                hseq_out[pl.ds(R * sr + B, B), 0:H] = h[0:B]
                hseq_out[pl.ds(R * sr, B), H:2 * H] = h[B:R]
                hseq_out[pl.ds(R * s + B, B), H:2 * H] = h[B:R]
        return h  # rows 0:B = fwd final state, rows B:2B = bwd final state

    # Layer 0: input = embeddings; its per-step hidden stays in VMEM scratch only.
    run_layer(x_ref[...], wih0_ref, whh0_ref, b0_ref, hseq_ref)
    # Layer 1 (last): only the final states are needed -> no hseq writeback at all.
    h_fin = run_layer(hseq_ref[...], wih1_ref, whh1_ref, b1_ref, None)

    # classifier(cat([hidden[-2], hidden[-1]])) without a lane concat:
    out_ref[...] = (
        jnp.dot(h_fin[0:B], wcls_ref[0:H, :], preferred_element_type=jnp.float32)
        + jnp.dot(h_fin[B:R], wcls_ref[H:2 * H, :], preferred_element_type=jnp.float32)
        + bcls_ref[...])


# ------------------------------- Wrapper ------------------------------------

def sentifier_forward(params, embeddings):
    """embeddings: (B, T, E) batch-first, like the PyTorch module.
    Returns logits (B, number_classes)."""
    B, T, E = embeddings.shape
    H = params["whh0"].shape[0]
    C = params["wcls"].shape[1]

    # Arrange the input once (cheap XLA prologue): time-major, with the forward
    # stream (time s) and backward stream (time T-1-s) stacked on the batch axis
    # for every step -> rows (T*2B, E).
    x_tm = jnp.transpose(embeddings.astype(jnp.float32), (1, 0, 2))   # (T, B, E)
    x_arr = jnp.concatenate([x_tm, x_tm[::-1]], axis=1).reshape(T * 2 * B, E)

    kernel = functools.partial(_sentifier_kernel, T=T, B=B, H=H)
    vmem = pl.BlockSpec(memory_space=pltpu.MemorySpace.VMEM)
    return pl.pallas_call(
        kernel,
        out_shape=jax.ShapeDtypeStruct((B, C), jnp.float32),
        in_specs=[vmem] * 9,
        out_specs=vmem,
        scratch_shapes=[
            pltpu.VMEM((T * 2 * B, 8 * H), jnp.float32),  # hoisted input-projection gates
            pltpu.VMEM((T * 2 * B, 2 * H), jnp.float32),  # layer-0 hidden sequence (arranged)
        ],
    )(x_arr, params["wih0"], params["whh0"], params["b0"],
      params["wih1"], params["whh1"], params["b1"],
      params["wcls"], params["bcls"])


# ------------------------------ Parameters ----------------------------------

def init_params(key, embedding=32, dimension=128, number_classes=2, number_layers=2):
    """nn.LSTM / nn.Linear-shaped params, packed for the fused kernel:
       wih{l}: (D_in, 8H) bf16 = [W_ih_fwd.T | W_ih_bwd.T]
       whh{l}: (H,   8H) bf16 = [W_hh_fwd.T | W_hh_bwd.T]
       b{l}:   (1,   8H) f32  = [b_ih_fwd+b_hh_fwd | b_ih_bwd+b_hh_bwd]
       wcls:   (2H, C) f32, bcls: (1, C) f32 (Linear weight.T / bias)."""
    assert number_layers == 2, "fused kernel is specialized to 2 layers"
    H = dimension
    stdv = 1.0 / float(H) ** 0.5
    params = {}
    for layer in range(number_layers):
        d_in = embedding if layer == 0 else 2 * H
        wih_dirs, whh_dirs, b_dirs = [], [], []
        for _ in range(2):  # fwd, bwd
            key, k1, k2, k3, k4 = jax.random.split(key, 5)
            wih_dirs.append(jax.random.uniform(k1, (d_in, 4 * H), jnp.float32, -stdv, stdv))
            whh_dirs.append(jax.random.uniform(k2, (H, 4 * H), jnp.float32, -stdv, stdv))
            b_ih = jax.random.uniform(k3, (1, 4 * H), jnp.float32, -stdv, stdv)
            b_hh = jax.random.uniform(k4, (1, 4 * H), jnp.float32, -stdv, stdv)
            b_dirs.append(b_ih + b_hh)
        params[f"wih{layer}"] = jnp.concatenate(wih_dirs, axis=1).astype(jnp.bfloat16)
        params[f"whh{layer}"] = jnp.concatenate(whh_dirs, axis=1).astype(jnp.bfloat16)
        params[f"b{layer}"] = jnp.concatenate(b_dirs, axis=1)
    key, kw, kb = jax.random.split(key, 3)
    bound = 1.0 / float(2 * H) ** 0.5
    params["wcls"] = jax.random.uniform(kw, (2 * H, number_classes), jnp.float32, -bound, bound)
    params["bcls"] = jax.random.uniform(kb, (1, number_classes), jnp.float32, -bound, bound)
    return params


# ------------------------- Pure-JAX reference (f32) -------------------------

def reference_forward(params, embeddings):
    """Straightforward bidirectional 2-layer LSTM + Linear in f32 (same weights)."""
    H = params["whh0"].shape[0]
    H4 = 4 * H
    x = jnp.transpose(embeddings.astype(jnp.float32), (1, 0, 2))  # (T, B, E)
    B = x.shape[1]

    def run_dir(seq, wih, whh, b):
        def step(carry, x_t):
            h, c = carry
            g = x_t @ wih + h @ whh + b
            i = jax.nn.sigmoid(g[:, 0 * H:1 * H])
            f = jax.nn.sigmoid(g[:, 1 * H:2 * H])
            gg = jnp.tanh(g[:, 2 * H:3 * H])
            o = jax.nn.sigmoid(g[:, 3 * H:4 * H])
            c = f * c + i * gg
            h = o * jnp.tanh(c)
            return (h, c), h
        init = (jnp.zeros((B, H), jnp.float32), jnp.zeros((B, H), jnp.float32))
        (h_fin, _), h_seq = lax.scan(step, init, seq)
        return h_seq, h_fin

    seq = x
    hf = hb = None
    for layer in range(2):
        wih = params[f"wih{layer}"].astype(jnp.float32)
        whh = params[f"whh{layer}"].astype(jnp.float32)
        b = params[f"b{layer}"].astype(jnp.float32)
        hs_f, hf = run_dir(seq, wih[:, :H4], whh[:, :H4], b[:, :H4])
        hs_b, hb = run_dir(seq[::-1], wih[:, H4:], whh[:, H4:], b[:, H4:])
        seq = jnp.concatenate([hs_f, hs_b[::-1]], axis=-1)
    hidden = jnp.concatenate([hf, hb], axis=1)
    return hidden @ params["wcls"] + params["bcls"]


# --------------------------------- Main --------------------------------------

if __name__ == "__main__":
    B, T, E = 2, 8, 32          # batch, seq_len, embedding
    H, C = 128, 2               # dimension, number_classes

    key = jax.random.PRNGKey(0)
    key, k_params, k_x = jax.random.split(key, 3)
    params = init_params(k_params, embedding=E, dimension=H, number_classes=C)
    embeddings = jax.random.normal(k_x, (B, T, E), jnp.float32)

    logits = jax.jit(sentifier_forward)(params, embeddings)
    jax.block_until_ready(logits)
    assert logits.shape == (B, C), logits.shape
    assert bool(jnp.all(jnp.isfinite(logits)))

    # Semantic parity vs. a pure-JAX f32 reference (kernel matmuls are bf16).
    ref = reference_forward(params, embeddings)
    max_err = float(jnp.max(jnp.abs(logits - ref)))
    assert max_err < 1e-1, f"kernel/reference mismatch: max abs err {max_err}"

    print("KERNEL_OK")
</pallas_src>

<mosaic_0001>
module attributes {stable_mosaic.version = 11 : i64} {
  func.func @_sentifier_kernel(%arg0: memref<32x32xf32, #tpu.memory_space<vmem>>, %arg1: memref<32x1024xbf16, #tpu.memory_space<vmem>>, %arg2: memref<128x1024xbf16, #tpu.memory_space<vmem>>, %arg3: memref<1x1024xf32, #tpu.memory_space<vmem>>, %arg4: memref<256x1024xbf16, #tpu.memory_space<vmem>>, %arg5: memref<128x1024xbf16, #tpu.memory_space<vmem>>, %arg6: memref<1x1024xf32, #tpu.memory_space<vmem>>, %arg7: memref<256x2xf32, #tpu.memory_space<vmem>>, %arg8: memref<1x2xf32, #tpu.memory_space<vmem>>, %arg9: memref<2x2xf32, #tpu.memory_space<vmem>>, %arg10: memref<32x1024xf32, #tpu.memory_space<vmem>>, %arg11: memref<32x256xf32, #tpu.memory_space<vmem>>) attributes {dimension_semantics = [], scalar_prefetch = 0 : i64, scratch_operands = 2 : i64, tpu.core_type = #tpu.core_type<tc>} {
    %0 = tpu.iota {dimensions = array<i32: 0>} : vector<4x512xi32>
    %c2_i32 = arith.constant 2 : i32
    %1 = vector.broadcast %c2_i32 : i32 to vector<4x512xi32>
    %2 = arith.cmpi slt, %0, %1 : vector<4x512xi32>
    %c0 = arith.constant 0 : index
    %c0_0 = arith.constant 0 : index
    %3 = vector.load %arg0[%c0, %c0_0] : memref<32x32xf32, #tpu.memory_space<vmem>>, vector<32x32xf32>
    %4 = arith.truncf %3 : vector<32x32xf32> to vector<32x32xbf16>
    %c0_1 = arith.constant 0 : index
    %c0_2 = arith.constant 0 : index
    %5 = vector.load %arg1[%c0_1, %c0_2] : memref<32x1024xbf16, #tpu.memory_space<vmem>>, vector<32x1024xbf16>
    %cst = arith.constant dense<0.000000e+00> : vector<32x1024xf32>
    %6 = tpu.matmul %4, %5, %cst {dimension_numbers = #tpu.dot_dimension_numbers<[1], [0], [0], [1], [0, 0, 1, 1], [], []>} : vector<32x32xbf16>, vector<32x1024xbf16>, vector<32x1024xf32> -> vector<32x1024xf32>
    %c0_3 = arith.constant 0 : index
    %c0_4 = arith.constant 0 : index
    %7 = vector.load %arg3[%c0_3, %c0_4] : memref<1x1024xf32, #tpu.memory_space<vmem>>, vector<1x1024xf32>
    %8 = vector.broadcast %7 : vector<1x1024xf32> to vector<32x1024xf32>
    %9 = arith.addf %6, %8 : vector<32x1024xf32>
    %c0_5 = arith.constant 0 : index
    %c0_6 = arith.constant 0 : index
    %10 = vector.load %arg10[%c0_5, %c0_6] : memref<32x1024xf32, #tpu.memory_space<vmem>>, vector<32x1024xf32>
    tpu.vector_store %arg10[%c0_5, %c0_6], %9 {strides = array<i32>} : memref<32x1024xf32, #tpu.memory_space<vmem>>, vector<32x1024xf32>,
    %cst_7 = arith.constant 0.000000e+00 : f32
    %11 = vector.broadcast %cst_7 : f32 to vector<4x128xf32>
    %cst_8 = arith.constant 0.000000e+00 : f32
    %12 = vector.broadcast %cst_8 : f32 to vector<4x128xf32>
    %c0_9 = arith.constant 0 : index
    %c0_10 = arith.constant 0 : index
    %13 = vector.load %arg10[%c0_9, %c0_10] : memref<32x1024xf32, #tpu.memory_space<vmem>>, vector<4x1024xf32>
    %14 = arith.truncf %11 : vector<4x128xf32> to vector<4x128xbf16>
    %c0_11 = arith.constant 0 : index
    %c0_12 = arith.constant 0 : index
    %15 = vector.load %arg2[%c0_11, %c0_12] : memref<128x1024xbf16, #tpu.memory_space<vmem>>, vector<128x1024xbf16>
    %cst_13 = arith.constant dense<0.000000e+00> : vector<4x1024xf32>
    %16 = tpu.matmul %14, %15, %cst_13 {dimension_numbers = #tpu.dot_dimension_numbers<[1], [0], [0], [1], [0, 0, 1, 1], [], []>} : vector<4x128xbf16>, vector<128x1024xbf16>, vector<4x1024xf32> -> vector<4x1024xf32>
    %17 = arith.addf %13, %16 : vector<4x1024xf32>
    %18 = vector.extract_strided_slice %17 {offsets = [0, 0], sizes = [4, 512], strides = [1, 1]} : vector<4x1024xf32> to vector<4x512xf32>
    %19 = vector.extract_strided_slice %17 {offsets = [0, 512], sizes = [4, 512], strides = [1, 1]} : vector<4x1024xf32> to vector<4x512xf32>
    %20 = arith.select %2, %18, %19 : vector<4x512xi1>, vector<4x512xf32>
    %21 = vector.extract_strided_slice %20 {offsets = [0, 0], sizes = [4, 128], strides = [1, 1]} : vector<4x512xf32> to vector<4x128xf32>
    %22 = arith.negf %21 : vector<4x128xf32>
    %23 = math.exp %22 : vector<4x128xf32>
    %cst_14 = arith.constant 1.000000e+00 : f32
    %24 = vector.broadcast %cst_14 : f32 to vector<4x128xf32>
    %25 = arith.addf %24, %23 : vector<4x128xf32>
    %26 = arith.divf %24, %25 : vector<4x128xf32>
    %27 = vector.extract_strided_slice %20 {offsets = [0, 128], sizes = [4, 128], strides = [1, 1]} : vector<4x512xf32> to vector<4x128xf32>
    %28 = arith.negf %27 : vector<4x128xf32>
    %29 = math.exp %28 : vector<4x128xf32>
    %cst_15 = arith.constant 1.000000e+00 : f32
    %30 = vector.broadcast %cst_15 : f32 to vector<4x128xf32>
    %31 = arith.addf %30, %29 : vector<4x128xf32>
    %32 = arith.divf %30, %31 : vector<4x128xf32>
    %33 = vector.extract_strided_slice %20 {offsets = [0, 256], sizes = [4, 128], strides = [1, 1]} : vector<4x512xf32> to vector<4x128xf32>
    %34 = math.tanh %33 : vector<4x128xf32>
    %35 = vector.extract_strided_slice %20 {offsets = [0, 384], sizes = [4, 128], strides = [1, 1]} : vector<4x512xf32> to vector<4x128xf32>
    %36 = arith.negf %35 : vector<4x128xf32>
    %37 = math.exp %36 : vector<4x128xf32>
    %cst_16 = arith.constant 1.000000e+00 : f32
    %38 = vector.broadcast %cst_16 : f32 to vector<4x128xf32>
    %39 = arith.addf %38, %37 : vector<4x128xf32>
    %40 = arith.divf %38, %39 : vector<4x128xf32>
    %41 = arith.mulf %32, %12 : vector<4x128xf32>
    %42 = arith.mulf %26, %34 : vector<4x128xf32>
    %43 = arith.addf %41, %42 : vector<4x128xf32>
    %44 = math.tanh %43 : vector<4x128xf32>
    %45 = arith.mulf %40, %44 : vector<4x128xf32>
    %46 = vector.extract_strided_slice %45 {offsets = [0, 0], sizes = [2, 128], strides = [1, 1]} : vector<4x128xf32> to vector<2x128xf32>
    %c0_17 = arith.constant 0 : index
    %c0_18 = arith.constant 0 : index
    %47 = vector.load %arg11[%c0_17, %c0_18] : memref<32x256xf32, #tpu.memory_space<vmem>>, vector<2x128xf32>
    tpu.vector_store %arg11[%c0_17, %c0_18], %46 {strides = array<i32>} : memref<32x256xf32, #tpu.memory_space<vmem>>, vector<2x128xf32>,
    %48 = vector.extract_strided_slice %45 {offsets = [0, 0], sizes = [2, 128], strides = [1, 1]} : vector<4x128xf32> to vector<2x128xf32>
    %c30 = arith.constant 30 : index
    %c0_19 = arith.constant 0 : index
    %49 = vector.load %arg11[%c30, %c0_19] : memref<32x256xf32, #tpu.memory_space<vmem>>, vector<2x128xf32>
    tpu.vector_store %arg11[%c30, %c0_19], %48 {strides = array<i32>} : memref<32x256xf32, #tpu.memory_space<vmem>>, vector<2x128xf32>,
    %50 = vector.extract_strided_slice %45 {offsets = [2, 0], sizes = [2, 128], strides = [1, 1]} : vector<4x128xf32> to vector<2x128xf32>
    %c28 = arith.constant 28 : index
    %c128 = arith.constant 128 : index
    %51 = vector.load %arg11[%c28, %c128] : memref<32x256xf32, #tpu.memory_space<vmem>>, vector<2x128xf32>
    tpu.vector_store %arg11[%c28, %c128], %50 {strides = array<i32>} : memref<32x256xf32, #tpu.memory_space<vmem>>, vector<2x128xf32>,
    %52 = vector.extract_strided_slice %45 {offsets = [2, 0], sizes = [2, 128], strides = [1, 1]} : vector<4x128xf32> to vector<2x128xf32>
    %c2 = arith.constant 2 : index
    %c128_20 = arith.constant 128 : index
    %53 = vector.load %arg11[%c2, %c128_20] : memref<32x256xf32, #tpu.memory_space<vmem>>, vector<2x128xf32>
    tpu.vector_store %arg11[%c2, %c128_20], %52 {strides = array<i32>} : memref<32x256xf32, #tpu.memory_space<vmem>>, vector<2x128xf32>,
    %c4 = arith.constant 4 : index
    %c0_21 = arith.constant 0 : index
    %54 = vector.load %arg10[%c4, %c0_21] : memref<32x1024xf32, #tpu.memory_space<vmem>>, vector<4x1024xf32>
    %55 = arith.truncf %45 : vector<4x128xf32> to vector<4x128xbf16>
    %c0_22 = arith.constant 0 : index
    %c0_23 = arith.constant 0 : index
    %56 = vector.load %arg2[%c0_22, %c0_23] : memref<128x1024xbf16, #tpu.memory_space<vmem>>, vector<128x1024xbf16>
    %cst_24 = arith.constant dense<0.000000e+00> : vector<4x1024xf32>
    %57 = tpu.matmul %55, %56, %cst_24 {dimension_numbers = #tpu.dot_dimension_numbers<[1], [0], [0], [1], [0, 0, 1, 1], [], []>} : vector<4x128xbf16>, vector<128x1024xbf16>, vector<4x1024xf32> -> vector<4x1024xf32>
    %58 = arith.addf %54, %57 : vector<4x1024xf32>
    %59 = vector.extract_strided_slice %58 {offsets = [0, 0], sizes = [4, 512], strides = [1, 1]} : vector<4x1024xf32> to vector<4x512xf32>
    %60 = vector.extract_strided_slice %58 {offsets = [0, 512], sizes = [4, 512], strides = [1, 1]} : vector<4x1024xf32> to vector<4x512xf32>
    %61 = arith.select %2, %59, %60 : vector<4x512xi1>, vector<4x512xf32>
    %62 = vector.extract_strided_slice %61 {offsets = [0, 0], sizes = [4, 128], strides = [1, 1]} : vector<4x512xf32> to vector<4x128xf32>
    %63 = arith.negf %62 : vector<4x128xf32>
    %64 = math.exp %63 : vector<4x128xf32>
    %cst_25 = arith.constant 1.000000e+00 : f32
    %65 = vector.broadcast %cst_25 : f32 to vector<4x128xf32>
    %66 = arith.addf %65, %64 : vector<4x128xf32>
    %67 = arith.divf %65, %66 : vector<4x128xf32>
    %68 = vector.extract_strided_slice %61 {offsets = [0, 128], sizes = [4, 128], strides = [1, 1]} : vector<4x512xf32> to vector<4x128xf32>
    %69 = arith.negf %68 : vector<4x128xf32>
    %70 = math.exp %69 : vector<4x128xf32>
    %cst_26 = arith.constant 1.000000e+00 : f32
    %71 = vector.broadcast %cst_26 : f32 to vector<4x128xf32>
    %72 = arith.addf %71, %70 : vector<4x128xf32>
    %73 = arith.divf %71, %72 : vector<4x128xf32>
    %74 = vector.extract_strided_slice %61 {offsets = [0, 256], sizes = [4, 128], strides = [1, 1]} : vector<4x512xf32> to vector<4x128xf32>
    %75 = math.tanh %74 : vector<4x128xf32>
    %76 = vector.extract_strided_slice %61 {offsets = [0, 384], sizes = [4, 128], strides = [1, 1]} : vector<4x512xf32> to vector<4x128xf32>
    %77 = arith.negf %76 : vector<4x128xf32>
    %78 = math.exp %77 : vector<4x128xf32>
    %cst_27 = arith.constant 1.000000e+00 : f32
    %79 = vector.broadcast %cst_27 : f32 to vector<4x128xf32>
    %80 = arith.addf %79, %78 : vector<4x128xf32>
    %81 = arith.divf %79, %80 : vector<4x128xf32>
    %82 = arith.mulf %73, %43 : vector<4x128xf32>
    %83 = arith.mulf %67, %75 : vector<4x128xf32>
    %84 = arith.addf %82, %83 : vector<4x128xf32>
    %85 = math.tanh %84 : vector<4x128xf32>
    %86 = arith.mulf %81, %85 : vector<4x128xf32>
    %87 = vector.extract_strided_slice %86 {offsets = [0, 0], sizes = [2, 128], strides = [1, 1]} : vector<4x128xf32> to vector<2x128xf32>
    %c4_28 = arith.constant 4 : index
    %c0_29 = arith.constant 0 : index
    %88 = vector.load %arg11[%c4_28, %c0_29] : memref<32x256xf32, #tpu.memory_space<vmem>>, vector<2x128xf32>
    tpu.vector_store %arg11[%c4_28, %c0_29], %87 {strides = array<i32>} : memref<32x256xf32, #tpu.memory_space<vmem>>, vector<2x128xf32>,
    %89 = vector.extract_strided_slice %86 {offsets = [0, 0], sizes = [2, 128], strides = [1, 1]} : vector<4x128xf32> to vector<2x128xf32>
    %c26 = arith.constant 26 : index
    %c0_30 = arith.constant 0 : index
    %90 = vector.load %arg11[%c26, %c0_30] : memref<32x256xf32, #tpu.memory_space<vmem>>, vector<2x128xf32>
    tpu.vector_store %arg11[%c26, %c0_30], %89 {strides = array<i32>} : memref<32x256xf32, #tpu.memory_space<vmem>>, vector<2x128xf32>,
    %91 = vector.extract_strided_slice %86 {offsets = [2, 0], sizes = [2, 128], strides = [1, 1]} : vector<4x128xf32> to vector<2x128xf32>
    %c24 = arith.constant 24 : index
    %c128_31 = arith.constant 128 : index
    %92 = vector.load %arg11[%c24, %c128_31] : memref<32x256xf32, #tpu.memory_space<vmem>>, vector<2x128xf32>
    tpu.vector_store %arg11[%c24, %c128_31], %91 {strides = array<i32>} : memref<32x256xf32, #tpu.memory_space<vmem>>, vector<2x128xf32>,
    %93 = vector.extract_strided_slice %86 {offsets = [2, 0], sizes = [2, 128], strides = [1, 1]} : vector<4x128xf32> to vector<2x128xf32>
    %c6 = arith.constant 6 : index
    %c128_32 = arith.constant 128 : index
    %94 = vector.load %arg11[%c6, %c128_32] : memref<32x256xf32, #tpu.memory_space<vmem>>, vector<2x128xf32>
    tpu.vector_store %arg11[%c6, %c128_32], %93 {strides = array<i32>} : memref<32x256xf32, #tpu.memory_space<vmem>>, vector<2x128xf32>,
    %c8 = arith.constant 8 : index
    %c0_33 = arith.constant 0 : index
    %95 = vector.load %arg10[%c8, %c0_33] : memref<32x1024xf32, #tpu.memory_space<vmem>>, vector<4x1024xf32>
    %96 = arith.truncf %86 : vector<4x128xf32> to vector<4x128xbf16>
    %c0_34 = arith.constant 0 : index
    %c0_35 = arith.constant 0 : index
    %97 = vector.load %arg2[%c0_34, %c0_35] : memref<128x1024xbf16, #tpu.memory_space<vmem>>, vector<128x1024xbf16>
    %cst_36 = arith.constant dense<0.000000e+00> : vector<4x1024xf32>
    %98 = tpu.matmul %96, %97, %cst_36 {dimension_numbers = #tpu.dot_dimension_numbers<[1], [0], [0], [1], [0, 0, 1, 1], [], []>} : vector<4x128xbf16>, vector<128x1024xbf16>, vector<4x1024xf32> -> vector<4x1024xf32>
    %99 = arith.addf %95, %98 : vector<4x1024xf32>
    %100 = vector.extract_strided_slice %99 {offsets = [0, 0], sizes = [4, 512], strides = [1, 1]} : vector<4x1024xf32> to vector<4x512xf32>
    %101 = vector.extract_strided_slice %99 {offsets = [0, 512], sizes = [4, 512], strides = [1, 1]} : vector<4x1024xf32> to vector<4x512xf32>
    %102 = arith.select %2, %100, %101 : vector<4x512xi1>, vector<4x512xf32>
    %103 = vector.extract_strided_slice %102 {offsets = [0, 0], sizes = [4, 128], strides = [1, 1]} : vector<4x512xf32> to vector<4x128xf32>
    %104 = arith.negf %103 : vector<4x128xf32>
    %105 = math.exp %104 : vector<4x128xf32>
    %cst_37 = arith.constant 1.000000e+00 : f32
    %106 = vector.broadcast %cst_37 : f32 to vector<4x128xf32>
    %107 = arith.addf %106, %105 : vector<4x128xf32>
    %108 = arith.divf %106, %107 : vector<4x128xf32>
    %109 = vector.extract_strided_slice %102 {offsets = [0, 128], sizes = [4, 128], strides = [1, 1]} : vector<4x512xf32> to vector<4x128xf32>
    %110 = arith.negf %109 : vector<4x128xf32>
    %111 = math.exp %110 : vector<4x128xf32>
    %cst_38 = arith.constant 1.000000e+00 : f32
    %112 = vector.broadcast %cst_38 : f32 to vector<4x128xf32>
    %113 = arith.addf %112, %111 : vector<4x128xf32>
    %114 = arith.divf %112, %113 : vector<4x128xf32>
    %115 = vector.extract_strided_slice %102 {offsets = [0, 256], sizes = [4, 128], strides = [1, 1]} : vector<4x512xf32> to vector<4x128xf32>
    %116 = math.tanh %115 : vector<4x128xf32>
    %117 = vector.extract_strided_slice %102 {offsets = [0, 384], sizes = [4, 128], strides = [1, 1]} : vector<4x512xf32> to vector<4x128xf32>
    %118 = arith.negf %117 : vector<4x128xf32>
    %119 = math.exp %118 : vector<4x128xf32>
    %cst_39 = arith.constant 1.000000e+00 : f32
    %120 = vector.broadcast %cst_39 : f32 to vector<4x128xf32>
    %121 = arith.addf %120, %119 : vector<4x128xf32>
    %122 = arith.divf %120, %121 : vector<4x128xf32>
    %123 = arith.mulf %114, %84 : vector<4x128xf32>
    %124 = arith.mulf %108, %116 : vector<4x128xf32>
    %125 = arith.addf %123, %124 : vector<4x128xf32>
    %126 = math.tanh %125 : vector<4x128xf32>
    %127 = arith.mulf %122, %126 : vector<4x128xf32>
    %128 = vector.extract_strided_slice %127 {offsets = [0, 0], sizes = [2, 128], strides = [1, 1]} : vector<4x128xf32> to vector<2x128xf32>
    %c8_40 = arith.constant 8 : index
    %c0_41 = arith.constant 0 : index
    %129 = vector.load %arg11[%c8_40, %c0_41] : memref<32x256xf32, #tpu.memory_space<vmem>>, vector<2x128xf32>
    tpu.vector_store %arg11[%c8_40, %c0_41], %128 {strides = array<i32>} : memref<32x256xf32, #tpu.memory_space<vmem>>, vector<2x128xf32>,
    %130 = vector.extract_strided_slice %127 {offsets = [0, 0], sizes = [2, 128], strides = [1, 1]} : vector<4x128xf32> to vector<2x128xf32>
    %c22 = arith.constant 22 : index
    %c0_42 = arith.constant 0 : index
    %131 = vector.load %arg11[%c22, %c0_42] : memref<32x256xf32, #tpu.memory_space<vmem>>, vector<2x128xf32>
    tpu.vector_store %arg11[%c22, %c0_42], %130 {strides = array<i32>} : memref<32x256xf32, #tpu.memory_space<vmem>>, vector<2x128xf32>,
    %132 = vector.extract_strided_slice %127 {offsets = [2, 0], sizes = [2, 128], strides = [1, 1]} : vector<4x128xf32> to vector<2x128xf32>
    %c20 = arith.constant 20 : index
    %c128_43 = arith.constant 128 : index
    %133 = vector.load %arg11[%c20, %c128_43] : memref<32x256xf32, #tpu.memory_space<vmem>>, vector<2x128xf32>
    tpu.vector_store %arg11[%c20, %c128_43], %132 {strides = array<i32>} : memref<32x256xf32, #tpu.memory_space<vmem>>, vector<2x128xf32>,
    %134 = vector.extract_strided_slice %127 {offsets = [2, 0], sizes = [2, 128], strides = [1, 1]} : vector<4x128xf32> to vector<2x128xf32>
    %c10 = arith.constant 10 : index
    %c128_44 = arith.constant 128 : index
    %135 = vector.load %arg11[%c10, %c128_44] : memref<32x256xf32, #tpu.memory_space<vmem>>, vector<2x128xf32>
    tpu.vector_store %arg11[%c10, %c128_44], %134 {strides = array<i32>} : memref<32x256xf32, #tpu.memory_space<vmem>>, vector<2x128xf32>,
    %c12 = arith.constant 12 : index
    %c0_45 = arith.constant 0 : index
    %136 = vector.load %arg10[%c12, %c0_45] : memref<32x1024xf32, #tpu.memory_space<vmem>>, vector<4x1024xf32>
    %137 = arith.truncf %127 : vector<4x128xf32> to vector<4x128xbf16>
    %c0_46 = arith.constant 0 : index
    %c0_47 = arith.constant 0 : index
    %138 = vector.load %arg2[%c0_46, %c0_47] : memref<128x1024xbf16, #tpu.memory_space<vmem>>, vector<128x1024xbf16>
    %cst_48 = arith.constant dense<0.000000e+00> : vector<4x1024xf32>
    %139 = tpu.matmul %137, %138, %cst_48 {dimension_numbers = #tpu.dot_dimension_numbers<[1], [0], [0], [1], [0, 0, 1, 1], [], []>} : vector<4x128xbf16>, vector<128x1024xbf16>, vector<4x1024xf32> -> vector<4x1024xf32>
    %140 = arith.addf %136, %139 : vector<4x1024xf32>
    %141 = vector.extract_strided_slice %140 {offsets = [0, 0], sizes = [4, 512], strides = [1, 1]} : vector<4x1024xf32> to vector<4x512xf32>
    %142 = vector.extract_strided_slice %140 {offsets = [0, 512], sizes = [4, 512], strides = [1, 1]} : vector<4x1024xf32> to vector<4x512xf32>
    %143 = arith.select %2, %141, %142 : vector<4x512xi1>, vector<4x512xf32>
    %144 = vector.extract_strided_slice %143 {offsets = [0, 0], sizes = [4, 128], strides = [1, 1]} : vector<4x512xf32> to vector<4x128xf32>
    %145 = arith.negf %144 : vector<4x128xf32>
    %146 = math.exp %145 : vector<4x128xf32>
    %cst_49 = arith.constant 1.000000e+00 : f32
    %147 = vector.broadcast %cst_49 : f32 to vector<4x128xf32>
    %148 = arith.addf %147, %146 : vector<4x128xf32>
    %149 = arith.divf %147, %148 : vector<4x128xf32>
    %150 = vector.extract_strided_slice %143 {offsets = [0, 128], sizes = [4, 128], strides = [1, 1]} : vector<4x512xf32> to vector<4x128xf32>
    %151 = arith.negf %150 : vector<4x128xf32>
    %152 = math.exp %151 : vector<4x128xf32>
    %cst_50 = arith.constant 1.000000e+00 : f32
    %153 = vector.broadcast %cst_50 : f32 to vector<4x128xf32>
    %154 = arith.addf %153, %152 : vector<4x128xf32>
    %155 = arith.divf %153, %154 : vector<4x128xf32>
    %156 = vector.extract_strided_slice %143 {offsets = [0, 256], sizes = [4, 128], strides = [1, 1]} : vector<4x512xf32> to vector<4x128xf32>
    %157 = math.tanh %156 : vector<4x128xf32>
    %158 = vector.extract_strided_slice %143 {offsets = [0, 384], sizes = [4, 128], strides = [1, 1]} : vector<4x512xf32> to vector<4x128xf32>
    %159 = arith.negf %158 : vector<4x128xf32>
    %160 = math.exp %159 : vector<4x128xf32>
    %cst_51 = arith.constant 1.000000e+00 : f32
    %161 = vector.broadcast %cst_51 : f32 to vector<4x128xf32>
    %162 = arith.addf %161, %160 : vector<4x128xf32>
    %163 = arith.divf %161, %162 : vector<4x128xf32>
    %164 = arith.mulf %155, %125 : vector<4x128xf32>
    %165 = arith.mulf %149, %157 : vector<4x128xf32>
    %166 = arith.addf %164, %165 : vector<4x128xf32>
    %167 = math.tanh %166 : vector<4x128xf32>
    %168 = arith.mulf %163, %167 : vector<4x128xf32>
    %169 = vector.extract_strided_slice %168 {offsets = [0, 0], sizes = [2, 128], strides = [1, 1]} : vector<4x128xf32> to vector<2x128xf32>
    %c12_52 = arith.constant 12 : index
    %c0_53 = arith.constant 0 : index
    %170 = vector.load %arg11[%c12_52, %c0_53] : memref<32x256xf32, #tpu.memory_space<vmem>>, vector<2x128xf32>
    tpu.vector_store %arg11[%c12_52, %c0_53], %169 {strides = array<i32>} : memref<32x256xf32, #tpu.memory_space<vmem>>, vector<2x128xf32>,
    %171 = vector.extract_strided_slice %168 {offsets = [0, 0], sizes = [2, 128], strides = [1, 1]} : vector<4x128xf32> to vector<2x128xf32>
    %c18 = arith.constant 18 : index
    %c0_54 = arith.constant 0 : index
    %172 = vector.load %arg11[%c18, %c0_54] : memref<32x256xf32, #tpu.memory_space<vmem>>, vector<2x128xf32>
    tpu.vector_store %arg11[%c18, %c0_54], %171 {strides = array<i32>} : memref<32x256xf32, #tpu.memory_space<vmem>>, vector<2x128xf32>,
    %173 = vector.extract_strided_slice %168 {offsets = [2, 0], sizes = [2, 128], strides = [1, 1]} : vector<4x128xf32> to vector<2x128xf32>
    %c16 = arith.constant 16 : index
    %c128_55 = arith.constant 128 : index
    %174 = vector.load %arg11[%c16, %c128_55] : memref<32x256xf32, #tpu.memory_space<vmem>>, vector<2x128xf32>
    tpu.vector_store %arg11[%c16, %c128_55], %173 {strides = array<i32>} : memref<32x256xf32, #tpu.memory_space<vmem>>, vector<2x128xf32>,
    %175 = vector.extract_strided_slice %168 {offsets = [2, 0], sizes = [2, 128], strides = [1, 1]} : vector<4x128xf32> to vector<2x128xf32>
    %c14 = arith.constant 14 : index
    %c128_56 = arith.constant 128 : index
    %176 = vector.load %arg11[%c14, %c128_56] : memref<32x256xf32, #tpu.memory_space<vmem>>, vector<2x128xf32>
    tpu.vector_store %arg11[%c14, %c128_56], %175 {strides = array<i32>} : memref<32x256xf32, #tpu.memory_space<vmem>>, vector<2x128xf32>,
    %c16_57 = arith.constant 16 : index
    %c0_58 = arith.constant 0 : index
    %177 = vector.load %arg10[%c16_57, %c0_58] : memref<32x1024xf32, #tpu.memory_space<vmem>>, vector<4x1024xf32>
    %178 = arith.truncf %168 : vector<4x128xf32> to vector<4x128xbf16>
    %c0_59 = arith.constant 0 : index
    %c0_60 = arith.constant 0 : index
    %179 = vector.load %arg2[%c0_59, %c0_60] : memref<128x1024xbf16, #tpu.memory_space<vmem>>, vector<128x1024xbf16>
    %cst_61 = arith.constant dense<0.000000e+00> : vector<4x1024xf32>
    %180 = tpu.matmul %178, %179, %cst_61 {dimension_numbers = #tpu.dot_dimension_numbers<[1], [0], [0], [1], [0, 0, 1, 1], [], []>} : vector<4x128xbf16>, vector<128x1024xbf16>, vector<4x1024xf32> -> vector<4x1024xf32>
    %181 = arith.addf %177, %180 : vector<4x1024xf32>
    %182 = vector.extract_strided_slice %181 {offsets = [0, 0], sizes = [4, 512], strides = [1, 1]} : vector<4x1024xf32> to vector<4x512xf32>
    %183 = vector.extract_strided_slice %181 {offsets = [0, 512], sizes = [4, 512], strides = [1, 1]} : vector<4x1024xf32> to vector<4x512xf32>
    %184 = arith.select %2, %182, %183 : vector<4x512xi1>, vector<4x512xf32>
    %185 = vector.extract_strided_slice %184 {offsets = [0, 0], sizes = [4, 128], strides = [1, 1]} : vector<4x512xf32> to vector<4x128xf32>
    %186 = arith.negf %185 : vector<4x128xf32>
    %187 = math.exp %186 : vector<4x128xf32>
    %cst_62 = arith.constant 1.000000e+00 : f32
    %188 = vector.broadcast %cst_62 : f32 to vector<4x128xf32>
    %189 = arith.addf %188, %187 : vector<4x128xf32>
    %190 = arith.divf %188, %189 : vector<4x128xf32>
    %191 = vector.extract_strided_slice %184 {offsets = [0, 128], sizes = [4, 128], strides = [1, 1]} : vector<4x512xf32> to vector<4x128xf32>
    %192 = arith.negf %191 : vector<4x128xf32>
    %193 = math.exp %192 : vector<4x128xf32>
    %cst_63 = arith.constant 1.000000e+00 : f32
    %194 = vector.broadcast %cst_63 : f32 to vector<4x128xf32>
    %195 = arith.addf %194, %193 : vector<4x128xf32>
    %196 = arith.divf %194, %195 : vector<4x128xf32>
    %197 = vector.extract_strided_slice %184 {offsets = [0, 256], sizes = [4, 128], strides = [1, 1]} : vector<4x512xf32> to vector<4x128xf32>
    %198 = math.tanh %197 : vector<4x128xf32>
    %199 = vector.extract_strided_slice %184 {offsets = [0, 384], sizes = [4, 128], strides = [1, 1]} : vector<4x512xf32> to vector<4x128xf32>
    %200 = arith.negf %199 : vector<4x128xf32>
    %201 = math.exp %200 : vector<4x128xf32>
    %cst_64 = arith.constant 1.000000e+00 : f32
    %202 = vector.broadcast %cst_64 : f32 to vector<4x128xf32>
    %203 = arith.addf %202, %201 : vector<4x128xf32>
    %204 = arith.divf %202, %203 : vector<4x128xf32>
    %205 = arith.mulf %196, %166 : vector<4x128xf32>
    %206 = arith.mulf %190, %198 : vector<4x128xf32>
    %207 = arith.addf %205, %206 : vector<4x128xf32>
    %208 = math.tanh %207 : vector<4x128xf32>
    %209 = arith.mulf %204, %208 : vector<4x128xf32>
    %210 = vector.extract_strided_slice %209 {offsets = [0, 0], sizes = [2, 128], strides = [1, 1]} : vector<4x128xf32> to vector<2x128xf32>
    %c16_65 = arith.constant 16 : index
    %c0_66 = arith.constant 0 : index
    %211 = vector.load %arg11[%c16_65, %c0_66] : memref<32x256xf32, #tpu.memory_space<vmem>>, vector<2x128xf32>
    tpu.vector_store %arg11[%c16_65, %c0_66], %210 {strides = array<i32>} : memref<32x256xf32, #tpu.memory_space<vmem>>, vector<2x128xf32>,
    %212 = vector.extract_strided_slice %209 {offsets = [0, 0], sizes = [2, 128], strides = [1, 1]} : vector<4x128xf32> to vector<2x128xf32>
    %c14_67 = arith.constant 14 : index
    %c0_68 = arith.constant 0 : index
    %213 = vector.load %arg11[%c14_67, %c0_68] : memref<32x256xf32, #tpu.memory_space<vmem>>, vector<2x128xf32>
    tpu.vector_store %arg11[%c14_67, %c0_68], %212 {strides = array<i32>} : memref<32x256xf32, #tpu.memory_space<vmem>>, vector<2x128xf32>,
    %214 = vector.extract_strided_slice %209 {offsets = [2, 0], sizes = [2, 128], strides = [1, 1]} : vector<4x128xf32> to vector<2x128xf32>
    %c12_69 = arith.constant 12 : index
    %c128_70 = arith.constant 128 : index
    %215 = vector.load %arg11[%c12_69, %c128_70] : memref<32x256xf32, #tpu.memory_space<vmem>>, vector<2x128xf32>
    tpu.vector_store %arg11[%c12_69, %c128_70], %214 {strides = array<i32>} : memref<32x256xf32, #tpu.memory_space<vmem>>, vector<2x128xf32>,
    %216 = vector.extract_strided_slice %209 {offsets = [2, 0], sizes = [2, 128], strides = [1, 1]} : vector<4x128xf32> to vector<2x128xf32>
    %c18_71 = arith.constant 18 : index
    %c128_72 = arith.constant 128 : index
    %217 = vector.load %arg11[%c18_71, %c128_72] : memref<32x256xf32, #tpu.memory_space<vmem>>, vector<2x128xf32>
    tpu.vector_store %arg11[%c18_71, %c128_72], %216 {strides = array<i32>} : memref<32x256xf32, #tpu.memory_space<vmem>>, vector<2x128xf32>,
    %c20_73 = arith.constant 20 : index
    %c0_74 = arith.constant 0 : index
    %218 = vector.load %arg10[%c20_73, %c0_74] : memref<32x1024xf32, #tpu.memory_space<vmem>>, vector<4x1024xf32>
    %219 = arith.truncf %209 : vector<4x128xf32> to vector<4x128xbf16>
    %c0_75 = arith.constant 0 : index
    %c0_76 = arith.constant 0 : index
    %220 = vector.load %arg2[%c0_75, %c0_76] : memref<128x1024xbf16, #tpu.memory_space<vmem>>, vector<128x1024xbf16>
    %cst_77 = arith.constant dense<0.000000e+00> : vector<4x1024xf32>
    %221 = tpu.matmul %219, %220, %cst_77 {dimension_numbers = #tpu.dot_dimension_numbers<[1], [0], [0], [1], [0, 0, 1, 1], [], []>} : vector<4x128xbf16>, vector<128x1024xbf16>, vector<4x1024xf32> -> vector<4x1024xf32>
    %222 = arith.addf %218, %221 : vector<4x1024xf32>
    %223 = vector.extract_strided_slice %222 {offsets = [0, 0], sizes = [4, 512], strides = [1, 1]} : vector<4x1024xf32> to vector<4x512xf32>
    %224 = vector.extract_strided_slice %222 {offsets = [0, 512], sizes = [4, 512], strides = [1, 1]} : vector<4x1024xf32> to vector<4x512xf32>
    %225 = arith.select %2, %223, %224 : vector<4x512xi1>, vector<4x512xf32>
    %226 = vector.extract_strided_slice %225 {offsets = [0, 0], sizes = [4, 128], strides = [1, 1]} : vector<4x512xf32> to vector<4x128xf32>
    %227 = arith.negf %226 : vector<4x128xf32>
    %228 = math.exp %227 : vector<4x128xf32>
    %cst_78 = arith.constant 1.000000e+00 : f32
    %229 = vector.broadcast %cst_78 : f32 to vector<4x128xf32>
    %230 = arith.addf %229, %228 : vector<4x128xf32>
    %231 = arith.divf %229, %230 : vector<4x128xf32>
    %232 = vector.extract_strided_slice %225 {offsets = [0, 128], sizes = [4, 128], strides = [1, 1]} : vector<4x512xf32> to vector<4x128xf32>
    %233 = arith.negf %232 : vector<4x128xf32>
    %234 = math.exp %233 : vector<4x128xf32>
    %cst_79 = arith.constant 1.000000e+00 : f32
    %235 = vector.broadcast %cst_79 : f32 to vector<4x128xf32>
    %236 = arith.addf %235, %234 : vector<4x128xf32>
    %237 = arith.divf %235, %236 : vector<4x128xf32>
    %238 = vector.extract_strided_slice %225 {offsets = [0, 256], sizes = [4, 128], strides = [1, 1]} : vector<4x512xf32> to vector<4x128xf32>
    %239 = math.tanh %238 : vector<4x128xf32>
    %240 = vector.extract_strided_slice %225 {offsets = [0, 384], sizes = [4, 128], strides = [1, 1]} : vector<4x512xf32> to vector<4x128xf32>
    %241 = arith.negf %240 : vector<4x128xf32>
    %242 = math.exp %241 : vector<4x128xf32>
    %cst_80 = arith.constant 1.000000e+00 : f32
    %243 = vector.broadcast %cst_80 : f32 to vector<4x128xf32>
    %244 = arith.addf %243, %242 : vector<4x128xf32>
    %245 = arith.divf %243, %244 : vector<4x128xf32>
    %246 = arith.mulf %237, %207 : vector<4x128xf32>
    %247 = arith.mulf %231, %239 : vector<4x128xf32>
    %248 = arith.addf %246, %247 : vector<4x128xf32>
    %249 = math.tanh %248 : vector<4x128xf32>
    %250 = arith.mulf %245, %249 : vector<4x128xf32>
    %251 = vector.extract_strided_slice %250 {offsets = [0, 0], sizes = [2, 128], strides = [1, 1]} : vector<4x128xf32> to vector<2x128xf32>
    %c20_81 = arith.constant 20 : index
    %c0_82 = arith.constant 0 : index
    %252 = vector.load %arg11[%c20_81, %c0_82] : memref<32x256xf32, #tpu.memory_space<vmem>>, vector<2x128xf32>
    tpu.vector_store %arg11[%c20_81, %c0_82], %251 {strides = array<i32>} : memref<32x256xf32, #tpu.memory_space<vmem>>, vector<2x128xf32>,
    %253 = vector.extract_strided_slice %250 {offsets = [0, 0], sizes = [2, 128], strides = [1, 1]} : vector<4x128xf32> to vector<2x128xf32>
    %c10_83 = arith.constant 10 : index
    %c0_84 = arith.constant 0 : index
    %254 = vector.load %arg11[%c10_83, %c0_84] : memref<32x256xf32, #tpu.memory_space<vmem>>, vector<2x128xf32>
    tpu.vector_store %arg11[%c10_83, %c0_84], %253 {strides = array<i32>} : memref<32x256xf32, #tpu.memory_space<vmem>>, vector<2x128xf32>,
    %255 = vector.extract_strided_slice %250 {offsets = [2, 0], sizes = [2, 128], strides = [1, 1]} : vector<4x128xf32> to vector<2x128xf32>
    %c8_85 = arith.constant 8 : index
    %c128_86 = arith.constant 128 : index
    %256 = vector.load %arg11[%c8_85, %c128_86] : memref<32x256xf32, #tpu.memory_space<vmem>>, vector<2x128xf32>
    tpu.vector_store %arg11[%c8_85, %c128_86], %255 {strides = array<i32>} : memref<32x256xf32, #tpu.memory_space<vmem>>, vector<2x128xf32>,
    %257 = vector.extract_strided_slice %250 {offsets = [2, 0], sizes = [2, 128], strides = [1, 1]} : vector<4x128xf32> to vector<2x128xf32>
    %c22_87 = arith.constant 22 : index
    %c128_88 = arith.constant 128 : index
    %258 = vector.load %arg11[%c22_87, %c128_88] : memref<32x256xf32, #tpu.memory_space<vmem>>, vector<2x128xf32>
    tpu.vector_store %arg11[%c22_87, %c128_88], %257 {strides = array<i32>} : memref<32x256xf32, #tpu.memory_space<vmem>>, vector<2x128xf32>,
    %c24_89 = arith.constant 24 : index
    %c0_90 = arith.constant 0 : index
    %259 = vector.load %arg10[%c24_89, %c0_90] : memref<32x1024xf32, #tpu.memory_space<vmem>>, vector<4x1024xf32>
    %260 = arith.truncf %250 : vector<4x128xf32> to vector<4x128xbf16>
    %c0_91 = arith.constant 0 : index
    %c0_92 = arith.constant 0 : index
    %261 = vector.load %arg2[%c0_91, %c0_92] : memref<128x1024xbf16, #tpu.memory_space<vmem>>, vector<128x1024xbf16>
    %cst_93 = arith.constant dense<0.000000e+00> : vector<4x1024xf32>
    %262 = tpu.matmul %260, %261, %cst_93 {dimension_numbers = #tpu.dot_dimension_numbers<[1], [0], [0], [1], [0, 0, 1, 1], [], []>} : vector<4x128xbf16>, vector<128x1024xbf16>, vector<4x1024xf32> -> vector<4x1024xf32>
    %263 = arith.addf %259, %262 : vector<4x1024xf32>
    %264 = vector.extract_strided_slice %263 {offsets = [0, 0], sizes = [4, 512], strides = [1, 1]} : vector<4x1024xf32> to vector<4x512xf32>
    %265 = vector.extract_strided_slice %263 {offsets = [0, 512], sizes = [4, 512], strides = [1, 1]} : vector<4x1024xf32> to vector<4x512xf32>
    %266 = arith.select %2, %264, %265 : vector<4x512xi1>, vector<4x512xf32>
    %267 = vector.extract_strided_slice %266 {offsets = [0, 0], sizes = [4, 128], strides = [1, 1]} : vector<4x512xf32> to vector<4x128xf32>
    %268 = arith.negf %267 : vector<4x128xf32>
    %269 = math.exp %268 : vector<4x128xf32>
    %cst_94 = arith.constant 1.000000e+00 : f32
    %270 = vector.broadcast %cst_94 : f32 to vector<4x128xf32>
    %271 = arith.addf %270, %269 : vector<4x128xf32>
    %272 = arith.divf %270, %271 : vector<4x128xf32>
    %273 = vector.extract_strided_slice %266 {offsets = [0, 128], sizes = [4, 128], strides = [1, 1]} : vector<4x512xf32> to vector<4x128xf32>
    %274 = arith.negf %273 : vector<4x128xf32>
    %275 = math.exp %274 : vector<4x128xf32>
    %cst_95 = arith.constant 1.000000e+00 : f32
    %276 = vector.broadcast %cst_95 : f32 to vector<4x128xf32>
    %277 = arith.addf %276, %275 : vector<4x128xf32>
    %278 = arith.divf %276, %277 : vector<4x128xf32>
    %279 = vector.extract_strided_slice %266 {offsets = [0, 256], sizes = [4, 128], strides = [1, 1]} : vector<4x512xf32> to vector<4x128xf32>
    %280 = math.tanh %279 : vector<4x128xf32>
    %281 = vector.extract_strided_slice %266 {offsets = [0, 384], sizes = [4, 128], strides = [1, 1]} : vector<4x512xf32> to vector<4x128xf32>
    %282 = arith.negf %281 : vector<4x128xf32>
    %283 = math.exp %282 : vector<4x128xf32>
    %cst_96 = arith.constant 1.000000e+00 : f32
    %284 = vector.broadcast %cst_96 : f32 to vector<4x128xf32>
    %285 = arith.addf %284, %283 : vector<4x128xf32>
    %286 = arith.divf %284, %285 : vector<4x128xf32>
    %287 = arith.mulf %278, %248 : vector<4x128xf32>
    %288 = arith.mulf %272, %280 : vector<4x128xf32>
    %289 = arith.addf %287, %288 : vector<4x128xf32>
    %290 = math.tanh %289 : vector<4x128xf32>
    %291 = arith.mulf %286, %290 : vector<4x128xf32>
    %292 = vector.extract_strided_slice %291 {offsets = [0, 0], sizes = [2, 128], strides = [1, 1]} : vector<4x128xf32> to vector<2x128xf32>
    %c24_97 = arith.constant 24 : index
    %c0_98 = arith.constant 0 : index
    %293 = vector.load %arg11[%c24_97, %c0_98] : memref<32x256xf32, #tpu.memory_space<vmem>>, vector<2x128xf32>
    tpu.vector_store %arg11[%c24_97, %c0_98], %292 {strides = array<i32>} : memref<32x256xf32, #tpu.memory_space<vmem>>, vector<2x128xf32>,
    %294 = vector.extract_strided_slice %291 {offsets = [0, 0], sizes = [2, 128], strides = [1, 1]} : vector<4x128xf32> to vector<2x128xf32>
    %c6_99 = arith.constant 6 : index
    %c0_100 = arith.constant 0 : index
    %295 = vector.load %arg11[%c6_99, %c0_100] : memref<32x256xf32, #tpu.memory_space<vmem>>, vector<2x128xf32>
    tpu.vector_store %arg11[%c6_99, %c0_100], %294 {strides = array<i32>} : memref<32x256xf32, #tpu.memory_space<vmem>>, vector<2x128xf32>,
    %296 = vector.extract_strided_slice %291 {offsets = [2, 0], sizes = [2, 128], strides = [1, 1]} : vector<4x128xf32> to vector<2x128xf32>
    %c4_101 = arith.constant 4 : index
    %c128_102 = arith.constant 128 : index
    %297 = vector.load %arg11[%c4_101, %c128_102] : memref<32x256xf32, #tpu.memory_space<vmem>>, vector<2x128xf32>
    tpu.vector_store %arg11[%c4_101, %c128_102], %296 {strides = array<i32>} : memref<32x256xf32, #tpu.memory_space<vmem>>, vector<2x128xf32>,
    %298 = vector.extract_strided_slice %291 {offsets = [2, 0], sizes = [2, 128], strides = [1, 1]} : vector<4x128xf32> to vector<2x128xf32>
    %c26_103 = arith.constant 26 : index
    %c128_104 = arith.constant 128 : index
    %299 = vector.load %arg11[%c26_103, %c128_104] : memref<32x256xf32, #tpu.memory_space<vmem>>, vector<2x128xf32>
    tpu.vector_store %arg11[%c26_103, %c128_104], %298 {strides = array<i32>} : memref<32x256xf32, #tpu.memory_space<vmem>>, vector<2x128xf32>,
    %c28_105 = arith.constant 28 : index
    %c0_106 = arith.constant 0 : index
    %300 = vector.load %arg10[%c28_105, %c0_106] : memref<32x1024xf32, #tpu.memory_space<vmem>>, vector<4x1024xf32>
    %301 = arith.truncf %291 : vector<4x128xf32> to vector<4x128xbf16>
    %c0_107 = arith.constant 0 : index
    %c0_108 = arith.constant 0 : index
    %302 = vector.load %arg2[%c0_107, %c0_108] : memref<128x1024xbf16, #tpu.memory_space<vmem>>, vector<128x1024xbf16>
    %cst_109 = arith.constant dense<0.000000e+00> : vector<4x1024xf32>
    %303 = tpu.matmul %301, %302, %cst_109 {dimension_numbers = #tpu.dot_dimension_numbers<[1], [0], [0], [1], [0, 0, 1, 1], [], []>} : vector<4x128xbf16>, vector<128x1024xbf16>, vector<4x1024xf32> -> vector<4x1024xf32>
    %304 = arith.addf %300, %303 : vector<4x1024xf32>
    %305 = vector.extract_strided_slice %304 {offsets = [0, 0], sizes = [4, 512], strides = [1, 1]} : vector<4x1024xf32> to vector<4x512xf32>
    %306 = vector.extract_strided_slice %304 {offsets = [0, 512], sizes = [4, 512], strides = [1, 1]} : vector<4x1024xf32> to vector<4x512xf32>
    %307 = arith.select %2, %305, %306 : vector<4x512xi1>, vector<4x512xf32>
    %308 = vector.extract_strided_slice %307 {offsets = [0, 0], sizes = [4, 128], strides = [1, 1]} : vector<4x512xf32> to vector<4x128xf32>
    %309 = arith.negf %308 : vector<4x128xf32>
    %310 = math.exp %309 : vector<4x128xf32>
    %cst_110 = arith.constant 1.000000e+00 : f32
    %311 = vector.broadcast %cst_110 : f32 to vector<4x128xf32>
    %312 = arith.addf %311, %310 : vector<4x128xf32>
    %313 = arith.divf %311, %312 : vector<4x128xf32>
    %314 = vector.extract_strided_slice %307 {offsets = [0, 128], sizes = [4, 128], strides = [1, 1]} : vector<4x512xf32> to vector<4x128xf32>
    %315 = arith.negf %314 : vector<4x128xf32>
    %316 = math.exp %315 : vector<4x128xf32>
    %cst_111 = arith.constant 1.000000e+00 : f32
    %317 = vector.broadcast %cst_111 : f32 to vector<4x128xf32>
    %318 = arith.addf %317, %316 : vector<4x128xf32>
    %319 = arith.divf %317, %318 : vector<4x128xf32>
    %320 = vector.extract_strided_slice %307 {offsets = [0, 256], sizes = [4, 128], strides = [1, 1]} : vector<4x512xf32> to vector<4x128xf32>
    %321 = math.tanh %320 : vector<4x128xf32>
    %322 = vector.extract_strided_slice %307 {offsets = [0, 384], sizes = [4, 128], strides = [1, 1]} : vector<4x512xf32> to vector<4x128xf32>
    %323 = arith.negf %322 : vector<4x128xf32>
    %324 = math.exp %323 : vector<4x128xf32>
    %cst_112 = arith.constant 1.000000e+00 : f32
    %325 = vector.broadcast %cst_112 : f32 to vector<4x128xf32>
    %326 = arith.addf %325, %324 : vector<4x128xf32>
    %327 = arith.divf %325, %326 : vector<4x128xf32>
    %328 = arith.mulf %319, %289 : vector<4x128xf32>
    %329 = arith.mulf %313, %321 : vector<4x128xf32>
    %330 = arith.addf %328, %329 : vector<4x128xf32>
    %331 = math.tanh %330 : vector<4x128xf32>
    %332 = arith.mulf %327, %331 : vector<4x128xf32>
    %333 = vector.extract_strided_slice %332 {offsets = [0, 0], sizes = [2, 128], strides = [1, 1]} : vector<4x128xf32> to vector<2x128xf32>
    %c28_113 = arith.constant 28 : index
    %c0_114 = arith.constant 0 : index
    %334 = vector.load %arg11[%c28_113, %c0_114] : memref<32x256xf32, #tpu.memory_space<vmem>>, vector<2x128xf32>
    tpu.vector_store %arg11[%c28_113, %c0_114], %333 {strides = array<i32>} : memref<32x256xf32, #tpu.memory_space<vmem>>, vector<2x128xf32>,
    %335 = vector.extract_strided_slice %332 {offsets = [0, 0], sizes = [2, 128], strides = [1, 1]} : vector<4x128xf32> to vector<2x128xf32>
    %c2_115 = arith.constant 2 : index
    %c0_116 = arith.constant 0 : index
    %336 = vector.load %arg11[%c2_115, %c0_116] : memref<32x256xf32, #tpu.memory_space<vmem>>, vector<2x128xf32>
    tpu.vector_store %arg11[%c2_115, %c0_116], %335 {strides = array<i32>} : memref<32x256xf32, #tpu.memory_space<vmem>>, vector<2x128xf32>,
    %337 = vector.extract_strided_slice %332 {offsets = [2, 0], sizes = [2, 128], strides = [1, 1]} : vector<4x128xf32> to vector<2x128xf32>
    %c0_117 = arith.constant 0 : index
    %c128_118 = arith.constant 128 : index
    %338 = vector.load %arg11[%c0_117, %c128_118] : memref<32x256xf32, #tpu.memory_space<vmem>>, vector<2x128xf32>
    tpu.vector_store %arg11[%c0_117, %c128_118], %337 {strides = array<i32>} : memref<32x256xf32, #tpu.memory_space<vmem>>, vector<2x128xf32>,
    %339 = vector.extract_strided_slice %332 {offsets = [2, 0], sizes = [2, 128], strides = [1, 1]} : vector<4x128xf32> to vector<2x128xf32>
    %c30_119 = arith.constant 30 : index
    %c128_120 = arith.constant 128 : index
    %340 = vector.load %arg11[%c30_119, %c128_120] : memref<32x256xf32, #tpu.memory_space<vmem>>, vector<2x128xf32>
    tpu.vector_store %arg11[%c30_119, %c128_120], %339 {strides = array<i32>} : memref<32x256xf32, #tpu.memory_space<vmem>>, vector<2x128xf32>,
    %c0_121 = arith.constant 0 : index
    %c0_122 = arith.constant 0 : index
    %341 = vector.load %arg11[%c0_121, %c0_122] : memref<32x256xf32, #tpu.memory_space<vmem>>, vector<32x256xf32>
    %342 = arith.truncf %341 : vector<32x256xf32> to vector<32x256xbf16>
    %c0_123 = arith.constant 0 : index
    %c0_124 = arith.constant 0 : index
    %343 = vector.load %arg4[%c0_123, %c0_124] : memref<256x1024xbf16, #tpu.memory_space<vmem>>, vector<256x1024xbf16>
    %cst_125 = arith.constant dense<0.000000e+00> : vector<32x1024xf32>
    %344 = tpu.matmul %342, %343, %cst_125 {dimension_numbers = #tpu.dot_dimension_numbers<[1], [0], [0], [1], [0, 0, 1, 1], [], []>} : vector<32x256xbf16>, vector<256x1024xbf16>, vector<32x1024xf32> -> vector<32x1024xf32>
    %c0_126 = arith.constant 0 : index
    %c0_127 = arith.constant 0 : index
    %345 = vector.load %arg6[%c0_126, %c0_127] : memref<1x1024xf32, #tpu.memory_space<vmem>>, vector<1x1024xf32>
    %346 = vector.broadcast %345 : vector<1x1024xf32> to vector<32x1024xf32>
    %347 = arith.addf %344, %346 : vector<32x1024xf32>
    %c0_128 = arith.constant 0 : index
    %c0_129 = arith.constant 0 : index
    %348 = vector.load %arg10[%c0_128, %c0_129] : memref<32x1024xf32, #tpu.memory_space<vmem>>, vector<32x1024xf32>
    tpu.vector_store %arg10[%c0_128, %c0_129], %347 {strides = array<i32>} : memref<32x1024xf32, #tpu.memory_space<vmem>>, vector<32x1024xf32>,
    %cst_130 = arith.constant 0.000000e+00 : f32
    %349 = vector.broadcast %cst_130 : f32 to vector<4x128xf32>
    %cst_131 = arith.constant 0.000000e+00 : f32
    %350 = vector.broadcast %cst_131 : f32 to vector<4x128xf32>
    %c0_132 = arith.constant 0 : index
    %c0_133 = arith.constant 0 : index
    %351 = vector.load %arg10[%c0_132, %c0_133] : memref<32x1024xf32, #tpu.memory_space<vmem>>, vector<4x1024xf32>
    %352 = arith.truncf %349 : vector<4x128xf32> to vector<4x128xbf16>
    %c0_134 = arith.constant 0 : index
    %c0_135 = arith.constant 0 : index
    %353 = vector.load %arg5[%c0_134, %c0_135] : memref<128x1024xbf16, #tpu.memory_space<vmem>>, vector<128x1024xbf16>
    %cst_136 = arith.constant dense<0.000000e+00> : vector<4x1024xf32>
    %354 = tpu.matmul %352, %353, %cst_136 {dimension_numbers = #tpu.dot_dimension_numbers<[1], [0], [0], [1], [0, 0, 1, 1], [], []>} : vector<4x128xbf16>, vector<128x1024xbf16>, vector<4x1024xf32> -> vector<4x1024xf32>
    %355 = arith.addf %351, %354 : vector<4x1024xf32>
    %356 = vector.extract_strided_slice %355 {offsets = [0, 0], sizes = [4, 512], strides = [1, 1]} : vector<4x1024xf32> to vector<4x512xf32>
    %357 = vector.extract_strided_slice %355 {offsets = [0, 512], sizes = [4, 512], strides = [1, 1]} : vector<4x1024xf32> to vector<4x512xf32>
    %358 = arith.select %2, %356, %357 : vector<4x512xi1>, vector<4x512xf32>
    %359 = vector.extract_strided_slice %358 {offsets = [0, 0], sizes = [4, 128], strides = [1, 1]} : vector<4x512xf32> to vector<4x128xf32>
    %360 = arith.negf %359 : vector<4x128xf32>
    %361 = math.exp %360 : vector<4x128xf32>
    %cst_137 = arith.constant 1.000000e+00 : f32
    %362 = vector.broadcast %cst_137 : f32 to vector<4x128xf32>
    %363 = arith.addf %362, %361 : vector<4x128xf32>
    %364 = arith.divf %362, %363 : vector<4x128xf32>
    %365 = vector.extract_strided_slice %358 {offsets = [0, 128], sizes = [4, 128], strides = [1, 1]} : vector<4x512xf32> to vector<4x128xf32>
    %366 = arith.negf %365 : vector<4x128xf32>
    %367 = math.exp %366 : vector<4x128xf32>
    %cst_138 = arith.constant 1.000000e+00 : f32
    %368 = vector.broadcast %cst_138 : f32 to vector<4x128xf32>
    %369 = arith.addf %368, %367 : vector<4x128xf32>
    %370 = arith.divf %368, %369 : vector<4x128xf32>
    %371 = vector.extract_strided_slice %358 {offsets = [0, 256], sizes = [4, 128], strides = [1, 1]} : vector<4x512xf32> to vector<4x128xf32>
    %372 = math.tanh %371 : vector<4x128xf32>
    %373 = vector.extract_strided_slice %358 {offsets = [0, 384], sizes = [4, 128], strides = [1, 1]} : vector<4x512xf32> to vector<4x128xf32>
    %374 = arith.negf %373 : vector<4x128xf32>
    %375 = math.exp %374 : vector<4x128xf32>
    %cst_139 = arith.constant 1.000000e+00 : f32
    %376 = vector.broadcast %cst_139 : f32 to vector<4x128xf32>
    %377 = arith.addf %376, %375 : vector<4x128xf32>
    %378 = arith.divf %376, %377 : vector<4x128xf32>
    %379 = arith.mulf %370, %350 : vector<4x128xf32>
    %380 = arith.mulf %364, %372 : vector<4x128xf32>
    %381 = arith.addf %379, %380 : vector<4x128xf32>
    %382 = math.tanh %381 : vector<4x128xf32>
    %383 = arith.mulf %378, %382 : vector<4x128xf32>
    %c4_140 = arith.constant 4 : index
    %c0_141 = arith.constant 0 : index
    %384 = vector.load %arg10[%c4_140, %c0_141] : memref<32x1024xf32, #tpu.memory_space<vmem>>, vector<4x1024xf32>
    %385 = arith.truncf %383 : vector<4x128xf32> to vector<4x128xbf16>
    %c0_142 = arith.constant 0 : index
    %c0_143 = arith.constant 0 : index
    %386 = vector.load %arg5[%c0_142, %c0_143] : memref<128x1024xbf16, #tpu.memory_space<vmem>>, vector<128x1024xbf16>
    %cst_144 = arith.constant dense<0.000000e+00> : vector<4x1024xf32>
    %387 = tpu.matmul %385, %386, %cst_144 {dimension_numbers = #tpu.dot_dimension_numbers<[1], [0], [0], [1], [0, 0, 1, 1], [], []>} : vector<4x128xbf16>, vector<128x1024xbf16>, vector<4x1024xf32> -> vector<4x1024xf32>
    %388 = arith.addf %384, %387 : vector<4x1024xf32>
    %389 = vector.extract_strided_slice %388 {offsets = [0, 0], sizes = [4, 512], strides = [1, 1]} : vector<4x1024xf32> to vector<4x512xf32>
    %390 = vector.extract_strided_slice %388 {offsets = [0, 512], sizes = [4, 512], strides = [1, 1]} : vector<4x1024xf32> to vector<4x512xf32>
    %391 = arith.select %2, %389, %390 : vector<4x512xi1>, vector<4x512xf32>
    %392 = vector.extract_strided_slice %391 {offsets = [0, 0], sizes = [4, 128], strides = [1, 1]} : vector<4x512xf32> to vector<4x128xf32>
    %393 = arith.negf %392 : vector<4x128xf32>
    %394 = math.exp %393 : vector<4x128xf32>
    %cst_145 = arith.constant 1.000000e+00 : f32
    %395 = vector.broadcast %cst_145 : f32 to vector<4x128xf32>
    %396 = arith.addf %395, %394 : vector<4x128xf32>
    %397 = arith.divf %395, %396 : vector<4x128xf32>
    %398 = vector.extract_strided_slice %391 {offsets = [0, 128], sizes = [4, 128], strides = [1, 1]} : vector<4x512xf32> to vector<4x128xf32>
    %399 = arith.negf %398 : vector<4x128xf32>
    %400 = math.exp %399 : vector<4x128xf32>
    %cst_146 = arith.constant 1.000000e+00 : f32
    %401 = vector.broadcast %cst_146 : f32 to vector<4x128xf32>
    %402 = arith.addf %401, %400 : vector<4x128xf32>
    %403 = arith.divf %401, %402 : vector<4x128xf32>
    %404 = vector.extract_strided_slice %391 {offsets = [0, 256], sizes = [4, 128], strides = [1, 1]} : vector<4x512xf32> to vector<4x128xf32>
    %405 = math.tanh %404 : vector<4x128xf32>
    %406 = vector.extract_strided_slice %391 {offsets = [0, 384], sizes = [4, 128], strides = [1, 1]} : vector<4x512xf32> to vector<4x128xf32>
    %407 = arith.negf %406 : vector<4x128xf32>
    %408 = math.exp %407 : vector<4x128xf32>
    %cst_147 = arith.constant 1.000000e+00 : f32
    %409 = vector.broadcast %cst_147 : f32 to vector<4x128xf32>
    %410 = arith.addf %409, %408 : vector<4x128xf32>
    %411 = arith.divf %409, %410 : vector<4x128xf32>
    %412 = arith.mulf %403, %381 : vector<4x128xf32>
    %413 = arith.mulf %397, %405 : vector<4x128xf32>
    %414 = arith.addf %412, %413 : vector<4x128xf32>
    %415 = math.tanh %414 : vector<4x128xf32>
    %416 = arith.mulf %411, %415 : vector<4x128xf32>
    %c8_148 = arith.constant 8 : index
    %c0_149 = arith.constant 0 : index
    %417 = vector.load %arg10[%c8_148, %c0_149] : memref<32x1024xf32, #tpu.memory_space<vmem>>, vector<4x1024xf32>
    %418 = arith.truncf %416 : vector<4x128xf32> to vector<4x128xbf16>
    %c0_150 = arith.constant 0 : index
    %c0_151 = arith.constant 0 : index
    %419 = vector.load %arg5[%c0_150, %c0_151] : memref<128x1024xbf16, #tpu.memory_space<vmem>>, vector<128x1024xbf16>
    %cst_152 = arith.constant dense<0.000000e+00> : vector<4x1024xf32>
    %420 = tpu.matmul %418, %419, %cst_152 {dimension_numbers = #tpu.dot_dimension_numbers<[1], [0], [0], [1], [0, 0, 1, 1], [], []>} : vector<4x128xbf16>, vector<128x1024xbf16>, vector<4x1024xf32> -> vector<4x1024xf32>
    %421 = arith.addf %417, %420 : vector<4x1024xf32>
    %422 = vector.extract_strided_slice %421 {offsets = [0, 0], sizes = [4, 512], strides = [1, 1]} : vector<4x1024xf32> to vector<4x512xf32>
    %423 = vector.extract_strided_slice %421 {offsets = [0, 512], sizes = [4, 512], strides = [1, 1]} : vector<4x1024xf32> to vector<4x512xf32>
    %424 = arith.select %2, %422, %423 : vector<4x512xi1>, vector<4x512xf32>
    %425 = vector.extract_strided_slice %424 {offsets = [0, 0], sizes = [4, 128], strides = [1, 1]} : vector<4x512xf32> to vector<4x128xf32>
    %426 = arith.negf %425 : vector<4x128xf32>
    %427 = math.exp %426 : vector<4x128xf32>
    %cst_153 = arith.constant 1.000000e+00 : f32
    %428 = vector.broadcast %cst_153 : f32 to vector<4x128xf32>
    %429 = arith.addf %428, %427 : vector<4x128xf32>
    %430 = arith.divf %428, %429 : vector<4x128xf32>
    %431 = vector.extract_strided_slice %424 {offsets = [0, 128], sizes = [4, 128], strides = [1, 1]} : vector<4x512xf32> to vector<4x128xf32>
    %432 = arith.negf %431 : vector<4x128xf32>
    %433 = math.exp %432 : vector<4x128xf32>
    %cst_154 = arith.constant 1.000000e+00 : f32
    %434 = vector.broadcast %cst_154 : f32 to vector<4x128xf32>
    %435 = arith.addf %434, %433 : vector<4x128xf32>
    %436 = arith.divf %434, %435 : vector<4x128xf32>
    %437 = vector.extract_strided_slice %424 {offsets = [0, 256], sizes = [4, 128], strides = [1, 1]} : vector<4x512xf32> to vector<4x128xf32>
    %438 = math.tanh %437 : vector<4x128xf32>
    %439 = vector.extract_strided_slice %424 {offsets = [0, 384], sizes = [4, 128], strides = [1, 1]} : vector<4x512xf32> to vector<4x128xf32>
    %440 = arith.negf %439 : vector<4x128xf32>
    %441 = math.exp %440 : vector<4x128xf32>
    %cst_155 = arith.constant 1.000000e+00 : f32
    %442 = vector.broadcast %cst_155 : f32 to vector<4x128xf32>
    %443 = arith.addf %442, %441 : vector<4x128xf32>
    %444 = arith.divf %442, %443 : vector<4x128xf32>
    %445 = arith.mulf %436, %414 : vector<4x128xf32>
    %446 = arith.mulf %430, %438 : vector<4x128xf32>
    %447 = arith.addf %445, %446 : vector<4x128xf32>
    %448 = math.tanh %447 : vector<4x128xf32>
    %449 = arith.mulf %444, %448 : vector<4x128xf32>
    %c12_156 = arith.constant 12 : index
    %c0_157 = arith.constant 0 : index
    %450 = vector.load %arg10[%c12_156, %c0_157] : memref<32x1024xf32, #tpu.memory_space<vmem>>, vector<4x1024xf32>
    %451 = arith.truncf %449 : vector<4x128xf32> to vector<4x128xbf16>
    %c0_158 = arith.constant 0 : index
    %c0_159 = arith.constant 0 : index
    %452 = vector.load %arg5[%c0_158, %c0_159] : memref<128x1024xbf16, #tpu.memory_space<vmem>>, vector<128x1024xbf16>
    %cst_160 = arith.constant dense<0.000000e+00> : vector<4x1024xf32>
    %453 = tpu.matmul %451, %452, %cst_160 {dimension_numbers = #tpu.dot_dimension_numbers<[1], [0], [0], [1], [0, 0, 1, 1], [], []>} : vector<4x128xbf16>, vector<128x1024xbf16>, vector<4x1024xf32> -> vector<4x1024xf32>
    %454 = arith.addf %450, %453 : vector<4x1024xf32>
    %455 = vector.extract_strided_slice %454 {offsets = [0, 0], sizes = [4, 512], strides = [1, 1]} : vector<4x1024xf32> to vector<4x512xf32>
    %456 = vector.extract_strided_slice %454 {offsets = [0, 512], sizes = [4, 512], strides = [1, 1]} : vector<4x1024xf32> to vector<4x512xf32>
    %457 = arith.select %2, %455, %456 : vector<4x512xi1>, vector<4x512xf32>
    %458 = vector.extract_strided_slice %457 {offsets = [0, 0], sizes = [4, 128], strides = [1, 1]} : vector<4x512xf32> to vector<4x128xf32>
    %459 = arith.negf %458 : vector<4x128xf32>
    %460 = math.exp %459 : vector<4x128xf32>
    %cst_161 = arith.constant 1.000000e+00 : f32
    %461 = vector.broadcast %cst_161 : f32 to vector<4x128xf32>
    %462 = arith.addf %461, %460 : vector<4x128xf32>
    %463 = arith.divf %461, %462 : vector<4x128xf32>
    %464 = vector.extract_strided_slice %457 {offsets = [0, 128], sizes = [4, 128], strides = [1, 1]} : vector<4x512xf32> to vector<4x128xf32>
    %465 = arith.negf %464 : vector<4x128xf32>
    %466 = math.exp %465 : vector<4x128xf32>
    %cst_162 = arith.constant 1.000000e+00 : f32
    %467 = vector.broadcast %cst_162 : f32 to vector<4x128xf32>
    %468 = arith.addf %467, %466 : vector<4x128xf32>
    %469 = arith.divf %467, %468 : vector<4x128xf32>
    %470 = vector.extract_strided_slice %457 {offsets = [0, 256], sizes = [4, 128], strides = [1, 1]} : vector<4x512xf32> to vector<4x128xf32>
    %471 = math.tanh %470 : vector<4x128xf32>
    %472 = vector.extract_strided_slice %457 {offsets = [0, 384], sizes = [4, 128], strides = [1, 1]} : vector<4x512xf32> to vector<4x128xf32>
    %473 = arith.negf %472 : vector<4x128xf32>
    %474 = math.exp %473 : vector<4x128xf32>
    %cst_163 = arith.constant 1.000000e+00 : f32
    %475 = vector.broadcast %cst_163 : f32 to vector<4x128xf32>
    %476 = arith.addf %475, %474 : vector<4x128xf32>
    %477 = arith.divf %475, %476 : vector<4x128xf32>
    %478 = arith.mulf %469, %447 : vector<4x128xf32>
    %479 = arith.mulf %463, %471 : vector<4x128xf32>
    %480 = arith.addf %478, %479 : vector<4x128xf32>
    %481 = math.tanh %480 : vector<4x128xf32>
    %482 = arith.mulf %477, %481 : vector<4x128xf32>
    %c16_164 = arith.constant 16 : index
    %c0_165 = arith.constant 0 : index
    %483 = vector.load %arg10[%c16_164, %c0_165] : memref<32x1024xf32, #tpu.memory_space<vmem>>, vector<4x1024xf32>
    %484 = arith.truncf %482 : vector<4x128xf32> to vector<4x128xbf16>
    %c0_166 = arith.constant 0 : index
    %c0_167 = arith.constant 0 : index
    %485 = vector.load %arg5[%c0_166, %c0_167] : memref<128x1024xbf16, #tpu.memory_space<vmem>>, vector<128x1024xbf16>
    %cst_168 = arith.constant dense<0.000000e+00> : vector<4x1024xf32>
    %486 = tpu.matmul %484, %485, %cst_168 {dimension_numbers = #tpu.dot_dimension_numbers<[1], [0], [0], [1], [0, 0, 1, 1], [], []>} : vector<4x128xbf16>, vector<128x1024xbf16>, vector<4x1024xf32> -> vector<4x1024xf32>
    %487 = arith.addf %483, %486 : vector<4x1024xf32>
    %488 = vector.extract_strided_slice %487 {offsets = [0, 0], sizes = [4, 512], strides = [1, 1]} : vector<4x1024xf32> to vector<4x512xf32>
    %489 = vector.extract_strided_slice %487 {offsets = [0, 512], sizes = [4, 512], strides = [1, 1]} : vector<4x1024xf32> to vector<4x512xf32>
    %490 = arith.select %2, %488, %489 : vector<4x512xi1>, vector<4x512xf32>
    %491 = vector.extract_strided_slice %490 {offsets = [0, 0], sizes = [4, 128], strides = [1, 1]} : vector<4x512xf32> to vector<4x128xf32>
    %492 = arith.negf %491 : vector<4x128xf32>
    %493 = math.exp %492 : vector<4x128xf32>
    %cst_169 = arith.constant 1.000000e+00 : f32
    %494 = vector.broadcast %cst_169 : f32 to vector<4x128xf32>
    %495 = arith.addf %494, %493 : vector<4x128xf32>
    %496 = arith.divf %494, %495 : vector<4x128xf32>
    %497 = vector.extract_strided_slice %490 {offsets = [0, 128], sizes = [4, 128], strides = [1, 1]} : vector<4x512xf32> to vector<4x128xf32>
    %498 = arith.negf %497 : vector<4x128xf32>
    %499 = math.exp %498 : vector<4x128xf32>
    %cst_170 = arith.constant 1.000000e+00 : f32
    %500 = vector.broadcast %cst_170 : f32 to vector<4x128xf32>
    %501 = arith.addf %500, %499 : vector<4x128xf32>
    %502 = arith.divf %500, %501 : vector<4x128xf32>
    %503 = vector.extract_strided_slice %490 {offsets = [0, 256], sizes = [4, 128], strides = [1, 1]} : vector<4x512xf32> to vector<4x128xf32>
    %504 = math.tanh %503 : vector<4x128xf32>
    %505 = vector.extract_strided_slice %490 {offsets = [0, 384], sizes = [4, 128], strides = [1, 1]} : vector<4x512xf32> to vector<4x128xf32>
    %506 = arith.negf %505 : vector<4x128xf32>
    %507 = math.exp %506 : vector<4x128xf32>
    %cst_171 = arith.constant 1.000000e+00 : f32
    %508 = vector.broadcast %cst_171 : f32 to vector<4x128xf32>
    %509 = arith.addf %508, %507 : vector<4x128xf32>
    %510 = arith.divf %508, %509 : vector<4x128xf32>
    %511 = arith.mulf %502, %480 : vector<4x128xf32>
    %512 = arith.mulf %496, %504 : vector<4x128xf32>
    %513 = arith.addf %511, %512 : vector<4x128xf32>
    %514 = math.tanh %513 : vector<4x128xf32>
    %515 = arith.mulf %510, %514 : vector<4x128xf32>
    %c20_172 = arith.constant 20 : index
    %c0_173 = arith.constant 0 : index
    %516 = vector.load %arg10[%c20_172, %c0_173] : memref<32x1024xf32, #tpu.memory_space<vmem>>, vector<4x1024xf32>
    %517 = arith.truncf %515 : vector<4x128xf32> to vector<4x128xbf16>
    %c0_174 = arith.constant 0 : index
    %c0_175 = arith.constant 0 : index
    %518 = vector.load %arg5[%c0_174, %c0_175] : memref<128x1024xbf16, #tpu.memory_space<vmem>>, vector<128x1024xbf16>
    %cst_176 = arith.constant dense<0.000000e+00> : vector<4x1024xf32>
    %519 = tpu.matmul %517, %518, %cst_176 {dimension_numbers = #tpu.dot_dimension_numbers<[1], [0], [0], [1], [0, 0, 1, 1], [], []>} : vector<4x128xbf16>, vector<128x1024xbf16>, vector<4x1024xf32> -> vector<4x1024xf32>
    %520 = arith.addf %516, %519 : vector<4x1024xf32>
    %521 = vector.extract_strided_slice %520 {offsets = [0, 0], sizes = [4, 512], strides = [1, 1]} : vector<4x1024xf32> to vector<4x512xf32>
    %522 = vector.extract_strided_slice %520 {offsets = [0, 512], sizes = [4, 512], strides = [1, 1]} : vector<4x1024xf32> to vector<4x512xf32>
    %523 = arith.select %2, %521, %522 : vector<4x512xi1>, vector<4x512xf32>
    %524 = vector.extract_strided_slice %523 {offsets = [0, 0], sizes = [4, 128], strides = [1, 1]} : vector<4x512xf32> to vector<4x128xf32>
    %525 = arith.negf %524 : vector<4x128xf32>
    %526 = math.exp %525 : vector<4x128xf32>
    %cst_177 = arith.constant 1.000000e+00 : f32
    %527 = vector.broadcast %cst_177 : f32 to vector<4x128xf32>
    %528 = arith.addf %527, %526 : vector<4x128xf32>
    %529 = arith.divf %527, %528 : vector<4x128xf32>
    %530 = vector.extract_strided_slice %523 {offsets = [0, 128], sizes = [4, 128], strides = [1, 1]} : vector<4x512xf32> to vector<4x128xf32>
    %531 = arith.negf %530 : vector<4x128xf32>
    %532 = math.exp %531 : vector<4x128xf32>
    %cst_178 = arith.constant 1.000000e+00 : f32
    %533 = vector.broadcast %cst_178 : f32 to vector<4x128xf32>
    %534 = arith.addf %533, %532 : vector<4x128xf32>
    %535 = arith.divf %533, %534 : vector<4x128xf32>
    %536 = vector.extract_strided_slice %523 {offsets = [0, 256], sizes = [4, 128], strides = [1, 1]} : vector<4x512xf32> to vector<4x128xf32>
    %537 = math.tanh %536 : vector<4x128xf32>
    %538 = vector.extract_strided_slice %523 {offsets = [0, 384], sizes = [4, 128], strides = [1, 1]} : vector<4x512xf32> to vector<4x128xf32>
    %539 = arith.negf %538 : vector<4x128xf32>
    %540 = math.exp %539 : vector<4x128xf32>
    %cst_179 = arith.constant 1.000000e+00 : f32
    %541 = vector.broadcast %cst_179 : f32 to vector<4x128xf32>
    %542 = arith.addf %541, %540 : vector<4x128xf32>
    %543 = arith.divf %541, %542 : vector<4x128xf32>
    %544 = arith.mulf %535, %513 : vector<4x128xf32>
    %545 = arith.mulf %529, %537 : vector<4x128xf32>
    %546 = arith.addf %544, %545 : vector<4x128xf32>
    %547 = math.tanh %546 : vector<4x128xf32>
    %548 = arith.mulf %543, %547 : vector<4x128xf32>
    %c24_180 = arith.constant 24 : index
    %c0_181 = arith.constant 0 : index
    %549 = vector.load %arg10[%c24_180, %c0_181] : memref<32x1024xf32, #tpu.memory_space<vmem>>, vector<4x1024xf32>
    %550 = arith.truncf %548 : vector<4x128xf32> to vector<4x128xbf16>
    %c0_182 = arith.constant 0 : index
    %c0_183 = arith.constant 0 : index
    %551 = vector.load %arg5[%c0_182, %c0_183] : memref<128x1024xbf16, #tpu.memory_space<vmem>>, vector<128x1024xbf16>
    %cst_184 = arith.constant dense<0.000000e+00> : vector<4x1024xf32>
    %552 = tpu.matmul %550, %551, %cst_184 {dimension_numbers = #tpu.dot_dimension_numbers<[1], [0], [0], [1], [0, 0, 1, 1], [], []>} : vector<4x128xbf16>, vector<128x1024xbf16>, vector<4x1024xf32> -> vector<4x1024xf32>
    %553 = arith.addf %549, %552 : vector<4x1024xf32>
    %554 = vector.extract_strided_slice %553 {offsets = [0, 0], sizes = [4, 512], strides = [1, 1]} : vector<4x1024xf32> to vector<4x512xf32>
    %555 = vector.extract_strided_slice %553 {offsets = [0, 512], sizes = [4, 512], strides = [1, 1]} : vector<4x1024xf32> to vector<4x512xf32>
    %556 = arith.select %2, %554, %555 : vector<4x512xi1>, vector<4x512xf32>
    %557 = vector.extract_strided_slice %556 {offsets = [0, 0], sizes = [4, 128], strides = [1, 1]} : vector<4x512xf32> to vector<4x128xf32>
    %558 = arith.negf %557 : vector<4x128xf32>
    %559 = math.exp %558 : vector<4x128xf32>
    %cst_185 = arith.constant 1.000000e+00 : f32
    %560 = vector.broadcast %cst_185 : f32 to vector<4x128xf32>
    %561 = arith.addf %560, %559 : vector<4x128xf32>
    %562 = arith.divf %560, %561 : vector<4x128xf32>
    %563 = vector.extract_strided_slice %556 {offsets = [0, 128], sizes = [4, 128], strides = [1, 1]} : vector<4x512xf32> to vector<4x128xf32>
    %564 = arith.negf %563 : vector<4x128xf32>
    %565 = math.exp %564 : vector<4x128xf32>
    %cst_186 = arith.constant 1.000000e+00 : f32
    %566 = vector.broadcast %cst_186 : f32 to vector<4x128xf32>
    %567 = arith.addf %566, %565 : vector<4x128xf32>
    %568 = arith.divf %566, %567 : vector<4x128xf32>
    %569 = vector.extract_strided_slice %556 {offsets = [0, 256], sizes = [4, 128], strides = [1, 1]} : vector<4x512xf32> to vector<4x128xf32>
    %570 = math.tanh %569 : vector<4x128xf32>
    %571 = vector.extract_strided_slice %556 {offsets = [0, 384], sizes = [4, 128], strides = [1, 1]} : vector<4x512xf32> to vector<4x128xf32>
    %572 = arith.negf %571 : vector<4x128xf32>
    %573 = math.exp %572 : vector<4x128xf32>
    %cst_187 = arith.constant 1.000000e+00 : f32
    %574 = vector.broadcast %cst_187 : f32 to vector<4x128xf32>
    %575 = arith.addf %574, %573 : vector<4x128xf32>
    %576 = arith.divf %574, %575 : vector<4x128xf32>
    %577 = arith.mulf %568, %546 : vector<4x128xf32>
    %578 = arith.mulf %562, %570 : vector<4x128xf32>
    %579 = arith.addf %577, %578 : vector<4x128xf32>
    %580 = math.tanh %579 : vector<4x128xf32>
    %581 = arith.mulf %576, %580 : vector<4x128xf32>
    %c28_188 = arith.constant 28 : index
    %c0_189 = arith.constant 0 : index
    %582 = vector.load %arg10[%c28_188, %c0_189] : memref<32x1024xf32, #tpu.memory_space<vmem>>, vector<4x1024xf32>
    %583 = arith.truncf %581 : vector<4x128xf32> to vector<4x128xbf16>
    %c0_190 = arith.constant 0 : index
    %c0_191 = arith.constant 0 : index
    %584 = vector.load %arg5[%c0_190, %c0_191] : memref<128x1024xbf16, #tpu.memory_space<vmem>>, vector<128x1024xbf16>
    %cst_192 = arith.constant dense<0.000000e+00> : vector<4x1024xf32>
    %585 = tpu.matmul %583, %584, %cst_192 {dimension_numbers = #tpu.dot_dimension_numbers<[1], [0], [0], [1], [0, 0, 1, 1], [], []>} : vector<4x128xbf16>, vector<128x1024xbf16>, vector<4x1024xf32> -> vector<4x1024xf32>
    %586 = arith.addf %582, %585 : vector<4x1024xf32>
    %587 = vector.extract_strided_slice %586 {offsets = [0, 0], sizes = [4, 512], strides = [1, 1]} : vector<4x1024xf32> to vector<4x512xf32>
    %588 = vector.extract_strided_slice %586 {offsets = [0, 512], sizes = [4, 512], strides = [1, 1]} : vector<4x1024xf32> to vector<4x512xf32>
    %589 = arith.select %2, %587, %588 : vector<4x512xi1>, vector<4x512xf32>
    %590 = vector.extract_strided_slice %589 {offsets = [0, 0], sizes = [4, 128], strides = [1, 1]} : vector<4x512xf32> to vector<4x128xf32>
    %591 = arith.negf %590 : vector<4x128xf32>
    %592 = math.exp %591 : vector<4x128xf32>
    %cst_193 = arith.constant 1.000000e+00 : f32
    %593 = vector.broadcast %cst_193 : f32 to vector<4x128xf32>
    %594 = arith.addf %593, %592 : vector<4x128xf32>
    %595 = arith.divf %593, %594 : vector<4x128xf32>
    %596 = vector.extract_strided_slice %589 {offsets = [0, 128], sizes = [4, 128], strides = [1, 1]} : vector<4x512xf32> to vector<4x128xf32>
    %597 = arith.negf %596 : vector<4x128xf32>
    %598 = math.exp %597 : vector<4x128xf32>
    %cst_194 = arith.constant 1.000000e+00 : f32
    %599 = vector.broadcast %cst_194 : f32 to vector<4x128xf32>
    %600 = arith.addf %599, %598 : vector<4x128xf32>
    %601 = arith.divf %599, %600 : vector<4x128xf32>
    %602 = vector.extract_strided_slice %589 {offsets = [0, 256], sizes = [4, 128], strides = [1, 1]} : vector<4x512xf32> to vector<4x128xf32>
    %603 = math.tanh %602 : vector<4x128xf32>
    %604 = vector.extract_strided_slice %589 {offsets = [0, 384], sizes = [4, 128], strides = [1, 1]} : vector<4x512xf32> to vector<4x128xf32>
    %605 = arith.negf %604 : vector<4x128xf32>
    %606 = math.exp %605 : vector<4x128xf32>
    %cst_195 = arith.constant 1.000000e+00 : f32
    %607 = vector.broadcast %cst_195 : f32 to vector<4x128xf32>
    %608 = arith.addf %607, %606 : vector<4x128xf32>
    %609 = arith.divf %607, %608 : vector<4x128xf32>
    %610 = arith.mulf %601, %579 : vector<4x128xf32>
    %611 = arith.mulf %595, %603 : vector<4x128xf32>
    %612 = arith.addf %610, %611 : vector<4x128xf32>
    %613 = math.tanh %612 : vector<4x128xf32>
    %614 = arith.mulf %609, %613 : vector<4x128xf32>
    %615 = vector.extract_strided_slice %614 {offsets = [0, 0], sizes = [2, 128], strides = [1, 1]} : vector<4x128xf32> to vector<2x128xf32>
    %c0_196 = arith.constant 0 : index
    %c0_197 = arith.constant 0 : index
    %616 = vector.load %arg7[%c0_196, %c0_197] : memref<256x2xf32, #tpu.memory_space<vmem>>, vector<128x2xf32>
    %cst_198 = arith.constant dense<0.000000e+00> : vector<2x2xf32>
    %617 = tpu.matmul %615, %616, %cst_198 {dimension_numbers = #tpu.dot_dimension_numbers<[1], [0], [0], [1], [0, 0, 1, 1], [], []>} : vector<2x128xf32>, vector<128x2xf32>, vector<2x2xf32> -> vector<2x2xf32>
    %618 = vector.extract_strided_slice %614 {offsets = [2, 0], sizes = [2, 128], strides = [1, 1]} : vector<4x128xf32> to vector<2x128xf32>
    %c128_199 = arith.constant 128 : index
    %c0_200 = arith.constant 0 : index
    %619 = vector.load %arg7[%c128_199, %c0_200] : memref<256x2xf32, #tpu.memory_space<vmem>>, vector<128x2xf32>
    %cst_201 = arith.constant dense<0.000000e+00> : vector<2x2xf32>
    %620 = tpu.matmul %618, %619, %cst_201 {dimension_numbers = #tpu.dot_dimension_numbers<[1], [0], [0], [1], [0, 0, 1, 1], [], []>} : vector<2x128xf32>, vector<128x2xf32>, vector<2x2xf32> -> vector<2x2xf32>
    %621 = arith.addf %617, %620 : vector<2x2xf32>
    %c0_202 = arith.constant 0 : index
    %c0_203 = arith.constant 0 : index
    %622 = vector.load %arg8[%c0_202, %c0_203] : memref<1x2xf32, #tpu.memory_space<vmem>>, vector<1x2xf32>
    %623 = vector.broadcast %622 : vector<1x2xf32> to vector<2x2xf32>
    %624 = arith.addf %621, %623 : vector<2x2xf32>
    %c0_204 = arith.constant 0 : index
    %c0_205 = arith.constant 0 : index
    %625 = vector.load %arg9[%c0_204, %c0_205] : memref<2x2xf32, #tpu.memory_space<vmem>>, vector<2x2xf32>
    tpu.vector_store %arg9[%c0_204, %c0_205], %624 {strides = array<i32>} : memref<2x2xf32, #tpu.memory_space<vmem>>, vector<2x2xf32>,
    return
  }
}

</mosaic_0001>

<bundles_post_ra>
// kernel: sentifier_forward.1
= control target key start
LH: loop header
LB: loop body
LE: loop exit
PB: predicated region body
PF: predicated region fallthrough
CT: control target
= control target key end

     0   :  { %14 = vsyncpa [#allocation5], 0  ;;  %s12643_s0 = inlined_call_operand.vmem [shape: f32[32,32], index: 0, kind: input, shape index: {}]   ;;  %s12644_s1 = inlined_call_operand.vmem [shape: bf16[32,1024], index: 1, kind: input, shape index: {}]   ;;  %s12645_s2 = inlined_call_operand.hbm [shape: bf16[128,1024], index: 2, kind: input, shape index: {}]   ;;  %s12646_s3 = inlined_call_operand.vmem [shape: f32[1,1024], index: 3, kind: input, shape index: {}]   ;;  %s12647_s4 = inlined_call_operand.hbm [shape: bf16[256,1024], index: 4, kind: input, shape index: {}]   ;;  %s12648_s5 = inlined_call_operand.hbm [shape: bf16[128,1024], index: 5, kind: input, shape index: {}]   ;;  %s12649_s6 = inlined_call_operand.vmem [shape: f32[1,1024], index: 6, kind: input, shape index: {}]   ;;  %s12650_s7 = inlined_call_operand.vmem [shape: f32[256,2], index: 7, kind: input, shape index: {}]   ;;  %s12651_s8 = inlined_call_operand.vmem [shape: f32[1,2], index: 8, kind: input, shape index: {}]   ;;  %s12652_s9 = inlined_call_operand.hbm [shape: f32[2,2], index: 9, kind: output, shape index: {}]  }
   0x1   :  { %15 = vsyncpa [#allocation8], 0 }
   0x2   :  { %16 = vsyncpa [#allocation6], 0  ;;  %s10291_s30 = smov [#allocation7]   ;;  %s10292_s11 = smov [#allocation4]  }
   0x3   :  { %s40_s10 = sshll.u32 %s10291_s30, 4  ;;  %s26_s12 = sshll.u32 %s10292_s11, 4  ;;  %s41_s10 = int_to_ptr.vmem [resolvable:$true] %s40_s10  ;;  %s10351_s12 = int_to_ptr.vmem [resolvable:$true] %s26_s12 }
   0x4   :  { %s10197_s15 = scalar_lea.hbm %s12647_s4, 16384 }
   0x5   :  { %p10198_p0 = scmp.ne.s32.totalorder %s12647_s4, %s10197_s15  ;;  %p10201_p1 = scmp.lt.u32.totalorder %s10197_s15, %s12647_s4 }
   0x7   :  { %p10203_p2 = pnand %p10201_p1, %p10198_p0 }
   0x9   :  { %10206 = shalt.err (!%p10203_p2)
}
   0xa   :  { %s10207_s20 = scalar_lea.vmem %s41_s10, 16384  ;;  %p10212_p4 = scmp.lt.s32.totalorder %s41_s10, %s41_s10 }
   0xb   :  { %p10208_p3 = scmp.ne.s32.totalorder %s41_s10, %s10207_s20  ;;  %p10213_p5 = scmp.lt.s32.totalorder %s10207_s20, %s10207_s20 }
   0xd   :  { %p10214_p6 = por %p10213_p5, %p10212_p4 }
   0xf   :  { %p10215_p7 = pnand %p10214_p6, %p10208_p3 }
  0x11   :  { %10218 = shalt.err (!%p10215_p7)
}
  0x12   :  { %s10293_s21 = smov 512   ;;  %s10294_s22 = smov 32  }
  0x13   :  { %46 = dma.hbm_to_vmem [thread:$0]  %s12647_s4, 16384, %s41_s10, [#allocation8], %s10293_s21, %s10293_s21, %s10294_s22  }
  0x14   :  { %s10219_s27 = scalar_lea.hbm %s12645_s2, 8192 }
  0x15   :  { %p10220_p8 = scmp.ne.s32.totalorder %s12645_s2, %s10219_s27  ;;  %p10223_p9 = scmp.lt.u32.totalorder %s10219_s27, %s12645_s2 }
  0x17   :  { %p10225_p10 = pnand %p10223_p9, %p10220_p8 }
  0x19   :  { %10228 = shalt.err (!%p10225_p10)
}
  0x1a   :  { %s10229_s13 = scalar_lea.vmem %s10351_s12, 8192  ;;  %p10234_p12 = scmp.lt.s32.totalorder %s10351_s12, %s10351_s12 }
  0x1b   :  { %p10230_p11 = scmp.ne.s32.totalorder %s10351_s12, %s10229_s13  ;;  %p10235_p13 = scmp.lt.s32.totalorder %s10229_s13, %s10229_s13 }
  0x1d   :  { %p10236_p0 = por %p10235_p13, %p10234_p12 }
  0x1f   :  { %p10237_p1 = pnand %p10236_p0, %p10230_p11 }
  0x21   :  { %10240 = shalt.err (!%p10237_p1)
}
  0x22   :  { %32 = dma.hbm_to_vmem [thread:$0]  %s12645_s2, 8192, %s10351_s12, [#allocation5], %s10293_s21, %s10293_s21, %s10294_s22  }
  0x23   :  { %s10295_s14 = smov [#allocation9]   ;;  %s10241_s18 = scalar_lea.hbm %s12648_s5, 8192 }
  0x24   :  { %s52_s15 = sshll.u32 %s10295_s14, 4  ;;  %p10242_p2 = scmp.ne.s32.totalorder %s12648_s5, %s10241_s18  ;;  %s53_s15 = int_to_ptr.vmem [resolvable:$true] %s52_s15 }
  0x25   :  { %p10245_p3 = scmp.lt.u32.totalorder %s10241_s18, %s12648_s5 }
  0x27   :  { %p10247_p4 = pnand %p10245_p3, %p10242_p2 }
  0x29   :  { %10250 = shalt.err (!%p10247_p4)
}
  0x2a   :  { %s10251_s25 = scalar_lea.vmem %s53_s15, 8192  ;;  %p10256_p6 = scmp.lt.s32.totalorder %s53_s15, %s53_s15 }
  0x2b   :  { %p10252_p5 = scmp.ne.s32.totalorder %s53_s15, %s10251_s25  ;;  %p10257_p7 = scmp.lt.s32.totalorder %s10251_s25, %s10251_s25 }
  0x2d   :  { %p10258_p8 = por %p10257_p7, %p10256_p6 }
  0x2f   :  { %p10259_p9 = pnand %p10258_p8, %p10252_p5 }
  0x31   :  { %10262 = shalt.err (!%p10259_p9)
}
  0x32   :  { %58 = dma.hbm_to_vmem [thread:$0]  %s12648_s5, 8192, %s53_s15, [#allocation8], %s10293_s21, %s10293_s21, %s10294_s22  }
  0x33   :  { %10285 = dma.done.wait [#allocation5], 8192  }
  0x34   :  { %10286 = vsyncadd [#allocation5], 4294959104 }
  0x35   :  { %10287 = dma.done.wait [#allocation8], 24576  }
  0x36   :  { %10288 = vsyncadd [#allocation8], 4294942720  ;;  %v12653_v0 = vmov 0   ;;  %v84_v1 = vld [vmem:[%s12644_s1] sm:$0xff]  ;;  %v85_v3 = vld [vmem:[%s12644_s1 + $0x8] sm:$0xff]  ;;  %vm222_vm0 = vcmask 261120  }
  0x37   :  { %261 = vmatprep.mubr.bf16.mxu0 %v12653_v0  ;;  %314 = vmatprep.mubr.bf16.mxu1 %v12653_v0  ;;  %v88_v2 = vld [vmem:[%s12644_s1 + $0x20] sm:$0xff]  ;;  %v89_v5 = vld [vmem:[%s12644_s1 + $0x28] sm:$0xff]  ;;  %v86_v16 = vld [vmem:[%s12644_s1 + $0x10] sm:$0xff]  ;;  %vm10298_vm2 = vmmov 0   ;;  %s10300_s27 = smov [#allocation10]   ;;  %vm8984_vm3 = vcmask 9216  }
  0x38   :  { %v9003_v4 = vcombine.high %v84_v1, %v88_v2  ;;  %v9002_v6 = vcombine.low %v84_v1, %v88_v2  ;;  %v92_v7 = vld [vmem:[%s12644_s1 + $0x40] sm:$0xff]  ;;  %v9005_v9 = vcombine.high %v85_v3, %v89_v5  ;;  %v9004_v10 = vcombine.low %v85_v3, %v89_v5  ;;  %v93_v12 = vld [vmem:[%s12644_s1 + $0x48] sm:$0xff]  ;;  %v90_v17 = vld [vmem:[%s12644_s1 + $0x30] sm:$0xff]  ;;  %s8992_s28 = sshll.u32 %s10300_s27, 4  ;;  %s8993_s28 = int_to_ptr.vmem [resolvable:$true] %s8992_s28 }
  0x39   :  { %v96_v8 = vld [vmem:[%s12644_s1 + $0x60] sm:$0xff]  ;;  %v97_v13 = vld [vmem:[%s12644_s1 + $0x68] sm:$0xff]  ;;  %v87_v20 = vld [vmem:[%s12644_s1 + $0x18] sm:$0xff]  ;;  %v9007_v23 = vcombine.high %v86_v16, %v90_v17  ;;  %v9006_v28 = vcombine.low %v86_v16, %v90_v17  ;;  %s10263_s29 = scalar_lea.vmem %s8993_s28, 32  ;;  %p10268_p11 = scmp.lt.s32.totalorder %s8993_s28, %s8993_s28 }
  0x3a   :  { %v9011_v11 = vcombine.high %v92_v7, %v96_v8  ;;  %229 = vmatprep.subr.bf16.mxu0 %v9003_v4  ;;  %v9013_v14 = vcombine.high %v93_v12, %v97_v13  ;;  %v78_v15 = vld [vmem:[%s12643_s0] sm:$0xff]  ;;  %282 = vmatprep.subr.bf16.mxu1 %v9005_v9  ;;  %v9010_v18 = vcombine.low %v92_v7, %v96_v8  ;;  %v79_v19 = vld [vmem:[%s12643_s0 + $0x8] sm:$0xff]  ;;  %v91_v21 = vld [vmem:[%s12644_s1 + $0x38] sm:$0xff]  ;;  %p10264_p10 = scmp.ne.s32.totalorder %s8993_s28, %s10263_s29  ;;  %p10269_p12 = scmp.lt.s32.totalorder %s10263_s29, %s10263_s29 }
  0x3b   :  { %230 = vmatpush1.bf16.msra.mxu0 %v9002_v6  ;;  %283 = vmatpush1.bf16.msra.mxu1 %v9004_v10  ;;  %v9012_v22 = vcombine.low %v93_v12, %v97_v13  ;;  %v9009_v24 = vcombine.high %v87_v20, %v91_v21  ;;  %v82_v25 = vpack.c.bf16 %v79_v19, %v78_v15  ;;  %v94_v26 = vld [vmem:[%s12644_s1 + $0x50] sm:$0xff]  ;;  %v95_v29 = vld [vmem:[%s12644_s1 + $0x58] sm:$0xff]  ;;  %v481_v33 = vld [vmem:[#allocation4] sm:$0xff] }
  0x3c   :  { %231 = vmatprep.subr.bf16.mxu0 %v9011_v11  ;;  %284 = vmatprep.subr.bf16.mxu1 %v9013_v14  ;;  %v98_v27 = vld [vmem:[%s12644_s1 + $0x70] sm:$0xff]  ;;  %v99_v30 = vld [vmem:[%s12644_s1 + $0x78] sm:$0xff]  ;;  %v9008_v31 = vcombine.low %v87_v20, %v91_v21  ;;  %v485_v34 = vld [vmem:[#allocation4 + $0x20] sm:$0xff]  ;;  %p10270_p13 = por %p10269_p12, %p10268_p11 }
  0x3d   :  { %v9015_v32 = vcombine.high %v94_v26, %v98_v27  ;;  %v80_v35 = vld [vmem:[%s12643_s0 + $0x10] sm:$0xff]  ;;  %v9017_v36 = vcombine.high %v95_v29, %v99_v30  ;;  %v81_v37 = vld [vmem:[%s12643_s0 + $0x18] sm:$0xff]  ;;  %v9014_v38 = vcombine.low %v94_v26, %v98_v27  ;;  %v482_v39 = vld [vmem:[#allocation4 + $0x8] sm:$0xff]  ;;  %v10469_v41 = vcombine.high %v481_v33, %v485_v34 }
  0x3e   :  { %v486_v40 = vld [vmem:[#allocation4 + $0x28] sm:$0xff]  ;;  %v9016_v42 = vcombine.low %v95_v29, %v99_v30  ;;  %v83_v43 = vpack.c.bf16 %v81_v37, %v80_v35  ;;  %v489_v45 = vld [vmem:[#allocation4 + $0x40] sm:$0xff]  ;;  %v10479_v49 = vcombine.low %v481_v33, %v485_v34  ;;  %p10271_p0 = pnand %p10270_p13, %p10264_p10 }
  0x3f   :  { %232 = vmatpush1.bf16.msra.mxu0 %v9010_v18  ;;  %285 = vmatpush1.bf16.msra.mxu1 %v9012_v22  ;;  %v10471_v44 = vcombine.high %v482_v39, %v486_v40  ;;  %v493_v46 = vld [vmem:[#allocation4 + $0x60] sm:$0xff]  ;;  %v490_v47 = vld [vmem:[#allocation4 + $0x48] sm:$0xff]  ;;  %v10481_v50 = vcombine.low %v482_v39, %v486_v40  ;;  %v487_v39 = vld [vmem:[#allocation4 + $0x30] sm:$0xff] }
  0x40   :  { %335 = vmatprep.subr.bf16.mxu0 %v9007_v23  ;;  %388 = vmatprep.subr.bf16.mxu1 %v9009_v24  ;;  %v494_v48 = vld [vmem:[#allocation4 + $0x68] sm:$0xff]  ;;  %v10483_v51 = vcombine.high %v489_v45, %v493_v46  ;;  %v497_v53 = vld [vmem:[#allocation4 + $0x80] sm:$0xff]  ;;  %v10490_v57 = vcombine.low %v489_v45, %v493_v46  ;;  %v484_v40 = vld [vmem:[#allocation4 + $0x18] sm:$0xff] }
  0x41   :  { %v10485_v52 = vcombine.high %v490_v47, %v494_v48  ;;  %v501_v54 = vld [vmem:[#allocation4 + $0xa0] sm:$0xff]  ;;  %v498_v55 = vld [vmem:[#allocation4 + $0x88] sm:$0xff]  ;;  %v10494_v58 = vcombine.low %v490_v47, %v494_v48  ;;  %v491_v48 = vld [vmem:[#allocation4 + $0x50] sm:$0xff] }
  0x42   :  { %9018 = vmatmul.mubr.msk.bf16.vlgmr.msra.gmra.mrb[0].mxu0 %vm222_vm0, %v82_v25  ;;  %9020 = vmatmul.mubr.msk.bf16.vlgmr.msra.gmra.mrb[0].mxu1 %vm222_vm0, %v82_v25  ;;  %v502_v56 = vld [vmem:[#allocation4 + $0xa8] sm:$0xff]  ;;  %v10496_v59 = vcombine.high %v497_v53, %v501_v54  ;;  %v505_v61 = vld [vmem:[#allocation4 + $0xc0] sm:$0xff]  ;;  %v10504_v2 = vcombine.low %v497_v53, %v501_v54  ;;  %v495_v53 = vld [vmem:[#allocation4 + $0x70] sm:$0xff] }
  0x43   :  { %336 = vmatpush1.bf16.msra.mxu0 %v9006_v28  ;;  %271 = vmatprep.mubr.bf16.mxu0 %v12653_v0  ;;  %v10499_v60 = vcombine.high %v498_v55, %v502_v56  ;;  %v509_v62 = vld [vmem:[#allocation4 + $0xe0] sm:$0xff]  ;;  %v506_v63 = vld [vmem:[#allocation4 + $0xc8] sm:$0xff]  ;;  %v10508_v3 = vcombine.low %v498_v55, %v502_v56  ;;  %v492_v54 = vld [vmem:[#allocation4 + $0x58] sm:$0xff] }
  0x44   :  { %324 = vmatprep.mubr.bf16.mxu1 %v12653_v0  ;;  %337 = vmatprep.subr.bf16.mxu0 %v9015_v32  ;;  %v510_v1 = vld [vmem:[#allocation4 + $0xe8] sm:$0xff]  ;;  %v10510_v4 = vcombine.high %v505_v61, %v509_v62  ;;  %v513_v6 = vld [vmem:[#allocation4 + $0x100] sm:$0xff]  ;;  %v10517_v10 = vcombine.low %v505_v61, %v509_v62  ;;  %v496_v55 = vld [vmem:[#allocation4 + $0x78] sm:$0xff]  ;;  %v10586_v62 = vcombine.high %v491_v48, %v495_v53 }
  0x45   :  { %389 = vmatpush1.bf16.msra.mxu1 %v9008_v31  ;;  %v10513_v5 = vcombine.high %v506_v63, %v510_v1  ;;  %v517_v7 = vld [vmem:[#allocation4 + $0x120] sm:$0xff]  ;;  %v514_v8 = vld [vmem:[#allocation4 + $0x108] sm:$0xff]  ;;  %v10522_v11 = vcombine.low %v506_v63, %v510_v1  ;;  %v10589_v63 = vcombine.high %v492_v54, %v496_v55  ;;  %v499_v1 = vld [vmem:[#allocation4 + $0x90] sm:$0xff] }
  0x46   :  { %390 = vmatprep.subr.bf16.mxu1 %v9017_v36  ;;  %v518_v9 = vld [vmem:[#allocation4 + $0x128] sm:$0xff]  ;;  %v10524_v12 = vcombine.high %v513_v6, %v517_v7  ;;  %v521_v14 = vld [vmem:[#allocation4 + $0x140] sm:$0xff]  ;;  %v10532_v18 = vcombine.low %v513_v6, %v517_v7  ;;  %v503_v6 = vld [vmem:[#allocation4 + $0xb0] sm:$0xff] }
  0x47   :  { %338 = vmatpush1.bf16.msra.mxu0 %v9014_v38  ;;  %v10527_v13 = vcombine.high %v514_v8, %v518_v9  ;;  %v525_v15 = vld [vmem:[#allocation4 + $0x160] sm:$0xff]  ;;  %v522_v16 = vld [vmem:[#allocation4 + $0x148] sm:$0xff]  ;;  %v10536_v19 = vcombine.low %v514_v8, %v518_v9  ;;  %v483_v38 = vld [vmem:[#allocation4 + $0x10] sm:$0xff]  ;;  %v10594_v9 = vcombine.low %v491_v48, %v495_v53 }
  0x48   :  { %865 = vmatprep.subr.bf16.mxu0 %v10469_v41  ;;  %v526_v17 = vld [vmem:[#allocation4 + $0x168] sm:$0xff]  ;;  %v10538_v20 = vcombine.high %v521_v14, %v525_v15  ;;  %v529_v22 = vld [vmem:[#allocation4 + $0x180] sm:$0xff]  ;;  %v10544_v26 = vcombine.low %v521_v14, %v525_v15  ;;  %v10574_v46 = vcombine.high %v483_v38, %v487_v39  ;;  %v10580_v56 = vcombine.low %v483_v38, %v487_v39  ;;  %v500_v7 = vld [vmem:[#allocation4 + $0x98] sm:$0xff] }
  0x49   :  { %391 = vmatpush1.bf16.msra.mxu1 %v9016_v42  ;;  %v10541_v21 = vcombine.high %v522_v16, %v526_v17  ;;  %v533_v23 = vld [vmem:[#allocation4 + $0x1a0] sm:$0xff]  ;;  %v530_v24 = vld [vmem:[#allocation4 + $0x188] sm:$0xff]  ;;  %v10548_v27 = vcombine.low %v522_v16, %v526_v17  ;;  %v488_v42 = vld [vmem:[#allocation4 + $0x38] sm:$0xff]  ;;  %v10598_v14 = vcombine.low %v492_v54, %v496_v55  ;;  %v10600_v15 = vcombine.high %v499_v1, %v503_v6 }
  0x4a   :  { %9019 = vmatmul.mubr.msk.bf16.gmra.mrb[4].mxu0 %vm222_vm0, %v83_v43  ;;  %906 = vmatprep.subr.bf16.mxu1 %v10471_v44  ;;  %v10550_v28 = vcombine.high %v529_v22, %v533_v23  ;;  %v537_v30 = vld [vmem:[#allocation4 + $0x1c0] sm:$0xff]  ;;  %v538_v32 = vld [vmem:[#allocation4 + $0x1c8] sm:$0xff]  ;;  %v10556_v34 = vcombine.low %v529_v22, %v533_v23  ;;  %v10577_v47 = vcombine.high %v484_v40, %v488_v42  ;;  %v504_v8 = vld [vmem:[#allocation4 + $0xb8] sm:$0xff] }
  0x4b   :  { %9021 = vmatmul.mubr.msk.bf16.gmra.mrb[4].mxu1 %vm222_vm0, %v83_v43  ;;  %367 = vmatprep.mubr.bf16.mxu0 %v12653_v0  ;;  %v541_v31 = vld [vmem:[#allocation4 + $0x1e0] sm:$0xff]  ;;  %v542_v33 = vld [vmem:[#allocation4 + $0x1e8] sm:$0xff]  ;;  %v10584_v61 = vcombine.low %v484_v40, %v488_v42  ;;  %v10603_v16 = vcombine.high %v500_v7, %v504_v8  ;;  %v507_v17 = vld [vmem:[#allocation4 + $0xd0] sm:$0xff] }
  0x4c   :  { %420 = vmatprep.mubr.bf16.mxu1 %v12653_v0  ;;  %v10562_v36 = vcombine.high %v537_v30, %v541_v31  ;;  %v10565_v37 = vcombine.high %v538_v32, %v542_v33  ;;  %v10572_v45 = vcombine.low %v538_v32, %v542_v33  ;;  %v511_v22 = vld [vmem:[#allocation4 + $0xf0] sm:$0xff]  ;;  %v508_v23 = vld [vmem:[#allocation4 + $0xd8] sm:$0xff] }
  0x4d   :  { %v515_v33 = vld [vmem:[#allocation4 + $0x110] sm:$0xff]  ;;  %v516_v39 = vld [vmem:[#allocation4 + $0x118] sm:$0xff]  ;;  %v10620_v42 = vcombine.low %v507_v17, %v511_v22 }
  0x4e   :  { %v519_v38 = vld [vmem:[#allocation4 + $0x130] sm:$0xff]  ;;  %v520_v40 = vld [vmem:[#allocation4 + $0x138] sm:$0xff] }
  0x4f   :  { %12802 = vst [vmem:[#allocation16_spill] sm:$0xff] %v10620_v42  ;;  %v10626_v53 = vcombine.high %v515_v33, %v519_v38  ;;  %v10629_v54 = vcombine.high %v516_v39, %v520_v40  ;;  %v523_v55 = vld [vmem:[#allocation4 + $0x150] sm:$0xff] }
  0x51   :  { %12804 = vst [vmem:[#allocation18_spill] sm:$0xff] %v10626_v53  ;;  %12805 = vst [vmem:[#allocation19_spill] sm:$0xff] %v10629_v54 }
  0x52   :  { %9022 = vmatmul.mubr.msk.bf16.vlgmr.msra.gmra.mrb[8].mxu0 %vm222_vm0, %v82_v25 }
  0x53   :  { %9024 = vmatmul.mubr.msk.bf16.vlgmr.msra.gmra.mrb[8].mxu1 %vm222_vm0, %v82_v25  ;;  %866 = vmatpush1.bf16.msra.mxu0 %v10479_v49  ;;  %v534_v25 = vld [vmem:[#allocation4 + $0x1a8] sm:$0xff] }
  0x54   :  { %907 = vmatpush1.bf16.msra.mxu1 %v10481_v50  ;;  %867 = vmatprep.subr.bf16.mxu0 %v10483_v51  ;;  %v10553_v29 = vcombine.high %v530_v24, %v534_v25  ;;  %v10560_v35 = vcombine.low %v530_v24, %v534_v25  ;;  %v512_v24 = vld [vmem:[#allocation4 + $0xf8] sm:$0xff]  ;;  %v10608_v25 = vcombine.low %v499_v1, %v503_v6  ;;  %v527_v1 = vld [vmem:[#allocation4 + $0x170] sm:$0xff] }
  0x55   :  { %908 = vmatprep.subr.bf16.mxu1 %v10485_v52  ;;  %377 = vmatprep.mubr.bf16.mxu0 %v12653_v0  ;;  %v10617_v32 = vcombine.high %v508_v23, %v512_v24  ;;  %v10624_v48 = vcombine.low %v508_v23, %v512_v24  ;;  %v524_v6 = vld [vmem:[#allocation4 + $0x158] sm:$0xff]  ;;  %v531_v24 = vld [vmem:[#allocation4 + $0x190] sm:$0xff] }
  0x56   :  { %430 = vmatprep.mubr.bf16.mxu1 %v12653_v0 }
  0x57   :  { %868 = vmatpush1.bf16.msra.mxu0 %v10490_v57  ;;  %12801 = vst [vmem:[#allocation15_spill] sm:$0xff] %v10617_v32  ;;  %12803 = vst [vmem:[#allocation17_spill] sm:$0xff] %v10624_v48 }
  0x58   :  { %909 = vmatpush1.bf16.msra.mxu1 %v10494_v58  ;;  %869 = vmatprep.subr.bf16.mxu0 %v10496_v59 }
  0x59   :  { %910 = vmatprep.subr.bf16.mxu1 %v10499_v60 }
  0x5a   :  { %9023 = vmatmul.mubr.msk.bf16.gmra.mrb[12].mxu0 %vm222_vm0, %v83_v43 }
  0x5b   :  { %870 = vmatpush1.bf16.msra.mxu0 %v10504_v2  ;;  %9025 = vmatmul.mubr.msk.bf16.gmra.mrb[12].mxu1 %vm222_vm0, %v83_v43  ;;  %v10568_v43 = vcombine.low %v537_v30, %v541_v31  ;;  %v10612_v30 = vcombine.low %v500_v7, %v504_v8  ;;  %v10614_v31 = vcombine.high %v507_v17, %v511_v22  ;;  %v528_v7 = vld [vmem:[#allocation4 + $0x178] sm:$0xff] }
  0x5c   :  { %911 = vmatpush1.bf16.msra.mxu1 %v10508_v3  ;;  %871 = vmatprep.subr.bf16.mxu0 %v10510_v4  ;;  %v10632_v8 = vcombine.low %v515_v33, %v519_v38  ;;  %v10636_v17 = vcombine.low %v516_v39, %v520_v40  ;;  %v10638_v22 = vcombine.high %v523_v55, %v527_v1 }
  0x5d   :  { %912 = vmatprep.subr.bf16.mxu1 %v10513_v5  ;;  %897 = vmatprep.mubr.bf16.mxu0 %v12653_v0  ;;  %12800 = vst [vmem:[#allocation14_spill] sm:$0xff] %v10614_v31  ;;  %v10641_v23 = vcombine.high %v524_v6, %v528_v7  ;;  %v10644_v33 = vcombine.low %v523_v55, %v527_v1 }
  0x5e   :  { %938 = vmatprep.mubr.bf16.mxu1 %v12653_v0  ;;  %v10648_v38 = vcombine.low %v524_v6, %v528_v7 }
  0x5f   :  { %872 = vmatpush1.bf16.msra.mxu0 %v10517_v10  ;;  %12806 = vst [vmem:[#allocation20_spill] sm:$0xff] %v10641_v23 }
  0x60   :  { %913 = vmatpush1.bf16.msra.mxu1 %v10522_v11  ;;  %873 = vmatprep.subr.bf16.mxu0 %v10524_v12 }
  0x61   :  { %914 = vmatprep.subr.bf16.mxu1 %v10527_v13 }
  0x63   :  { %874 = vmatpush1.bf16.msra.mxu0 %v10532_v18 }
  0x64   :  { %915 = vmatpush1.bf16.msra.mxu1 %v10536_v19  ;;  %875 = vmatprep.subr.bf16.mxu0 %v10538_v20 }
  0x65   :  { %916 = vmatprep.subr.bf16.mxu1 %v10541_v21 }
  0x67   :  { %876 = vmatpush1.bf16.msra.mxu0 %v10544_v26 }
  0x68   :  { %917 = vmatpush1.bf16.msra.mxu1 %v10548_v27  ;;  %877 = vmatprep.subr.bf16.mxu0 %v10550_v28 }
  0x69   :  { %918 = vmatprep.subr.bf16.mxu1 %v10553_v29 }
  0x6b   :  { %878 = vmatpush1.bf16.msra.mxu0 %v10556_v34 }
  0x6c   :  { %919 = vmatpush1.bf16.msra.mxu1 %v10560_v35  ;;  %879 = vmatprep.subr.bf16.mxu0 %v10562_v36 }
  0x6d   :  { %920 = vmatprep.subr.bf16.mxu1 %v10565_v37 }
  0x6f   :  { %880 = vmatpush1.bf16.msra.mxu0 %v10568_v43 }
  0x70   :  { %921 = vmatpush1.bf16.msra.mxu1 %v10572_v45  ;;  %947 = vmatprep.subr.bf16.mxu0 %v10574_v46 }
  0x71   :  { %988 = vmatprep.subr.bf16.mxu1 %v10577_v47 }
  0x72   :  { %898 = vmatmul.mubr.bf16.vlgmr.msra.gmra.mrb[16].mxu0 %v12653_v0 }
  0x73   :  { %939 = vmatmul.mubr.bf16.vlgmr.msra.gmra.mrb[16].mxu1 %v12653_v0  ;;  %948 = vmatpush1.bf16.msra.mxu0 %v10580_v56 }
  0x74   :  { %989 = vmatpush1.bf16.msra.mxu1 %v10584_v61  ;;  %949 = vmatprep.subr.bf16.mxu0 %v10586_v62 }
  0x75   :  { %990 = vmatprep.subr.bf16.mxu1 %v10589_v63  ;;  %979 = vmatprep.mubr.bf16.mxu0 %v12653_v0 }
  0x76   :  { %1020 = vmatprep.mubr.bf16.mxu1 %v12653_v0  ;;  %v535_v0 = vld [vmem:[#allocation4 + $0x1b0] sm:$0xff] }
  0x77   :  { %950 = vmatpush1.bf16.msra.mxu0 %v10594_v9  ;;  %v10650_v39 = vcombine.high %v531_v24, %v535_v0  ;;  %v10656_v55 = vcombine.low %v531_v24, %v535_v0 }
  0x78   :  { %991 = vmatpush1.bf16.msra.mxu1 %v10598_v14  ;;  %951 = vmatprep.subr.bf16.mxu0 %v10600_v15 }
  0x79   :  { %992 = vmatprep.subr.bf16.mxu1 %v10603_v16 }
  0x7b   :  { %952 = vmatpush1.bf16.msra.mxu0 %v10608_v25 }
  0x7c   :  { %993 = vmatpush1.bf16.msra.mxu1 %v10612_v30  ;;  %953 = vmatprep.subr.bf16.mxu0 %v10614_v31  ;;  %v536_v31 = vld [vmem:[#allocation4 + $0x1b8] sm:$0xff] }
  0x7d   :  { %994 = vmatprep.subr.bf16.mxu1 %v10617_v32  ;;  %v532_v32 = vld [vmem:[#allocation4 + $0x198] sm:$0xff] }
  0x7e   :  { %v10653_v40 = vcombine.high %v532_v32, %v536_v31  ;;  %v10660_v1 = vcombine.low %v532_v32, %v536_v31  ;;  %v12807_v31 = vmov 0  }
  0x7f   :  { %954 = vmatpush1.bf16.msra.mxu0 %v10620_v42  ;;  %v544_v42 = vld [vmem:[#allocation4 + $0x1f8] sm:$0xff] }
  0x80   :  { %995 = vmatpush1.bf16.msra.mxu1 %v10624_v48  ;;  %955 = vmatprep.subr.bf16.mxu0 %v10626_v53  ;;  %v543_v53 = vld [vmem:[#allocation4 + $0x1f0] sm:$0xff]  ;;  %v540_v48 = vld [vmem:[#allocation4 + $0x1d8] sm:$0xff] }
  0x81   :  { %996 = vmatprep.subr.bf16.mxu1 %v10629_v54  ;;  %v539_v54 = vld [vmem:[#allocation4 + $0x1d0] sm:$0xff]  ;;  %v10665_v7 = vcombine.high %v540_v48, %v544_v42  ;;  %v10672_v0 = vcombine.low %v540_v48, %v544_v42 }
  0x82   :  { %v10662_v6 = vcombine.high %v539_v54, %v543_v53 }
  0x83   :  { %956 = vmatpush1.bf16.msra.mxu0 %v10632_v8 }
  0x84   :  { %997 = vmatpush1.bf16.msra.mxu1 %v10636_v17  ;;  %957 = vmatprep.subr.bf16.mxu0 %v10638_v22 }
  0x85   :  { %998 = vmatprep.subr.bf16.mxu1 %v10641_v23  ;;  %v10668_v23 = vcombine.low %v539_v54, %v543_v53 }
  0x87   :  { %958 = vmatpush1.bf16.msra.mxu0 %v10644_v33 }
  0x88   :  { %999 = vmatpush1.bf16.msra.mxu1 %v10648_v38  ;;  %959 = vmatprep.subr.bf16.mxu0 %v10650_v39 }
  0x89   :  { %1000 = vmatprep.subr.bf16.mxu1 %v10653_v40 }
  0x8b   :  { %960 = vmatpush1.bf16.msra.mxu0 %v10656_v55 }
  0x8c   :  { %1001 = vmatpush1.bf16.msra.mxu1 %v10660_v1  ;;  %961 = vmatprep.subr.bf16.mxu0 %v10662_v6 }
  0x8d   :  { %1002 = vmatprep.subr.bf16.mxu1 %v10665_v7 }
  0x8f   :  { %962 = vmatpush1.bf16.msra.mxu0 %v10668_v23 }
  0x90   :  { %1003 = vmatpush1.bf16.msra.mxu1 %v10672_v0  ;;  %1467 = vmatprep.subr.bf16.mxu0 %v10469_v41  ;;  %v75_v41 = vlaneseq }
  0x91   :  { %1508 = vmatprep.subr.bf16.mxu1 %v10471_v44 }
  0x92   :  { %980 = vmatmul.mubr.bf16.vlgmr.msra.gmra.mrb[20].mxu0 %v12807_v31  ;;  %v10715_v44 = vshrl.u32 %v75_v41, 7 }
  0x93   :  { %1021 = vmatmul.mubr.bf16.vlgmr.msra.gmra.mrb[20].mxu1 %v12807_v31  ;;  %1468 = vmatpush1.bf16.msra.mxu0 %v10479_v49 }
  0x94   :  { %1509 = vmatpush1.bf16.msra.mxu1 %v10481_v50  ;;  %1469 = vmatprep.subr.bf16.mxu0 %v10483_v51  ;;  %v12669_v49 = vsub.s32 0, %v10715_v44  ;;  %v10721_v50 = vld [vmem:[%s12646_s3] sm:$0xff]  ;;  %v12667_v51 = vsub.s32 1, %v10715_v44  ;;  %v12663_v32 = vsub.s32 5, %v10715_v44  ;;  %v12664_v53 = vsub.s32 6, %v10715_v44 }
  0x95   :  { %1510 = vmatprep.subr.bf16.mxu1 %v10485_v52  ;;  %1499 = vmatprep.mubr.bf16.mxu0 %v12807_v31  ;;  %v12668_v52 = vsub.s32 2, %v10715_v44  ;;  %vm77_vm1 = vcmp.lt.s32.totalorder %v10715_v44, 2 }
  0x96   :  { %1540 = vmatprep.mubr.bf16.mxu1 %v12807_v31 }
  0x97   :  { %1470 = vmatpush1.bf16.msra.mxu0 %v10490_v57  ;;  %v12666_v57 = vsub.s32 3, %v10715_v44 }
  0x98   :  { %1511 = vmatpush1.bf16.msra.mxu1 %v10494_v58  ;;  %1471 = vmatprep.subr.bf16.mxu0 %v10496_v59  ;;  %v105_v58 = vrot.slane %v10721_v50, %v12669_v49  ;;  %v109_v59 = vrot.slane %v10721_v50, %v12667_v51 }
  0x99   :  { %1512 = vmatprep.subr.bf16.mxu1 %v10499_v60  ;;  %v113_v60 = vrot.slane %v10721_v50, %v12668_v52 }
  0x9b   :  { %1472 = vmatpush1.bf16.msra.mxu0 %v10504_v2  ;;  %v117_v2 = vrot.slane %v10721_v50, %v12666_v57 }
  0x9c   :  { %1513 = vmatpush1.bf16.msra.mxu1 %v10508_v3  ;;  %1473 = vmatprep.subr.bf16.mxu0 %v10510_v4 }
  0x9d   :  { %1514 = vmatprep.subr.bf16.mxu1 %v10513_v5 }
  0x9f   :  { %1474 = vmatpush1.bf16.msra.mxu0 %v10517_v10 }
  0xa0   :  { %1515 = vmatpush1.bf16.msra.mxu1 %v10522_v11  ;;  %1475 = vmatprep.subr.bf16.mxu0 %v10524_v12 }
  0xa1   :  { %1516 = vmatprep.subr.bf16.mxu1 %v10527_v13 }
  0xa3   :  { %1476 = vmatpush1.bf16.msra.mxu0 %v10532_v18 }
  0xa4   :  { %1517 = vmatpush1.bf16.msra.mxu1 %v10536_v19  ;;  %1477 = vmatprep.subr.bf16.mxu0 %v10538_v20 }
  0xa5   :  { %1518 = vmatprep.subr.bf16.mxu1 %v10541_v21 }
  0xa7   :  { %1478 = vmatpush1.bf16.msra.mxu0 %v10544_v26 }
  0xa8   :  { %1519 = vmatpush1.bf16.msra.mxu1 %v10548_v27  ;;  %1479 = vmatprep.subr.bf16.mxu0 %v10550_v28 }
  0xa9   :  { %1520 = vmatprep.subr.bf16.mxu1 %v10553_v29 }
  0xab   :  { %1480 = vmatpush1.bf16.msra.mxu0 %v10556_v34 }
  0xac   :  { %1521 = vmatpush1.bf16.msra.mxu1 %v10560_v35  ;;  %1481 = vmatprep.subr.bf16.mxu0 %v10562_v36 }
  0xad   :  { %1522 = vmatprep.subr.bf16.mxu1 %v10565_v37 }
  0xaf   :  { %1482 = vmatpush1.bf16.msra.mxu0 %v10568_v43  ;;  %v12665_v43 = vsub.s32 4, %v10715_v44 }
  0xb0   :  { %1523 = vmatpush1.bf16.msra.mxu1 %v10572_v45  ;;  %1549 = vmatprep.subr.bf16.mxu0 %v10574_v46 }
  0xb1   :  { %1590 = vmatprep.subr.bf16.mxu1 %v10577_v47 }
 0x115   :  { %v263_v3 = vpop.f32.mrb[0].mxu0  ;;  %v316_v10 = vpop.f32.mrb[0].mxu1 }
 0x116   :  { %v264_v4 = vadd.f32 %v263_v3, %v105_v58  ;;  %v265_v5 = vpop.f32.mrb[1].mxu0  ;;  %v317_v13 = vadd.f32 %v316_v10, %v113_v60  ;;  %v318_v18 = vpop.f32.mrb[1].mxu1 }
 0x117   :  { %v266_v11 = vadd.f32 %v265_v5, %v109_v59  ;;  %v267_v12 = vpop.f32.mrb[2].mxu0  ;;  %v319_v21 = vadd.f32 %v318_v18, %v117_v2  ;;  %v320_v26 = vpop.f32.mrb[2].mxu1 }
 0x118   :  { %441 = vst [vmem:[#allocation2] sm:$0xff] %v264_v4  ;;  %v268_v19 = vadd.f32 %v267_v12, %v105_v58  ;;  %v269_v20 = vpop.f32.mrb[3].mxu0  ;;  %443 = vst [vmem:[#allocation2 + $0x10] sm:$0xff] %v317_v13  ;;  %v321_v28 = vadd.f32 %v320_v26, %v113_v60  ;;  %v322_v29 = vpop.f32.mrb[3].mxu1  ;;  %v12662_v4 = vsub.s32 7, %v10715_v44  ;;  %v121_v12 = vrot.slane %v10721_v50, %v12665_v43 }
 0x119   :  { %442 = vst [vmem:[#allocation2 + $0x8] sm:$0xff] %v266_v11  ;;  %v270_v27 = vadd.f32 %v269_v20, %v109_v59  ;;  %444 = vst [vmem:[#allocation2 + $0x18] sm:$0xff] %v319_v21  ;;  %v323_v34 = vadd.f32 %v322_v29, %v117_v2 }
 0x11a   :  { %449 = vst [vmem:[#allocation2 + $0x40] sm:$0xff] %v268_v19  ;;  %451 = vst [vmem:[#allocation2 + $0x50] sm:$0xff] %v321_v28 }
 0x11b   :  { %450 = vst [vmem:[#allocation2 + $0x48] sm:$0xff] %v270_v27  ;;  %452 = vst [vmem:[#allocation2 + $0x58] sm:$0xff] %v323_v34 }
 0x11d   :  { %v273_v35 = vpop.f32.mrb[4].mxu0 }
 0x11e   :  { %v274_v36 = vadd.f32 %v273_v35, %v105_v58  ;;  %v275_v37 = vpop.f32.mrb[5].mxu0  ;;  %v326_v45 = vpop.f32.mrb[4].mxu1 }
 0x11f   :  { %v276_v46 = vadd.f32 %v275_v37, %v109_v59  ;;  %v277_v47 = vpop.f32.mrb[6].mxu0  ;;  %v327_v42 = vadd.f32 %v326_v45, %v113_v60  ;;  %v328_v48 = vpop.f32.mrb[5].mxu1 }
 0x120   :  { %457 = vst [vmem:[#allocation2 + $0x80] sm:$0xff] %v274_v36  ;;  %v278_v54 = vadd.f32 %v277_v47, %v105_v58  ;;  %v279_v24 = vpop.f32.mrb[7].mxu0  ;;  %v329_v41 = vadd.f32 %v328_v48, %v117_v2  ;;  %v330_v3 = vpop.f32.mrb[6].mxu1  ;;  %v125_v58 = vrot.slane %v10721_v50, %v12663_v32 }
 0x121   :  { %458 = vst [vmem:[#allocation2 + $0x88] sm:$0xff] %v276_v46  ;;  %v280_v5 = vadd.f32 %v279_v24, %v109_v59  ;;  %459 = vst [vmem:[#allocation2 + $0x90] sm:$0xff] %v327_v42  ;;  %v331_v10 = vadd.f32 %v330_v3, %v113_v60  ;;  %v332_v11 = vpop.f32.mrb[7].mxu1  ;;  %v129_v59 = vrot.slane %v10721_v50, %v12664_v53 }
 0x122   :  { %465 = vst [vmem:[#allocation2 + $0xc0] sm:$0xff] %v278_v54  ;;  %460 = vst [vmem:[#allocation2 + $0x98] sm:$0xff] %v329_v41  ;;  %v333_v13 = vadd.f32 %v332_v11, %v117_v2  ;;  %v133_v60 = vrot.slane %v10721_v50, %v12662_v4 }
 0x123   :  { %466 = vst [vmem:[#allocation2 + $0xc8] sm:$0xff] %v280_v5  ;;  %467 = vst [vmem:[#allocation2 + $0xd0] sm:$0xff] %v331_v10 }
 0x124   :  { %468 = vst [vmem:[#allocation2 + $0xd8] sm:$0xff] %v333_v13 }
 0x125   :  { %v369_v18 = vpop.f32.mrb[8].mxu0 }
 0x126   :  { %v370_v19 = vadd.f32 %v369_v18, %v121_v12  ;;  %v371_v20 = vpop.f32.mrb[9].mxu0  ;;  %v422_v21 = vpop.f32.mrb[8].mxu1 }
 0x127   :  { %v372_v2 = vadd.f32 %v371_v20, %v125_v58  ;;  %v373_v26 = vpop.f32.mrb[10].mxu0  ;;  %v423_v27 = vadd.f32 %v422_v21, %v129_v59  ;;  %v424_v28 = vpop.f32.mrb[9].mxu1 }
 0x128   :  { %445 = vst [vmem:[#allocation2 + $0x20] sm:$0xff] %v370_v19  ;;  %v374_v29 = vadd.f32 %v373_v26, %v121_v12  ;;  %v375_v34 = vpop.f32.mrb[11].mxu0  ;;  %v425_v35 = vadd.f32 %v424_v28, %v133_v60  ;;  %v426_v36 = vpop.f32.mrb[10].mxu1 }
 0x129   :  { %446 = vst [vmem:[#allocation2 + $0x28] sm:$0xff] %v372_v2  ;;  %v376_v37 = vadd.f32 %v375_v34, %v125_v58  ;;  %447 = vst [vmem:[#allocation2 + $0x30] sm:$0xff] %v423_v27  ;;  %v427_v45 = vadd.f32 %v426_v36, %v129_v59  ;;  %v428_v46 = vpop.f32.mrb[11].mxu1 }
 0x12a   :  { %453 = vst [vmem:[#allocation2 + $0x60] sm:$0xff] %v374_v29  ;;  %448 = vst [vmem:[#allocation2 + $0x38] sm:$0xff] %v425_v35  ;;  %v429_v50 = vadd.f32 %v428_v46, %v133_v60 }
 0x12b   :  { %454 = vst [vmem:[#allocation2 + $0x68] sm:$0xff] %v376_v37  ;;  %455 = vst [vmem:[#allocation2 + $0x70] sm:$0xff] %v427_v45  ;;  %v473_v37 = vld [vmem:[#allocation2] sm:$0xf]  ;;  %v475_v45 = vld [vmem:[#allocation2 + $0x10] sm:$0xf] }
 0x12c   :  { %456 = vst [vmem:[#allocation2 + $0x78] sm:$0xff] %v429_v50 }
 0x12d   :  { %v379_v47 = vpop.f32.mrb[12].mxu0 }
 0x12e   :  { %v380_v42 = vadd.f32 %v379_v47, %v121_v12  ;;  %v381_v48 = vpop.f32.mrb[13].mxu0  ;;  %v432_v54 = vpop.f32.mrb[12].mxu1 }
 0x12f   :  { %v382_v24 = vadd.f32 %v381_v48, %v125_v58  ;;  %v383_v41 = vpop.f32.mrb[14].mxu0  ;;  %v433_v3 = vadd.f32 %v432_v54, %v129_v59  ;;  %v434_v5 = vpop.f32.mrb[13].mxu1  ;;  %v1078_v43 = vld [vmem:[#allocation2 + $0x20] sm:$0xf0] }
 0x130   :  { %461 = vst [vmem:[#allocation2 + $0xa0] sm:$0xff] %v380_v42  ;;  %v384_v10 = vadd.f32 %v383_v41, %v121_v12  ;;  %v385_v11 = vpop.f32.mrb[15].mxu0  ;;  %v435_v13 = vadd.f32 %v434_v5, %v133_v60  ;;  %v436_v18 = vpop.f32.mrb[14].mxu1  ;;  %v479_v47 = vld [vmem:[#allocation2 + $0x30] sm:$0xf] }
 0x131   :  { %462 = vst [vmem:[#allocation2 + $0xa8] sm:$0xff] %v382_v24  ;;  %v386_v19 = vadd.f32 %v385_v11, %v125_v58  ;;  %463 = vst [vmem:[#allocation2 + $0xb0] sm:$0xff] %v433_v3  ;;  %v437_v20 = vadd.f32 %v436_v18, %v129_v59  ;;  %v438_v21 = vpop.f32.mrb[15].mxu1  ;;  %v474_v58 = vld [vmem:[#allocation2 + $0x8] sm:$0xf] }
 0x132   :  { %469 = vst [vmem:[#allocation2 + $0xe0] sm:$0xff] %v384_v10  ;;  %464 = vst [vmem:[#allocation2 + $0xb8] sm:$0xff] %v435_v13  ;;  %v439_v2 = vadd.f32 %v438_v21, %v133_v60  ;;  %v477_v59 = vld [vmem:[#allocation2 + $0x20] sm:$0xf]  ;;  %v478_v48 = vld [vmem:[#allocation2 + $0x28] sm:$0xf] }
 0x133   :  { %470 = vst [vmem:[#allocation2 + $0xe8] sm:$0xff] %v386_v19  ;;  %471 = vst [vmem:[#allocation2 + $0xf0] sm:$0xff] %v437_v20  ;;  %v476_v3 = vld [vmem:[#allocation2 + $0x18] sm:$0xf] }
 0x134   :  { %472 = vst [vmem:[#allocation2 + $0xf8] sm:$0xff] %v439_v2  ;;  %v480_v11 = vld [vmem:[#allocation2 + $0x38] sm:$0xf] }
 0x145   :  { %v899_v26 = vpop.f32.mrb[16].mxu0 }
 0x146   :  { %v940_v27 = vpop.f32.mrb[16].mxu1  ;;  %v901_v28 = vpop.f32.mrb[17].mxu0  ;;  %v1029_v50 = vadd.f32 %v899_v26, %v473_v37 }
 0x147   :  { %v942_v29 = vpop.f32.mrb[17].mxu1  ;;  %v903_v34 = vpop.f32.mrb[18].mxu0  ;;  %v1031_v24 = vadd.f32 %v940_v27, %v475_v45  ;;  %v1030_v41 = vadd.f32 %v901_v28, %v474_v58 }
 0x148   :  { %v904_v12 = vpop.f32.mrb[19].mxu0  ;;  %v944_v35 = vpop.f32.mrb[18].mxu1  ;;  %v1032_v19 = vadd.f32 %v942_v29, %v476_v3 }
 0x149   :  { %v945_v36 = vpop.f32.mrb[19].mxu1 }
 0x165   :  { %v981_v46 = vpop.f32.mrb[20].mxu0 }
 0x166   :  { %v1033_v60 = vadd.f32 %v981_v46, %v477_v59  ;;  %v1022_v42 = vpop.f32.mrb[20].mxu1  ;;  %v983_v54 = vpop.f32.mrb[21].mxu0 }
 0x167   :  { %v1035_v5 = vadd.f32 %v1022_v42, %v479_v47  ;;  %v1034_v10 = vadd.f32 %v983_v54, %v478_v48  ;;  %v1024_v13 = vpop.f32.mrb[21].mxu1  ;;  %v985_v18 = vpop.f32.mrb[22].mxu0 }
 0x168   :  { %v1037_v20 = vsel %vm77_vm1, %v1029_v50, %v1033_v60  ;;  %v1036_v21 = vadd.f32 %v1024_v13, %v480_v11  ;;  %v986_v2 = vpop.f32.mrb[23].mxu0  ;;  %v1026_v26 = vpop.f32.mrb[22].mxu1  ;;  %v12812_v18 = vld [vmem:[#allocation18_spill] sm:$0xff] }
 0x169   :  { %v9090_v34 = vmul.f32 -1.442695, %v1037_v20  ;;  %v1039_v12 = vsel %vm77_vm1, %v1031_v24, %v1035_v5  ;;  %v1038_v27 = vsel %vm77_vm1, %v1030_v41, %v1034_v10  ;;  %v1027_v28 = vpop.f32.mrb[23].mxu1  ;;  %v1752_v20 = vld [vmem:[#allocation4 + $0x88] sm:$0xff] }
 0x16a   :  { %v9091_v35 = vmul.f32 -1.442695, %v1038_v27  ;;  %v1040_v36 = vsel %vm77_vm1, %v1032_v19, %v1036_v21  ;;  %v1755_v19 = vld [vmem:[#allocation4 + $0xa0] sm:$0xff]  ;;  %v1756_v2 = vld [vmem:[#allocation4 + $0xa8] sm:$0xff] }
 0x16b   :  { %9941 = vpow2.f32 %v9090_v34  ;;  %v9092_v29 = vmul.f32 -1.442695, %v1040_v36  ;;  %v10828_v34 = vcombine.low %v1752_v20, %v1756_v2  ;;  %v1759_v27 = vld [vmem:[#allocation4 + $0xc0] sm:$0xff] }
 0x16c   :  { %9943 = vpow2.f32 %v9091_v35  ;;  %v1763_v28 = vld [vmem:[#allocation4 + $0xe0] sm:$0xff]  ;;  %v1760_v35 = vld [vmem:[#allocation4 + $0xc8] sm:$0xff] }
 0x16d   :  { %9945 = vpow2.f32 %v9092_v29  ;;  %v10836_v36 = vcombine.high %v1759_v27, %v1763_v28  ;;  %v1764_v29 = vld [vmem:[#allocation4 + $0xe8] sm:$0xff] }
 0x16e   :  { %9947 = vtanh.f32 %v1039_v12  ;;  %v10830_v12 = vcombine.high %v1752_v20, %v1756_v2 }
 0x175   :  { %v9942_v37 = vpop.eup %9941 }
 0x176   :  { %v9944_v45 = vpop.eup %9943  ;;  %v1044_v58 = vadd.f32 1.0, %v9942_v37  ;;  %v10838_v37 = vcombine.low %v1759_v27, %v1763_v28 }
 0x177   :  { %v1050_v59 = vadd.f32 1.0, %v9944_v45  ;;  %v9946_v46 = vpop.eup %9945  ;;  %v10840_v45 = vcombine.low %v1760_v35, %v1764_v29 }
 0x178   :  { %9949 = vrcp.f32 %v1044_v58  ;;  %v9948_v50 = vpop.eup %9947  ;;  %v1057_v48 = vadd.f32 1.0, %v9946_v46  ;;  %v10842_v58 = vcombine.high %v1760_v35, %v1764_v29  ;;  %v1771_v46 = vld [vmem:[#allocation4 + $0x120] sm:$0xff] }
 0x179   :  { %9951 = vrcp.f32 %v1050_v59  ;;  %v1767_v59 = vld [vmem:[#allocation4 + $0x100] sm:$0xff] }
 0x17a   :  { %9953 = vrcp.f32 %v1057_v48 }
 0x182   :  { %v9950_v60 = vpop.eup %9949 }
 0x183   :  { %v9952_v47 = vpop.eup %9951  ;;  %v1061_v42 = vmul.f32 %v9950_v60, %v9948_v50  ;;  %v1768_v50 = vld [vmem:[#allocation4 + $0x108] sm:$0xff]  ;;  %v10848_v60 = vcombine.high %v1767_v59, %v1771_v46 }
 0x184   :  { %v1060_v54 = vmul.f32 0.0, %v9952_v47  ;;  %v9954_v41 = vpop.eup %9953  ;;  %v1772_v47 = vld [vmem:[#allocation4 + $0x128] sm:$0xff] }
 0x185   :  { %v10852_v48 = vcombine.low %v1768_v50, %v1772_v47 }
 0x186   :  { %v10763_v24 = vadd.f32 %v1061_v42, %v1060_v54  ;;  %v10850_v42 = vcombine.low %v1767_v59, %v1771_v46  ;;  %v10854_v54 = vcombine.high %v1768_v50, %v1772_v47 }
 0x188   :  { %9955 = vtanh.f32 %v10763_v24 }
 0x192   :  { %v9956_v3 = vpop.eup %9955 }
 0x193   :  { %v1064_v5 = vmul.f32 %v9956_v3, %v9954_v41  ;;  %v1775_v41 = vld [vmem:[#allocation4 + $0x140] sm:$0xff] }
 0x194   :  { %v1779_v3 = vld [vmem:[#allocation4 + $0x160] sm:$0xff] }
 0x195   :  { %1065 = vst [vmem:[#allocation3] sm:$0x3] %v1064_v5  ;;  %v1067_v10 = vrot.slane %v1064_v5, 2  ;;  %v1070_v11 = vrot.slane %v1064_v5, 6  ;;  %1073 = vst [vmem:[#allocation3 + $0x8] sm:$0xc] %v1064_v5  ;;  %v1082_v13 = vpack.c.bf16 %v1064_v5, %v1064_v5 }
 0x196   :  { %v1776_v5 = vld [vmem:[#allocation4 + $0x148] sm:$0xff] }
 0x197   :  { %1069 = vst [vmem:[#allocation3 + $0x30] sm:$0xc0] %v1067_v10  ;;  %1072 = vst [vmem:[#allocation3 + $0x38] sm:$0x30] %v1070_v11  ;;  %1500 = vmatmul.mubr.bf16.vlgmr.msra.gmra.mrb[24].mxu0 %v1082_v13  ;;  %1541 = vmatmul.mubr.bf16.vlgmr.msra.gmra.mrb[24].mxu1 %v1082_v13  ;;  %v10857_v10 = vcombine.high %v1775_v41, %v1779_v3  ;;  %v1780_v11 = vld [vmem:[#allocation4 + $0x168] sm:$0xff] }
 0x198   :  { %1550 = vmatpush1.bf16.msra.mxu0 %v10580_v56  ;;  %1591 = vmatpush1.bf16.msra.mxu1 %v10584_v61  ;;  %v12808_v56 = vld [vmem:[#allocation14_spill] sm:$0xff]  ;;  %v12809_v61 = vld [vmem:[#allocation15_spill] sm:$0xff] }
 0x199   :  { %1551 = vmatprep.subr.bf16.mxu0 %v10586_v62  ;;  %1592 = vmatprep.subr.bf16.mxu1 %v10589_v63  ;;  %v12810_v62 = vld [vmem:[#allocation16_spill] sm:$0xff]  ;;  %v12811_v63 = vld [vmem:[#allocation17_spill] sm:$0xff] }
 0x19a   :  { %1581 = vmatprep.mubr.bf16.mxu0 %v12807_v31  ;;  %1622 = vmatprep.mubr.bf16.mxu1 %v12807_v31 }
 0x19c   :  { %1552 = vmatpush1.bf16.msra.mxu0 %v10594_v9  ;;  %1593 = vmatpush1.bf16.msra.mxu1 %v10598_v14  ;;  %v12813_v9 = vld [vmem:[#allocation19_spill] sm:$0xff]  ;;  %v12814_v14 = vld [vmem:[#allocation20_spill] sm:$0xff] }
 0x19d   :  { %1553 = vmatprep.subr.bf16.mxu0 %v10600_v15  ;;  %1594 = vmatprep.subr.bf16.mxu1 %v10603_v16  ;;  %v1735_v15 = vld [vmem:[#allocation4] sm:$0xff] }
 0x19e   :  { %v1739_v16 = vld [vmem:[#allocation4 + $0x20] sm:$0xff] }
 0x1a0   :  { %1554 = vmatpush1.bf16.msra.mxu0 %v10608_v25  ;;  %1595 = vmatpush1.bf16.msra.mxu1 %v10612_v30  ;;  %v1736_v25 = vld [vmem:[#allocation4 + $0x8] sm:$0xff]  ;;  %v10800_v30 = vcombine.high %v1735_v15, %v1739_v16 }
 0x1a1   :  { %1555 = vmatprep.subr.bf16.mxu0 %v12808_v56  ;;  %1596 = vmatprep.subr.bf16.mxu1 %v12809_v61  ;;  %v1787_v56 = vld [vmem:[#allocation4 + $0x1a0] sm:$0xff]  ;;  %v10861_v61 = vcombine.low %v1775_v41, %v1779_v3 }
 0x1a4   :  { %1556 = vmatpush1.bf16.msra.mxu0 %v12810_v62  ;;  %1597 = vmatpush1.bf16.msra.mxu1 %v12811_v63  ;;  %v10863_v62 = vcombine.high %v1776_v5, %v1780_v11  ;;  %v1784_v63 = vld [vmem:[#allocation4 + $0x188] sm:$0xff] }
 0x1a5   :  { %1557 = vmatprep.subr.bf16.mxu0 %v12812_v18  ;;  %1598 = vmatprep.subr.bf16.mxu1 %v12813_v9  ;;  %v1788_v18 = vld [vmem:[#allocation4 + $0x1a8] sm:$0xff]  ;;  %v10867_v9 = vcombine.low %v1776_v5, %v1780_v11 }
 0x1a6   :  { %v10883_v27 = vcombine.low %v1784_v63, %v1788_v18 }
 0x1a8   :  { %1558 = vmatpush1.bf16.msra.mxu0 %v10632_v8  ;;  %1599 = vmatpush1.bf16.msra.mxu1 %v10636_v17  ;;  %v1740_v8 = vld [vmem:[#allocation4 + $0x28] sm:$0xff]  ;;  %v10802_v17 = vcombine.low %v1735_v15, %v1739_v16  ;;  %v1791_v15 = vld [vmem:[#allocation4 + $0x1c0] sm:$0xff] }
 0x1a9   :  { %1559 = vmatprep.subr.bf16.mxu0 %v10638_v22  ;;  %1600 = vmatprep.subr.bf16.mxu1 %v12814_v14  ;;  %v10804_v22 = vcombine.low %v1736_v25, %v1740_v8  ;;  %v1795_v16 = vld [vmem:[#allocation4 + $0x1e0] sm:$0xff] }
 0x1aa   :  { %v10885_v28 = vcombine.high %v1791_v15, %v1795_v16  ;;  %v10891_v29 = vcombine.low %v1791_v15, %v1795_v16 }
 0x1ac   :  { %1560 = vmatpush1.bf16.msra.mxu0 %v10644_v33  ;;  %1601 = vmatpush1.bf16.msra.mxu1 %v10648_v38  ;;  %v10806_v33 = vcombine.high %v1736_v25, %v1740_v8  ;;  %v1747_v38 = vld [vmem:[#allocation4 + $0x60] sm:$0xff]  ;;  %v10872_v25 = vcombine.high %v1784_v63, %v1788_v18  ;;  %v1737_v8 = vld [vmem:[#allocation4 + $0x10] sm:$0xff]  ;;  %12815 = vst [vmem:[#allocation14_spill] sm:$0xff] %v10885_v28  ;;  %12817 = vst [vmem:[#allocation16_spill] sm:$0xff] %v10891_v29 }
 0x1ad   :  { %1561 = vmatprep.subr.bf16.mxu0 %v10650_v39  ;;  %1602 = vmatprep.subr.bf16.mxu1 %v10653_v40  ;;  %v1744_v39 = vld [vmem:[#allocation4 + $0x48] sm:$0xff] }
 0x1b0   :  { %1562 = vmatpush1.bf16.msra.mxu0 %v10656_v55  ;;  %1603 = vmatpush1.bf16.msra.mxu1 %v10660_v1  ;;  %v1748_v55 = vld [vmem:[#allocation4 + $0x68] sm:$0xff] }
 0x1b1   :  { %1563 = vmatprep.subr.bf16.mxu0 %v10662_v6  ;;  %1604 = vmatprep.subr.bf16.mxu1 %v10665_v7  ;;  %v10816_v6 = vcombine.low %v1744_v39, %v1748_v55  ;;  %v10818_v7 = vcombine.high %v1744_v39, %v1748_v55  ;;  %v1792_v39 = vld [vmem:[#allocation4 + $0x1c8] sm:$0xff] }
 0x1b2   :  { %v1796_v55 = vld [vmem:[#allocation4 + $0x1e8] sm:$0xff] }
 0x1b3   :  { %v10888_v35 = vcombine.high %v1792_v39, %v1796_v55  ;;  %v10895_v59 = vcombine.low %v1792_v39, %v1796_v55  ;;  %v1075_v39 = vld [vmem:[#allocation2 + $0x8] sm:$0xf0]  ;;  %v1077_v55 = vld [vmem:[#allocation2 + $0x18] sm:$0xf0] }
 0x1b4   :  { %1564 = vmatpush1.bf16.msra.mxu0 %v10668_v23  ;;  %1605 = vmatpush1.bf16.msra.mxu1 %v10672_v0  ;;  %v1743_v23 = vld [vmem:[#allocation4 + $0x40] sm:$0xff] }
 0x1b5   :  { %2119 = vmatprep.subr.bf16.mxu0 %v10800_v30  ;;  %2160 = vmatprep.subr.bf16.mxu1 %v10806_v33  ;;  %v10812_v40 = vcombine.high %v1743_v23, %v1747_v38  ;;  %v10814_v1 = vcombine.low %v1743_v23, %v1747_v38  ;;  %v1751_v0 = vld [vmem:[#allocation4 + $0x80] sm:$0xff]  ;;  %v1741_v23 = vld [vmem:[#allocation4 + $0x30] sm:$0xff]  ;;  %v1738_v38 = vld [vmem:[#allocation4 + $0x18] sm:$0xff]  ;;  %12816 = vst [vmem:[#allocation15_spill] sm:$0xff] %v10888_v35 }
 0x1b6   :  { %v10824_v21 = vcombine.high %v1751_v0, %v1755_v19  ;;  %v10826_v26 = vcombine.low %v1751_v0, %v1755_v19  ;;  %v10874_v0 = vcombine.low %v1737_v8, %v1741_v23  ;;  %v1742_v19 = vld [vmem:[#allocation4 + $0x38] sm:$0xff]  ;;  %12818 = vst [vmem:[#allocation17_spill] sm:$0xff] %v10895_v59  ;;  %v10897_v46 = vcombine.high %v1737_v8, %v1741_v23  ;;  %v1074_v23 = vld [vmem:[#allocation2] sm:$0xf0] }
 0x1b7   :  { %1582 = vmatmul.mubr.bf16.vlgmr.msra.gmra.mrb[28].mxu0 %v1082_v13  ;;  %1623 = vmatmul.mubr.bf16.vlgmr.msra.gmra.mrb[28].mxu1 %v1082_v13  ;;  %v1783_v13 = vld [vmem:[#allocation4 + $0x180] sm:$0xff]  ;;  %v10879_v2 = vcombine.low %v1738_v38, %v1742_v19  ;;  %v10900_v50 = vcombine.high %v1738_v38, %v1742_v19  ;;  %v1076_v38 = vld [vmem:[#allocation2 + $0x10] sm:$0xf0] }
 0x1b8   :  { %2151 = vmatprep.mubr.bf16.mxu0 %v12807_v31  ;;  %2192 = vmatprep.mubr.bf16.mxu1 %v12807_v31  ;;  %v10869_v14 = vcombine.high %v1783_v13, %v1787_v56  ;;  %v10877_v20 = vcombine.low %v1783_v13, %v1787_v56  ;;  %12819 = vst [vmem:[#allocation18_spill] sm:$0xff] %v10897_v46 }
 0x1b9   :  { %2120 = vmatpush1.bf16.msra.mxu0 %v10802_v17  ;;  %2161 = vmatpush1.bf16.msra.mxu1 %v10804_v22  ;;  %12820 = vst [vmem:[#allocation19_spill] sm:$0xff] %v10900_v50 }
 0x1ba   :  { %2121 = vmatprep.subr.bf16.mxu0 %v10812_v40  ;;  %2162 = vmatprep.subr.bf16.mxu1 %v10818_v7 }
 0x1bd   :  { %2122 = vmatpush1.bf16.msra.mxu0 %v10814_v1  ;;  %2163 = vmatpush1.bf16.msra.mxu1 %v10816_v6 }
 0x1be   :  { %2123 = vmatprep.subr.bf16.mxu0 %v10824_v21  ;;  %2164 = vmatprep.subr.bf16.mxu1 %v10830_v12 }
 0x1c1   :  { %2124 = vmatpush1.bf16.msra.mxu0 %v10826_v26  ;;  %2165 = vmatpush1.bf16.msra.mxu1 %v10828_v34 }
 0x1c2   :  { %2125 = vmatprep.subr.bf16.mxu0 %v10836_v36  ;;  %2166 = vmatprep.subr.bf16.mxu1 %v10842_v58 }
 0x1c5   :  { %2126 = vmatpush1.bf16.msra.mxu0 %v10838_v37  ;;  %2167 = vmatpush1.bf16.msra.mxu1 %v10840_v45 }
 0x1c6   :  { %2127 = vmatprep.subr.bf16.mxu0 %v10848_v60  ;;  %2168 = vmatprep.subr.bf16.mxu1 %v10854_v54 }
 0x1c9   :  { %2128 = vmatpush1.bf16.msra.mxu0 %v10850_v42  ;;  %2169 = vmatpush1.bf16.msra.mxu1 %v10852_v48 }
 0x1ca   :  { %2129 = vmatprep.subr.bf16.mxu0 %v10857_v10  ;;  %2170 = vmatprep.subr.bf16.mxu1 %v10863_v62 }
 0x1cd   :  { %2130 = vmatpush1.bf16.msra.mxu0 %v10861_v61  ;;  %2171 = vmatpush1.bf16.msra.mxu1 %v10867_v9 }
 0x1ce   :  { %2131 = vmatprep.subr.bf16.mxu0 %v10869_v14  ;;  %2172 = vmatprep.subr.bf16.mxu1 %v10872_v25 }
 0x1d1   :  { %2132 = vmatpush1.bf16.msra.mxu0 %v10877_v20  ;;  %2173 = vmatpush1.bf16.msra.mxu1 %v10883_v27 }
 0x1d2   :  { %2133 = vmatprep.subr.bf16.mxu0 %v10885_v28  ;;  %2174 = vmatprep.subr.bf16.mxu1 %v10888_v35 }
 0x1d5   :  { %2134 = vmatpush1.bf16.msra.mxu0 %v10891_v29  ;;  %2175 = vmatpush1.bf16.msra.mxu1 %v10895_v59  ;;  %v1081_v59 = vld [vmem:[#allocation2 + $0x38] sm:$0xf0] }
 0x1d6   :  { %2201 = vmatprep.subr.bf16.mxu0 %v10897_v46  ;;  %2242 = vmatprep.subr.bf16.mxu1 %v10900_v50  ;;  %v1079_v46 = vld [vmem:[#allocation2 + $0x28] sm:$0xf0] }
 0x26a   :  { %v1501_v47 = vpop.f32.mrb[24].mxu0  ;;  %v1542_v41 = vpop.f32.mrb[24].mxu1 }
 0x26b   :  { %v1503_v3 = vpop.f32.mrb[25].mxu0  ;;  %v1544_v5 = vpop.f32.mrb[25].mxu1  ;;  %v1639_v18 = vrot.slane %v1501_v47, 4  ;;  %v1641_v15 = vrot.slane %v1542_v41, 4 }
 0x26c   :  { %v1505_v11 = vpop.f32.mrb[26].mxu0  ;;  %v1546_v13 = vpop.f32.mrb[26].mxu1  ;;  %v1640_v16 = vrot.slane %v1503_v3, 4  ;;  %v1642_v8 = vrot.slane %v1544_v5, 4 }
 0x26d   :  { %v1506_v56 = vpop.f32.mrb[27].mxu0  ;;  %v1547_v63 = vpop.f32.mrb[27].mxu1  ;;  %v1655_v32 = vadd.f32 %v1639_v18, %v1074_v23  ;;  %v1657_v53 = vadd.f32 %v1641_v15, %v1076_v38 }
 0x26e   :  { %v1656_v13 = vadd.f32 %v1640_v16, %v1075_v39  ;;  %v1658_v56 = vadd.f32 %v1642_v8, %v1077_v55  ;;  %v1080_v63 = vld [vmem:[#allocation2 + $0x30] sm:$0xf0] }
 0x26f   :  { %v1667_v23 = vrot.slane %v1655_v32, 4  ;;  %v1669_v38 = vrot.slane %v1657_v53, 4 }
 0x270   :  { %v1668_v28 = vrot.slane %v1656_v13, 4  ;;  %v1670_v16 = vrot.slane %v1658_v56, 4 }
 0x28a   :  { %v1583_v19 = vpop.f32.mrb[28].mxu0  ;;  %v1624_v4 = vpop.f32.mrb[28].mxu1 }
 0x28b   :  { %v1643_v57 = vrot.slane %v1583_v19, 4  ;;  %v1645_v51 = vrot.slane %v1624_v4, 4  ;;  %v1585_v52 = vpop.f32.mrb[29].mxu0  ;;  %v1626_v11 = vpop.f32.mrb[29].mxu1 }
 0x28c   :  { %v1644_v47 = vrot.slane %v1585_v52, 4  ;;  %v1646_v41 = vrot.slane %v1626_v11, 4  ;;  %v1587_v3 = vpop.f32.mrb[30].mxu0  ;;  %v1628_v5 = vpop.f32.mrb[30].mxu1 }
 0x28d   :  { %v1659_v49 = vadd.f32 %v1643_v57, %v1078_v43  ;;  %v1661_v50 = vadd.f32 %v1645_v51, %v1080_v63  ;;  %v1588_v29 = vpop.f32.mrb[31].mxu0  ;;  %v1629_v35 = vpop.f32.mrb[31].mxu1  ;;  %v1749_v5 = vld [vmem:[#allocation4 + $0x70] sm:$0xff] }
 0x28e   :  { %v1660_v18 = vadd.f32 %v1644_v47, %v1079_v46  ;;  %v1662_v15 = vadd.f32 %v1646_v41, %v1081_v59  ;;  %v1745_v41 = vld [vmem:[#allocation4 + $0x50] sm:$0xff] }
 0x28f   :  { %v1679_v4 = vrot.slane %v1659_v49, 4  ;;  %v1681_v19 = vrot.slane %v1661_v50, 4 }
 0x290   :  { %v1680_v8 = vrot.slane %v1660_v18, 4  ;;  %v1682_v39 = vrot.slane %v1662_v15, 4  ;;  %v1746_v18 = vld [vmem:[#allocation4 + $0x58] sm:$0xff] }
 0x291   :  { %v1687_v52 = vsel %vm77_vm1, %v1667_v23, %v1679_v4  ;;  %v1689_v51 = vsel %vm77_vm1, %v1669_v38, %v1681_v19  ;;  %v1750_v15 = vld [vmem:[#allocation4 + $0x78] sm:$0xff]  ;;  %v10918_v4 = vcombine.high %v1745_v41, %v1749_v5 }
 0x292   :  { %v9157_v57 = vmul.f32 -1.442695, %v1687_v52  ;;  %v1688_v43 = vsel %vm77_vm1, %v1668_v28, %v1680_v8  ;;  %v1690_v32 = vsel %vm77_vm1, %v1670_v16, %v1682_v39  ;;  %v10920_v19 = vcombine.high %v1746_v18, %v1750_v15  ;;  %v1753_v52 = vld [vmem:[#allocation4 + $0x90] sm:$0xff] }
 0x293   :  { %v9158_v53 = vmul.f32 -1.442695, %v1688_v43  ;;  %v9159_v49 = vmul.f32 -1.442695, %v1690_v32  ;;  %v1758_v43 = vld [vmem:[#allocation4 + $0xb8] sm:$0xff]  ;;  %v10928_v32 = vcombine.low %v1745_v41, %v1749_v5 }
 0x294   :  { %9957 = vpow2.f32 %v9157_v57  ;;  %v1754_v57 = vld [vmem:[#allocation4 + $0x98] sm:$0xff] }
 0x295   :  { %9959 = vpow2.f32 %v9158_v53  ;;  %v10930_v53 = vcombine.low %v1746_v18, %v1750_v15  ;;  %v1770_v41 = vld [vmem:[#allocation4 + $0x118] sm:$0xff] }
 0x296   :  { %9961 = vpow2.f32 %v9159_v49 }
 0x297   :  { %9963 = vtanh.f32 %v1689_v51  ;;  %v1757_v51 = vld [vmem:[#allocation4 + $0xb0] sm:$0xff] }
 0x298   :  { %v10934_v49 = vcombine.high %v1753_v52, %v1757_v51 }
 0x29e   :  { %v9958_v35 = vpop.eup %9957 }
 0x29f   :  { %v9960_v29 = vpop.eup %9959  ;;  %v1694_v59 = vadd.f32 1.0, %v9958_v35  ;;  %v10936_v35 = vcombine.high %v1754_v57, %v1758_v43 }
 0x2a0   :  { %v1700_v46 = vadd.f32 1.0, %v9960_v29  ;;  %v9962_v50 = vpop.eup %9961  ;;  %v1761_v29 = vld [vmem:[#allocation4 + $0xd0] sm:$0xff] }
 0x2a1   :  { %9965 = vrcp.f32 %v1694_v59  ;;  %v9964_v55 = vpop.eup %9963  ;;  %v1707_v56 = vadd.f32 1.0, %v9962_v50  ;;  %v1765_v59 = vld [vmem:[#allocation4 + $0xf0] sm:$0xff]  ;;  %v1766_v50 = vld [vmem:[#allocation4 + $0xf8] sm:$0xff] }
 0x2a2   :  { %9967 = vrcp.f32 %v1700_v46  ;;  %v1762_v46 = vld [vmem:[#allocation4 + $0xd8] sm:$0xff]  ;;  %v10954_v5 = vcombine.low %v1761_v29, %v1765_v59 }
 0x2a3   :  { %9969 = vrcp.f32 %v1707_v56  ;;  %v1769_v56 = vld [vmem:[#allocation4 + $0x110] sm:$0xff]  ;;  %v10956_v18 = vcombine.low %v1762_v46, %v1766_v50 }
 0x2a4   :  { %12821 = vst [vmem:[#allocation20_spill] sm:$0xff] %v10954_v5 }
 0x2a5   :  { %12822 = vst [vmem:[#allocation21_spill] sm:$0xff] %v10956_v18 }
 0x2ab   :  { %v9966_v11 = vpop.eup %9965 }
 0x2ac   :  { %v9968_v13 = vpop.eup %9967  ;;  %v1711_v28 = vmul.f32 %v9966_v11, %v9964_v55  ;;  %v10942_v55 = vcombine.low %v1753_v52, %v1757_v51  ;;  %v10944_v11 = vcombine.low %v1754_v57, %v1758_v43 }
 0x2ad   :  { %v1710_v63 = vmul.f32 %v9968_v13, %v10763_v24  ;;  %v9970_v3 = vpop.eup %9969  ;;  %v10948_v13 = vcombine.high %v1761_v29, %v1765_v59  ;;  %v1785_v29 = vld [vmem:[#allocation4 + $0x190] sm:$0xff] }
 0x2ae   :  { %v1789_v59 = vld [vmem:[#allocation4 + $0x1b0] sm:$0xff] }
 0x2af   :  { %v10915_v47 = vadd.f32 %v1711_v28, %v1710_v63  ;;  %v10950_v28 = vcombine.high %v1762_v46, %v1766_v50  ;;  %v1773_v63 = vld [vmem:[#allocation4 + $0x130] sm:$0xff]  ;;  %v1786_v46 = vld [vmem:[#allocation4 + $0x198] sm:$0xff] }
 0x2b0   :  { %v10960_v15 = vcombine.high %v1769_v56, %v1773_v63  ;;  %v10966_v52 = vcombine.low %v1769_v56, %v1773_v63  ;;  %v1790_v50 = vld [vmem:[#allocation4 + $0x1b8] sm:$0xff] }
 0x2b1   :  { %9971 = vtanh.f32 %v10915_v47 }
 0x2b2   :  { %12823 = vst [vmem:[#allocation22_spill] sm:$0xff] %v10960_v15 }
 0x2bb   :  { %v9972_v23 = vpop.eup %9971 }
 0x2bc   :  { %v1714_v38 = vmul.f32 %v9972_v23, %v9970_v3  ;;  %v1774_v3 = vld [vmem:[#allocation4 + $0x138] sm:$0xff] }
 0x2bd   :  { %v10962_v23 = vcombine.high %v1770_v41, %v1774_v3  ;;  %v10968_v51 = vcombine.low %v1770_v41, %v1774_v3  ;;  %v10984_v41 = vcombine.high %v1785_v29, %v1789_v59  ;;  %v10986_v3 = vcombine.high %v1786_v46, %v1790_v50 }
 0x2be   :  { %v1716_v16 = vrot.slane %v1714_v38, 4  ;;  %v1719_v8 = vrot.slane %v1714_v38, 6  ;;  %v1722_v39 = vrot.slane %v1714_v38, 2  ;;  %v10922_v24 = vpack.c.bf16 %v1714_v38, %v1714_v38  ;;  %v1777_v38 = vld [vmem:[#allocation4 + $0x150] sm:$0xff] }
 0x2bf   :  { %12824 = vst [vmem:[#allocation23_spill] sm:$0xff] %v10962_v23 }
 0x2c0   :  { %1718 = vst [vmem:[#allocation3] sm:$0x30] %v1716_v16  ;;  %1721 = vst [vmem:[#allocation3 + $0x30] sm:$0xc] %v1719_v8  ;;  %2152 = vmatmul.mubr.bf16.vlgmr.msra.gmra.mrb[32].mxu0 %v10922_v24  ;;  %2193 = vmatmul.mubr.bf16.vlgmr.msra.gmra.mrb[32].mxu1 %v10922_v24  ;;  %v1778_v8 = vld [vmem:[#allocation4 + $0x158] sm:$0xff] }
 0x2c1   :  { %1724 = vst [vmem:[#allocation3 + $0x38] sm:$0x3] %v1722_v39  ;;  %1725 = vst [vmem:[#allocation3 + $0x8] sm:$0xc0] %v1716_v16  ;;  %2202 = vmatpush1.bf16.msra.mxu0 %v10874_v0  ;;  %2243 = vmatpush1.bf16.msra.mxu1 %v10879_v2  ;;  %v1781_v16 = vld [vmem:[#allocation4 + $0x170] sm:$0xff]  ;;  %v1782_v39 = vld [vmem:[#allocation4 + $0x178] sm:$0xff] }
 0x2c2   :  { %2203 = vmatprep.subr.bf16.mxu0 %v10918_v4  ;;  %2244 = vmatprep.subr.bf16.mxu1 %v10920_v19  ;;  %v10972_v57 = vcombine.high %v1777_v38, %v1781_v16  ;;  %v10974_v43 = vcombine.high %v1778_v8, %v1782_v39  ;;  %v10978_v56 = vcombine.low %v1777_v38, %v1781_v16 }
 0x2c3   :  { %2233 = vmatprep.mubr.bf16.mxu0 %v12807_v31  ;;  %2274 = vmatprep.mubr.bf16.mxu1 %v12807_v31  ;;  %v10980_v63 = vcombine.low %v1778_v8, %v1782_v39  ;;  %v10990_v38 = vcombine.low %v1785_v29, %v1789_v59  ;;  %v10992_v16 = vcombine.low %v1786_v46, %v1790_v50 }
 0x2c4   :  { %12825 = vst [vmem:[#allocation24_spill] sm:$0xff] %v10974_v43  ;;  %12826 = vst [vmem:[#allocation25_spill] sm:$0xff] %v10978_v56 }
 0x2c5   :  { %2204 = vmatpush1.bf16.msra.mxu0 %v10928_v32  ;;  %2245 = vmatpush1.bf16.msra.mxu1 %v10930_v53 }
 0x2c6   :  { %2205 = vmatprep.subr.bf16.mxu0 %v10934_v49  ;;  %2246 = vmatprep.subr.bf16.mxu1 %v10936_v35 }
 0x2c9   :  { %2206 = vmatpush1.bf16.msra.mxu0 %v10942_v55  ;;  %2247 = vmatpush1.bf16.msra.mxu1 %v10944_v11 }
 0x2ca   :  { %2207 = vmatprep.subr.bf16.mxu0 %v10948_v13  ;;  %2248 = vmatprep.subr.bf16.mxu1 %v10950_v28 }
 0x2cd   :  { %2208 = vmatpush1.bf16.msra.mxu0 %v10954_v5  ;;  %2249 = vmatpush1.bf16.msra.mxu1 %v10956_v18  ;;  %v1794_v18 = vld [vmem:[#allocation4 + $0x1d8] sm:$0xff] }
 0x2ce   :  { %2209 = vmatprep.subr.bf16.mxu0 %v10960_v15  ;;  %2250 = vmatprep.subr.bf16.mxu1 %v10962_v23  ;;  %v1793_v23 = vld [vmem:[#allocation4 + $0x1d0] sm:$0xff]  ;;  %v1798_v5 = vld [vmem:[#allocation4 + $0x1f8] sm:$0xff] }
 0x2cf   :  { %v1797_v15 = vld [vmem:[#allocation4 + $0x1f0] sm:$0xff]  ;;  %v10998_v39 = vcombine.high %v1794_v18, %v1798_v5 }
 0x2d0   :  { %v10996_v8 = vcombine.high %v1793_v23, %v1797_v15 }
 0x2d1   :  { %2210 = vmatpush1.bf16.msra.mxu0 %v10966_v52  ;;  %2251 = vmatpush1.bf16.msra.mxu1 %v10968_v51 }
 0x2d2   :  { %2211 = vmatprep.subr.bf16.mxu0 %v10972_v57  ;;  %2252 = vmatprep.subr.bf16.mxu1 %v10974_v43  ;;  %v11002_v43 = vcombine.low %v1793_v23, %v1797_v15 }
 0x2d5   :  { %2212 = vmatpush1.bf16.msra.mxu0 %v10978_v56  ;;  %2253 = vmatpush1.bf16.msra.mxu1 %v10980_v63  ;;  %v11004_v56 = vcombine.low %v1794_v18, %v1798_v5 }
 0x2d6   :  { %2213 = vmatprep.subr.bf16.mxu0 %v10984_v41  ;;  %2254 = vmatprep.subr.bf16.mxu1 %v10986_v3 }
 0x2d9   :  { %2214 = vmatpush1.bf16.msra.mxu0 %v10990_v38  ;;  %2255 = vmatpush1.bf16.msra.mxu1 %v10992_v16 }
 0x2da   :  { %2215 = vmatprep.subr.bf16.mxu0 %v10996_v8  ;;  %2256 = vmatprep.subr.bf16.mxu1 %v10998_v39 }
 0x2dd   :  { %2216 = vmatpush1.bf16.msra.mxu0 %v11002_v43  ;;  %2257 = vmatpush1.bf16.msra.mxu1 %v11004_v56 }
 0x2de   :  { %2721 = vmatprep.subr.bf16.mxu0 %v10800_v30  ;;  %2762 = vmatprep.subr.bf16.mxu1 %v10806_v33  ;;  %v12827_v30 = vld [vmem:[#allocation14_spill] sm:$0xff]  ;;  %v12830_v33 = vld [vmem:[#allocation17_spill] sm:$0xff] }
 0x2e0   :  { %2234 = vmatmul.mubr.bf16.vlgmr.msra.gmra.mrb[36].mxu0 %v10922_v24  ;;  %2275 = vmatmul.mubr.bf16.vlgmr.msra.gmra.mrb[36].mxu1 %v10922_v24  ;;  %v1733_v24 = vld [vmem:[#allocation2 + $0x78] sm:$0xf] }
 0x2e1   :  { %2722 = vmatpush1.bf16.msra.mxu0 %v10802_v17  ;;  %2763 = vmatpush1.bf16.msra.mxu1 %v10804_v22  ;;  %v12828_v17 = vld [vmem:[#allocation15_spill] sm:$0xff]  ;;  %v12829_v22 = vld [vmem:[#allocation16_spill] sm:$0xff] }
 0x2e2   :  { %2723 = vmatprep.subr.bf16.mxu0 %v10812_v40  ;;  %2764 = vmatprep.subr.bf16.mxu1 %v10818_v7  ;;  %v12831_v40 = vld [vmem:[#allocation18_spill] sm:$0xff] }
 0x2e3   :  { %2753 = vmatprep.mubr.bf16.mxu0 %v12807_v31  ;;  %2794 = vmatprep.mubr.bf16.mxu1 %v12807_v31 }
 0x2e5   :  { %2724 = vmatpush1.bf16.msra.mxu0 %v10814_v1  ;;  %2765 = vmatpush1.bf16.msra.mxu1 %v10816_v6  ;;  %v12832_v1 = vld [vmem:[#allocation19_spill] sm:$0xff] }
 0x2e6   :  { %2725 = vmatprep.subr.bf16.mxu0 %v10824_v21  ;;  %2766 = vmatprep.subr.bf16.mxu1 %v10830_v12 }
 0x2e9   :  { %2726 = vmatpush1.bf16.msra.mxu0 %v10826_v26  ;;  %2767 = vmatpush1.bf16.msra.mxu1 %v10828_v34 }
 0x2ea   :  { %2727 = vmatprep.subr.bf16.mxu0 %v10836_v36  ;;  %2768 = vmatprep.subr.bf16.mxu1 %v10842_v58  ;;  %v1728_v58 = vld [vmem:[#allocation2 + $0x50] sm:$0xf] }
 0x2ed   :  { %2728 = vmatpush1.bf16.msra.mxu0 %v10838_v37  ;;  %2769 = vmatpush1.bf16.msra.mxu1 %v10840_v45  ;;  %v1726_v45 = vld [vmem:[#allocation2 + $0x40] sm:$0xf] }
 0x2ee   :  { %2729 = vmatprep.subr.bf16.mxu0 %v10848_v60  ;;  %2770 = vmatprep.subr.bf16.mxu1 %v10854_v54  ;;  %v1727_v60 = vld [vmem:[#allocation2 + $0x48] sm:$0xf] }
 0x2f1   :  { %2730 = vmatpush1.bf16.msra.mxu0 %v10850_v42  ;;  %2771 = vmatpush1.bf16.msra.mxu1 %v10852_v48  ;;  %v1729_v42 = vld [vmem:[#allocation2 + $0x58] sm:$0xf]  ;;  %v1730_v48 = vld [vmem:[#allocation2 + $0x60] sm:$0xf] }
 0x2f2   :  { %2731 = vmatprep.subr.bf16.mxu0 %v10857_v10  ;;  %2772 = vmatprep.subr.bf16.mxu1 %v10863_v62  ;;  %v1732_v10 = vld [vmem:[#allocation2 + $0x70] sm:$0xf] }
 0x2f5   :  { %2732 = vmatpush1.bf16.msra.mxu0 %v10861_v61  ;;  %2773 = vmatpush1.bf16.msra.mxu1 %v10867_v9 }
 0x2f6   :  { %2733 = vmatprep.subr.bf16.mxu0 %v10869_v14  ;;  %2774 = vmatprep.subr.bf16.mxu1 %v10872_v25 }
 0x2f9   :  { %2734 = vmatpush1.bf16.msra.mxu0 %v10877_v20  ;;  %2775 = vmatpush1.bf16.msra.mxu1 %v10883_v27  ;;  %v1731_v20 = vld [vmem:[#allocation2 + $0x68] sm:$0xf] }
 0x2fa   :  { %2735 = vmatprep.subr.bf16.mxu0 %v12827_v30  ;;  %2776 = vmatprep.subr.bf16.mxu1 %v12828_v17 }
 0x2fd   :  { %2736 = vmatpush1.bf16.msra.mxu0 %v12829_v22  ;;  %2777 = vmatpush1.bf16.msra.mxu1 %v12830_v33 }
 0x2fe   :  { %2803 = vmatprep.subr.bf16.mxu0 %v12831_v40  ;;  %2844 = vmatprep.subr.bf16.mxu1 %v12832_v1 }
 0x393   :  { %v2153_v6 = vpop.f32.mrb[32].mxu0  ;;  %v2194_v7 = vpop.f32.mrb[32].mxu1 }
 0x394   :  { %v2155_v21 = vpop.f32.mrb[33].mxu0  ;;  %v2196_v26 = vpop.f32.mrb[33].mxu1  ;;  %v2283_v62 = vadd.f32 %v2153_v6, %v1726_v45  ;;  %v2285_v9 = vadd.f32 %v2194_v7, %v1728_v58 }
 0x395   :  { %v2157_v34 = vpop.f32.mrb[34].mxu0  ;;  %v2198_v12 = vpop.f32.mrb[34].mxu1  ;;  %v2284_v18 = vadd.f32 %v2155_v21, %v1727_v60  ;;  %v2286_v15 = vadd.f32 %v2196_v26, %v1729_v42 }
 0x396   :  { %v2158_v36 = vpop.f32.mrb[35].mxu0  ;;  %v2199_v37 = vpop.f32.mrb[35].mxu1 }
 0x3b3   :  { %v2235_v54 = vpop.f32.mrb[36].mxu0  ;;  %v2276_v61 = vpop.f32.mrb[36].mxu1 }
 0x3b4   :  { %v2287_v14 = vadd.f32 %v2235_v54, %v1730_v48  ;;  %v2289_v25 = vadd.f32 %v2276_v61, %v1732_v10  ;;  %v2237_v27 = vpop.f32.mrb[37].mxu0  ;;  %v2278_v5 = vpop.f32.mrb[37].mxu1 }
 0x3b5   :  { %v2288_v23 = vadd.f32 %v2237_v27, %v1731_v20  ;;  %v2290_v29 = vadd.f32 %v2278_v5, %v1733_v24  ;;  %v2239_v59 = vpop.f32.mrb[38].mxu0  ;;  %v2280_v46 = vpop.f32.mrb[38].mxu1  ;;  %v3010_v27 = vld [vmem:[#allocation4 + $0xa8] sm:$0xff] }
 0x3b6   :  { %v2291_v50 = vsel %vm77_vm1, %v2283_v62, %v2287_v14  ;;  %v2293_v30 = vsel %vm77_vm1, %v2285_v9, %v2289_v25  ;;  %v2240_v17 = vpop.f32.mrb[39].mxu0  ;;  %v2281_v22 = vpop.f32.mrb[39].mxu1  ;;  %v3018_v46 = vld [vmem:[#allocation4 + $0xe8] sm:$0xff] }
 0x3b7   :  { %v9224_v33 = vmul.f32 -1.442695, %v2291_v50  ;;  %v2292_v40 = vsel %vm77_vm1, %v2284_v18, %v2288_v23  ;;  %v2294_v1 = vsel %vm77_vm1, %v2286_v15, %v2290_v29  ;;  %v3013_v15 = vld [vmem:[#allocation4 + $0xc0] sm:$0xff]  ;;  %v3014_v29 = vld [vmem:[#allocation4 + $0xc8] sm:$0xff] }
 0x3b8   :  { %v9225_v6 = vmul.f32 -1.442695, %v2292_v40  ;;  %v9226_v7 = vmul.f32 -1.442695, %v2294_v1  ;;  %v3017_v23 = vld [vmem:[#allocation4 + $0xe0] sm:$0xff]  ;;  %v11136_v17 = vcombine.high %v3014_v29, %v3018_v46  ;;  %v3022_v40 = vld [vmem:[#allocation4 + $0x108] sm:$0xff] }
 0x3b9   :  { %9973 = vpow2.f32 %v9224_v33  ;;  %v11130_v59 = vcombine.high %v3013_v15, %v3017_v23  ;;  %v11132_v50 = vcombine.low %v3013_v15, %v3017_v23  ;;  %v3021_v22 = vld [vmem:[#allocation4 + $0x100] sm:$0xff] }
 0x3ba   :  { %9975 = vpow2.f32 %v9225_v6  ;;  %v3025_v33 = vld [vmem:[#allocation4 + $0x120] sm:$0xff]  ;;  %v3026_v6 = vld [vmem:[#allocation4 + $0x128] sm:$0xff] }
 0x3bb   :  { %9977 = vpow2.f32 %v9226_v7  ;;  %v11142_v1 = vcombine.high %v3021_v22, %v3025_v33  ;;  %v11144_v7 = vcombine.low %v3021_v22, %v3025_v33 }
 0x3bc   :  { %9979 = vtanh.f32 %v2293_v30  ;;  %v11134_v30 = vcombine.low %v3014_v29, %v3018_v46 }
 0x3c3   :  { %v9974_v21 = vpop.eup %9973 }
 0x3c4   :  { %v9976_v26 = vpop.eup %9975  ;;  %v2298_v34 = vadd.f32 1.0, %v9974_v21  ;;  %v11146_v21 = vcombine.low %v3022_v40, %v3026_v6 }
 0x3c5   :  { %v2304_v12 = vadd.f32 1.0, %v9976_v26  ;;  %v9978_v36 = vpop.eup %9977  ;;  %v11148_v26 = vcombine.high %v3022_v40, %v3026_v6 }
 0x3c6   :  { %9981 = vrcp.f32 %v2298_v34  ;;  %v9980_v37 = vpop.eup %9979  ;;  %v2311_v42 = vadd.f32 1.0, %v9978_v36  ;;  %v3029_v34 = vld [vmem:[#allocation4 + $0x140] sm:$0xff]  ;;  %v3030_v36 = vld [vmem:[#allocation4 + $0x148] sm:$0xff] }
 0x3c7   :  { %9983 = vrcp.f32 %v2304_v12  ;;  %v3033_v12 = vld [vmem:[#allocation4 + $0x160] sm:$0xff] }
 0x3c8   :  { %9985 = vrcp.f32 %v2311_v42  ;;  %v11155_v42 = vcombine.low %v3029_v34, %v3033_v12 }
 0x3d0   :  { %v9982_v45 = vpop.eup %9981 }
 0x3d1   :  { %v9984_v58 = vpop.eup %9983  ;;  %v2315_v60 = vmul.f32 %v9982_v45, %v9980_v37  ;;  %v11151_v37 = vcombine.high %v3029_v34, %v3033_v12  ;;  %v3034_v45 = vld [vmem:[#allocation4 + $0x168] sm:$0xff] }
 0x3d2   :  { %v2314_v48 = vmul.f32 %v9984_v58, %v10915_v47  ;;  %v9986_v10 = vpop.eup %9985  ;;  %v12835_v47 = vld [vmem:[#allocation22_spill] sm:$0xff] }
 0x3d3   :  { %v3037_v58 = vld [vmem:[#allocation4 + $0x180] sm:$0xff] }
 0x3d4   :  { %v11057_v54 = vadd.f32 %v2315_v60, %v2314_v48  ;;  %v3041_v60 = vld [vmem:[#allocation4 + $0x1a0] sm:$0xff]  ;;  %v11157_v48 = vcombine.high %v3030_v36, %v3034_v45 }
 0x3d6   :  { %9987 = vtanh.f32 %v11057_v54 }
 0x3e0   :  { %v9988_v61 = vpop.eup %9987 }
 0x3e1   :  { %v2318_v62 = vmul.f32 %v9988_v61, %v9986_v10  ;;  %v3038_v10 = vld [vmem:[#allocation4 + $0x188] sm:$0xff] }
 0x3e2   :  { %v3042_v61 = vld [vmem:[#allocation4 + $0x1a8] sm:$0xff] }
 0x3e3   :  { %2319 = vst [vmem:[#allocation3 + $0x10] sm:$0x3] %v2318_v62  ;;  %v2321_v9 = vrot.slane %v2318_v62, 2  ;;  %v2324_v14 = vrot.slane %v2318_v62, 6  ;;  %2327 = vst [vmem:[#allocation3 + $0x18] sm:$0xc] %v2318_v62  ;;  %v2336_v25 = vpack.c.bf16 %v2318_v62, %v2318_v62  ;;  %v11161_v62 = vcombine.low %v3030_v36, %v3034_v45 }
 0x3e4   :  { %v2328_v45 = vld [vmem:[#allocation2 + $0x40] sm:$0xf0] }
 0x3e5   :  { %2323 = vst [vmem:[#allocation3 + $0x20] sm:$0xc0] %v2321_v9  ;;  %2326 = vst [vmem:[#allocation3 + $0x28] sm:$0x30] %v2324_v14  ;;  %2754 = vmatmul.mubr.bf16.vlgmr.msra.gmra.mrb[40].mxu0 %v2336_v25  ;;  %2795 = vmatmul.mubr.bf16.vlgmr.msra.gmra.mrb[40].mxu1 %v2336_v25  ;;  %v11163_v9 = vcombine.high %v3037_v58, %v3041_v60  ;;  %v3045_v14 = vld [vmem:[#allocation4 + $0x1c0] sm:$0xff] }
 0x3e6   :  { %2804 = vmatpush1.bf16.msra.mxu0 %v10874_v0  ;;  %2845 = vmatpush1.bf16.msra.mxu1 %v10879_v2  ;;  %v12833_v0 = vld [vmem:[#allocation20_spill] sm:$0xff]  ;;  %v12834_v2 = vld [vmem:[#allocation21_spill] sm:$0xff] }
 0x3e7   :  { %2805 = vmatprep.subr.bf16.mxu0 %v10918_v4  ;;  %2846 = vmatprep.subr.bf16.mxu1 %v10920_v19  ;;  %v12836_v4 = vld [vmem:[#allocation23_spill] sm:$0xff]  ;;  %v12837_v19 = vld [vmem:[#allocation24_spill] sm:$0xff] }
 0x3e8   :  { %2835 = vmatprep.mubr.bf16.mxu0 %v12807_v31  ;;  %2876 = vmatprep.mubr.bf16.mxu1 %v12807_v31 }
 0x3ea   :  { %2806 = vmatpush1.bf16.msra.mxu0 %v10928_v32  ;;  %2847 = vmatpush1.bf16.msra.mxu1 %v10930_v53  ;;  %v12838_v32 = vld [vmem:[#allocation25_spill] sm:$0xff] }
 0x3eb   :  { %2807 = vmatprep.subr.bf16.mxu0 %v10934_v49  ;;  %2848 = vmatprep.subr.bf16.mxu1 %v10936_v35  ;;  %v2989_v53 = vld [vmem:[#allocation4] sm:$0xff]  ;;  %v2990_v35 = vld [vmem:[#allocation4 + $0x8] sm:$0xff] }
 0x3ec   :  { %v2993_v49 = vld [vmem:[#allocation4 + $0x20] sm:$0xff] }
 0x3ee   :  { %2808 = vmatpush1.bf16.msra.mxu0 %v10942_v55  ;;  %2849 = vmatpush1.bf16.msra.mxu1 %v10944_v11  ;;  %v11094_v55 = vcombine.high %v2989_v53, %v2993_v49  ;;  %v2994_v11 = vld [vmem:[#allocation4 + $0x28] sm:$0xff] }
 0x3ef   :  { %2809 = vmatprep.subr.bf16.mxu0 %v10948_v13  ;;  %2850 = vmatprep.subr.bf16.mxu1 %v10950_v28  ;;  %v11096_v13 = vcombine.low %v2989_v53, %v2993_v49  ;;  %v11098_v28 = vcombine.low %v2990_v35, %v2994_v11  ;;  %v2996_v49 = vld [vmem:[#allocation4 + $0x38] sm:$0xff] }
 0x3f2   :  { %2810 = vmatpush1.bf16.msra.mxu0 %v12833_v0  ;;  %2851 = vmatpush1.bf16.msra.mxu1 %v12834_v2  ;;  %v11166_v0 = vcombine.high %v3038_v10, %v3042_v61  ;;  %v2991_v2 = vld [vmem:[#allocation4 + $0x10] sm:$0xff] }
 0x3f3   :  { %2811 = vmatprep.subr.bf16.mxu0 %v12835_v47  ;;  %2852 = vmatprep.subr.bf16.mxu1 %v12836_v4  ;;  %v2995_v47 = vld [vmem:[#allocation4 + $0x30] sm:$0xff]  ;;  %v2992_v4 = vld [vmem:[#allocation4 + $0x18] sm:$0xff] }
 0x3f4   :  { %v11168_v53 = vcombine.low %v2991_v2, %v2995_v47 }
 0x3f6   :  { %2812 = vmatpush1.bf16.msra.mxu0 %v10966_v52  ;;  %2853 = vmatpush1.bf16.msra.mxu1 %v10968_v51  ;;  %v11100_v52 = vcombine.high %v2990_v35, %v2994_v11  ;;  %v2997_v51 = vld [vmem:[#allocation4 + $0x40] sm:$0xff]  ;;  %v11171_v35 = vcombine.low %v3037_v58, %v3041_v60  ;;  %v11173_v11 = vcombine.low %v2992_v4, %v2996_v49  ;;  %v2330_v58 = vld [vmem:[#allocation2 + $0x50] sm:$0xf0]  ;;  %v2329_v60 = vld [vmem:[#allocation2 + $0x48] sm:$0xf0] }
 0x3f7   :  { %2813 = vmatprep.subr.bf16.mxu0 %v10972_v57  ;;  %2854 = vmatprep.subr.bf16.mxu1 %v12837_v19  ;;  %v3001_v57 = vld [vmem:[#allocation4 + $0x60] sm:$0xff]  ;;  %v3046_v19 = vld [vmem:[#allocation4 + $0x1c8] sm:$0xff] }
 0x3fa   :  { %2814 = vmatpush1.bf16.msra.mxu0 %v12838_v32  ;;  %2855 = vmatpush1.bf16.msra.mxu1 %v10980_v63  ;;  %v3002_v63 = vld [vmem:[#allocation4 + $0x68] sm:$0xff] }
 0x3fb   :  { %2815 = vmatprep.subr.bf16.mxu0 %v10984_v41  ;;  %2856 = vmatprep.subr.bf16.mxu1 %v10986_v3  ;;  %v11108_v41 = vcombine.low %v2997_v51, %v3001_v57  ;;  %v3050_v32 = vld [vmem:[#allocation4 + $0x1e8] sm:$0xff] }
 0x3fe   :  { %2816 = vmatpush1.bf16.msra.mxu0 %v10990_v38  ;;  %2857 = vmatpush1.bf16.msra.mxu1 %v10992_v16  ;;  %v3005_v16 = vld [vmem:[#allocation4 + $0x80] sm:$0xff] }
 0x3ff   :  { %2817 = vmatprep.subr.bf16.mxu0 %v10996_v8  ;;  %2858 = vmatprep.subr.bf16.mxu1 %v10998_v39  ;;  %v3009_v8 = vld [vmem:[#allocation4 + $0xa0] sm:$0xff]  ;;  %v3006_v39 = vld [vmem:[#allocation4 + $0x88] sm:$0xff] }
 0x400   :  { %v11118_v20 = vcombine.high %v3005_v16, %v3009_v8  ;;  %v11120_v24 = vcombine.low %v3005_v16, %v3009_v8  ;;  %v11122_v5 = vcombine.low %v3006_v39, %v3010_v27  ;;  %v11124_v18 = vcombine.high %v3006_v39, %v3010_v27 }
 0x401   :  { %v11189_v16 = vcombine.low %v3046_v19, %v3050_v32  ;;  %v11191_v8 = vcombine.high %v2991_v2, %v2995_v47  ;;  %v11194_v39 = vcombine.high %v2992_v4, %v2996_v49  ;;  %v2332_v47 = vld [vmem:[#allocation2 + $0x60] sm:$0xf0] }
 0x402   :  { %2818 = vmatpush1.bf16.msra.mxu0 %v11002_v43  ;;  %2859 = vmatpush1.bf16.msra.mxu1 %v11004_v56  ;;  %v2998_v43 = vld [vmem:[#allocation4 + $0x48] sm:$0xff]  ;;  %v11106_v56 = vcombine.high %v2997_v51, %v3001_v57  ;;  %v11177_v51 = vcombine.low %v3038_v10, %v3042_v61  ;;  %v2331_v10 = vld [vmem:[#allocation2 + $0x58] sm:$0xf0] }
 0x403   :  { %3373 = vmatprep.subr.bf16.mxu0 %v11094_v55  ;;  %3414 = vmatprep.subr.bf16.mxu1 %v11100_v52  ;;  %v11110_v3 = vcombine.low %v2998_v43, %v3002_v63  ;;  %v11112_v38 = vcombine.high %v2998_v43, %v3002_v63  ;;  %v11182_v43 = vcombine.high %v3046_v19, %v3050_v32 }
 0x404   :  { %12842 = vst [vmem:[#allocation17_spill] sm:$0xff] %v11189_v16  ;;  %12843 = vst [vmem:[#allocation18_spill] sm:$0xff] %v11191_v8 }
 0x405   :  { %2836 = vmatmul.mubr.bf16.vlgmr.msra.gmra.mrb[44].mxu0 %v2336_v25  ;;  %2877 = vmatmul.mubr.bf16.vlgmr.msra.gmra.mrb[44].mxu1 %v2336_v25  ;;  %v3049_v25 = vld [vmem:[#allocation4 + $0x1e0] sm:$0xff]  ;;  %12840 = vst [vmem:[#allocation15_spill] sm:$0xff] %v11182_v43  ;;  %12844 = vst [vmem:[#allocation19_spill] sm:$0xff] %v11194_v39 }
 0x406   :  { %3405 = vmatprep.mubr.bf16.mxu0 %v12807_v31  ;;  %3446 = vmatprep.mubr.bf16.mxu1 %v12807_v31  ;;  %v11179_v57 = vcombine.high %v3045_v14, %v3049_v25  ;;  %v11185_v63 = vcombine.low %v3045_v14, %v3049_v25 }
 0x407   :  { %3374 = vmatpush1.bf16.msra.mxu0 %v11096_v13  ;;  %3415 = vmatpush1.bf16.msra.mxu1 %v11098_v28 }
 0x408   :  { %3375 = vmatprep.subr.bf16.mxu0 %v11106_v56  ;;  %3416 = vmatprep.subr.bf16.mxu1 %v11112_v38  ;;  %12839 = vst [vmem:[#allocation14_spill] sm:$0xff] %v11179_v57  ;;  %12841 = vst [vmem:[#allocation16_spill] sm:$0xff] %v11185_v63 }
 0x40b   :  { %3376 = vmatpush1.bf16.msra.mxu0 %v11108_v41  ;;  %3417 = vmatpush1.bf16.msra.mxu1 %v11110_v3 }
 0x40c   :  { %3377 = vmatprep.subr.bf16.mxu0 %v11118_v20  ;;  %3418 = vmatprep.subr.bf16.mxu1 %v11124_v18 }
 0x40f   :  { %3378 = vmatpush1.bf16.msra.mxu0 %v11120_v24  ;;  %3419 = vmatpush1.bf16.msra.mxu1 %v11122_v5 }
 0x410   :  { %3379 = vmatprep.subr.bf16.mxu0 %v11130_v59  ;;  %3420 = vmatprep.subr.bf16.mxu1 %v11136_v17 }
 0x413   :  { %3380 = vmatpush1.bf16.msra.mxu0 %v11132_v50  ;;  %3421 = vmatpush1.bf16.msra.mxu1 %v11134_v30 }
 0x414   :  { %3381 = vmatprep.subr.bf16.mxu0 %v11142_v1  ;;  %3422 = vmatprep.subr.bf16.mxu1 %v11148_v26 }
 0x417   :  { %3382 = vmatpush1.bf16.msra.mxu0 %v11144_v7  ;;  %3423 = vmatpush1.bf16.msra.mxu1 %v11146_v21 }
 0x418   :  { %3383 = vmatprep.subr.bf16.mxu0 %v11151_v37  ;;  %3424 = vmatprep.subr.bf16.mxu1 %v11157_v48 }
 0x41b   :  { %3384 = vmatpush1.bf16.msra.mxu0 %v11155_v42  ;;  %3425 = vmatpush1.bf16.msra.mxu1 %v11161_v62 }
 0x41c   :  { %3385 = vmatprep.subr.bf16.mxu0 %v11163_v9  ;;  %3426 = vmatprep.subr.bf16.mxu1 %v11166_v0 }
 0x41f   :  { %3386 = vmatpush1.bf16.msra.mxu0 %v11171_v35  ;;  %3427 = vmatpush1.bf16.msra.mxu1 %v11177_v51 }
 0x420   :  { %3387 = vmatprep.subr.bf16.mxu0 %v11179_v57  ;;  %3428 = vmatprep.subr.bf16.mxu1 %v11182_v43 }
 0x423   :  { %3388 = vmatpush1.bf16.msra.mxu0 %v11185_v63  ;;  %3429 = vmatpush1.bf16.msra.mxu1 %v11189_v16  ;;  %v2335_v16 = vld [vmem:[#allocation2 + $0x78] sm:$0xf0] }
 0x424   :  { %3455 = vmatprep.subr.bf16.mxu0 %v11191_v8  ;;  %3496 = vmatprep.subr.bf16.mxu1 %v11194_v39  ;;  %v2333_v8 = vld [vmem:[#allocation2 + $0x68] sm:$0xf0] }
 0x4b8   :  { %v2755_v27 = vpop.f32.mrb[40].mxu0  ;;  %v2796_v15 = vpop.f32.mrb[40].mxu1 }
 0x4b9   :  { %v2757_v23 = vpop.f32.mrb[41].mxu0  ;;  %v2798_v29 = vpop.f32.mrb[41].mxu1  ;;  %v2893_v6 = vrot.slane %v2755_v27, 4  ;;  %v2895_v34 = vrot.slane %v2796_v15, 4 }
 0x4ba   :  { %v2759_v46 = vpop.f32.mrb[42].mxu0  ;;  %v2800_v22 = vpop.f32.mrb[42].mxu1  ;;  %v2894_v12 = vrot.slane %v2757_v23, 4  ;;  %v2896_v36 = vrot.slane %v2798_v29, 4 }
 0x4bb   :  { %v2760_v33 = vpop.f32.mrb[43].mxu0  ;;  %v2801_v40 = vpop.f32.mrb[43].mxu1  ;;  %v2909_v25 = vadd.f32 %v2893_v6, %v2328_v45  ;;  %v2911_v2 = vadd.f32 %v2895_v34, %v2330_v58 }
 0x4bc   :  { %v2910_v46 = vadd.f32 %v2894_v12, %v2329_v60  ;;  %v2912_v22 = vadd.f32 %v2896_v36, %v2331_v10  ;;  %v2334_v33 = vld [vmem:[#allocation2 + $0x70] sm:$0xf0] }
 0x4bd   :  { %v2921_v45 = vrot.slane %v2909_v25, 4  ;;  %v2923_v58 = vrot.slane %v2911_v2, 4 }
 0x4be   :  { %v2922_v57 = vrot.slane %v2910_v46, 4  ;;  %v2924_v12 = vrot.slane %v2912_v22, 4 }
 0x4d8   :  { %v2837_v61 = vpop.f32.mrb[44].mxu0  ;;  %v2878_v14 = vpop.f32.mrb[44].mxu1 }
 0x4d9   :  { %v2897_v4 = vrot.slane %v2837_v61, 4  ;;  %v2899_v19 = vrot.slane %v2878_v14, 4  ;;  %v2839_v32 = vpop.f32.mrb[45].mxu0  ;;  %v2880_v49 = vpop.f32.mrb[45].mxu1 }
 0x4da   :  { %v2898_v27 = vrot.slane %v2839_v32, 4  ;;  %v2900_v15 = vrot.slane %v2880_v49, 4  ;;  %v2841_v23 = vpop.f32.mrb[46].mxu0  ;;  %v2882_v29 = vpop.f32.mrb[46].mxu1 }
 0x4db   :  { %v2913_v40 = vadd.f32 %v2897_v4, %v2332_v47  ;;  %v2915_v39 = vadd.f32 %v2899_v19, %v2334_v33  ;;  %v2842_v63 = vpop.f32.mrb[47].mxu0  ;;  %v2883_v43 = vpop.f32.mrb[47].mxu1  ;;  %v2999_v23 = vld [vmem:[#allocation4 + $0x50] sm:$0xff] }
 0x4dc   :  { %v2914_v6 = vadd.f32 %v2898_v27, %v2333_v8  ;;  %v2916_v34 = vadd.f32 %v2900_v15, %v2335_v16 }
 0x4dd   :  { %v2933_v61 = vrot.slane %v2913_v40, 4  ;;  %v2935_v14 = vrot.slane %v2915_v39, 4  ;;  %v3003_v40 = vld [vmem:[#allocation4 + $0x70] sm:$0xff] }
 0x4de   :  { %v2934_v36 = vrot.slane %v2914_v6, 4  ;;  %v2936_v60 = vrot.slane %v2916_v34, 4  ;;  %v3000_v6 = vld [vmem:[#allocation4 + $0x58] sm:$0xff] }
 0x4df   :  { %v2941_v10 = vsel %vm77_vm1, %v2921_v45, %v2933_v61  ;;  %v2943_v47 = vsel %vm77_vm1, %v2923_v58, %v2935_v14  ;;  %v3004_v34 = vld [vmem:[#allocation4 + $0x78] sm:$0xff]  ;;  %v11212_v61 = vcombine.high %v2999_v23, %v3003_v40 }
 0x4e0   :  { %v9291_v4 = vmul.f32 -1.442695, %v2941_v10  ;;  %v2942_v43 = vsel %vm77_vm1, %v2922_v57, %v2934_v36  ;;  %v2944_v63 = vsel %vm77_vm1, %v2924_v12, %v2936_v60  ;;  %v11214_v14 = vcombine.high %v3000_v6, %v3004_v34  ;;  %v3007_v10 = vld [vmem:[#allocation4 + $0x90] sm:$0xff] }
 0x4e1   :  { %v9292_v16 = vmul.f32 -1.442695, %v2942_v43  ;;  %v9293_v8 = vmul.f32 -1.442695, %v2944_v63  ;;  %v3012_v43 = vld [vmem:[#allocation4 + $0xb8] sm:$0xff]  ;;  %v11222_v63 = vcombine.low %v2999_v23, %v3003_v40 }
 0x4e2   :  { %9989 = vpow2.f32 %v9291_v4  ;;  %v3008_v4 = vld [vmem:[#allocation4 + $0x98] sm:$0xff] }
 0x4e3   :  { %9991 = vpow2.f32 %v9292_v16  ;;  %v11224_v16 = vcombine.low %v3000_v6, %v3004_v34  ;;  %v3024_v23 = vld [vmem:[#allocation4 + $0x118] sm:$0xff] }
 0x4e4   :  { %9993 = vpow2.f32 %v9293_v8 }
 0x4e5   :  { %9995 = vtanh.f32 %v2943_v47  ;;  %v3011_v47 = vld [vmem:[#allocation4 + $0xb0] sm:$0xff] }
 0x4e6   :  { %v11228_v8 = vcombine.high %v3007_v10, %v3011_v47 }
 0x4ec   :  { %v9990_v39 = vpop.eup %9989 }
 0x4ed   :  { %v9992_v25 = vpop.eup %9991  ;;  %v2948_v2 = vadd.f32 1.0, %v9990_v39  ;;  %v11230_v39 = vcombine.high %v3008_v4, %v3012_v43 }
 0x4ee   :  { %v2954_v19 = vadd.f32 1.0, %v9992_v25  ;;  %v9994_v32 = vpop.eup %9993  ;;  %v3015_v25 = vld [vmem:[#allocation4 + $0xd0] sm:$0xff] }
 0x4ef   :  { %9997 = vrcp.f32 %v2948_v2  ;;  %v9996_v49 = vpop.eup %9995  ;;  %v2961_v33 = vadd.f32 1.0, %v9994_v32  ;;  %v3019_v2 = vld [vmem:[#allocation4 + $0xf0] sm:$0xff]  ;;  %v3020_v32 = vld [vmem:[#allocation4 + $0xf8] sm:$0xff] }
 0x4f0   :  { %9999 = vrcp.f32 %v2954_v19  ;;  %v3016_v19 = vld [vmem:[#allocation4 + $0xd8] sm:$0xff]  ;;  %v11248_v40 = vcombine.low %v3015_v25, %v3019_v2 }
 0x4f1   :  { %10001 = vrcp.f32 %v2961_v33  ;;  %v3023_v33 = vld [vmem:[#allocation4 + $0x110] sm:$0xff]  ;;  %v11250_v6 = vcombine.low %v3016_v19, %v3020_v32 }
 0x4f2   :  { %12845 = vst [vmem:[#allocation20_spill] sm:$0xff] %v11248_v40 }
 0x4f3   :  { %12846 = vst [vmem:[#allocation21_spill] sm:$0xff] %v11250_v6 }
 0x4f9   :  { %v9998_v46 = vpop.eup %9997 }
 0x4fa   :  { %v10000_v22 = vpop.eup %9999  ;;  %v2965_v57 = vmul.f32 %v9998_v46, %v9996_v49  ;;  %v11236_v49 = vcombine.low %v3007_v10, %v3011_v47  ;;  %v11238_v46 = vcombine.low %v3008_v4, %v3012_v43 }
 0x4fb   :  { %v2964_v27 = vmul.f32 %v10000_v22, %v11057_v54  ;;  %v10002_v29 = vpop.eup %10001  ;;  %v11242_v22 = vcombine.high %v3015_v25, %v3019_v2  ;;  %v3039_v25 = vld [vmem:[#allocation4 + $0x190] sm:$0xff] }
 0x4fc   :  { %v3043_v2 = vld [vmem:[#allocation4 + $0x1b0] sm:$0xff] }
 0x4fd   :  { %v11209_v15 = vadd.f32 %v2965_v57, %v2964_v27  ;;  %v11244_v57 = vcombine.high %v3016_v19, %v3020_v32  ;;  %v3027_v27 = vld [vmem:[#allocation4 + $0x130] sm:$0xff]  ;;  %v3040_v19 = vld [vmem:[#allocation4 + $0x198] sm:$0xff] }
 0x4fe   :  { %v11254_v34 = vcombine.high %v3023_v33, %v3027_v27  ;;  %v11260_v10 = vcombine.low %v3023_v33, %v3027_v27  ;;  %v3044_v32 = vld [vmem:[#allocation4 + $0x1b8] sm:$0xff] }
 0x4ff   :  { %10003 = vtanh.f32 %v11209_v15 }
 0x500   :  { %12847 = vst [vmem:[#allocation22_spill] sm:$0xff] %v11254_v34 }
 0x509   :  { %v10004_v45 = vpop.eup %10003 }
 0x50a   :  { %v2968_v58 = vmul.f32 %v10004_v45, %v10002_v29  ;;  %v3028_v29 = vld [vmem:[#allocation4 + $0x138] sm:$0xff] }
 0x50b   :  { %v11256_v45 = vcombine.high %v3024_v23, %v3028_v29  ;;  %v11262_v47 = vcombine.low %v3024_v23, %v3028_v29  ;;  %v11278_v23 = vcombine.high %v3039_v25, %v3043_v2  ;;  %v11280_v29 = vcombine.high %v3040_v19, %v3044_v32 }
 0x50c   :  { %v2970_v12 = vrot.slane %v2968_v58, 4  ;;  %v2973_v36 = vrot.slane %v2968_v58, 6  ;;  %v2976_v60 = vrot.slane %v2968_v58, 2  ;;  %v11216_v54 = vpack.c.bf16 %v2968_v58, %v2968_v58  ;;  %v3031_v58 = vld [vmem:[#allocation4 + $0x150] sm:$0xff] }
 0x50d   :  { %12848 = vst [vmem:[#allocation23_spill] sm:$0xff] %v11256_v45 }
 0x50e   :  { %2972 = vst [vmem:[#allocation3 + $0x10] sm:$0x30] %v2970_v12  ;;  %2975 = vst [vmem:[#allocation3 + $0x20] sm:$0xc] %v2973_v36  ;;  %3406 = vmatmul.mubr.bf16.vlgmr.msra.gmra.mrb[48].mxu0 %v11216_v54  ;;  %3447 = vmatmul.mubr.bf16.vlgmr.msra.gmra.mrb[48].mxu1 %v11216_v54  ;;  %v3032_v36 = vld [vmem:[#allocation4 + $0x158] sm:$0xff] }
 0x50f   :  { %2978 = vst [vmem:[#allocation3 + $0x28] sm:$0x3] %v2976_v60  ;;  %2979 = vst [vmem:[#allocation3 + $0x18] sm:$0xc0] %v2970_v12  ;;  %3456 = vmatpush1.bf16.msra.mxu0 %v11168_v53  ;;  %3497 = vmatpush1.bf16.msra.mxu1 %v11173_v11  ;;  %v3035_v12 = vld [vmem:[#allocation4 + $0x170] sm:$0xff]  ;;  %v3036_v60 = vld [vmem:[#allocation4 + $0x178] sm:$0xff] }
 0x510   :  { %3457 = vmatprep.subr.bf16.mxu0 %v11212_v61  ;;  %3498 = vmatprep.subr.bf16.mxu1 %v11214_v14  ;;  %v11266_v4 = vcombine.high %v3031_v58, %v3035_v12  ;;  %v11268_v43 = vcombine.high %v3032_v36, %v3036_v60  ;;  %v11272_v33 = vcombine.low %v3031_v58, %v3035_v12 }
 0x511   :  { %3487 = vmatprep.mubr.bf16.mxu0 %v12807_v31  ;;  %3528 = vmatprep.mubr.bf16.mxu1 %v12807_v31  ;;  %v11274_v27 = vcombine.low %v3032_v36, %v3036_v60  ;;  %v11284_v58 = vcombine.low %v3039_v25, %v3043_v2  ;;  %v11286_v12 = vcombine.low %v3040_v19, %v3044_v32 }
 0x512   :  { %12849 = vst [vmem:[#allocation24_spill] sm:$0xff] %v11268_v43  ;;  %12850 = vst [vmem:[#allocation25_spill] sm:$0xff] %v11272_v33 }
 0x513   :  { %3458 = vmatpush1.bf16.msra.mxu0 %v11222_v63  ;;  %3499 = vmatpush1.bf16.msra.mxu1 %v11224_v16 }
 0x514   :  { %3459 = vmatprep.subr.bf16.mxu0 %v11228_v8  ;;  %3500 = vmatprep.subr.bf16.mxu1 %v11230_v39 }
 0x517   :  { %3460 = vmatpush1.bf16.msra.mxu0 %v11236_v49  ;;  %3501 = vmatpush1.bf16.msra.mxu1 %v11238_v46 }
 0x518   :  { %3461 = vmatprep.subr.bf16.mxu0 %v11242_v22  ;;  %3502 = vmatprep.subr.bf16.mxu1 %v11244_v57 }
 0x51b   :  { %3462 = vmatpush1.bf16.msra.mxu0 %v11248_v40  ;;  %3503 = vmatpush1.bf16.msra.mxu1 %v11250_v6  ;;  %v3048_v6 = vld [vmem:[#allocation4 + $0x1d8] sm:$0xff] }
 0x51c   :  { %3463 = vmatprep.subr.bf16.mxu0 %v11254_v34  ;;  %3504 = vmatprep.subr.bf16.mxu1 %v11256_v45  ;;  %v3047_v45 = vld [vmem:[#allocation4 + $0x1d0] sm:$0xff]  ;;  %v3052_v40 = vld [vmem:[#allocation4 + $0x1f8] sm:$0xff] }
 0x51d   :  { %v3051_v34 = vld [vmem:[#allocation4 + $0x1f0] sm:$0xff]  ;;  %v11292_v60 = vcombine.high %v3048_v6, %v3052_v40 }
 0x51e   :  { %v11290_v36 = vcombine.high %v3047_v45, %v3051_v34 }
 0x51f   :  { %3464 = vmatpush1.bf16.msra.mxu0 %v11260_v10  ;;  %3505 = vmatpush1.bf16.msra.mxu1 %v11262_v47 }
 0x520   :  { %3465 = vmatprep.subr.bf16.mxu0 %v11266_v4  ;;  %3506 = vmatprep.subr.bf16.mxu1 %v11268_v43  ;;  %v11296_v43 = vcombine.low %v3047_v45, %v3051_v34 }
 0x523   :  { %3466 = vmatpush1.bf16.msra.mxu0 %v11272_v33  ;;  %3507 = vmatpush1.bf16.msra.mxu1 %v11274_v27  ;;  %v11298_v33 = vcombine.low %v3048_v6, %v3052_v40 }
 0x524   :  { %3467 = vmatprep.subr.bf16.mxu0 %v11278_v23  ;;  %3508 = vmatprep.subr.bf16.mxu1 %v11280_v29 }
 0x527   :  { %3468 = vmatpush1.bf16.msra.mxu0 %v11284_v58  ;;  %3509 = vmatpush1.bf16.msra.mxu1 %v11286_v12 }
 0x528   :  { %3469 = vmatprep.subr.bf16.mxu0 %v11290_v36  ;;  %3510 = vmatprep.subr.bf16.mxu1 %v11292_v60 }
 0x52b   :  { %3470 = vmatpush1.bf16.msra.mxu0 %v11296_v43  ;;  %3511 = vmatpush1.bf16.msra.mxu1 %v11298_v33 }
 0x52c   :  { %3975 = vmatprep.subr.bf16.mxu0 %v11094_v55  ;;  %4016 = vmatprep.subr.bf16.mxu1 %v11100_v52  ;;  %v12851_v55 = vld [vmem:[#allocation14_spill] sm:$0xff]  ;;  %v12854_v52 = vld [vmem:[#allocation17_spill] sm:$0xff] }
 0x52e   :  { %3488 = vmatmul.mubr.bf16.vlgmr.msra.gmra.mrb[52].mxu0 %v11216_v54  ;;  %3529 = vmatmul.mubr.bf16.vlgmr.msra.gmra.mrb[52].mxu1 %v11216_v54  ;;  %v2987_v54 = vld [vmem:[#allocation2 + $0xb8] sm:$0xf] }
 0x52f   :  { %3976 = vmatpush1.bf16.msra.mxu0 %v11096_v13  ;;  %4017 = vmatpush1.bf16.msra.mxu1 %v11098_v28  ;;  %v12852_v13 = vld [vmem:[#allocation15_spill] sm:$0xff]  ;;  %v12853_v28 = vld [vmem:[#allocation16_spill] sm:$0xff] }
 0x530   :  { %3977 = vmatprep.subr.bf16.mxu0 %v11106_v56  ;;  %4018 = vmatprep.subr.bf16.mxu1 %v11112_v38  ;;  %v12855_v56 = vld [vmem:[#allocation18_spill] sm:$0xff] }
 0x531   :  { %4007 = vmatprep.mubr.bf16.mxu0 %v12807_v31  ;;  %4048 = vmatprep.mubr.bf16.mxu1 %v12807_v31 }
 0x533   :  { %3978 = vmatpush1.bf16.msra.mxu0 %v11108_v41  ;;  %4019 = vmatpush1.bf16.msra.mxu1 %v11110_v3  ;;  %v12856_v41 = vld [vmem:[#allocation19_spill] sm:$0xff] }
 0x534   :  { %3979 = vmatprep.subr.bf16.mxu0 %v11118_v20  ;;  %4020 = vmatprep.subr.bf16.mxu1 %v11124_v18 }
 0x537   :  { %3980 = vmatpush1.bf16.msra.mxu0 %v11120_v24  ;;  %4021 = vmatpush1.bf16.msra.mxu1 %v11122_v5 }
 0x538   :  { %3981 = vmatprep.subr.bf16.mxu0 %v11130_v59  ;;  %4022 = vmatprep.subr.bf16.mxu1 %v11136_v17  ;;  %v2982_v17 = vld [vmem:[#allocation2 + $0x90] sm:$0xf] }
 0x53b   :  { %3982 = vmatpush1.bf16.msra.mxu0 %v11132_v50  ;;  %4023 = vmatpush1.bf16.msra.mxu1 %v11134_v30  ;;  %v2980_v30 = vld [vmem:[#allocation2 + $0x80] sm:$0xf] }
 0x53c   :  { %3983 = vmatprep.subr.bf16.mxu0 %v11142_v1  ;;  %4024 = vmatprep.subr.bf16.mxu1 %v11148_v26  ;;  %v2981_v1 = vld [vmem:[#allocation2 + $0x88] sm:$0xf] }
 0x53f   :  { %3984 = vmatpush1.bf16.msra.mxu0 %v11144_v7  ;;  %4025 = vmatpush1.bf16.msra.mxu1 %v11146_v21  ;;  %v2983_v7 = vld [vmem:[#allocation2 + $0x98] sm:$0xf]  ;;  %v2984_v21 = vld [vmem:[#allocation2 + $0xa0] sm:$0xf] }
 0x540   :  { %3985 = vmatprep.subr.bf16.mxu0 %v11151_v37  ;;  %4026 = vmatprep.subr.bf16.mxu1 %v11157_v48  ;;  %v2986_v37 = vld [vmem:[#allocation2 + $0xb0] sm:$0xf] }
 0x543   :  { %3986 = vmatpush1.bf16.msra.mxu0 %v11155_v42  ;;  %4027 = vmatpush1.bf16.msra.mxu1 %v11161_v62 }
 0x544   :  { %3987 = vmatprep.subr.bf16.mxu0 %v11163_v9  ;;  %4028 = vmatprep.subr.bf16.mxu1 %v11166_v0 }
 0x547   :  { %3988 = vmatpush1.bf16.msra.mxu0 %v11171_v35  ;;  %4029 = vmatpush1.bf16.msra.mxu1 %v11177_v51  ;;  %v2985_v35 = vld [vmem:[#allocation2 + $0xa8] sm:$0xf] }
 0x548   :  { %3989 = vmatprep.subr.bf16.mxu0 %v12851_v55  ;;  %4030 = vmatprep.subr.bf16.mxu1 %v12852_v13 }
 0x54b   :  { %3990 = vmatpush1.bf16.msra.mxu0 %v12853_v28  ;;  %4031 = vmatpush1.bf16.msra.mxu1 %v12854_v52 }
 0x54c   :  { %4057 = vmatprep.subr.bf16.mxu0 %v12855_v56  ;;  %4098 = vmatprep.subr.bf16.mxu1 %v12856_v41 }
 0x5e1   :  { %v3407_v3 = vpop.f32.mrb[48].mxu0  ;;  %v3448_v38 = vpop.f32.mrb[48].mxu1 }
 0x5e2   :  { %v3409_v20 = vpop.f32.mrb[49].mxu0  ;;  %v3450_v24 = vpop.f32.mrb[49].mxu1  ;;  %v3537_v48 = vadd.f32 %v3407_v3, %v2980_v30  ;;  %v3539_v62 = vadd.f32 %v3448_v38, %v2982_v17 }
 0x5e3   :  { %v3411_v5 = vpop.f32.mrb[50].mxu0  ;;  %v3452_v18 = vpop.f32.mrb[50].mxu1  ;;  %v3538_v6 = vadd.f32 %v3409_v20, %v2981_v1  ;;  %v3540_v34 = vadd.f32 %v3450_v24, %v2983_v7 }
 0x5e4   :  { %v3412_v59 = vpop.f32.mrb[51].mxu0  ;;  %v3453_v50 = vpop.f32.mrb[51].mxu1 }
 0x601   :  { %v3489_v26 = vpop.f32.mrb[52].mxu0  ;;  %v3530_v42 = vpop.f32.mrb[52].mxu1 }
 0x602   :  { %v3541_v9 = vadd.f32 %v3489_v26, %v2984_v21  ;;  %v3543_v0 = vadd.f32 %v3530_v42, %v2986_v37  ;;  %v3491_v51 = vpop.f32.mrb[53].mxu0  ;;  %v3532_v40 = vpop.f32.mrb[53].mxu1 }
 0x603   :  { %v3542_v45 = vadd.f32 %v3491_v51, %v2985_v35  ;;  %v3544_v25 = vadd.f32 %v3532_v40, %v2987_v54  ;;  %v3493_v2 = vpop.f32.mrb[54].mxu0  ;;  %v3534_v19 = vpop.f32.mrb[54].mxu1  ;;  %v4264_v51 = vld [vmem:[#allocation4 + $0xa8] sm:$0xff] }
 0x604   :  { %v3545_v32 = vsel %vm77_vm1, %v3537_v48, %v3541_v9  ;;  %v3547_v55 = vsel %vm77_vm1, %v3539_v62, %v3543_v0  ;;  %v3494_v13 = vpop.f32.mrb[55].mxu0  ;;  %v3535_v28 = vpop.f32.mrb[55].mxu1  ;;  %v4272_v19 = vld [vmem:[#allocation4 + $0xe8] sm:$0xff] }
 0x605   :  { %v9358_v52 = vmul.f32 -1.442695, %v3545_v32  ;;  %v3546_v56 = vsel %vm77_vm1, %v3538_v6, %v3542_v45  ;;  %v3548_v41 = vsel %vm77_vm1, %v3540_v34, %v3544_v25  ;;  %v4267_v34 = vld [vmem:[#allocation4 + $0xc0] sm:$0xff]  ;;  %v4268_v25 = vld [vmem:[#allocation4 + $0xc8] sm:$0xff] }
 0x606   :  { %v9359_v3 = vmul.f32 -1.442695, %v3546_v56  ;;  %v9360_v38 = vmul.f32 -1.442695, %v3548_v41  ;;  %v4271_v45 = vld [vmem:[#allocation4 + $0xe0] sm:$0xff]  ;;  %v11430_v13 = vcombine.high %v4268_v25, %v4272_v19  ;;  %v4276_v56 = vld [vmem:[#allocation4 + $0x108] sm:$0xff] }
 0x607   :  { %10005 = vpow2.f32 %v9358_v52  ;;  %v11424_v2 = vcombine.high %v4267_v34, %v4271_v45  ;;  %v11426_v32 = vcombine.low %v4267_v34, %v4271_v45  ;;  %v4275_v28 = vld [vmem:[#allocation4 + $0x100] sm:$0xff] }
 0x608   :  { %10007 = vpow2.f32 %v9359_v3  ;;  %v4279_v52 = vld [vmem:[#allocation4 + $0x120] sm:$0xff]  ;;  %v4280_v3 = vld [vmem:[#allocation4 + $0x128] sm:$0xff] }
 0x609   :  { %10009 = vpow2.f32 %v9360_v38  ;;  %v11436_v41 = vcombine.high %v4275_v28, %v4279_v52  ;;  %v11438_v38 = vcombine.low %v4275_v28, %v4279_v52 }
 0x60a   :  { %10011 = vtanh.f32 %v3547_v55  ;;  %v11428_v55 = vcombine.low %v4268_v25, %v4272_v19 }
 0x611   :  { %v10006_v20 = vpop.eup %10005 }
 0x612   :  { %v10008_v24 = vpop.eup %10007  ;;  %v3552_v5 = vadd.f32 1.0, %v10006_v20  ;;  %v11440_v20 = vcombine.low %v4276_v56, %v4280_v3 }
 0x613   :  { %v3558_v18 = vadd.f32 1.0, %v10008_v24  ;;  %v10010_v59 = vpop.eup %10009  ;;  %v11442_v24 = vcombine.high %v4276_v56, %v4280_v3 }
 0x614   :  { %10013 = vrcp.f32 %v3552_v5  ;;  %v10012_v50 = vpop.eup %10011  ;;  %v3565_v7 = vadd.f32 1.0, %v10010_v59  ;;  %v4283_v5 = vld [vmem:[#allocation4 + $0x140] sm:$0xff]  ;;  %v4284_v59 = vld [vmem:[#allocation4 + $0x148] sm:$0xff] }
 0x615   :  { %10015 = vrcp.f32 %v3558_v18  ;;  %v4287_v18 = vld [vmem:[#allocation4 + $0x160] sm:$0xff] }
 0x616   :  { %10017 = vrcp.f32 %v3565_v7  ;;  %v11449_v7 = vcombine.low %v4283_v5, %v4287_v18 }
 0x61e   :  { %v10014_v30 = vpop.eup %10013 }
 0x61f   :  { %v10016_v17 = vpop.eup %10015  ;;  %v3569_v1 = vmul.f32 %v10014_v30, %v10012_v50  ;;  %v11445_v50 = vcombine.high %v4283_v5, %v4287_v18  ;;  %v4288_v30 = vld [vmem:[#allocation4 + $0x168] sm:$0xff] }
 0x620   :  { %v3568_v21 = vmul.f32 %v10016_v17, %v11209_v15  ;;  %v10018_v37 = vpop.eup %10017  ;;  %v12859_v15 = vld [vmem:[#allocation22_spill] sm:$0xff] }
 0x621   :  { %v4291_v17 = vld [vmem:[#allocation4 + $0x180] sm:$0xff] }
 0x622   :  { %v11351_v26 = vadd.f32 %v3569_v1, %v3568_v21  ;;  %v4295_v1 = vld [vmem:[#allocation4 + $0x1a0] sm:$0xff]  ;;  %v11451_v21 = vcombine.high %v4284_v59, %v4288_v30 }
 0x624   :  { %10019 = vtanh.f32 %v11351_v26 }
 0x62e   :  { %v10020_v42 = vpop.eup %10019 }
 0x62f   :  { %v3572_v48 = vmul.f32 %v10020_v42, %v10018_v37  ;;  %v4292_v37 = vld [vmem:[#allocation4 + $0x188] sm:$0xff] }
 0x630   :  { %v4296_v42 = vld [vmem:[#allocation4 + $0x1a8] sm:$0xff] }
 0x631   :  { %3573 = vst [vmem:[#allocation3 + $0x20] sm:$0x3] %v3572_v48  ;;  %v3575_v62 = vrot.slane %v3572_v48, 2  ;;  %v3578_v9 = vrot.slane %v3572_v48, 6  ;;  %3581 = vst [vmem:[#allocation3 + $0x28] sm:$0xc] %v3572_v48  ;;  %v3590_v0 = vpack.c.bf16 %v3572_v48, %v3572_v48  ;;  %v11455_v48 = vcombine.low %v4284_v59, %v4288_v30 }
 0x632   :  { %v3582_v30 = vld [vmem:[#allocation2 + $0x80] sm:$0xf0] }
 0x633   :  { %3577 = vst [vmem:[#allocation3 + $0x10] sm:$0xc0] %v3575_v62  ;;  %3580 = vst [vmem:[#allocation3 + $0x18] sm:$0x30] %v3578_v9  ;;  %4008 = vmatmul.mubr.bf16.vlgmr.msra.gmra.mrb[56].mxu0 %v3590_v0  ;;  %4049 = vmatmul.mubr.bf16.vlgmr.msra.gmra.mrb[56].mxu1 %v3590_v0  ;;  %v11457_v62 = vcombine.high %v4291_v17, %v4295_v1  ;;  %v4299_v9 = vld [vmem:[#allocation4 + $0x1c0] sm:$0xff] }
 0x634   :  { %4058 = vmatpush1.bf16.msra.mxu0 %v11168_v53  ;;  %4099 = vmatpush1.bf16.msra.mxu1 %v11173_v11  ;;  %v12857_v53 = vld [vmem:[#allocation20_spill] sm:$0xff]  ;;  %v12858_v11 = vld [vmem:[#allocation21_spill] sm:$0xff] }
 0x635   :  { %4059 = vmatprep.subr.bf16.mxu0 %v11212_v61  ;;  %4100 = vmatprep.subr.bf16.mxu1 %v11214_v14  ;;  %v12860_v61 = vld [vmem:[#allocation23_spill] sm:$0xff]  ;;  %v12861_v14 = vld [vmem:[#allocation24_spill] sm:$0xff] }
 0x636   :  { %4089 = vmatprep.mubr.bf16.mxu0 %v12807_v31  ;;  %4130 = vmatprep.mubr.bf16.mxu1 %v12807_v31 }
 0x638   :  { %4060 = vmatpush1.bf16.msra.mxu0 %v11222_v63  ;;  %4101 = vmatpush1.bf16.msra.mxu1 %v11224_v16  ;;  %v12862_v63 = vld [vmem:[#allocation25_spill] sm:$0xff] }
 0x639   :  { %4061 = vmatprep.subr.bf16.mxu0 %v11228_v8  ;;  %4102 = vmatprep.subr.bf16.mxu1 %v11230_v39  ;;  %v4243_v16 = vld [vmem:[#allocation4] sm:$0xff]  ;;  %v4244_v39 = vld [vmem:[#allocation4 + $0x8] sm:$0xff] }
 0x63a   :  { %v4247_v8 = vld [vmem:[#allocation4 + $0x20] sm:$0xff] }
 0x63c   :  { %4062 = vmatpush1.bf16.msra.mxu0 %v11236_v49  ;;  %4103 = vmatpush1.bf16.msra.mxu1 %v11238_v46  ;;  %v11388_v49 = vcombine.high %v4243_v16, %v4247_v8  ;;  %v4248_v46 = vld [vmem:[#allocation4 + $0x28] sm:$0xff] }
 0x63d   :  { %4063 = vmatprep.subr.bf16.mxu0 %v11242_v22  ;;  %4104 = vmatprep.subr.bf16.mxu1 %v11244_v57  ;;  %v11390_v22 = vcombine.low %v4243_v16, %v4247_v8  ;;  %v11392_v57 = vcombine.low %v4244_v39, %v4248_v46  ;;  %v4250_v8 = vld [vmem:[#allocation4 + $0x38] sm:$0xff] }
 0x640   :  { %4064 = vmatpush1.bf16.msra.mxu0 %v12857_v53  ;;  %4105 = vmatpush1.bf16.msra.mxu1 %v12858_v11  ;;  %v11460_v53 = vcombine.high %v4292_v37, %v4296_v42  ;;  %v4245_v11 = vld [vmem:[#allocation4 + $0x10] sm:$0xff] }
 0x641   :  { %4065 = vmatprep.subr.bf16.mxu0 %v12859_v15  ;;  %4106 = vmatprep.subr.bf16.mxu1 %v12860_v61  ;;  %v4249_v15 = vld [vmem:[#allocation4 + $0x30] sm:$0xff]  ;;  %v4246_v61 = vld [vmem:[#allocation4 + $0x18] sm:$0xff] }
 0x642   :  { %v11462_v16 = vcombine.low %v4245_v11, %v4249_v15 }
 0x644   :  { %4066 = vmatpush1.bf16.msra.mxu0 %v11260_v10  ;;  %4107 = vmatpush1.bf16.msra.mxu1 %v11262_v47  ;;  %v11394_v10 = vcombine.high %v4244_v39, %v4248_v46  ;;  %v4251_v47 = vld [vmem:[#allocation4 + $0x40] sm:$0xff]  ;;  %v11465_v39 = vcombine.low %v4291_v17, %v4295_v1  ;;  %v11467_v46 = vcombine.low %v4246_v61, %v4250_v8  ;;  %v3584_v17 = vld [vmem:[#allocation2 + $0x90] sm:$0xf0]  ;;  %v3583_v1 = vld [vmem:[#allocation2 + $0x88] sm:$0xf0] }
 0x645   :  { %4067 = vmatprep.subr.bf16.mxu0 %v11266_v4  ;;  %4108 = vmatprep.subr.bf16.mxu1 %v12861_v14  ;;  %v4255_v4 = vld [vmem:[#allocation4 + $0x60] sm:$0xff]  ;;  %v4300_v14 = vld [vmem:[#allocation4 + $0x1c8] sm:$0xff] }
 0x648   :  { %4068 = vmatpush1.bf16.msra.mxu0 %v12862_v63  ;;  %4109 = vmatpush1.bf16.msra.mxu1 %v11274_v27  ;;  %v4256_v27 = vld [vmem:[#allocation4 + $0x68] sm:$0xff] }
 0x649   :  { %4069 = vmatprep.subr.bf16.mxu0 %v11278_v23  ;;  %4110 = vmatprep.subr.bf16.mxu1 %v11280_v29  ;;  %v11402_v23 = vcombine.low %v4251_v47, %v4255_v4  ;;  %v4304_v63 = vld [vmem:[#allocation4 + $0x1e8] sm:$0xff] }
 0x64c   :  { %4070 = vmatpush1.bf16.msra.mxu0 %v11284_v58  ;;  %4111 = vmatpush1.bf16.msra.mxu1 %v11286_v12  ;;  %v4259_v12 = vld [vmem:[#allocation4 + $0x80] sm:$0xff] }
 0x64d   :  { %4071 = vmatprep.subr.bf16.mxu0 %v11290_v36  ;;  %4112 = vmatprep.subr.bf16.mxu1 %v11292_v60  ;;  %v4263_v36 = vld [vmem:[#allocation4 + $0xa0] sm:$0xff]  ;;  %v4260_v60 = vld [vmem:[#allocation4 + $0x88] sm:$0xff] }
 0x64e   :  { %v11412_v35 = vcombine.high %v4259_v12, %v4263_v36  ;;  %v11414_v54 = vcombine.low %v4259_v12, %v4263_v36  ;;  %v11416_v40 = vcombine.low %v4260_v60, %v4264_v51  ;;  %v11418_v6 = vcombine.high %v4260_v60, %v4264_v51 }
 0x64f   :  { %v11483_v12 = vcombine.low %v4300_v14, %v4304_v63  ;;  %v11485_v36 = vcombine.high %v4245_v11, %v4249_v15  ;;  %v11488_v60 = vcombine.high %v4246_v61, %v4250_v8  ;;  %v3586_v15 = vld [vmem:[#allocation2 + $0xa0] sm:$0xf0] }
 0x650   :  { %4072 = vmatpush1.bf16.msra.mxu0 %v11296_v43  ;;  %4113 = vmatpush1.bf16.msra.mxu1 %v11298_v33  ;;  %v4252_v43 = vld [vmem:[#allocation4 + $0x48] sm:$0xff]  ;;  %v11400_v33 = vcombine.high %v4251_v47, %v4255_v4  ;;  %v11471_v47 = vcombine.low %v4292_v37, %v4296_v42  ;;  %v3585_v37 = vld [vmem:[#allocation2 + $0x98] sm:$0xf0] }
 0x651   :  { %4627 = vmatprep.subr.bf16.mxu0 %v11388_v49  ;;  %4668 = vmatprep.subr.bf16.mxu1 %v11394_v10  ;;  %v11404_v29 = vcombine.low %v4252_v43, %v4256_v27  ;;  %v11406_v58 = vcombine.high %v4252_v43, %v4256_v27  ;;  %v11476_v43 = vcombine.high %v4300_v14, %v4304_v63 }
 0x652   :  { %12866 = vst [vmem:[#allocation17_spill] sm:$0xff] %v11483_v12  ;;  %12867 = vst [vmem:[#allocation18_spill] sm:$0xff] %v11485_v36 }
 0x653   :  { %4090 = vmatmul.mubr.bf16.vlgmr.msra.gmra.mrb[60].mxu0 %v3590_v0  ;;  %4131 = vmatmul.mubr.bf16.vlgmr.msra.gmra.mrb[60].mxu1 %v3590_v0  ;;  %v4303_v0 = vld [vmem:[#allocation4 + $0x1e0] sm:$0xff]  ;;  %12864 = vst [vmem:[#allocation15_spill] sm:$0xff] %v11476_v43  ;;  %12868 = vst [vmem:[#allocation19_spill] sm:$0xff] %v11488_v60 }
 0x654   :  { %4659 = vmatprep.mubr.bf16.mxu0 %v12807_v31  ;;  %4700 = vmatprep.mubr.bf16.mxu1 %v12807_v31  ;;  %v11473_v4 = vcombine.high %v4299_v9, %v4303_v0  ;;  %v11479_v27 = vcombine.low %v4299_v9, %v4303_v0 }
 0x655   :  { %4628 = vmatpush1.bf16.msra.mxu0 %v11390_v22  ;;  %4669 = vmatpush1.bf16.msra.mxu1 %v11392_v57 }
 0x656   :  { %4629 = vmatprep.subr.bf16.mxu0 %v11400_v33  ;;  %4670 = vmatprep.subr.bf16.mxu1 %v11406_v58  ;;  %12863 = vst [vmem:[#allocation14_spill] sm:$0xff] %v11473_v4  ;;  %12865 = vst [vmem:[#allocation16_spill] sm:$0xff] %v11479_v27 }
 0x659   :  { %4630 = vmatpush1.bf16.msra.mxu0 %v11402_v23  ;;  %4671 = vmatpush1.bf16.msra.mxu1 %v11404_v29 }
 0x65a   :  { %4631 = vmatprep.subr.bf16.mxu0 %v11412_v35  ;;  %4672 = vmatprep.subr.bf16.mxu1 %v11418_v6 }
 0x65d   :  { %4632 = vmatpush1.bf16.msra.mxu0 %v11414_v54  ;;  %4673 = vmatpush1.bf16.msra.mxu1 %v11416_v40 }
 0x65e   :  { %4633 = vmatprep.subr.bf16.mxu0 %v11424_v2  ;;  %4674 = vmatprep.subr.bf16.mxu1 %v11430_v13 }
 0x661   :  { %4634 = vmatpush1.bf16.msra.mxu0 %v11426_v32  ;;  %4675 = vmatpush1.bf16.msra.mxu1 %v11428_v55 }
 0x662   :  { %4635 = vmatprep.subr.bf16.mxu0 %v11436_v41  ;;  %4676 = vmatprep.subr.bf16.mxu1 %v11442_v24 }
 0x665   :  { %4636 = vmatpush1.bf16.msra.mxu0 %v11438_v38  ;;  %4677 = vmatpush1.bf16.msra.mxu1 %v11440_v20 }
 0x666   :  { %4637 = vmatprep.subr.bf16.mxu0 %v11445_v50  ;;  %4678 = vmatprep.subr.bf16.mxu1 %v11451_v21 }
 0x669   :  { %4638 = vmatpush1.bf16.msra.mxu0 %v11449_v7  ;;  %4679 = vmatpush1.bf16.msra.mxu1 %v11455_v48 }
 0x66a   :  { %4639 = vmatprep.subr.bf16.mxu0 %v11457_v62  ;;  %4680 = vmatprep.subr.bf16.mxu1 %v11460_v53 }
 0x66d   :  { %4640 = vmatpush1.bf16.msra.mxu0 %v11465_v39  ;;  %4681 = vmatpush1.bf16.msra.mxu1 %v11471_v47 }
 0x66e   :  { %4641 = vmatprep.subr.bf16.mxu0 %v11473_v4  ;;  %4682 = vmatprep.subr.bf16.mxu1 %v11476_v43 }
 0x671   :  { %4642 = vmatpush1.bf16.msra.mxu0 %v11479_v27  ;;  %4683 = vmatpush1.bf16.msra.mxu1 %v11483_v12  ;;  %v3589_v12 = vld [vmem:[#allocation2 + $0xb8] sm:$0xf0] }
 0x672   :  { %4709 = vmatprep.subr.bf16.mxu0 %v11485_v36  ;;  %4750 = vmatprep.subr.bf16.mxu1 %v11488_v60  ;;  %v3587_v36 = vld [vmem:[#allocation2 + $0xa8] sm:$0xf0] }
 0x706   :  { %v4009_v51 = vpop.f32.mrb[56].mxu0  ;;  %v4050_v34 = vpop.f32.mrb[56].mxu1 }
 0x707   :  { %v4011_v45 = vpop.f32.mrb[57].mxu0  ;;  %v4052_v25 = vpop.f32.mrb[57].mxu1  ;;  %v4147_v3 = vrot.slane %v4009_v51, 4  ;;  %v4149_v5 = vrot.slane %v4050_v34, 4 }
 0x708   :  { %v4013_v19 = vpop.f32.mrb[58].mxu0  ;;  %v4054_v28 = vpop.f32.mrb[58].mxu1  ;;  %v4148_v18 = vrot.slane %v4011_v45, 4  ;;  %v4150_v59 = vrot.slane %v4052_v25, 4 }
 0x709   :  { %v4014_v52 = vpop.f32.mrb[59].mxu0  ;;  %v4055_v56 = vpop.f32.mrb[59].mxu1  ;;  %v4163_v0 = vadd.f32 %v4147_v3, %v3582_v30  ;;  %v4165_v11 = vadd.f32 %v4149_v5, %v3584_v17 }
 0x70a   :  { %v4164_v19 = vadd.f32 %v4148_v18, %v3583_v1  ;;  %v4166_v28 = vadd.f32 %v4150_v59, %v3585_v37  ;;  %v3588_v52 = vld [vmem:[#allocation2 + $0xb0] sm:$0xf0] }
 0x70b   :  { %v4175_v30 = vrot.slane %v4163_v0, 4  ;;  %v4177_v17 = vrot.slane %v4165_v11, 4 }
 0x70c   :  { %v4176_v4 = vrot.slane %v4164_v19, 4  ;;  %v4178_v18 = vrot.slane %v4166_v28, 4 }
 0x726   :  { %v4091_v42 = vpop.f32.mrb[60].mxu0  ;;  %v4132_v9 = vpop.f32.mrb[60].mxu1 }
 0x727   :  { %v4151_v61 = vrot.slane %v4091_v42, 4  ;;  %v4153_v14 = vrot.slane %v4132_v9, 4  ;;  %v4093_v63 = vpop.f32.mrb[61].mxu0  ;;  %v4134_v8 = vpop.f32.mrb[61].mxu1 }
 0x728   :  { %v4152_v51 = vrot.slane %v4093_v63, 4  ;;  %v4154_v34 = vrot.slane %v4134_v8, 4  ;;  %v4095_v45 = vpop.f32.mrb[62].mxu0  ;;  %v4136_v25 = vpop.f32.mrb[62].mxu1 }
 0x729   :  { %v4167_v56 = vadd.f32 %v4151_v61, %v3586_v15  ;;  %v4169_v60 = vadd.f32 %v4153_v14, %v3588_v52  ;;  %v4096_v27 = vpop.f32.mrb[63].mxu0  ;;  %v4137_v43 = vpop.f32.mrb[63].mxu1  ;;  %v4253_v45 = vld [vmem:[#allocation4 + $0x50] sm:$0xff] }
 0x72a   :  { %v4168_v3 = vadd.f32 %v4152_v51, %v3587_v36  ;;  %v4170_v5 = vadd.f32 %v4154_v34, %v3589_v12 }
 0x72b   :  { %v4187_v42 = vrot.slane %v4167_v56, 4  ;;  %v4189_v9 = vrot.slane %v4169_v60, 4  ;;  %v4257_v56 = vld [vmem:[#allocation4 + $0x70] sm:$0xff] }
 0x72c   :  { %v4188_v59 = vrot.slane %v4168_v3, 4  ;;  %v4190_v1 = vrot.slane %v4170_v5, 4  ;;  %v4254_v3 = vld [vmem:[#allocation4 + $0x58] sm:$0xff] }
 0x72d   :  { %v4195_v37 = vsel %vm77_vm1, %v4175_v30, %v4187_v42  ;;  %v4197_v15 = vsel %vm77_vm1, %v4177_v17, %v4189_v9  ;;  %v4258_v5 = vld [vmem:[#allocation4 + $0x78] sm:$0xff]  ;;  %v11506_v42 = vcombine.high %v4253_v45, %v4257_v56 }
 0x72e   :  { %v9425_v61 = vmul.f32 -1.442695, %v4195_v37  ;;  %v4196_v43 = vsel %vm77_vm1, %v4176_v4, %v4188_v59  ;;  %v4198_v27 = vsel %vm77_vm1, %v4178_v18, %v4190_v1  ;;  %v11508_v9 = vcombine.high %v4254_v3, %v4258_v5  ;;  %v4261_v37 = vld [vmem:[#allocation4 + $0x90] sm:$0xff] }
 0x72f   :  { %v9426_v12 = vmul.f32 -1.442695, %v4196_v43  ;;  %v9427_v36 = vmul.f32 -1.442695, %v4198_v27  ;;  %v4266_v43 = vld [vmem:[#allocation4 + $0xb8] sm:$0xff]  ;;  %v11516_v27 = vcombine.low %v4253_v45, %v4257_v56 }
 0x730   :  { %10021 = vpow2.f32 %v9425_v61  ;;  %v4262_v61 = vld [vmem:[#allocation4 + $0x98] sm:$0xff] }
 0x731   :  { %10023 = vpow2.f32 %v9426_v12  ;;  %v11518_v12 = vcombine.low %v4254_v3, %v4258_v5  ;;  %v4278_v45 = vld [vmem:[#allocation4 + $0x118] sm:$0xff] }
 0x732   :  { %10025 = vpow2.f32 %v9427_v36 }
 0x733   :  { %10027 = vtanh.f32 %v4197_v15  ;;  %v4265_v15 = vld [vmem:[#allocation4 + $0xb0] sm:$0xff] }
 0x734   :  { %v11522_v36 = vcombine.high %v4261_v37, %v4265_v15 }
 0x73a   :  { %v10022_v60 = vpop.eup %10021 }
 0x73b   :  { %v10024_v0 = vpop.eup %10023  ;;  %v4202_v11 = vadd.f32 1.0, %v10022_v60  ;;  %v11524_v60 = vcombine.high %v4262_v61, %v4266_v43 }
 0x73c   :  { %v4208_v14 = vadd.f32 1.0, %v10024_v0  ;;  %v10026_v63 = vpop.eup %10025  ;;  %v4269_v0 = vld [vmem:[#allocation4 + $0xd0] sm:$0xff] }
 0x73d   :  { %10029 = vrcp.f32 %v4202_v11  ;;  %v10028_v8 = vpop.eup %10027  ;;  %v4215_v52 = vadd.f32 1.0, %v10026_v63  ;;  %v4273_v11 = vld [vmem:[#allocation4 + $0xf0] sm:$0xff]  ;;  %v4274_v63 = vld [vmem:[#allocation4 + $0xf8] sm:$0xff] }
 0x73e   :  { %10031 = vrcp.f32 %v4208_v14  ;;  %v4270_v14 = vld [vmem:[#allocation4 + $0xd8] sm:$0xff]  ;;  %v11542_v56 = vcombine.low %v4269_v0, %v4273_v11 }
 0x73f   :  { %10033 = vrcp.f32 %v4215_v52  ;;  %v4277_v52 = vld [vmem:[#allocation4 + $0x110] sm:$0xff]  ;;  %v11544_v3 = vcombine.low %v4270_v14, %v4274_v63 }
 0x740   :  { %12869 = vst [vmem:[#allocation20_spill] sm:$0xff] %v11542_v56 }
 0x741   :  { %12870 = vst [vmem:[#allocation21_spill] sm:$0xff] %v11544_v3 }
 0x747   :  { %v10030_v19 = vpop.eup %10029 }
 0x748   :  { %v10032_v28 = vpop.eup %10031  ;;  %v4219_v4 = vmul.f32 %v10030_v19, %v10028_v8  ;;  %v11530_v8 = vcombine.low %v4261_v37, %v4265_v15  ;;  %v11532_v19 = vcombine.low %v4262_v61, %v4266_v43 }
 0x749   :  { %v4218_v51 = vmul.f32 %v10032_v28, %v11351_v26  ;;  %v10034_v25 = vpop.eup %10033  ;;  %v11536_v28 = vcombine.high %v4269_v0, %v4273_v11  ;;  %v4293_v0 = vld [vmem:[#allocation4 + $0x190] sm:$0xff] }
 0x74a   :  { %v4297_v11 = vld [vmem:[#allocation4 + $0x1b0] sm:$0xff] }
 0x74b   :  { %v11503_v34 = vadd.f32 %v4219_v4, %v4218_v51  ;;  %v11538_v4 = vcombine.high %v4270_v14, %v4274_v63  ;;  %v4281_v51 = vld [vmem:[#allocation4 + $0x130] sm:$0xff]  ;;  %v4294_v14 = vld [vmem:[#allocation4 + $0x198] sm:$0xff] }
 0x74c   :  { %v11548_v5 = vcombine.high %v4277_v52, %v4281_v51  ;;  %v11554_v37 = vcombine.low %v4277_v52, %v4281_v51  ;;  %v4298_v63 = vld [vmem:[#allocation4 + $0x1b8] sm:$0xff] }
 0x74d   :  { %10035 = vtanh.f32 %v11503_v34 }
 0x74e   :  { %12871 = vst [vmem:[#allocation22_spill] sm:$0xff] %v11548_v5 }
 0x757   :  { %v10036_v30 = vpop.eup %10035 }
 0x758   :  { %v4222_v17 = vmul.f32 %v10036_v30, %v10034_v25  ;;  %v4282_v25 = vld [vmem:[#allocation4 + $0x138] sm:$0xff] }
 0x759   :  { %v11550_v30 = vcombine.high %v4278_v45, %v4282_v25  ;;  %v11556_v15 = vcombine.low %v4278_v45, %v4282_v25  ;;  %v11572_v45 = vcombine.high %v4293_v0, %v4297_v11  ;;  %v11574_v25 = vcombine.high %v4294_v14, %v4298_v63 }
 0x75a   :  { %v4224_v18 = vrot.slane %v4222_v17, 4  ;;  %v4227_v59 = vrot.slane %v4222_v17, 6  ;;  %v4230_v1 = vrot.slane %v4222_v17, 2  ;;  %v11510_v26 = vpack.c.bf16 %v4222_v17, %v4222_v17  ;;  %v4285_v17 = vld [vmem:[#allocation4 + $0x150] sm:$0xff] }
 0x75b   :  { %12872 = vst [vmem:[#allocation23_spill] sm:$0xff] %v11550_v30 }
 0x75c   :  { %4226 = vst [vmem:[#allocation3 + $0x20] sm:$0x30] %v4224_v18  ;;  %4229 = vst [vmem:[#allocation3 + $0x10] sm:$0xc] %v4227_v59  ;;  %4660 = vmatmul.mubr.bf16.vlgmr.msra.gmra.mrb[64].mxu0 %v11510_v26  ;;  %4701 = vmatmul.mubr.bf16.vlgmr.msra.gmra.mrb[64].mxu1 %v11510_v26  ;;  %v4286_v59 = vld [vmem:[#allocation4 + $0x158] sm:$0xff] }
 0x75d   :  { %4232 = vst [vmem:[#allocation3 + $0x18] sm:$0x3] %v4230_v1  ;;  %4233 = vst [vmem:[#allocation3 + $0x28] sm:$0xc0] %v4224_v18  ;;  %4710 = vmatpush1.bf16.msra.mxu0 %v11462_v16  ;;  %4751 = vmatpush1.bf16.msra.mxu1 %v11467_v46  ;;  %v4289_v18 = vld [vmem:[#allocation4 + $0x170] sm:$0xff]  ;;  %v4290_v1 = vld [vmem:[#allocation4 + $0x178] sm:$0xff] }
 0x75e   :  { %4711 = vmatprep.subr.bf16.mxu0 %v11506_v42  ;;  %4752 = vmatprep.subr.bf16.mxu1 %v11508_v9  ;;  %v11560_v61 = vcombine.high %v4285_v17, %v4289_v18  ;;  %v11562_v43 = vcombine.high %v4286_v59, %v4290_v1  ;;  %v11566_v52 = vcombine.low %v4285_v17, %v4289_v18 }
 0x75f   :  { %4741 = vmatprep.mubr.bf16.mxu0 %v12807_v31  ;;  %4782 = vmatprep.mubr.bf16.mxu1 %v12807_v31  ;;  %v11568_v51 = vcombine.low %v4286_v59, %v4290_v1  ;;  %v11578_v17 = vcombine.low %v4293_v0, %v4297_v11  ;;  %v11580_v18 = vcombine.low %v4294_v14, %v4298_v63 }
 0x760   :  { %12873 = vst [vmem:[#allocation24_spill] sm:$0xff] %v11562_v43  ;;  %12874 = vst [vmem:[#allocation25_spill] sm:$0xff] %v11566_v52 }
 0x761   :  { %4712 = vmatpush1.bf16.msra.mxu0 %v11516_v27  ;;  %4753 = vmatpush1.bf16.msra.mxu1 %v11518_v12 }
 0x762   :  { %4713 = vmatprep.subr.bf16.mxu0 %v11522_v36  ;;  %4754 = vmatprep.subr.bf16.mxu1 %v11524_v60 }
 0x765   :  { %4714 = vmatpush1.bf16.msra.mxu0 %v11530_v8  ;;  %4755 = vmatpush1.bf16.msra.mxu1 %v11532_v19 }
 0x766   :  { %4715 = vmatprep.subr.bf16.mxu0 %v11536_v28  ;;  %4756 = vmatprep.subr.bf16.mxu1 %v11538_v4 }
 0x769   :  { %4716 = vmatpush1.bf16.msra.mxu0 %v11542_v56  ;;  %4757 = vmatpush1.bf16.msra.mxu1 %v11544_v3  ;;  %v4302_v3 = vld [vmem:[#allocation4 + $0x1d8] sm:$0xff] }
 0x76a   :  { %4717 = vmatprep.subr.bf16.mxu0 %v11548_v5  ;;  %4758 = vmatprep.subr.bf16.mxu1 %v11550_v30  ;;  %v4301_v30 = vld [vmem:[#allocation4 + $0x1d0] sm:$0xff]  ;;  %v4306_v56 = vld [vmem:[#allocation4 + $0x1f8] sm:$0xff] }
 0x76b   :  { %v4305_v5 = vld [vmem:[#allocation4 + $0x1f0] sm:$0xff]  ;;  %v11586_v1 = vcombine.high %v4302_v3, %v4306_v56 }
 0x76c   :  { %v11584_v59 = vcombine.high %v4301_v30, %v4305_v5 }
 0x76d   :  { %4718 = vmatpush1.bf16.msra.mxu0 %v11554_v37  ;;  %4759 = vmatpush1.bf16.msra.mxu1 %v11556_v15 }
 0x76e   :  { %4719 = vmatprep.subr.bf16.mxu0 %v11560_v61  ;;  %4760 = vmatprep.subr.bf16.mxu1 %v11562_v43  ;;  %v11590_v43 = vcombine.low %v4301_v30, %v4305_v5 }
 0x771   :  { %4720 = vmatpush1.bf16.msra.mxu0 %v11566_v52  ;;  %4761 = vmatpush1.bf16.msra.mxu1 %v11568_v51  ;;  %v11592_v52 = vcombine.low %v4302_v3, %v4306_v56 }
 0x772   :  { %4721 = vmatprep.subr.bf16.mxu0 %v11572_v45  ;;  %4762 = vmatprep.subr.bf16.mxu1 %v11574_v25 }
 0x775   :  { %4722 = vmatpush1.bf16.msra.mxu0 %v11578_v17  ;;  %4763 = vmatpush1.bf16.msra.mxu1 %v11580_v18 }
 0x776   :  { %4723 = vmatprep.subr.bf16.mxu0 %v11584_v59  ;;  %4764 = vmatprep.subr.bf16.mxu1 %v11586_v1 }
 0x779   :  { %4724 = vmatpush1.bf16.msra.mxu0 %v11590_v43  ;;  %4765 = vmatpush1.bf16.msra.mxu1 %v11592_v52 }
 0x77a   :  { %5229 = vmatprep.subr.bf16.mxu0 %v11388_v49  ;;  %5270 = vmatprep.subr.bf16.mxu1 %v11394_v10  ;;  %v12875_v49 = vld [vmem:[#allocation14_spill] sm:$0xff]  ;;  %v12878_v10 = vld [vmem:[#allocation17_spill] sm:$0xff] }
 0x77c   :  { %4742 = vmatmul.mubr.bf16.vlgmr.msra.gmra.mrb[68].mxu0 %v11510_v26  ;;  %4783 = vmatmul.mubr.bf16.vlgmr.msra.gmra.mrb[68].mxu1 %v11510_v26  ;;  %v4241_v26 = vld [vmem:[#allocation2 + $0xf8] sm:$0xf] }
 0x77d   :  { %5230 = vmatpush1.bf16.msra.mxu0 %v11390_v22  ;;  %5271 = vmatpush1.bf16.msra.mxu1 %v11392_v57  ;;  %v12876_v22 = vld [vmem:[#allocation15_spill] sm:$0xff]  ;;  %v12877_v57 = vld [vmem:[#allocation16_spill] sm:$0xff] }
 0x77e   :  { %5231 = vmatprep.subr.bf16.mxu0 %v11400_v33  ;;  %5272 = vmatprep.subr.bf16.mxu1 %v11406_v58  ;;  %v12879_v33 = vld [vmem:[#allocation18_spill] sm:$0xff] }
 0x77f   :  { %5261 = vmatprep.mubr.bf16.mxu0 %v12807_v31  ;;  %5302 = vmatprep.mubr.bf16.mxu1 %v12807_v31 }
 0x781   :  { %5232 = vmatpush1.bf16.msra.mxu0 %v11402_v23  ;;  %5273 = vmatpush1.bf16.msra.mxu1 %v11404_v29  ;;  %v12880_v23 = vld [vmem:[#allocation19_spill] sm:$0xff] }
 0x782   :  { %5233 = vmatprep.subr.bf16.mxu0 %v11412_v35  ;;  %5274 = vmatprep.subr.bf16.mxu1 %v11418_v6 }
 0x785   :  { %5234 = vmatpush1.bf16.msra.mxu0 %v11414_v54  ;;  %5275 = vmatpush1.bf16.msra.mxu1 %v11416_v40 }
 0x786   :  { %5235 = vmatprep.subr.bf16.mxu0 %v11424_v2  ;;  %5276 = vmatprep.subr.bf16.mxu1 %v11430_v13  ;;  %v4236_v13 = vld [vmem:[#allocation2 + $0xd0] sm:$0xf] }
 0x789   :  { %5236 = vmatpush1.bf16.msra.mxu0 %v11426_v32  ;;  %5277 = vmatpush1.bf16.msra.mxu1 %v11428_v55  ;;  %v4234_v55 = vld [vmem:[#allocation2 + $0xc0] sm:$0xf] }
 0x78a   :  { %5237 = vmatprep.subr.bf16.mxu0 %v11436_v41  ;;  %5278 = vmatprep.subr.bf16.mxu1 %v11442_v24  ;;  %v4235_v41 = vld [vmem:[#allocation2 + $0xc8] sm:$0xf] }
 0x78d   :  { %5238 = vmatpush1.bf16.msra.mxu0 %v11438_v38  ;;  %5279 = vmatpush1.bf16.msra.mxu1 %v11440_v20  ;;  %v4237_v38 = vld [vmem:[#allocation2 + $0xd8] sm:$0xf]  ;;  %v4238_v20 = vld [vmem:[#allocation2 + $0xe0] sm:$0xf] }
 0x78e   :  { %5239 = vmatprep.subr.bf16.mxu0 %v11445_v50  ;;  %5280 = vmatprep.subr.bf16.mxu1 %v11451_v21  ;;  %v4240_v50 = vld [vmem:[#allocation2 + $0xf0] sm:$0xf] }
 0x791   :  { %5240 = vmatpush1.bf16.msra.mxu0 %v11449_v7  ;;  %5281 = vmatpush1.bf16.msra.mxu1 %v11455_v48 }
 0x792   :  { %5241 = vmatprep.subr.bf16.mxu0 %v11457_v62  ;;  %5282 = vmatprep.subr.bf16.mxu1 %v11460_v53 }
 0x795   :  { %5242 = vmatpush1.bf16.msra.mxu0 %v11465_v39  ;;  %5283 = vmatpush1.bf16.msra.mxu1 %v11471_v47  ;;  %v4239_v39 = vld [vmem:[#allocation2 + $0xe8] sm:$0xf] }
 0x796   :  { %5243 = vmatprep.subr.bf16.mxu0 %v12875_v49  ;;  %5284 = vmatprep.subr.bf16.mxu1 %v12876_v22 }
 0x799   :  { %5244 = vmatpush1.bf16.msra.mxu0 %v12877_v57  ;;  %5285 = vmatpush1.bf16.msra.mxu1 %v12878_v10 }
 0x79a   :  { %5311 = vmatprep.subr.bf16.mxu0 %v12879_v33  ;;  %5352 = vmatprep.subr.bf16.mxu1 %v12880_v23 }
 0x82f   :  { %v4661_v29 = vpop.f32.mrb[64].mxu0  ;;  %v4702_v58 = vpop.f32.mrb[64].mxu1 }
 0x830   :  { %v4663_v35 = vpop.f32.mrb[65].mxu0  ;;  %v4704_v54 = vpop.f32.mrb[65].mxu1  ;;  %v4791_v21 = vadd.f32 %v4661_v29, %v4234_v55  ;;  %v4793_v48 = vadd.f32 %v4702_v58, %v4236_v13 }
 0x831   :  { %v4665_v40 = vpop.f32.mrb[66].mxu0  ;;  %v4706_v6 = vpop.f32.mrb[66].mxu1  ;;  %v4792_v3 = vadd.f32 %v4663_v35, %v4235_v41  ;;  %v4794_v5 = vadd.f32 %v4704_v54, %v4237_v38 }
 0x832   :  { %v4666_v2 = vpop.f32.mrb[67].mxu0  ;;  %v4707_v32 = vpop.f32.mrb[67].mxu1 }
 0x84f   :  { %v4743_v24 = vpop.f32.mrb[68].mxu0  ;;  %v4784_v7 = vpop.f32.mrb[68].mxu1 }
 0x850   :  { %v4795_v62 = vadd.f32 %v4743_v24, %v4238_v20  ;;  %v4797_v53 = vadd.f32 %v4784_v7, %v4240_v50  ;;  %v4745_v47 = vpop.f32.mrb[69].mxu0  ;;  %v4786_v56 = vpop.f32.mrb[69].mxu1 }
 0x851   :  { %v4796_v30 = vadd.f32 %v4745_v47, %v4239_v39  ;;  %v4798_v0 = vadd.f32 %v4786_v56, %v4241_v26  ;;  %v4747_v11 = vpop.f32.mrb[70].mxu0  ;;  %v4788_v14 = vpop.f32.mrb[70].mxu1  ;;  %v5521_v47 = vld [vmem:[#allocation7 + $0xa8] sm:$0xff] }
 0x852   :  { %v4799_v63 = vsel %vm77_vm1, %v4791_v21, %v4795_v62  ;;  %v4801_v49 = vsel %vm77_vm1, %v4793_v48, %v4797_v53  ;;  %v4748_v22 = vpop.f32.mrb[71].mxu0  ;;  %v4789_v57 = vpop.f32.mrb[71].mxu1  ;;  %v5529_v14 = vld [vmem:[#allocation7 + $0xe8] sm:$0xff] }
 0x853   :  { %v9492_v10 = vmul.f32 -1.442695, %v4799_v63  ;;  %v4800_v33 = vsel %vm77_vm1, %v4792_v3, %v4796_v30  ;;  %v4802_v23 = vsel %vm77_vm1, %v4794_v5, %v4798_v0  ;;  %v5524_v5 = vld [vmem:[#allocation7 + $0xc0] sm:$0xff]  ;;  %v5525_v0 = vld [vmem:[#allocation7 + $0xc8] sm:$0xff] }
 0x854   :  { %v9493_v29 = vmul.f32 -1.442695, %v4800_v33  ;;  %v9494_v58 = vmul.f32 -1.442695, %v4802_v23  ;;  %v5528_v30 = vld [vmem:[#allocation7 + $0xe0] sm:$0xff]  ;;  %v9589_v22 = vcombine.high %v5525_v0, %v5529_v14  ;;  %v5533_v33 = vld [vmem:[#allocation7 + $0x108] sm:$0xff] }
 0x855   :  { %10037 = vpow2.f32 %v9492_v10  ;;  %v9587_v11 = vcombine.high %v5524_v5, %v5528_v30  ;;  %v9586_v63 = vcombine.low %v5524_v5, %v5528_v30  ;;  %v5532_v57 = vld [vmem:[#allocation7 + $0x100] sm:$0xff] }
 0x856   :  { %10039 = vpow2.f32 %v9493_v29  ;;  %v5536_v10 = vld [vmem:[#allocation7 + $0x120] sm:$0xff]  ;;  %v5537_v29 = vld [vmem:[#allocation7 + $0x128] sm:$0xff] }
 0x857   :  { %10041 = vpow2.f32 %v9494_v58  ;;  %v9595_v23 = vcombine.high %v5532_v57, %v5536_v10  ;;  %v9594_v58 = vcombine.low %v5532_v57, %v5536_v10 }
 0x858   :  { %10043 = vtanh.f32 %v4801_v49  ;;  %v9588_v49 = vcombine.low %v5525_v0, %v5529_v14  ;;  %v5592_v14 = vld [vmem:[#allocation7 + $0x2e0] sm:$0xff] }
 0x85f   :  { %v10038_v35 = vpop.eup %10037 }
 0x860   :  { %v10040_v54 = vpop.eup %10039  ;;  %v4806_v40 = vadd.f32 1.0, %v10038_v35  ;;  %v9596_v35 = vcombine.low %v5533_v33, %v5537_v29 }
 0x861   :  { %v4812_v6 = vadd.f32 1.0, %v10040_v54  ;;  %v10042_v2 = vpop.eup %10041  ;;  %v9597_v54 = vcombine.high %v5533_v33, %v5537_v29  ;;  %v5600_v29 = vld [vmem:[#allocation7 + $0x320] sm:$0xff] }
 0x862   :  { %10045 = vrcp.f32 %v4806_v40  ;;  %v10044_v32 = vpop.eup %10043  ;;  %v4819_v38 = vadd.f32 1.0, %v10042_v2  ;;  %v5540_v40 = vld [vmem:[#allocation7 + $0x140] sm:$0xff]  ;;  %v5541_v2 = vld [vmem:[#allocation7 + $0x148] sm:$0xff] }
 0x863   :  { %10047 = vrcp.f32 %v4812_v6  ;;  %v5544_v6 = vld [vmem:[#allocation7 + $0x160] sm:$0xff] }
 0x864   :  { %10049 = vrcp.f32 %v4819_v38 }
 0x86c   :  { %v10046_v55 = vpop.eup %10045 }
 0x86d   :  { %v10048_v13 = vpop.eup %10047  ;;  %v4823_v41 = vmul.f32 %v10046_v55, %v10044_v32  ;;  %v9603_v32 = vcombine.high %v5540_v40, %v5544_v6  ;;  %v5545_v55 = vld [vmem:[#allocation7 + $0x168] sm:$0xff] }
 0x86e   :  { %v4822_v20 = vmul.f32 %v10048_v13, %v11503_v34  ;;  %v10050_v50 = vpop.eup %10049  ;;  %v12883_v34 = vld [vmem:[#allocation22_spill] sm:$0xff]  ;;  %v9602_v13 = vcombine.low %v5540_v40, %v5544_v6  ;;  %v9605_v38 = vcombine.high %v5541_v2, %v5545_v55 }
 0x870   :  { %v11645_v24 = vadd.f32 %v4823_v41, %v4822_v20  ;;  %v9604_v41 = vcombine.low %v5541_v2, %v5545_v55  ;;  %v5548_v20 = vld [vmem:[#allocation7 + $0x180] sm:$0xff] }
 0x871   :  { %v5608_v55 = vld [vmem:[#allocation7 + $0x360] sm:$0xff] }
 0x872   :  { %10051 = vtanh.f32 %v11645_v24 }
 0x87c   :  { %v10052_v7 = vpop.eup %10051 }
 0x87d   :  { %v4826_v21 = vmul.f32 %v10052_v7, %v10050_v50  ;;  %v5552_v50 = vld [vmem:[#allocation7 + $0x1a0] sm:$0xff]  ;;  %v5549_v7 = vld [vmem:[#allocation7 + $0x188] sm:$0xff] }
 0x87f   :  { %4827 = vst [vmem:[#allocation3 + $0x30] sm:$0x3] %v4826_v21  ;;  %v4829_v48 = vrot.slane %v4826_v21, 2  ;;  %v4832_v62 = vrot.slane %v4826_v21, 6  ;;  %4835 = vst [vmem:[#allocation3 + $0x38] sm:$0xc] %v4826_v21  ;;  %v4844_v53 = vpack.c.bf16 %v4826_v21, %v4826_v21  ;;  %v9611_v21 = vcombine.high %v5548_v20, %v5552_v50 }
 0x881   :  { %4831 = vst [vmem:[#allocation3] sm:$0xc0] %v4829_v48  ;;  %4834 = vst [vmem:[#allocation3 + $0x8] sm:$0x30] %v4832_v62  ;;  %5262 = vmatmul.mubr.bf16.vlgmr.msra.gmra.mrb[72].mxu0 %v4844_v53  ;;  %5303 = vmatmul.mubr.bf16.vlgmr.msra.gmra.mrb[72].mxu1 %v4844_v53  ;;  %v5553_v48 = vld [vmem:[#allocation7 + $0x1a8] sm:$0xff]  ;;  %v9610_v62 = vcombine.low %v5548_v20, %v5552_v50 }
 0x882   :  { %5312 = vmatpush1.bf16.msra.mxu0 %v11462_v16  ;;  %5353 = vmatpush1.bf16.msra.mxu1 %v11467_v46  ;;  %v12881_v16 = vld [vmem:[#allocation20_spill] sm:$0xff]  ;;  %v12882_v46 = vld [vmem:[#allocation21_spill] sm:$0xff] }
 0x883   :  { %5313 = vmatprep.subr.bf16.mxu0 %v11506_v42  ;;  %5354 = vmatprep.subr.bf16.mxu1 %v11508_v9  ;;  %v12884_v42 = vld [vmem:[#allocation23_spill] sm:$0xff]  ;;  %v12885_v9 = vld [vmem:[#allocation24_spill] sm:$0xff] }
 0x884   :  { %5343 = vmatprep.mubr.bf16.mxu0 %v12807_v31  ;;  %5384 = vmatprep.mubr.bf16.mxu1 %v12807_v31 }
 0x886   :  { %5314 = vmatpush1.bf16.msra.mxu0 %v11516_v27  ;;  %5355 = vmatpush1.bf16.msra.mxu1 %v11518_v12  ;;  %v12886_v27 = vld [vmem:[#allocation25_spill] sm:$0xff] }
 0x887   :  { %5315 = vmatprep.subr.bf16.mxu0 %v11522_v36  ;;  %5356 = vmatprep.subr.bf16.mxu1 %v11524_v60  ;;  %v5500_v12 = vld [vmem:[#allocation7] sm:$0xff]  ;;  %v5501_v60 = vld [vmem:[#allocation7 + $0x8] sm:$0xff] }
 0x888   :  { %v5504_v36 = vld [vmem:[#allocation7 + $0x20] sm:$0xff] }
 0x88a   :  { %5316 = vmatpush1.bf16.msra.mxu0 %v11530_v8  ;;  %5357 = vmatpush1.bf16.msra.mxu1 %v11532_v19  ;;  %v9563_v8 = vcombine.high %v5500_v12, %v5504_v36  ;;  %v5505_v19 = vld [vmem:[#allocation7 + $0x28] sm:$0xff] }
 0x88b   :  { %5317 = vmatprep.subr.bf16.mxu0 %v11536_v28  ;;  %5358 = vmatprep.subr.bf16.mxu1 %v11538_v4  ;;  %v9562_v28 = vcombine.low %v5500_v12, %v5504_v36  ;;  %v9564_v4 = vcombine.low %v5501_v60, %v5505_v19 }
 0x88e   :  { %5318 = vmatpush1.bf16.msra.mxu0 %v12881_v16  ;;  %5359 = vmatpush1.bf16.msra.mxu1 %v12882_v46  ;;  %v9613_v16 = vcombine.high %v5549_v7, %v5553_v48  ;;  %v5556_v46 = vld [vmem:[#allocation7 + $0x1c0] sm:$0xff] }
 0x88f   :  { %5319 = vmatprep.subr.bf16.mxu0 %v12883_v34  ;;  %5360 = vmatprep.subr.bf16.mxu1 %v12884_v42  ;;  %v5560_v34 = vld [vmem:[#allocation7 + $0x1e0] sm:$0xff]  ;;  %v5557_v42 = vld [vmem:[#allocation7 + $0x1c8] sm:$0xff] }
 0x890   :  { %v9618_v12 = vcombine.low %v5556_v46, %v5560_v34 }
 0x892   :  { %5320 = vmatpush1.bf16.msra.mxu0 %v11554_v37  ;;  %5361 = vmatpush1.bf16.msra.mxu1 %v11556_v15  ;;  %v9565_v37 = vcombine.high %v5501_v60, %v5505_v19  ;;  %v5508_v15 = vld [vmem:[#allocation7 + $0x40] sm:$0xff] }
 0x893   :  { %5321 = vmatprep.subr.bf16.mxu0 %v11560_v61  ;;  %5362 = vmatprep.subr.bf16.mxu1 %v12885_v9  ;;  %v5512_v61 = vld [vmem:[#allocation7 + $0x60] sm:$0xff]  ;;  %v9619_v9 = vcombine.high %v5556_v46, %v5560_v34  ;;  %v5617_v46 = vld [vmem:[#allocation7 + $0x3a8] sm:$0xff] }
 0x894   :  { %v5568_v19 = vld [vmem:[#allocation7 + $0x220] sm:$0xff] }
 0x895   :  { %v5620_v34 = vld [vmem:[#allocation7 + $0x3c0] sm:$0xff] }
 0x896   :  { %5322 = vmatpush1.bf16.msra.mxu0 %v12886_v27  ;;  %5363 = vmatpush1.bf16.msra.mxu1 %v11568_v51  ;;  %v5509_v51 = vld [vmem:[#allocation7 + $0x48] sm:$0xff] }
 0x897   :  { %5323 = vmatprep.subr.bf16.mxu0 %v11572_v45  ;;  %5364 = vmatprep.subr.bf16.mxu1 %v11574_v25  ;;  %v5513_v45 = vld [vmem:[#allocation7 + $0x68] sm:$0xff] }
 0x898   :  { %v9572_v25 = vcombine.low %v5509_v51, %v5513_v45  ;;  %v5561_v27 = vld [vmem:[#allocation7 + $0x1e8] sm:$0xff] }
 0x899   :  { %v9620_v36 = vcombine.low %v5557_v42, %v5561_v27  ;;  %v9621_v60 = vcombine.high %v5557_v42, %v5561_v27  ;;  %v5624_v42 = vld [vmem:[#allocation7 + $0x3e0] sm:$0xff] }
 0x89a   :  { %5324 = vmatpush1.bf16.msra.mxu0 %v11578_v17  ;;  %5365 = vmatpush1.bf16.msra.mxu1 %v11580_v18  ;;  %v9573_v17 = vcombine.high %v5509_v51, %v5513_v45  ;;  %v5516_v18 = vld [vmem:[#allocation7 + $0x80] sm:$0xff] }
 0x89b   :  { %5325 = vmatprep.subr.bf16.mxu0 %v11584_v59  ;;  %5366 = vmatprep.subr.bf16.mxu1 %v11586_v1  ;;  %v5520_v59 = vld [vmem:[#allocation7 + $0xa0] sm:$0xff]  ;;  %v5517_v1 = vld [vmem:[#allocation7 + $0x88] sm:$0xff] }
 0x89c   :  { %v9579_v39 = vcombine.high %v5516_v18, %v5520_v59  ;;  %v9578_v26 = vcombine.low %v5516_v18, %v5520_v59  ;;  %v9580_v56 = vcombine.low %v5517_v1, %v5521_v47  ;;  %v9581_v3 = vcombine.high %v5517_v1, %v5521_v47  ;;  %v5576_v45 = vld [vmem:[#allocation7 + $0x260] sm:$0xff] }
 0x89d   :  { %v5584_v47 = vld [vmem:[#allocation7 + $0x2a0] sm:$0xff] }
 0x89e   :  { %5326 = vmatpush1.bf16.msra.mxu0 %v11590_v43  ;;  %5367 = vmatpush1.bf16.msra.mxu1 %v11592_v52  ;;  %v9571_v43 = vcombine.high %v5508_v15, %v5512_v61  ;;  %v9570_v52 = vcombine.low %v5508_v15, %v5512_v61 }
 0x89f   :  { %6310 = vmatprep.subr.bf16.mxu0 %v9563_v8  ;;  %6363 = vmatprep.subr.bf16.mxu1 %v9565_v37  ;;  %v5564_v8 = vld [vmem:[#allocation7 + $0x200] sm:$0xff]  ;;  %v5569_v37 = vld [vmem:[#allocation7 + $0x228] sm:$0xff] }
 0x8a0   :  { %v9626_v15 = vcombine.low %v5564_v8, %v5568_v19 }
 0x8a1   :  { %5344 = vmatmul.mubr.bf16.vlgmr.msra.gmra.mrb[76].mxu0 %v4844_v53  ;;  %5385 = vmatmul.mubr.bf16.vlgmr.msra.gmra.mrb[76].mxu1 %v4844_v53  ;;  %v9612_v53 = vcombine.low %v5549_v7, %v5553_v48  ;;  %v5616_v48 = vld [vmem:[#allocation7 + $0x3a0] sm:$0xff] }
 0x8a2   :  { %6311 = vmatpush1.bf16.msra.mxu0 %v9562_v28  ;;  %6364 = vmatpush1.bf16.msra.mxu1 %v9564_v4  ;;  %v5565_v28 = vld [vmem:[#allocation7 + $0x208] sm:$0xff]  ;;  %v9627_v4 = vcombine.high %v5564_v8, %v5568_v19  ;;  %v9682_v19 = vcombine.low %v5620_v34, %v5624_v42 }
 0x8a3   :  { %6312 = vmatprep.subr.bf16.mxu0 %v9571_v43  ;;  %6365 = vmatprep.subr.bf16.mxu1 %v9573_v17  ;;  %v9628_v61 = vcombine.low %v5565_v28, %v5569_v37  ;;  %v9629_v51 = vcombine.high %v5565_v28, %v5569_v37  ;;  %v5572_v43 = vld [vmem:[#allocation7 + $0x240] sm:$0xff]  ;;  %v5577_v17 = vld [vmem:[#allocation7 + $0x268] sm:$0xff]  ;;  %v11682_v37 = vld [vmem:[#allocation7 + $0x30] sm:$0xff] }
 0x8a4   :  { %v9634_v18 = vcombine.low %v5572_v43, %v5576_v45 }
 0x8a6   :  { %6313 = vmatpush1.bf16.msra.mxu0 %v9570_v52  ;;  %6366 = vmatpush1.bf16.msra.mxu1 %v9572_v25  ;;  %v5573_v52 = vld [vmem:[#allocation7 + $0x248] sm:$0xff]  ;;  %v9635_v25 = vcombine.high %v5572_v43, %v5576_v45 }
 0x8a7   :  { %6314 = vmatprep.subr.bf16.mxu0 %v9579_v39  ;;  %6367 = vmatprep.subr.bf16.mxu1 %v9581_v3  ;;  %v9636_v59 = vcombine.low %v5573_v52, %v5577_v17  ;;  %v9637_v1 = vcombine.high %v5573_v52, %v5577_v17  ;;  %v5580_v39 = vld [vmem:[#allocation7 + $0x280] sm:$0xff]  ;;  %v5585_v3 = vld [vmem:[#allocation7 + $0x2a8] sm:$0xff] }
 0x8a8   :  { %v9642_v5 = vcombine.low %v5580_v39, %v5584_v47 }
 0x8aa   :  { %6315 = vmatpush1.bf16.msra.mxu0 %v9578_v26  ;;  %6368 = vmatpush1.bf16.msra.mxu1 %v9580_v56  ;;  %v5581_v26 = vld [vmem:[#allocation7 + $0x288] sm:$0xff]  ;;  %v9643_v56 = vcombine.high %v5580_v39, %v5584_v47 }
 0x8ab   :  { %6316 = vmatprep.subr.bf16.mxu0 %v9587_v11  ;;  %6369 = vmatprep.subr.bf16.mxu1 %v9589_v22  ;;  %v9644_v30 = vcombine.low %v5581_v26, %v5585_v3  ;;  %v9645_v0 = vcombine.high %v5581_v26, %v5585_v3  ;;  %v5588_v11 = vld [vmem:[#allocation7 + $0x2c0] sm:$0xff]  ;;  %v5593_v22 = vld [vmem:[#allocation7 + $0x2e8] sm:$0xff] }
 0x8ac   :  { %v9650_v57 = vcombine.low %v5588_v11, %v5592_v14 }
 0x8ae   :  { %6317 = vmatpush1.bf16.msra.mxu0 %v9586_v63  ;;  %6370 = vmatpush1.bf16.msra.mxu1 %v9588_v49  ;;  %v5589_v63 = vld [vmem:[#allocation7 + $0x2c8] sm:$0xff]  ;;  %v9651_v49 = vcombine.high %v5588_v11, %v5592_v14  ;;  %v4838_v11 = vld [vmem:[#allocation2 + $0xd0] sm:$0xf0] }
 0x8af   :  { %6318 = vmatprep.subr.bf16.mxu0 %v9595_v23  ;;  %6371 = vmatprep.subr.bf16.mxu1 %v9597_v54  ;;  %v9652_v10 = vcombine.low %v5589_v63, %v5593_v22  ;;  %v9653_v33 = vcombine.high %v5589_v63, %v5593_v22  ;;  %v5596_v23 = vld [vmem:[#allocation7 + $0x300] sm:$0xff]  ;;  %v5601_v54 = vld [vmem:[#allocation7 + $0x328] sm:$0xff]  ;;  %v4839_v63 = vld [vmem:[#allocation2 + $0xd8] sm:$0xf0] }
 0x8b0   :  { %v9658_v40 = vcombine.low %v5596_v23, %v5600_v29  ;;  %v4837_v14 = vld [vmem:[#allocation2 + $0xc8] sm:$0xf0] }
 0x8b2   :  { %6319 = vmatpush1.bf16.msra.mxu0 %v9594_v58  ;;  %6372 = vmatpush1.bf16.msra.mxu1 %v9596_v35  ;;  %v5597_v58 = vld [vmem:[#allocation7 + $0x308] sm:$0xff]  ;;  %v9659_v35 = vcombine.high %v5596_v23, %v5600_v29 }
 0x8b3   :  { %6320 = vmatprep.subr.bf16.mxu0 %v9603_v32  ;;  %6373 = vmatprep.subr.bf16.mxu1 %v9605_v38  ;;  %v9660_v6 = vcombine.low %v5597_v58, %v5601_v54  ;;  %v9661_v2 = vcombine.high %v5597_v58, %v5601_v54  ;;  %v5604_v32 = vld [vmem:[#allocation7 + $0x340] sm:$0xff]  ;;  %v5609_v38 = vld [vmem:[#allocation7 + $0x368] sm:$0xff] }
 0x8b4   :  { %v9666_v20 = vcombine.low %v5604_v32, %v5608_v55 }
 0x8b6   :  { %6321 = vmatpush1.bf16.msra.mxu0 %v9602_v13  ;;  %6374 = vmatpush1.bf16.msra.mxu1 %v9604_v41  ;;  %v5605_v13 = vld [vmem:[#allocation7 + $0x348] sm:$0xff]  ;;  %v9667_v41 = vcombine.high %v5604_v32, %v5608_v55 }
 0x8b7   :  { %6322 = vmatprep.subr.bf16.mxu0 %v9611_v21  ;;  %6375 = vmatprep.subr.bf16.mxu1 %v9613_v16  ;;  %v9668_v50 = vcombine.low %v5605_v13, %v5609_v38  ;;  %v9669_v7 = vcombine.high %v5605_v13, %v5609_v38  ;;  %v5612_v21 = vld [vmem:[#allocation7 + $0x380] sm:$0xff] }
 0x8b8   :  { %v9675_v16 = vcombine.high %v5612_v21, %v5616_v48 }
 0x8ba   :  { %6323 = vmatpush1.bf16.msra.mxu0 %v9610_v62  ;;  %6376 = vmatpush1.bf16.msra.mxu1 %v9612_v53  ;;  %v5613_v62 = vld [vmem:[#allocation7 + $0x388] sm:$0xff]  ;;  %v9674_v53 = vcombine.low %v5612_v21, %v5616_v48 }
 0x8bb   :  { %6324 = vmatprep.subr.bf16.mxu0 %v9619_v9  ;;  %6377 = vmatprep.subr.bf16.mxu1 %v9621_v60  ;;  %v9676_v9 = vcombine.low %v5613_v62, %v5617_v46  ;;  %v9677_v27 = vcombine.high %v5613_v62, %v5617_v46  ;;  %v5625_v60 = vld [vmem:[#allocation7 + $0x3e8] sm:$0xff] }
 0x8be   :  { %6325 = vmatpush1.bf16.msra.mxu0 %v9618_v12  ;;  %6378 = vmatpush1.bf16.msra.mxu1 %v9620_v36  ;;  %v9683_v12 = vcombine.high %v5620_v34, %v5624_v42  ;;  %v5621_v36 = vld [vmem:[#allocation7 + $0x3c8] sm:$0xff] }
 0x8bf   :  { %6326 = vmatprep.subr.bf16.mxu0 %v9627_v4  ;;  %6379 = vmatprep.subr.bf16.mxu1 %v9629_v51  ;;  %v9685_v8 = vcombine.high %v5621_v36, %v5625_v60  ;;  %v9684_v28 = vcombine.low %v5621_v36, %v5625_v60  ;;  %v11680_v4 = vld [vmem:[#allocation7 + $0x10] sm:$0xff]  ;;  %v11688_v51 = vld [vmem:[#allocation7 + $0x38] sm:$0xff] }
 0x8c0   :  { %v9566_v43 = vcombine.low %v11680_v4, %v11682_v37 }
 0x8c2   :  { %6327 = vmatpush1.bf16.msra.mxu0 %v9626_v15  ;;  %6380 = vmatpush1.bf16.msra.mxu1 %v9628_v61  ;;  %v11684_v15 = vld [vmem:[#allocation7 + $0x18] sm:$0xff]  ;;  %v9567_v61 = vcombine.high %v11680_v4, %v11682_v37 }
 0x8c3   :  { %6328 = vmatprep.subr.bf16.mxu0 %v9635_v25  ;;  %6381 = vmatprep.subr.bf16.mxu1 %v9637_v1  ;;  %v9568_v45 = vcombine.low %v11684_v15, %v11688_v51  ;;  %v9569_v52 = vcombine.high %v11684_v15, %v11688_v51  ;;  %v5531_v4 = vld [vmem:[#allocation7 + $0xf8] sm:$0xff]  ;;  %v5492_v51 = vld [vmem:[#allocation3 + $0x20] sm:$0xff] }
 0x8c6   :  { %6329 = vmatpush1.bf16.msra.mxu0 %v9634_v18  ;;  %6382 = vmatpush1.bf16.msra.mxu1 %v9636_v59 }
 0x8c7   :  { %6330 = vmatprep.subr.bf16.mxu0 %v9643_v56  ;;  %6383 = vmatprep.subr.bf16.mxu1 %v9645_v0  ;;  %v4836_v0 = vld [vmem:[#allocation2 + $0xc0] sm:$0xf0] }
 0x8ca   :  { %6331 = vmatpush1.bf16.msra.mxu0 %v9642_v5  ;;  %6384 = vmatpush1.bf16.msra.mxu1 %v9644_v30 }
 0x8cb   :  { %6332 = vmatprep.subr.bf16.mxu0 %v9651_v49  ;;  %6385 = vmatprep.subr.bf16.mxu1 %v9653_v33  ;;  %v4840_v33 = vld [vmem:[#allocation2 + $0xe0] sm:$0xf0] }
 0x8ce   :  { %6333 = vmatpush1.bf16.msra.mxu0 %v9650_v57  ;;  %6386 = vmatpush1.bf16.msra.mxu1 %v9652_v10 }
 0x8cf   :  { %6334 = vmatprep.subr.bf16.mxu0 %v9659_v35  ;;  %6387 = vmatprep.subr.bf16.mxu1 %v9661_v2 }
 0x8d2   :  { %6335 = vmatpush1.bf16.msra.mxu0 %v9658_v40  ;;  %6388 = vmatpush1.bf16.msra.mxu1 %v9660_v6  ;;  %v4842_v6 = vld [vmem:[#allocation2 + $0xf0] sm:$0xf0] }
 0x8d3   :  { %6336 = vmatprep.subr.bf16.mxu0 %v9667_v41  ;;  %6389 = vmatprep.subr.bf16.mxu1 %v9669_v7 }
 0x8d6   :  { %6337 = vmatpush1.bf16.msra.mxu0 %v9666_v20  ;;  %6390 = vmatpush1.bf16.msra.mxu1 %v9668_v50  ;;  %v4841_v20 = vld [vmem:[#allocation2 + $0xe8] sm:$0xf0]  ;;  %v4843_v50 = vld [vmem:[#allocation2 + $0xf8] sm:$0xf0] }
 0x8d7   :  { %6338 = vmatprep.subr.bf16.mxu0 %v9675_v16  ;;  %6391 = vmatprep.subr.bf16.mxu1 %v9677_v27 }
 0x8da   :  { %6339 = vmatpush1.bf16.msra.mxu0 %v9674_v53  ;;  %6392 = vmatpush1.bf16.msra.mxu1 %v9676_v9 }
 0x8db   :  { %6340 = vmatprep.subr.bf16.mxu0 %v9683_v12  ;;  %6393 = vmatprep.subr.bf16.mxu1 %v9685_v8 }
 0x8de   :  { %6341 = vmatpush1.bf16.msra.mxu0 %v9682_v19  ;;  %6394 = vmatpush1.bf16.msra.mxu1 %v9684_v28 }
 0x8df   :  { %6416 = vmatprep.subr.bf16.mxu0 %v9567_v61  ;;  %6469 = vmatprep.subr.bf16.mxu1 %v9569_v52 }
 0x954   :  { %v5263_v25 = vpop.f32.mrb[72].mxu0  ;;  %v5304_v17 = vpop.f32.mrb[72].mxu1 }
 0x955   :  { %v5265_v18 = vpop.f32.mrb[73].mxu0  ;;  %v5306_v59 = vpop.f32.mrb[73].mxu1  ;;  %v5401_v56 = vrot.slane %v5263_v25, 4  ;;  %v5403_v3 = vrot.slane %v5304_v17, 4 }
 0x956   :  { %v5267_v1 = vpop.f32.mrb[74].mxu0  ;;  %v5308_v39 = vpop.f32.mrb[74].mxu1  ;;  %v5402_v5 = vrot.slane %v5265_v18, 4  ;;  %v5404_v30 = vrot.slane %v5306_v59, 4 }
 0x957   :  { %v5268_v47 = vpop.f32.mrb[75].mxu0  ;;  %v5309_v26 = vpop.f32.mrb[75].mxu1  ;;  %v5417_v57 = vadd.f32 %v5401_v56, %v4836_v0  ;;  %v5419_v10 = vadd.f32 %v5403_v3, %v4838_v11 }
 0x958   :  { %v5418_v54 = vadd.f32 %v5402_v5, %v4837_v14  ;;  %v5420_v40 = vadd.f32 %v5404_v30, %v4839_v63 }
 0x959   :  { %v5429_v53 = vrot.slane %v5417_v57, 4  ;;  %v5431_v16 = vrot.slane %v5419_v10, 4  ;;  %v5491_v57 = vld [vmem:[#allocation3 + $0x18] sm:$0xff]  ;;  %v5490_v10 = vld [vmem:[#allocation3 + $0x10] sm:$0xff] }
 0x95a   :  { %v5430_v42 = vrot.slane %v5418_v54, 4  ;;  %v5432_v9 = vrot.slane %v5420_v40, 4 }
 0x974   :  { %v5345_v49 = vpop.f32.mrb[76].mxu0  ;;  %v5386_v22 = vpop.f32.mrb[76].mxu1 }
 0x975   :  { %v5405_v23 = vrot.slane %v5345_v49, 4  ;;  %v5407_v29 = vrot.slane %v5386_v22, 4  ;;  %v5347_v58 = vpop.f32.mrb[77].mxu0  ;;  %v5388_v35 = vpop.f32.mrb[77].mxu1 }
 0x976   :  { %v5406_v2 = vrot.slane %v5347_v58, 4  ;;  %v5408_v32 = vrot.slane %v5388_v35, 4  ;;  %v5349_v55 = vpop.f32.mrb[78].mxu0  ;;  %v5390_v13 = vpop.f32.mrb[78].mxu1  ;;  %v5515_v35 = vld [vmem:[#allocation7 + $0x78] sm:$0xff] }
 0x977   :  { %v5421_v41 = vadd.f32 %v5405_v23, %v4840_v33  ;;  %v5423_v38 = vadd.f32 %v5407_v29, %v4842_v6  ;;  %v5350_v7 = vpop.f32.mrb[79].mxu0  ;;  %v5391_v21 = vpop.f32.mrb[79].mxu1  ;;  %v5510_v33 = vld [vmem:[#allocation7 + $0x50] sm:$0xff]  ;;  %v5511_v29 = vld [vmem:[#allocation7 + $0x58] sm:$0xff] }
 0x978   :  { %v5422_v48 = vadd.f32 %v5406_v2, %v4841_v20  ;;  %v5424_v62 = vadd.f32 %v5408_v32, %v4843_v50  ;;  %v5514_v23 = vld [vmem:[#allocation7 + $0x70] sm:$0xff]  ;;  %v5493_v2 = vld [vmem:[#allocation3 + $0x28] sm:$0xff]  ;;  %v9577_v13 = vcombine.high %v5511_v29, %v5515_v35  ;;  %v5523_v20 = vld [vmem:[#allocation7 + $0xb8] sm:$0xff]  ;;  %v9576_v21 = vcombine.low %v5511_v29, %v5515_v35 }
 0x979   :  { %v5441_v46 = vrot.slane %v5421_v41, 4  ;;  %v5443_v34 = vrot.slane %v5423_v38, 4  ;;  %v5518_v32 = vld [vmem:[#allocation7 + $0x90] sm:$0xff]  ;;  %v9575_v55 = vcombine.high %v5510_v33, %v5514_v23  ;;  %v5519_v38 = vld [vmem:[#allocation7 + $0x98] sm:$0xff]  ;;  %v9574_v7 = vcombine.low %v5510_v33, %v5514_v23 }
 0x97a   :  { %v5442_v27 = vrot.slane %v5422_v48, 4  ;;  %v5444_v12 = vrot.slane %v5424_v62, 4  ;;  %v5522_v41 = vld [vmem:[#allocation7 + $0xb0] sm:$0xff]  ;;  %v9585_v62 = vcombine.high %v5519_v38, %v5523_v20  ;;  %v9584_v15 = vcombine.low %v5519_v38, %v5523_v20  ;;  %v5571_v35 = vld [vmem:[#allocation7 + $0x238] sm:$0xff] }
 0x97b   :  { %v5449_v36 = vsel %vm77_vm1, %v5429_v53, %v5441_v46  ;;  %v5451_v60 = vsel %vm77_vm1, %v5431_v16, %v5443_v34  ;;  %v9583_v48 = vcombine.high %v5518_v32, %v5522_v41  ;;  %v5526_v16 = vld [vmem:[#allocation7 + $0xd0] sm:$0xff]  ;;  %v5527_v34 = vld [vmem:[#allocation7 + $0xd8] sm:$0xff]  ;;  %v9582_v37 = vcombine.low %v5518_v32, %v5522_v41 }
 0x97c   :  { %v9559_v8 = vmul.f32 -1.442695, %v5449_v36  ;;  %v5450_v19 = vsel %vm77_vm1, %v5430_v42, %v5442_v27  ;;  %v5452_v28 = vsel %vm77_vm1, %v5432_v9, %v5444_v12  ;;  %v5530_v46 = vld [vmem:[#allocation7 + $0xf0] sm:$0xff]  ;;  %v9593_v9 = vcombine.high %v5527_v34, %v5531_v4  ;;  %v5535_v12 = vld [vmem:[#allocation7 + $0x118] sm:$0xff] }
 0x97d   :  { %v9560_v61 = vmul.f32 -1.442695, %v5450_v19  ;;  %v9561_v52 = vmul.f32 -1.442695, %v5452_v28  ;;  %v9591_v42 = vcombine.high %v5526_v16, %v5530_v46  ;;  %v5538_v27 = vld [vmem:[#allocation7 + $0x130] sm:$0xff]  ;;  %v5539_v36 = vld [vmem:[#allocation7 + $0x138] sm:$0xff] }
 0x97e   :  { %10053 = vpow2.f32 %v9559_v8  ;;  %v9592_v8 = vcombine.low %v5527_v34, %v5531_v4  ;;  %v9601_v28 = vcombine.high %v5535_v12, %v5539_v36  ;;  %v5566_v29 = vld [vmem:[#allocation7 + $0x210] sm:$0xff]  ;;  %v5575_v41 = vld [vmem:[#allocation7 + $0x258] sm:$0xff] }
 0x97f   :  { %10055 = vpow2.f32 %v9560_v61  ;;  %v5542_v61 = vld [vmem:[#allocation7 + $0x150] sm:$0xff]  ;;  %v5579_v38 = vld [vmem:[#allocation7 + $0x278] sm:$0xff] }
 0x980   :  { %10057 = vpow2.f32 %v9561_v52  ;;  %v5546_v52 = vld [vmem:[#allocation7 + $0x170] sm:$0xff]  ;;  %v9640_v4 = vcombine.low %v5575_v41, %v5579_v38 }
 0x981   :  { %10059 = vtanh.f32 %v5451_v60  ;;  %v9590_v60 = vcombine.low %v5526_v16, %v5530_v46  ;;  %v5583_v16 = vld [vmem:[#allocation7 + $0x298] sm:$0xff] }
 0x982   :  { %v5587_v46 = vld [vmem:[#allocation7 + $0x2b8] sm:$0xff] }
 0x988   :  { %v10054_v25 = vpop.eup %10053 }
 0x989   :  { %v10056_v17 = vpop.eup %10055  ;;  %v5456_v18 = vadd.f32 1.0, %v10054_v25  ;;  %v5543_v25 = vld [vmem:[#allocation7 + $0x158] sm:$0xff] }
 0x98a   :  { %v5462_v59 = vadd.f32 1.0, %v10056_v17  ;;  %v10058_v1 = vpop.eup %10057  ;;  %v5547_v17 = vld [vmem:[#allocation7 + $0x178] sm:$0xff] }
 0x98b   :  { %10061 = vrcp.f32 %v5456_v18  ;;  %v10060_v39 = vpop.eup %10059  ;;  %v5469_v3 = vadd.f32 1.0, %v10058_v1  ;;  %v9607_v1 = vcombine.high %v5542_v61, %v5546_v52 }
 0x98c   :  { %10063 = vrcp.f32 %v5462_v59  ;;  %v9600_v59 = vcombine.low %v5535_v12, %v5539_v36  ;;  %v9648_v12 = vcombine.low %v5583_v16, %v5587_v46 }
 0x98d   :  { %10065 = vrcp.f32 %v5469_v3  ;;  %v5555_v3 = vld [vmem:[#allocation7 + $0x1b8] sm:$0xff] }
 0x995   :  { %v10062_v47 = vpop.eup %10061 }
 0x996   :  { %v10064_v26 = vpop.eup %10063  ;;  %v5473_v56 = vmul.f32 %v10062_v47, %v10060_v39  ;;  %v9609_v39 = vcombine.high %v5543_v25, %v5547_v17  ;;  %v5550_v47 = vld [vmem:[#allocation7 + $0x190] sm:$0xff] }
 0x997   :  { %v5472_v5 = vmul.f32 %v10064_v26, %v11645_v24  ;;  %v10066_v0 = vpop.eup %10065  ;;  %v5554_v26 = vld [vmem:[#allocation7 + $0x1b0] sm:$0xff] }
 0x999   :  { %v5474_v30 = vadd.f32 %v5473_v56, %v5472_v5  ;;  %v5551_v56 = vld [vmem:[#allocation7 + $0x198] sm:$0xff]  ;;  %v9606_v5 = vcombine.low %v5542_v61, %v5546_v52 }
 0x99a   :  { %v5603_v61 = vld [vmem:[#allocation7 + $0x338] sm:$0xff] }
 0x99b   :  { %10067 = vtanh.f32 %v5474_v30  ;;  %v9608_v30 = vcombine.low %v5543_v25, %v5547_v17 }
 0x9a5   :  { %v10068_v11 = vpop.eup %10067 }
 0x9a6   :  { %v5476_v14 = vmul.f32 %v10068_v11, %v10066_v0  ;;  %v9615_v0 = vcombine.high %v5550_v47, %v5554_v26  ;;  %v9617_v11 = vcombine.high %v5551_v56, %v5555_v3 }
 0x9a8   :  { %v5478_v63 = vrot.slane %v5476_v14, 4  ;;  %v5481_v49 = vrot.slane %v5476_v14, 6  ;;  %v5484_v22 = vrot.slane %v5476_v14, 2  ;;  %v5558_v14 = vld [vmem:[#allocation7 + $0x1d0] sm:$0xff] }
 0x9aa   :  { %5480 = vst [vmem:[#allocation3 + $0x30] sm:$0x30] %v5478_v63  ;;  %5483 = vst [vmem:[#allocation3] sm:$0xc] %v5481_v49  ;;  %v5559_v49 = vld [vmem:[#allocation7 + $0x1d8] sm:$0xff] }
 0x9ab   :  { %5486 = vst [vmem:[#allocation3 + $0x8] sm:$0x3] %v5484_v22  ;;  %5487 = vst [vmem:[#allocation3 + $0x38] sm:$0xc0] %v5478_v63  ;;  %v5562_v63 = vld [vmem:[#allocation7 + $0x1f0] sm:$0xff]  ;;  %v5563_v22 = vld [vmem:[#allocation7 + $0x1f8] sm:$0xff] }
 0x9ac   :  { %v9623_v33 = vcombine.high %v5558_v14, %v5562_v63  ;;  %v9625_v23 = vcombine.high %v5559_v49, %v5563_v22 }
 0x9b1   :  { %v5488_v24 = vld [vmem:[#allocation3] sm:$0xff]  ;;  %v5494_v53 = vld [vmem:[#allocation3 + $0x30] sm:$0xff] }
 0x9b2   :  { %v5489_v58 = vld [vmem:[#allocation3 + $0x8] sm:$0xff]  ;;  %v11705_v40 = vpack.c.bf16 %v5490_v10, %v5488_v24  ;;  %v5495_v6 = vld [vmem:[#allocation3 + $0x38] sm:$0xff]  ;;  %v9616_v10 = vcombine.low %v5551_v56, %v5555_v3 }
 0x9b3   :  { %v5497_v54 = vpack.c.bf16 %v5491_v57, %v5489_v58  ;;  %v11709_v50 = vpack.c.bf16 %v5495_v6, %v5493_v2  ;;  %v9614_v57 = vcombine.low %v5550_v47, %v5554_v26  ;;  %v5570_v58 = vld [vmem:[#allocation7 + $0x230] sm:$0xff]  ;;  %v5567_v24 = vld [vmem:[#allocation7 + $0x218] sm:$0xff]  ;;  %v9624_v6 = vcombine.low %v5559_v49, %v5563_v22 }
 0x9b4   :  { %v9631_v2 = vcombine.high %v5566_v29, %v5570_v58  ;;  %v9633_v32 = vcombine.high %v5567_v24, %v5571_v35  ;;  %v9630_v20 = vcombine.low %v5566_v29, %v5570_v58  ;;  %v5611_v47 = vld [vmem:[#allocation7 + $0x378] sm:$0xff] }
 0x9b5   :  { %6342 = vmatprep.mubr.bf16.mxu0 %v5497_v54  ;;  %6395 = vmatprep.mubr.bf16.mxu1 %v5497_v54  ;;  %v5627_v29 = vld [vmem:[#allocation7 + $0x3f8] sm:$0xff] }
 0x9b6   :  { %6343 = vmatmul.mubr.bf16.vlgmr.msra.gmra.mrb[80].mxu0 %v11705_v40  ;;  %6396 = vmatmul.mubr.bf16.vlgmr.msra.gmra.mrb[80].mxu1 %v11705_v40 }
 0x9b7   :  { %6417 = vmatpush1.bf16.msra.mxu0 %v9566_v43  ;;  %6470 = vmatpush1.bf16.msra.mxu1 %v9568_v45  ;;  %v11719_v43 = vpack.c.bf16 %v5494_v53, %v5492_v51  ;;  %v5534_v45 = vld [vmem:[#allocation7 + $0x110] sm:$0xff] }
 0x9b8   :  { %6352 = vmatprep.mubr.bf16.mxu0 %v11709_v50  ;;  %6405 = vmatprep.mubr.bf16.mxu1 %v11709_v50  ;;  %v9599_v19 = vcombine.high %v5534_v45, %v5538_v27  ;;  %v9598_v18 = vcombine.low %v5534_v45, %v5538_v27  ;;  %v5586_v53 = vld [vmem:[#allocation7 + $0x2b0] sm:$0xff] }
 0x9b9   :  { %6418 = vmatprep.subr.bf16.mxu0 %v9575_v55  ;;  %6471 = vmatprep.subr.bf16.mxu1 %v9577_v13  ;;  %v5574_v55 = vld [vmem:[#allocation7 + $0x250] sm:$0xff] }
 0x9ba   :  { %v5578_v13 = vld [vmem:[#allocation7 + $0x270] sm:$0xff] }
 0x9bb   :  { %6419 = vmatpush1.bf16.msra.mxu0 %v9574_v7  ;;  %6472 = vmatpush1.bf16.msra.mxu1 %v9576_v21  ;;  %v9632_v7 = vcombine.low %v5567_v24, %v5571_v35  ;;  %v9639_v21 = vcombine.high %v5574_v55, %v5578_v13  ;;  %v9638_v34 = vcombine.low %v5574_v55, %v5578_v13  ;;  %v5590_v51 = vld [vmem:[#allocation7 + $0x2d0] sm:$0xff]  ;;  %v6567_v55 = vld [vmem:[#allocation9 + $0x28] sm:$0xff] }
 0x9bc   :  { %6420 = vmatprep.subr.bf16.mxu0 %v9583_v48  ;;  %6473 = vmatprep.subr.bf16.mxu1 %v9585_v62  ;;  %v9641_v48 = vcombine.high %v5575_v41, %v5579_v38  ;;  %v5582_v62 = vld [vmem:[#allocation7 + $0x290] sm:$0xff] }
 0x9bd   :  { %v5594_v45 = vld [vmem:[#allocation7 + $0x2f0] sm:$0xff]  ;;  %v9646_v27 = vcombine.low %v5582_v62, %v5586_v53 }
 0x9be   :  { %6353 = vmatmul.mubr.bf16.gmra.mrb[84].mxu0 %v11719_v43  ;;  %6406 = vmatmul.mubr.bf16.gmra.mrb[84].mxu1 %v11719_v43  ;;  %v9655_v36 = vcombine.high %v5590_v51, %v5594_v45  ;;  %v9654_v52 = vcombine.low %v5590_v51, %v5594_v45  ;;  %v6583_v51 = vld [vmem:[#allocation9 + $0xa8] sm:$0xff] }
 0x9bf   :  { %6421 = vmatpush1.bf16.msra.mxu0 %v9582_v37  ;;  %6474 = vmatpush1.bf16.msra.mxu1 %v9584_v15  ;;  %v9647_v37 = vcombine.high %v5582_v62, %v5586_v53  ;;  %v9649_v15 = vcombine.high %v5583_v16, %v5587_v46  ;;  %v6575_v62 = vld [vmem:[#allocation9 + $0x68] sm:$0xff] }
 0x9c0   :  { %6448 = vmatprep.mubr.bf16.mxu0 %v5497_v54  ;;  %6501 = vmatprep.mubr.bf16.mxu1 %v5497_v54  ;;  %v9622_v54 = vcombine.low %v5558_v14, %v5562_v63  ;;  %v5619_v14 = vld [vmem:[#allocation7 + $0x3b8] sm:$0xff] }
 0x9c1   :  { %6422 = vmatprep.subr.bf16.mxu0 %v9591_v42  ;;  %6475 = vmatprep.subr.bf16.mxu1 %v9593_v9  ;;  %v5591_v42 = vld [vmem:[#allocation7 + $0x2d8] sm:$0xff] }
 0x9c2   :  { %v5595_v9 = vld [vmem:[#allocation7 + $0x2f8] sm:$0xff] }
 0x9c3   :  { %6423 = vmatpush1.bf16.msra.mxu0 %v9590_v60  ;;  %6476 = vmatpush1.bf16.msra.mxu1 %v9592_v8  ;;  %v9657_v60 = vcombine.high %v5591_v42, %v5595_v9  ;;  %v5598_v8 = vld [vmem:[#allocation7 + $0x310] sm:$0xff]  ;;  %v9656_v25 = vcombine.low %v5591_v42, %v5595_v9 }
 0x9c4   :  { %6424 = vmatprep.subr.bf16.mxu0 %v9599_v19  ;;  %6477 = vmatprep.subr.bf16.mxu1 %v9601_v28  ;;  %v5602_v19 = vld [vmem:[#allocation7 + $0x330] sm:$0xff]  ;;  %v5599_v28 = vld [vmem:[#allocation7 + $0x318] sm:$0xff] }
 0x9c5   :  { %v9663_v17 = vcombine.high %v5598_v8, %v5602_v19  ;;  %v9662_v26 = vcombine.low %v5598_v8, %v5602_v19  ;;  %v9664_v56 = vcombine.low %v5599_v28, %v5603_v61 }
 0x9c7   :  { %6425 = vmatpush1.bf16.msra.mxu0 %v9598_v18  ;;  %6478 = vmatpush1.bf16.msra.mxu1 %v9600_v59  ;;  %v9665_v18 = vcombine.high %v5599_v28, %v5603_v61  ;;  %v5606_v59 = vld [vmem:[#allocation7 + $0x350] sm:$0xff]  ;;  %v6594_v61 = vld [vmem:[#allocation9 + $0x100] sm:$0xff] }
 0x9c8   :  { %6426 = vmatprep.subr.bf16.mxu0 %v9607_v1  ;;  %6479 = vmatprep.subr.bf16.mxu1 %v9609_v39  ;;  %v5610_v1 = vld [vmem:[#allocation7 + $0x370] sm:$0xff]  ;;  %v5607_v39 = vld [vmem:[#allocation7 + $0x358] sm:$0xff] }
 0x9c9   :  { %v9671_v3 = vcombine.high %v5606_v59, %v5610_v1  ;;  %v9670_v63 = vcombine.low %v5606_v59, %v5610_v1  ;;  %v9672_v49 = vcombine.low %v5607_v39, %v5611_v47 }
 0x9cb   :  { %6427 = vmatpush1.bf16.msra.mxu0 %v9606_v5  ;;  %6480 = vmatpush1.bf16.msra.mxu1 %v9608_v30  ;;  %v9673_v5 = vcombine.high %v5607_v39, %v5611_v47  ;;  %v5614_v30 = vld [vmem:[#allocation7 + $0x390] sm:$0xff]  ;;  %v6602_v39 = vld [vmem:[#allocation9 + $0x140] sm:$0xff] }
 0x9cc   :  { %6428 = vmatprep.subr.bf16.mxu0 %v9615_v0  ;;  %6481 = vmatprep.subr.bf16.mxu1 %v9617_v11  ;;  %v5618_v0 = vld [vmem:[#allocation7 + $0x3b0] sm:$0xff]  ;;  %v5615_v11 = vld [vmem:[#allocation7 + $0x398] sm:$0xff]  ;;  %v6606_v47 = vld [vmem:[#allocation9 + $0x160] sm:$0xff] }
 0x9cd   :  { %v9679_v22 = vcombine.high %v5614_v30, %v5618_v0  ;;  %v9678_v58 = vcombine.low %v5614_v30, %v5618_v0  ;;  %v9680_v24 = vcombine.low %v5615_v11, %v5619_v14  ;;  %v11789_v30 = vcombine.high %v6602_v39, %v6606_v47 }
 0x9cf   :  { %6429 = vmatpush1.bf16.msra.mxu0 %v9614_v57  ;;  %6482 = vmatpush1.bf16.msra.mxu1 %v9616_v10  ;;  %v9681_v57 = vcombine.high %v5615_v11, %v5619_v14  ;;  %v5622_v10 = vld [vmem:[#allocation7 + $0x3d0] sm:$0xff]  ;;  %12907 = vst [vmem:[#allocation34_spill] sm:$0xff] %v11789_v30  ;;  %v6610_v11 = vld [vmem:[#allocation9 + $0x180] sm:$0xff] }
 0x9d0   :  { %6430 = vmatprep.subr.bf16.mxu0 %v9623_v33  ;;  %6483 = vmatprep.subr.bf16.mxu1 %v9625_v23  ;;  %v5626_v33 = vld [vmem:[#allocation7 + $0x3f0] sm:$0xff]  ;;  %v5623_v23 = vld [vmem:[#allocation7 + $0x3d8] sm:$0xff]  ;;  %v6614_v14 = vld [vmem:[#allocation9 + $0x1a0] sm:$0xff] }
 0x9d1   :  { %v9687_v35 = vcombine.high %v5622_v10, %v5626_v33  ;;  %v9686_v13 = vcombine.low %v5622_v10, %v5626_v33  ;;  %v9688_v41 = vcombine.low %v5623_v23, %v5627_v29  ;;  %v11801_v10 = vcombine.high %v6610_v11, %v6614_v14 }
 0x9d3   :  { %6431 = vmatpush1.bf16.msra.mxu0 %v9622_v54  ;;  %6484 = vmatpush1.bf16.msra.mxu1 %v9624_v6  ;;  %v9689_v54 = vcombine.high %v5623_v23, %v5627_v29  ;;  %v6562_v6 = vld [vmem:[#allocation9] sm:$0xff]  ;;  %12911 = vst [vmem:[#allocation38_spill] sm:$0xff] %v11801_v10 }
 0x9d4   :  { %6432 = vmatprep.subr.bf16.mxu0 %v9631_v2  ;;  %6485 = vmatprep.subr.bf16.mxu1 %v9633_v32  ;;  %v6566_v2 = vld [vmem:[#allocation9 + $0x20] sm:$0xff]  ;;  %v6563_v32 = vld [vmem:[#allocation9 + $0x8] sm:$0xff] }
 0x9d5   :  { %v11723_v38 = vcombine.high %v6562_v6, %v6566_v2  ;;  %v11729_v53 = vcombine.low %v6562_v6, %v6566_v2  ;;  %v11731_v16 = vcombine.low %v6563_v32, %v6567_v55  ;;  %v6618_v23 = vld [vmem:[#allocation9 + $0x1c0] sm:$0xff] }
 0x9d6   :  { %v6622_v29 = vld [vmem:[#allocation9 + $0x1e0] sm:$0xff] }
 0x9d7   :  { %6433 = vmatpush1.bf16.msra.mxu0 %v9630_v20  ;;  %6486 = vmatpush1.bf16.msra.mxu1 %v9632_v7  ;;  %12887 = vst [vmem:[#allocation14_spill] sm:$0xff] %v11723_v38  ;;  %v11725_v20 = vcombine.high %v6563_v32, %v6567_v55  ;;  %v6570_v7 = vld [vmem:[#allocation9 + $0x40] sm:$0xff]  ;;  %12889 = vst [vmem:[#allocation16_spill] sm:$0xff] %v11729_v53  ;;  %v11813_v6 = vcombine.high %v6618_v23, %v6622_v29  ;;  %v6564_v32 = vld [vmem:[#allocation9 + $0x10] sm:$0xff] }
 0x9d8   :  { %6434 = vmatprep.subr.bf16.mxu0 %v9639_v21  ;;  %6487 = vmatprep.subr.bf16.mxu1 %v9641_v48  ;;  %v6574_v21 = vld [vmem:[#allocation9 + $0x60] sm:$0xff]  ;;  %v6571_v48 = vld [vmem:[#allocation9 + $0x48] sm:$0xff]  ;;  %12890 = vst [vmem:[#allocation17_spill] sm:$0xff] %v11731_v16  ;;  %v6568_v55 = vld [vmem:[#allocation9 + $0x30] sm:$0xff] }
 0x9d9   :  { %12888 = vst [vmem:[#allocation15_spill] sm:$0xff] %v11725_v20  ;;  %v11733_v46 = vcombine.high %v6570_v7, %v6574_v21  ;;  %v11743_v45 = vcombine.low %v6570_v7, %v6574_v21  ;;  %v11745_v42 = vcombine.low %v6571_v48, %v6575_v62  ;;  %12915 = vst [vmem:[#allocation42_spill] sm:$0xff] %v11813_v6 }
 0x9da   :  { %v11819_v7 = vcombine.low %v6618_v23, %v6622_v29 }
 0x9db   :  { %6435 = vmatpush1.bf16.msra.mxu0 %v9638_v34  ;;  %6488 = vmatpush1.bf16.msra.mxu1 %v9640_v4  ;;  %12891 = vst [vmem:[#allocation18_spill] sm:$0xff] %v11733_v46  ;;  %v11735_v34 = vcombine.high %v6571_v48, %v6575_v62  ;;  %v6578_v4 = vld [vmem:[#allocation9 + $0x80] sm:$0xff]  ;;  %12893 = vst [vmem:[#allocation20_spill] sm:$0xff] %v11743_v45  ;;  %v11825_v48 = vcombine.high %v6564_v32, %v6568_v55 }
 0x9dc   :  { %6436 = vmatprep.subr.bf16.mxu0 %v9647_v37  ;;  %6489 = vmatprep.subr.bf16.mxu1 %v9649_v15  ;;  %v6582_v37 = vld [vmem:[#allocation9 + $0xa0] sm:$0xff]  ;;  %v6579_v15 = vld [vmem:[#allocation9 + $0x88] sm:$0xff]  ;;  %12894 = vst [vmem:[#allocation21_spill] sm:$0xff] %v11745_v42  ;;  %12917 = vst [vmem:[#allocation44_spill] sm:$0xff] %v11819_v7 }
 0x9dd   :  { %12892 = vst [vmem:[#allocation19_spill] sm:$0xff] %v11735_v34  ;;  %v11751_v9 = vcombine.high %v6579_v15, %v6583_v51  ;;  %v11757_v8 = vcombine.low %v6579_v15, %v6583_v51  ;;  %12919 = vst [vmem:[#allocation46_spill] sm:$0xff] %v11825_v48  ;;  %v6573_v15 = vld [vmem:[#allocation9 + $0x58] sm:$0xff] }
 0x9de   :  { %v6577_v51 = vld [vmem:[#allocation9 + $0x78] sm:$0xff] }
 0x9df   :  { %6437 = vmatpush1.bf16.msra.mxu0 %v9646_v27  ;;  %6490 = vmatpush1.bf16.msra.mxu1 %v9648_v12  ;;  %12896 = vst [vmem:[#allocation23_spill] sm:$0xff] %v11751_v9  ;;  %v6586_v27 = vld [vmem:[#allocation9 + $0xc0] sm:$0xff]  ;;  %12898 = vst [vmem:[#allocation25_spill] sm:$0xff] %v11757_v8 }
 0x9e0   :  { %6438 = vmatprep.subr.bf16.mxu0 %v9655_v36  ;;  %6491 = vmatprep.subr.bf16.mxu1 %v9657_v60  ;;  %v6590_v12 = vld [vmem:[#allocation9 + $0xe0] sm:$0xff]  ;;  %v6587_v36 = vld [vmem:[#allocation9 + $0xc8] sm:$0xff]  ;;  %v11755_v60 = vcombine.low %v6578_v4, %v6582_v37 }
 0x9e1   :  { %v11761_v19 = vcombine.high %v6586_v27, %v6590_v12 }
 0x9e2   :  { %12897 = vst [vmem:[#allocation24_spill] sm:$0xff] %v11755_v60 }
 0x9e3   :  { %6439 = vmatpush1.bf16.msra.mxu0 %v9654_v52  ;;  %6492 = vmatpush1.bf16.msra.mxu1 %v9656_v25  ;;  %12899 = vst [vmem:[#allocation26_spill] sm:$0xff] %v11761_v19  ;;  %v6598_v52 = vld [vmem:[#allocation9 + $0x120] sm:$0xff]  ;;  %v6595_v25 = vld [vmem:[#allocation9 + $0x108] sm:$0xff] }
 0x9e4   :  { %6440 = vmatprep.subr.bf16.mxu0 %v9663_v17  ;;  %6493 = vmatprep.subr.bf16.mxu1 %v9665_v18  ;;  %v6599_v17 = vld [vmem:[#allocation9 + $0x128] sm:$0xff]  ;;  %v11771_v18 = vcombine.low %v6586_v27, %v6590_v12  ;;  %v11831_v27 = vcombine.low %v6564_v32, %v6568_v55  ;;  %v6596_v32 = vld [vmem:[#allocation9 + $0x110] sm:$0xff] }
 0x9e5   :  { %v11779_v1 = vcombine.high %v6595_v25, %v6599_v17  ;;  %v6600_v55 = vld [vmem:[#allocation9 + $0x130] sm:$0xff] }
 0x9e6   :  { %12901 = vst [vmem:[#allocation28_spill] sm:$0xff] %v11771_v18 }
 0x9e7   :  { %6441 = vmatpush1.bf16.msra.mxu0 %v9662_v26  ;;  %6494 = vmatpush1.bf16.msra.mxu1 %v9664_v56  ;;  %12904 = vst [vmem:[#allocation31_spill] sm:$0xff] %v11779_v1  ;;  %v6603_v26 = vld [vmem:[#allocation9 + $0x148] sm:$0xff] }
 0x9e8   :  { %6442 = vmatprep.subr.bf16.mxu0 %v9671_v3  ;;  %6495 = vmatprep.subr.bf16.mxu1 %v9673_v5  ;;  %v6607_v56 = vld [vmem:[#allocation9 + $0x168] sm:$0xff]  ;;  %v11783_v3 = vcombine.low %v6594_v61, %v6598_v52  ;;  %v11785_v5 = vcombine.low %v6595_v25, %v6599_v17  ;;  %v6581_v25 = vld [vmem:[#allocation9 + $0x98] sm:$0xff] }
 0x9e9   :  { %v11791_v0 = vcombine.high %v6603_v26, %v6607_v56  ;;  %v6585_v17 = vld [vmem:[#allocation9 + $0xb8] sm:$0xff] }
 0x9ea   :  { %12905 = vst [vmem:[#allocation32_spill] sm:$0xff] %v11783_v3  ;;  %12906 = vst [vmem:[#allocation33_spill] sm:$0xff] %v11785_v5  ;;  %v11861_v29 = vcombine.low %v6581_v25, %v6585_v17 }
 0x9eb   :  { %6443 = vmatpush1.bf16.msra.mxu0 %v9670_v63  ;;  %6496 = vmatpush1.bf16.msra.mxu1 %v9672_v49  ;;  %12908 = vst [vmem:[#allocation35_spill] sm:$0xff] %v11791_v0  ;;  %v6611_v63 = vld [vmem:[#allocation9 + $0x188] sm:$0xff] }
 0x9ec   :  { %6444 = vmatprep.subr.bf16.mxu0 %v9679_v22  ;;  %6497 = vmatprep.subr.bf16.mxu1 %v9681_v57  ;;  %v6615_v49 = vld [vmem:[#allocation9 + $0x1a8] sm:$0xff]  ;;  %v11795_v22 = vcombine.low %v6602_v39, %v6606_v47  ;;  %v11797_v57 = vcombine.low %v6603_v26, %v6607_v56  ;;  %v11847_v47 = vcombine.low %v6573_v15, %v6577_v51 }
 0x9ed   :  { %v11803_v33 = vcombine.high %v6611_v63, %v6615_v49  ;;  %v11853_v56 = vcombine.high %v6581_v25, %v6585_v17  ;;  %12922 = vst [vmem:[#allocation49_spill] sm:$0xff] %v11861_v29  ;;  %v6605_v25 = vld [vmem:[#allocation9 + $0x158] sm:$0xff] }
 0x9ee   :  { %12909 = vst [vmem:[#allocation36_spill] sm:$0xff] %v11795_v22  ;;  %12910 = vst [vmem:[#allocation37_spill] sm:$0xff] %v11797_v57  ;;  %v6609_v17 = vld [vmem:[#allocation9 + $0x178] sm:$0xff] }
 0x9ef   :  { %6445 = vmatpush1.bf16.msra.mxu0 %v9678_v58  ;;  %6498 = vmatpush1.bf16.msra.mxu1 %v9680_v24  ;;  %12912 = vst [vmem:[#allocation39_spill] sm:$0xff] %v11803_v33  ;;  %v6619_v58 = vld [vmem:[#allocation9 + $0x1c8] sm:$0xff] }
 0x9f0   :  { %6446 = vmatprep.subr.bf16.mxu0 %v9687_v35  ;;  %6499 = vmatprep.subr.bf16.mxu1 %v9689_v54  ;;  %v6623_v24 = vld [vmem:[#allocation9 + $0x1e8] sm:$0xff]  ;;  %v11807_v35 = vcombine.low %v6610_v11, %v6614_v14  ;;  %v11809_v54 = vcombine.low %v6611_v63, %v6615_v49  ;;  %v6588_v11 = vld [vmem:[#allocation9 + $0xd0] sm:$0xff]  ;;  %v6589_v63 = vld [vmem:[#allocation9 + $0xd8] sm:$0xff] }
 0x9f1   :  { %v11815_v2 = vcombine.high %v6619_v58, %v6623_v24  ;;  %v11821_v21 = vcombine.low %v6619_v58, %v6623_v24  ;;  %v6592_v14 = vld [vmem:[#allocation9 + $0xf0] sm:$0xff]  ;;  %v6593_v49 = vld [vmem:[#allocation9 + $0xf8] sm:$0xff] }
 0x9f2   :  { %12913 = vst [vmem:[#allocation40_spill] sm:$0xff] %v11807_v35  ;;  %12914 = vst [vmem:[#allocation41_spill] sm:$0xff] %v11809_v54  ;;  %v11865_v58 = vcombine.high %v6588_v11, %v6592_v14  ;;  %v11867_v24 = vcombine.high %v6589_v63, %v6593_v49 }
 0x9f3   :  { %6447 = vmatpush1.bf16.msra.mxu0 %v9686_v13  ;;  %6500 = vmatpush1.bf16.msra.mxu1 %v9688_v41  ;;  %12916 = vst [vmem:[#allocation43_spill] sm:$0xff] %v11815_v2  ;;  %v6565_v13 = vld [vmem:[#allocation9 + $0x18] sm:$0xff]  ;;  %12918 = vst [vmem:[#allocation45_spill] sm:$0xff] %v11821_v21 }
 0x9f4   :  { %6946 = vmatprep.subr.bf16.mxu0 %v11723_v38  ;;  %6987 = vmatprep.subr.bf16.mxu1 %v11725_v20  ;;  %v6569_v41 = vld [vmem:[#allocation9 + $0x38] sm:$0xff]  ;;  %12923 = vst [vmem:[#allocation50_spill] sm:$0xff] %v11865_v58  ;;  %12924 = vst [vmem:[#allocation51_spill] sm:$0xff] %v11867_v24 }
 0x9f5   :  { %v11827_v62 = vcombine.high %v6565_v13, %v6569_v41  ;;  %v11833_v12 = vcombine.low %v6565_v13, %v6569_v41  ;;  %v6597_v13 = vld [vmem:[#allocation9 + $0x118] sm:$0xff] }
 0x9f6   :  { %6449 = vmatmul.mubr.bf16.vlgmr.msra.gmra.mrb[88].mxu0 %v11705_v40  ;;  %6502 = vmatmul.mubr.bf16.vlgmr.msra.gmra.mrb[88].mxu1 %v11705_v40  ;;  %v11749_v40 = vcombine.high %v6578_v4, %v6582_v37  ;;  %v6572_v4 = vld [vmem:[#allocation9 + $0x50] sm:$0xff]  ;;  %v6601_v41 = vld [vmem:[#allocation9 + $0x138] sm:$0xff] }
 0x9f7   :  { %6458 = vmatprep.mubr.bf16.mxu0 %v11709_v50  ;;  %6511 = vmatprep.mubr.bf16.mxu1 %v11709_v50  ;;  %v6591_v50 = vld [vmem:[#allocation9 + $0xe8] sm:$0xff]  ;;  %12920 = vst [vmem:[#allocation47_spill] sm:$0xff] %v11827_v62  ;;  %v6576_v37 = vld [vmem:[#allocation9 + $0x70] sm:$0xff] }
 0x9f8   :  { %6947 = vmatpush1.bf16.msra.mxu0 %v11729_v53  ;;  %6988 = vmatpush1.bf16.msra.mxu1 %v11731_v16  ;;  %12895 = vst [vmem:[#allocation22_spill] sm:$0xff] %v11749_v40  ;;  %v11763_v28 = vcombine.high %v6587_v36, %v6591_v50  ;;  %v11773_v59 = vcombine.low %v6587_v36, %v6591_v50 }
 0x9f9   :  { %6948 = vmatprep.subr.bf16.mxu0 %v11733_v46  ;;  %6989 = vmatprep.subr.bf16.mxu1 %v11735_v34  ;;  %v11837_v36 = vcombine.high %v6572_v4, %v6576_v37  ;;  %v11839_v50 = vcombine.high %v6573_v15, %v6577_v51  ;;  %v11845_v39 = vcombine.low %v6572_v4, %v6576_v37 }
 0x9fa   :  { %12900 = vst [vmem:[#allocation27_spill] sm:$0xff] %v11763_v28  ;;  %12902 = vst [vmem:[#allocation29_spill] sm:$0xff] %v11773_v59  ;;  %v11871_v4 = vcombine.low %v6588_v11, %v6592_v14  ;;  %v11873_v37 = vcombine.low %v6589_v63, %v6593_v49  ;;  %v11877_v15 = vcombine.high %v6596_v32, %v6600_v55 }
 0x9fb   :  { %v11879_v51 = vcombine.high %v6597_v13, %v6601_v41  ;;  %v11883_v11 = vcombine.low %v6596_v32, %v6600_v55  ;;  %v11885_v14 = vcombine.low %v6597_v13, %v6601_v41  ;;  %v11891_v49 = vcombine.high %v6605_v25, %v6609_v17 }
 0x9fc   :  { %6949 = vmatpush1.bf16.msra.mxu0 %v11743_v45  ;;  %6990 = vmatpush1.bf16.msra.mxu1 %v11745_v42  ;;  %12925 = vst [vmem:[#allocation52_spill] sm:$0xff] %v11871_v4  ;;  %12926 = vst [vmem:[#allocation53_spill] sm:$0xff] %v11873_v37  ;;  %v11897_v55 = vcombine.low %v6605_v25, %v6609_v17 }
 0x9fd   :  { %6950 = vmatprep.subr.bf16.mxu0 %v11749_v40  ;;  %6991 = vmatprep.subr.bf16.mxu1 %v11751_v9  ;;  %12927 = vst [vmem:[#allocation54_spill] sm:$0xff] %v11877_v15  ;;  %12928 = vst [vmem:[#allocation55_spill] sm:$0xff] %v11879_v51 }
 0x9fe   :  { %6459 = vmatmul.mubr.bf16.gmra.mrb[92].mxu0 %v11719_v43  ;;  %6512 = vmatmul.mubr.bf16.gmra.mrb[92].mxu1 %v11719_v43  ;;  %v11777_v43 = vcombine.high %v6594_v61, %v6598_v52  ;;  %v6580_v61 = vld [vmem:[#allocation9 + $0x90] sm:$0xff]  ;;  %12929 = vst [vmem:[#allocation56_spill] sm:$0xff] %v11891_v49 }
 0x9ff   :  { %6978 = vmatprep.mubr.bf16.mxu0 %v12807_v31  ;;  %7019 = vmatprep.mubr.bf16.mxu1 %v12807_v31  ;;  %v6584_v52 = vld [vmem:[#allocation9 + $0xb0] sm:$0xff] }
 0xa00   :  { %6951 = vmatpush1.bf16.msra.mxu0 %v11755_v60  ;;  %6992 = vmatpush1.bf16.msra.mxu1 %v11757_v8  ;;  %12903 = vst [vmem:[#allocation30_spill] sm:$0xff] %v11777_v43  ;;  %v11851_v26 = vcombine.high %v6580_v61, %v6584_v52  ;;  %v11859_v23 = vcombine.low %v6580_v61, %v6584_v52  ;;  %v6604_v61 = vld [vmem:[#allocation9 + $0x150] sm:$0xff] }
 0xa01   :  { %6952 = vmatprep.subr.bf16.mxu0 %v11761_v19  ;;  %6993 = vmatprep.subr.bf16.mxu1 %v11763_v28  ;;  %v6608_v52 = vld [vmem:[#allocation9 + $0x170] sm:$0xff] }
 0xa02   :  { %12921 = vst [vmem:[#allocation48_spill] sm:$0xff] %v11859_v23  ;;  %v11889_v63 = vcombine.high %v6604_v61, %v6608_v52  ;;  %v11895_v32 = vcombine.low %v6604_v61, %v6608_v52 }
 0xa04   :  { %6953 = vmatpush1.bf16.msra.mxu0 %v11771_v18  ;;  %6994 = vmatpush1.bf16.msra.mxu1 %v11773_v59  ;;  %12930 = vst [vmem:[#allocation57_spill] sm:$0xff] %v11895_v32 }
 0xa05   :  { %6954 = vmatprep.subr.bf16.mxu0 %v11777_v43  ;;  %6995 = vmatprep.subr.bf16.mxu1 %v11779_v1 }
 0xa08   :  { %6955 = vmatpush1.bf16.msra.mxu0 %v11783_v3  ;;  %6996 = vmatpush1.bf16.msra.mxu1 %v11785_v5 }
 0xa09   :  { %6956 = vmatprep.subr.bf16.mxu0 %v11789_v30  ;;  %6997 = vmatprep.subr.bf16.mxu1 %v11791_v0 }
 0xa0c   :  { %6957 = vmatpush1.bf16.msra.mxu0 %v11795_v22  ;;  %6998 = vmatpush1.bf16.msra.mxu1 %v11797_v57 }
 0xa0d   :  { %6958 = vmatprep.subr.bf16.mxu0 %v11801_v10  ;;  %6999 = vmatprep.subr.bf16.mxu1 %v11803_v33 }
 0xa10   :  { %6959 = vmatpush1.bf16.msra.mxu0 %v11807_v35  ;;  %7000 = vmatpush1.bf16.msra.mxu1 %v11809_v54 }
 0xa11   :  { %6960 = vmatprep.subr.bf16.mxu0 %v11813_v6  ;;  %7001 = vmatprep.subr.bf16.mxu1 %v11815_v2 }
 0xa14   :  { %6961 = vmatpush1.bf16.msra.mxu0 %v11819_v7  ;;  %7002 = vmatpush1.bf16.msra.mxu1 %v11821_v21 }
 0xa15   :  { %7028 = vmatprep.subr.bf16.mxu0 %v11825_v48  ;;  %7069 = vmatprep.subr.bf16.mxu1 %v11827_v62 }
 0xa17   :  { %6979 = vmatmul.mubr.bf16.vlgmr.msra.gmra.mrb[96].mxu0 %v12807_v31  ;;  %7020 = vmatmul.mubr.bf16.vlgmr.msra.gmra.mrb[96].mxu1 %v12807_v31 }
 0xa18   :  { %7029 = vmatpush1.bf16.msra.mxu0 %v11831_v27  ;;  %7070 = vmatpush1.bf16.msra.mxu1 %v11833_v12 }
 0xa19   :  { %7030 = vmatprep.subr.bf16.mxu0 %v11837_v36  ;;  %7071 = vmatprep.subr.bf16.mxu1 %v11839_v50 }
 0xa1a   :  { %7060 = vmatprep.mubr.bf16.mxu0 %v12807_v31  ;;  %7101 = vmatprep.mubr.bf16.mxu1 %v12807_v31 }
 0xa1c   :  { %7031 = vmatpush1.bf16.msra.mxu0 %v11845_v39  ;;  %7072 = vmatpush1.bf16.msra.mxu1 %v11847_v47 }
 0xa1d   :  { %7032 = vmatprep.subr.bf16.mxu0 %v11851_v26  ;;  %7073 = vmatprep.subr.bf16.mxu1 %v11853_v56 }
 0xa20   :  { %7033 = vmatpush1.bf16.msra.mxu0 %v11859_v23  ;;  %7074 = vmatpush1.bf16.msra.mxu1 %v11861_v29  ;;  %v6613_v29 = vld [vmem:[#allocation9 + $0x198] sm:$0xff] }
 0xa21   :  { %7034 = vmatprep.subr.bf16.mxu0 %v11865_v58  ;;  %7075 = vmatprep.subr.bf16.mxu1 %v11867_v24  ;;  %v6612_v24 = vld [vmem:[#allocation9 + $0x190] sm:$0xff]  ;;  %v6617_v23 = vld [vmem:[#allocation9 + $0x1b8] sm:$0xff] }
 0xa22   :  { %v6616_v58 = vld [vmem:[#allocation9 + $0x1b0] sm:$0xff]  ;;  %v11903_v41 = vcombine.high %v6613_v29, %v6617_v23  ;;  %v11909_v52 = vcombine.low %v6613_v29, %v6617_v23  ;;  %v5628_v23 = vld [vmem:[%s12649_s6] sm:$0xff]  ;;  %v12931_v29 = vsub.s32 0, %v10715_v44 }
 0xa23   :  { %v11901_v13 = vcombine.high %v6612_v24, %v6616_v58  ;;  %v11907_v61 = vcombine.low %v6612_v24, %v6616_v58  ;;  %v12932_v24 = vsub.s32 2, %v10715_v44 }
 0xa24   :  { %7035 = vmatpush1.bf16.msra.mxu0 %v11871_v4  ;;  %7076 = vmatpush1.bf16.msra.mxu1 %v11873_v37  ;;  %v6621_v37 = vld [vmem:[#allocation9 + $0x1d8] sm:$0xff]  ;;  %v5633_v58 = vrot.slane %v5628_v23, %v12931_v29 }
 0xa25   :  { %7036 = vmatprep.subr.bf16.mxu0 %v11877_v15  ;;  %7077 = vmatprep.subr.bf16.mxu1 %v11879_v51  ;;  %v6620_v51 = vld [vmem:[#allocation9 + $0x1d0] sm:$0xff]  ;;  %v6625_v4 = vld [vmem:[#allocation9 + $0x1f8] sm:$0xff] }
 0xa26   :  { %v6624_v15 = vld [vmem:[#allocation9 + $0x1f0] sm:$0xff]  ;;  %v11915_v17 = vcombine.high %v6621_v37, %v6625_v4 }
 0xa27   :  { %v11913_v25 = vcombine.high %v6620_v51, %v6624_v15 }
 0xa28   :  { %7037 = vmatpush1.bf16.msra.mxu0 %v11883_v11  ;;  %7078 = vmatpush1.bf16.msra.mxu1 %v11885_v14 }
 0xa29   :  { %7038 = vmatprep.subr.bf16.mxu0 %v11889_v63  ;;  %7079 = vmatprep.subr.bf16.mxu1 %v11891_v49  ;;  %v11919_v49 = vcombine.low %v6620_v51, %v6624_v15  ;;  %v12934_v51 = vsub.s32 3, %v10715_v44 }
 0xa2c   :  { %7039 = vmatpush1.bf16.msra.mxu0 %v11895_v32  ;;  %7080 = vmatpush1.bf16.msra.mxu1 %v11897_v55  ;;  %v11921_v32 = vcombine.low %v6621_v37, %v6625_v4  ;;  %v5641_v4 = vrot.slane %v5628_v23, %v12932_v24  ;;  %v12933_v37 = vsub.s32 1, %v10715_v44 }
 0xa2d   :  { %7040 = vmatprep.subr.bf16.mxu0 %v11901_v13  ;;  %7081 = vmatprep.subr.bf16.mxu1 %v11903_v41 }
 0xa2e   :  { %v5637_v15 = vrot.slane %v5628_v23, %v12933_v37 }
 0xa30   :  { %7041 = vmatpush1.bf16.msra.mxu0 %v11907_v61  ;;  %7082 = vmatpush1.bf16.msra.mxu1 %v11909_v52 }
 0xa31   :  { %7042 = vmatprep.subr.bf16.mxu0 %v11913_v25  ;;  %7083 = vmatprep.subr.bf16.mxu1 %v11915_v17 }
 0xa34   :  { %7043 = vmatpush1.bf16.msra.mxu0 %v11919_v49  ;;  %7084 = vmatpush1.bf16.msra.mxu1 %v11921_v32 }
 0xa35   :  { %7155 = vmatprep.subr.bf16.mxu0 %v11723_v38  ;;  %7196 = vmatprep.subr.bf16.mxu1 %v11725_v20 }
 0xa37   :  { %7061 = vmatmul.mubr.bf16.vlgmr.msra.gmra.mrb[100].mxu0 %v12807_v31  ;;  %7102 = vmatmul.mubr.bf16.vlgmr.msra.gmra.mrb[100].mxu1 %v12807_v31 }
 0xa38   :  { %7156 = vmatpush1.bf16.msra.mxu0 %v11729_v53  ;;  %7197 = vmatpush1.bf16.msra.mxu1 %v11731_v16 }
 0xa39   :  { %7157 = vmatprep.subr.bf16.mxu0 %v11733_v46  ;;  %7198 = vmatprep.subr.bf16.mxu1 %v11735_v34 }
 0xa3a   :  { %7187 = vmatprep.mubr.bf16.mxu0 %v12807_v31  ;;  %7228 = vmatprep.mubr.bf16.mxu1 %v12807_v31 }
 0xa3c   :  { %7158 = vmatpush1.bf16.msra.mxu0 %v11743_v45  ;;  %7199 = vmatpush1.bf16.msra.mxu1 %v11745_v42 }
 0xa3d   :  { %7159 = vmatprep.subr.bf16.mxu0 %v11749_v40  ;;  %7200 = vmatprep.subr.bf16.mxu1 %v11751_v9 }
 0xa40   :  { %7160 = vmatpush1.bf16.msra.mxu0 %v11755_v60  ;;  %7201 = vmatpush1.bf16.msra.mxu1 %v11757_v8 }
 0xa41   :  { %7161 = vmatprep.subr.bf16.mxu0 %v11761_v19  ;;  %7202 = vmatprep.subr.bf16.mxu1 %v11763_v28 }
 0xa44   :  { %7162 = vmatpush1.bf16.msra.mxu0 %v11771_v18  ;;  %7203 = vmatpush1.bf16.msra.mxu1 %v11773_v59 }
 0xa45   :  { %7163 = vmatprep.subr.bf16.mxu0 %v11777_v43  ;;  %7204 = vmatprep.subr.bf16.mxu1 %v11779_v1 }
 0xa48   :  { %7164 = vmatpush1.bf16.msra.mxu0 %v11783_v3  ;;  %7205 = vmatpush1.bf16.msra.mxu1 %v11785_v5 }
 0xa49   :  { %7165 = vmatprep.subr.bf16.mxu0 %v11789_v30  ;;  %7206 = vmatprep.subr.bf16.mxu1 %v11791_v0 }
 0xa4c   :  { %7166 = vmatpush1.bf16.msra.mxu0 %v11795_v22  ;;  %7207 = vmatpush1.bf16.msra.mxu1 %v11797_v57 }
 0xa4d   :  { %7167 = vmatprep.subr.bf16.mxu0 %v11801_v10  ;;  %7208 = vmatprep.subr.bf16.mxu1 %v11803_v33 }
 0xa50   :  { %7168 = vmatpush1.bf16.msra.mxu0 %v11807_v35  ;;  %7209 = vmatpush1.bf16.msra.mxu1 %v11809_v54 }
 0xa51   :  { %7169 = vmatprep.subr.bf16.mxu0 %v11813_v6  ;;  %7210 = vmatprep.subr.bf16.mxu1 %v11815_v2 }
 0xa54   :  { %7170 = vmatpush1.bf16.msra.mxu0 %v11819_v7  ;;  %7211 = vmatpush1.bf16.msra.mxu1 %v11821_v21  ;;  %v5645_v21 = vrot.slane %v5628_v23, %v12934_v51 }
 0xa55   :  { %7237 = vmatprep.subr.bf16.mxu0 %v11825_v48  ;;  %7278 = vmatprep.subr.bf16.mxu1 %v11827_v62 }
 0xa89   :  { %v6344_v7 = vpop.f32.mrb[80].mxu0  ;;  %v6397_v48 = vpop.f32.mrb[80].mxu1 }
 0xa8a   :  { %v6345_v2 = vadd.f32 %v6344_v7, %v5633_v58  ;;  %v6398_v62 = vadd.f32 %v6397_v48, %v5641_v4  ;;  %v6346_v6 = vpop.f32.mrb[81].mxu0  ;;  %v6399_v54 = vpop.f32.mrb[81].mxu1 }
 0xa8b   :  { %v6347_v35 = vadd.f32 %v6346_v6, %v5637_v15  ;;  %v6400_v33 = vadd.f32 %v6399_v54, %v5645_v21  ;;  %v6348_v10 = vpop.f32.mrb[82].mxu0  ;;  %v6401_v57 = vpop.f32.mrb[82].mxu1 }
 0xa8c   :  { %6522 = vst [vmem:[#allocation2] sm:$0xff] %v6345_v2  ;;  %6524 = vst [vmem:[#allocation2 + $0x10] sm:$0xff] %v6398_v62  ;;  %v6349_v29 = vadd.f32 %v6348_v10, %v5633_v58  ;;  %v6402_v24 = vadd.f32 %v6401_v57, %v5641_v4  ;;  %v6350_v22 = vpop.f32.mrb[83].mxu0  ;;  %v6403_v0 = vpop.f32.mrb[83].mxu1 }
 0xa8d   :  { %6523 = vst [vmem:[#allocation2 + $0x8] sm:$0xff] %v6347_v35  ;;  %6525 = vst [vmem:[#allocation2 + $0x18] sm:$0xff] %v6400_v33  ;;  %v6351_v37 = vadd.f32 %v6350_v22, %v5637_v15  ;;  %v6404_v51 = vadd.f32 %v6403_v0, %v5645_v21 }
 0xa8e   :  { %6530 = vst [vmem:[#allocation2 + $0x40] sm:$0xff] %v6349_v29  ;;  %6532 = vst [vmem:[#allocation2 + $0x50] sm:$0xff] %v6402_v24 }
 0xa8f   :  { %6531 = vst [vmem:[#allocation2 + $0x48] sm:$0xff] %v6351_v37  ;;  %6533 = vst [vmem:[#allocation2 + $0x58] sm:$0xff] %v6404_v51  ;;  %v12935_v37 = vsub.s32 4, %v10715_v44 }
 0xa91   :  { %v6354_v7 = vpop.f32.mrb[84].mxu0  ;;  %v6407_v48 = vpop.f32.mrb[84].mxu1 }
 0xa92   :  { %v6355_v6 = vadd.f32 %v6354_v7, %v5633_v58  ;;  %v6408_v54 = vadd.f32 %v6407_v48, %v5641_v4  ;;  %v6356_v30 = vpop.f32.mrb[85].mxu0  ;;  %v6409_v5 = vpop.f32.mrb[85].mxu1  ;;  %v12937_v7 = vsub.s32 5, %v10715_v44 }
 0xa93   :  { %v6357_v2 = vadd.f32 %v6356_v30, %v5637_v15  ;;  %v6410_v62 = vadd.f32 %v6409_v5, %v5645_v21  ;;  %v6358_v10 = vpop.f32.mrb[86].mxu0  ;;  %v6411_v57 = vpop.f32.mrb[86].mxu1  ;;  %v5649_v30 = vrot.slane %v5628_v23, %v12935_v37  ;;  %v12936_v5 = vsub.s32 6, %v10715_v44 }
 0xa94   :  { %6538 = vst [vmem:[#allocation2 + $0x80] sm:$0xff] %v6355_v6  ;;  %6540 = vst [vmem:[#allocation2 + $0x90] sm:$0xff] %v6408_v54  ;;  %v6359_v35 = vadd.f32 %v6358_v10, %v5633_v58  ;;  %v6412_v33 = vadd.f32 %v6411_v57, %v5641_v4  ;;  %v6360_v22 = vpop.f32.mrb[87].mxu0  ;;  %v6413_v0 = vpop.f32.mrb[87].mxu1  ;;  %v5653_v58 = vrot.slane %v5628_v23, %v12937_v7  ;;  %v12938_v4 = vsub.s32 7, %v10715_v44 }
 0xa95   :  { %6539 = vst [vmem:[#allocation2 + $0x88] sm:$0xff] %v6357_v2  ;;  %6541 = vst [vmem:[#allocation2 + $0x98] sm:$0xff] %v6410_v62  ;;  %v6361_v29 = vadd.f32 %v6360_v22, %v5637_v15  ;;  %v6414_v24 = vadd.f32 %v6413_v0, %v5645_v21  ;;  %v5657_v51 = vrot.slane %v5628_v23, %v12936_v5 }
 0xa96   :  { %6546 = vst [vmem:[#allocation2 + $0xc0] sm:$0xff] %v6359_v35  ;;  %6548 = vst [vmem:[#allocation2 + $0xd0] sm:$0xff] %v6412_v33  ;;  %v5661_v48 = vrot.slane %v5628_v23, %v12938_v4 }
 0xa97   :  { %6547 = vst [vmem:[#allocation2 + $0xc8] sm:$0xff] %v6361_v29  ;;  %6549 = vst [vmem:[#allocation2 + $0xd8] sm:$0xff] %v6414_v24 }
 0xac9   :  { %v6450_v6 = vpop.f32.mrb[88].mxu0  ;;  %v6503_v54 = vpop.f32.mrb[88].mxu1 }
 0xaca   :  { %v6451_v15 = vadd.f32 %v6450_v6, %v5649_v30  ;;  %v6504_v21 = vadd.f32 %v6503_v54, %v5657_v51  ;;  %v6452_v2 = vpop.f32.mrb[89].mxu0  ;;  %v6505_v62 = vpop.f32.mrb[89].mxu1 }
 0xacb   :  { %v6453_v10 = vadd.f32 %v6452_v2, %v5653_v58  ;;  %v6506_v57 = vadd.f32 %v6505_v62, %v5661_v48  ;;  %v6454_v35 = vpop.f32.mrb[90].mxu0  ;;  %v6507_v33 = vpop.f32.mrb[90].mxu1 }
 0xacc   :  { %6526 = vst [vmem:[#allocation2 + $0x20] sm:$0xff] %v6451_v15  ;;  %6528 = vst [vmem:[#allocation2 + $0x30] sm:$0xff] %v6504_v21  ;;  %v6455_v22 = vadd.f32 %v6454_v35, %v5649_v30  ;;  %v6508_v0 = vadd.f32 %v6507_v33, %v5657_v51  ;;  %v6456_v29 = vpop.f32.mrb[91].mxu0  ;;  %v6509_v24 = vpop.f32.mrb[91].mxu1 }
 0xacd   :  { %6527 = vst [vmem:[#allocation2 + $0x28] sm:$0xff] %v6453_v10  ;;  %6529 = vst [vmem:[#allocation2 + $0x38] sm:$0xff] %v6506_v57  ;;  %v6457_v37 = vadd.f32 %v6456_v29, %v5653_v58  ;;  %v6510_v23 = vadd.f32 %v6509_v24, %v5661_v48 }
 0xace   :  { %6534 = vst [vmem:[#allocation2 + $0x60] sm:$0xff] %v6455_v22  ;;  %6536 = vst [vmem:[#allocation2 + $0x70] sm:$0xff] %v6508_v0 }
 0xacf   :  { %6535 = vst [vmem:[#allocation2 + $0x68] sm:$0xff] %v6457_v37  ;;  %6537 = vst [vmem:[#allocation2 + $0x78] sm:$0xff] %v6510_v23 }
 0xad1   :  { %v6460_v5 = vpop.f32.mrb[92].mxu0  ;;  %v6513_v7 = vpop.f32.mrb[92].mxu1 }
 0xad2   :  { %v6461_v4 = vadd.f32 %v6460_v5, %v5649_v30  ;;  %v6514_v6 = vadd.f32 %v6513_v7, %v5657_v51  ;;  %v6462_v54 = vpop.f32.mrb[93].mxu0  ;;  %v6515_v2 = vpop.f32.mrb[93].mxu1 }
 0xad3   :  { %v6463_v15 = vadd.f32 %v6462_v54, %v5653_v58  ;;  %v6516_v21 = vadd.f32 %v6515_v2, %v5661_v48  ;;  %v6464_v62 = vpop.f32.mrb[94].mxu0  ;;  %v6517_v35 = vpop.f32.mrb[94].mxu1  ;;  %v6555_v2 = vld [vmem:[#allocation2 + $0x8] sm:$0xf] }
 0xad4   :  { %6542 = vst [vmem:[#allocation2 + $0xa0] sm:$0xff] %v6461_v4  ;;  %6544 = vst [vmem:[#allocation2 + $0xb0] sm:$0xff] %v6514_v6  ;;  %v6465_v10 = vadd.f32 %v6464_v62, %v5649_v30  ;;  %v6518_v57 = vadd.f32 %v6517_v35, %v5657_v51  ;;  %v6466_v33 = vpop.f32.mrb[95].mxu0  ;;  %v6519_v29 = vpop.f32.mrb[95].mxu1  ;;  %v6554_v30 = vld [vmem:[#allocation2] sm:$0xf] }
 0xad5   :  { %6543 = vst [vmem:[#allocation2 + $0xa8] sm:$0xff] %v6463_v15  ;;  %6545 = vst [vmem:[#allocation2 + $0xb8] sm:$0xff] %v6516_v21  ;;  %v6467_v22 = vadd.f32 %v6466_v33, %v5653_v58  ;;  %v6520_v0 = vadd.f32 %v6519_v29, %v5661_v48  ;;  %v6556_v51 = vld [vmem:[#allocation2 + $0x10] sm:$0xf]  ;;  %v6557_v62 = vld [vmem:[#allocation2 + $0x18] sm:$0xf] }
 0xad6   :  { %6550 = vst [vmem:[#allocation2 + $0xe0] sm:$0xff] %v6465_v10  ;;  %6552 = vst [vmem:[#allocation2 + $0xf0] sm:$0xff] %v6518_v57  ;;  %v6558_v15 = vld [vmem:[#allocation2 + $0x20] sm:$0xf]  ;;  %v6560_v58 = vld [vmem:[#allocation2 + $0x30] sm:$0xf] }
 0xad7   :  { %6551 = vst [vmem:[#allocation2 + $0xe8] sm:$0xff] %v6467_v22  ;;  %6553 = vst [vmem:[#allocation2 + $0xf8] sm:$0xff] %v6520_v0  ;;  %v6559_v29 = vld [vmem:[#allocation2 + $0x28] sm:$0xf]  ;;  %v6561_v0 = vld [vmem:[#allocation2 + $0x38] sm:$0xf] }
 0xaea   :  { %v6980_v24 = vpop.f32.mrb[96].mxu0  ;;  %v7021_v37 = vpop.f32.mrb[96].mxu1 }
 0xaeb   :  { %v6982_v23 = vpop.f32.mrb[97].mxu0  ;;  %v7023_v5 = vpop.f32.mrb[97].mxu1  ;;  %v7110_v35 = vadd.f32 %v6980_v24, %v6554_v30  ;;  %v7112_v10 = vadd.f32 %v7021_v37, %v6556_v51 }
 0xaec   :  { %v6984_v7 = vpop.f32.mrb[98].mxu0  ;;  %v7025_v54 = vpop.f32.mrb[98].mxu1 }
 0xaed   :  { %v6985_v4 = vpop.f32.mrb[99].mxu0  ;;  %v7026_v6 = vpop.f32.mrb[99].mxu1  ;;  %v7111_v7 = vadd.f32 %v6982_v23, %v6555_v2  ;;  %v7113_v54 = vadd.f32 %v7023_v5, %v6557_v62 }
 0xb0a   :  { %v7062_v21 = vpop.f32.mrb[100].mxu0  ;;  %v7103_v48 = vpop.f32.mrb[100].mxu1 }
 0xb0b   :  { %v7114_v57 = vadd.f32 %v7062_v21, %v6558_v15  ;;  %v7116_v33 = vadd.f32 %v7103_v48, %v6560_v58  ;;  %v7064_v22 = vpop.f32.mrb[101].mxu0  ;;  %v7105_v3 = vpop.f32.mrb[101].mxu1 }
 0xb0c   :  { %v7115_v4 = vadd.f32 %v7064_v22, %v6559_v29  ;;  %v7117_v6 = vadd.f32 %v7105_v3, %v6561_v0  ;;  %v7066_v1 = vpop.f32.mrb[102].mxu0  ;;  %v7107_v43 = vpop.f32.mrb[102].mxu1 }
 0xb0d   :  { %v7118_v59 = vsel %vm77_vm1, %v7110_v35, %v7114_v57  ;;  %v7120_v18 = vsel %vm77_vm1, %v7112_v10, %v7116_v33  ;;  %v7067_v24 = vpop.f32.mrb[103].mxu0  ;;  %v7108_v37 = vpop.f32.mrb[103].mxu1 }
 0xb0e   :  { %v9754_v30 = vmul.f32 -1.442695, %v7118_v59  ;;  %v7119_v51 = vsel %vm77_vm1, %v7111_v7, %v7115_v4  ;;  %v7121_v23 = vsel %vm77_vm1, %v7113_v54, %v7117_v6  ;;  %v12940_v7 = vld [vmem:[#allocation49_spill] sm:$0xff]  ;;  %v12941_v54 = vld [vmem:[#allocation50_spill] sm:$0xff]  ;;  %v12942_v4 = vld [vmem:[#allocation51_spill] sm:$0xff] }
 0xb0f   :  { %v9755_v5 = vmul.f32 -1.442695, %v7119_v51  ;;  %v9756_v1 = vmul.f32 -1.442695, %v7121_v23  ;;  %v12943_v6 = vld [vmem:[#allocation52_spill] sm:$0xff]  ;;  %v12944_v24 = vld [vmem:[#allocation53_spill] sm:$0xff] }
 0xb10   :  { %10069 = vpow2.f32 %v9754_v30  ;;  %v12945_v37 = vld [vmem:[#allocation54_spill] sm:$0xff]  ;;  %v12946_v30 = vld [vmem:[#allocation55_spill] sm:$0xff]  ;;  %v12947_v51 = vld [vmem:[#allocation56_spill] sm:$0xff] }
 0xb11   :  { %10071 = vpow2.f32 %v9755_v5  ;;  %v12948_v23 = vld [vmem:[#allocation57_spill] sm:$0xff]  ;;  %v12949_v5 = vld [vmem:[#allocation28_spill] sm:$0xff] }
 0xb12   :  { %10073 = vpow2.f32 %v9756_v1  ;;  %v12950_v1 = vld [vmem:[#allocation29_spill] sm:$0xff] }
 0xb13   :  { %10075 = vtanh.f32 %v7120_v18  ;;  %v12939_v18 = vld [vmem:[#allocation48_spill] sm:$0xff] }
 0xb1a   :  { %v10070_v43 = vpop.eup %10069 }
 0xb1b   :  { %v10072_v3 = vpop.eup %10071  ;;  %v7125_v2 = vadd.f32 1.0, %v10070_v43  ;;  %v12951_v43 = vld [vmem:[#allocation30_spill] sm:$0xff] }
 0xb1c   :  { %v7131_v62 = vadd.f32 1.0, %v10072_v3  ;;  %v10074_v15 = vpop.eup %10073  ;;  %v12952_v3 = vld [vmem:[#allocation31_spill] sm:$0xff] }
 0xb1d   :  { %10077 = vrcp.f32 %v7125_v2  ;;  %v10076_v59 = vpop.eup %10075  ;;  %v7138_v35 = vadd.f32 1.0, %v10074_v15  ;;  %v12953_v2 = vld [vmem:[#allocation32_spill] sm:$0xff]  ;;  %v12955_v15 = vld [vmem:[#allocation34_spill] sm:$0xff] }
 0xb1e   :  { %10079 = vrcp.f32 %v7131_v62  ;;  %v12954_v62 = vld [vmem:[#allocation33_spill] sm:$0xff] }
 0xb1f   :  { %10081 = vrcp.f32 %v7138_v35  ;;  %v12960_v35 = vld [vmem:[#allocation39_spill] sm:$0xff] }
 0xb27   :  { %v10078_v21 = vpop.eup %10077 }
 0xb28   :  { %v10080_v58 = vpop.eup %10079  ;;  %v7142_v48 = vmul.f32 %v10078_v21, %v10076_v59  ;;  %v12956_v59 = vld [vmem:[#allocation35_spill] sm:$0xff]  ;;  %v12957_v21 = vld [vmem:[#allocation36_spill] sm:$0xff] }
 0xb29   :  { %v7141_v10 = vmul.f32 0.0, %v10080_v58  ;;  %v10082_v33 = vpop.eup %10081  ;;  %v12958_v58 = vld [vmem:[#allocation37_spill] sm:$0xff] }
 0xb2b   :  { %v11992_v57 = vadd.f32 %v7142_v48, %v7141_v10  ;;  %v12959_v48 = vld [vmem:[#allocation38_spill] sm:$0xff]  ;;  %v12961_v10 = vld [vmem:[#allocation40_spill] sm:$0xff] }
 0xb2d   :  { %10083 = vtanh.f32 %v11992_v57 }
 0xb37   :  { %v10084_v29 = vpop.eup %10083 }
 0xb38   :  { %v7145_v22 = vmul.f32 %v10084_v29, %v10082_v33  ;;  %v12962_v33 = vld [vmem:[#allocation41_spill] sm:$0xff]  ;;  %v12963_v29 = vld [vmem:[#allocation42_spill] sm:$0xff] }
 0xb3a   :  { %v7154_v0 = vpack.c.bf16 %v7145_v22, %v7145_v22  ;;  %v12964_v22 = vld [vmem:[#allocation43_spill] sm:$0xff] }
 0xb3c   :  { %7188 = vmatmul.mubr.bf16.vlgmr.msra.gmra.mrb[104].mxu0 %v7154_v0  ;;  %7229 = vmatmul.mubr.bf16.vlgmr.msra.gmra.mrb[104].mxu1 %v7154_v0 }
 0xb3d   :  { %7238 = vmatpush1.bf16.msra.mxu0 %v11831_v27  ;;  %7279 = vmatpush1.bf16.msra.mxu1 %v11833_v12 }
 0xb3e   :  { %7239 = vmatprep.subr.bf16.mxu0 %v11837_v36  ;;  %7280 = vmatprep.subr.bf16.mxu1 %v11839_v50 }
 0xb3f   :  { %7269 = vmatprep.mubr.bf16.mxu0 %v12807_v31  ;;  %7310 = vmatprep.mubr.bf16.mxu1 %v12807_v31 }
 0xb41   :  { %7240 = vmatpush1.bf16.msra.mxu0 %v11845_v39  ;;  %7281 = vmatpush1.bf16.msra.mxu1 %v11847_v47 }
 0xb42   :  { %7241 = vmatprep.subr.bf16.mxu0 %v11851_v26  ;;  %7282 = vmatprep.subr.bf16.mxu1 %v11853_v56 }
 0xb45   :  { %7242 = vmatpush1.bf16.msra.mxu0 %v12939_v18  ;;  %7283 = vmatpush1.bf16.msra.mxu1 %v12940_v7 }
 0xb46   :  { %7243 = vmatprep.subr.bf16.mxu0 %v12941_v54  ;;  %7284 = vmatprep.subr.bf16.mxu1 %v12942_v4 }
 0xb49   :  { %7244 = vmatpush1.bf16.msra.mxu0 %v12943_v6  ;;  %7285 = vmatpush1.bf16.msra.mxu1 %v12944_v24 }
 0xb4a   :  { %7245 = vmatprep.subr.bf16.mxu0 %v12945_v37  ;;  %7286 = vmatprep.subr.bf16.mxu1 %v12946_v30 }
 0xb4d   :  { %7246 = vmatpush1.bf16.msra.mxu0 %v11883_v11  ;;  %7287 = vmatpush1.bf16.msra.mxu1 %v11885_v14 }
 0xb4e   :  { %7247 = vmatprep.subr.bf16.mxu0 %v11889_v63  ;;  %7288 = vmatprep.subr.bf16.mxu1 %v12947_v51 }
 0xb51   :  { %7248 = vmatpush1.bf16.msra.mxu0 %v12948_v23  ;;  %7289 = vmatpush1.bf16.msra.mxu1 %v11897_v55 }
 0xb52   :  { %7249 = vmatprep.subr.bf16.mxu0 %v11901_v13  ;;  %7290 = vmatprep.subr.bf16.mxu1 %v11903_v41 }
 0xb55   :  { %7250 = vmatpush1.bf16.msra.mxu0 %v11907_v61  ;;  %7291 = vmatpush1.bf16.msra.mxu1 %v11909_v52 }
 0xb56   :  { %7251 = vmatprep.subr.bf16.mxu0 %v11913_v25  ;;  %7292 = vmatprep.subr.bf16.mxu1 %v11915_v17 }
 0xb59   :  { %7252 = vmatpush1.bf16.msra.mxu0 %v11919_v49  ;;  %7293 = vmatpush1.bf16.msra.mxu1 %v11921_v32 }
 0xb5a   :  { %7412 = vmatprep.subr.bf16.mxu0 %v11723_v38  ;;  %7453 = vmatprep.subr.bf16.mxu1 %v11725_v20 }
 0xb5c   :  { %7270 = vmatmul.mubr.bf16.vlgmr.msra.gmra.mrb[108].mxu0 %v7154_v0  ;;  %7311 = vmatmul.mubr.bf16.vlgmr.msra.gmra.mrb[108].mxu1 %v7154_v0  ;;  %v12965_v0 = vld [vmem:[#allocation44_spill] sm:$0xff] }
 0xb5d   :  { %7413 = vmatpush1.bf16.msra.mxu0 %v11729_v53  ;;  %7454 = vmatpush1.bf16.msra.mxu1 %v11731_v16  ;;  %v7153_v16 = vld [vmem:[#allocation2 + $0x38] sm:$0xf0] }
 0xb5e   :  { %7414 = vmatprep.subr.bf16.mxu0 %v11733_v46  ;;  %7455 = vmatprep.subr.bf16.mxu1 %v11735_v34  ;;  %v7151_v46 = vld [vmem:[#allocation2 + $0x28] sm:$0xf0] }
 0xb5f   :  { %7444 = vmatprep.mubr.bf16.mxu0 %v12807_v31  ;;  %7485 = vmatprep.mubr.bf16.mxu1 %v12807_v31 }
 0xb61   :  { %7415 = vmatpush1.bf16.msra.mxu0 %v11743_v45  ;;  %7456 = vmatpush1.bf16.msra.mxu1 %v11745_v42 }
 0xb62   :  { %7416 = vmatprep.subr.bf16.mxu0 %v11749_v40  ;;  %7457 = vmatprep.subr.bf16.mxu1 %v11751_v9 }
 0xb65   :  { %7417 = vmatpush1.bf16.msra.mxu0 %v11755_v60  ;;  %7458 = vmatpush1.bf16.msra.mxu1 %v11757_v8  ;;  %v7150_v60 = vld [vmem:[#allocation2 + $0x20] sm:$0xf0] }
 0xb66   :  { %7418 = vmatprep.subr.bf16.mxu0 %v11761_v19  ;;  %7459 = vmatprep.subr.bf16.mxu1 %v11763_v28  ;;  %v7147_v28 = vld [vmem:[#allocation2 + $0x8] sm:$0xf0] }
 0xb69   :  { %7419 = vmatpush1.bf16.msra.mxu0 %v12949_v5  ;;  %7460 = vmatpush1.bf16.msra.mxu1 %v12950_v1  ;;  %v7146_v5 = vld [vmem:[#allocation2] sm:$0xf0] }
 0xb6a   :  { %7420 = vmatprep.subr.bf16.mxu0 %v12951_v43  ;;  %7461 = vmatprep.subr.bf16.mxu1 %v12952_v3 }
 0xb6d   :  { %7421 = vmatpush1.bf16.msra.mxu0 %v12953_v2  ;;  %7462 = vmatpush1.bf16.msra.mxu1 %v12954_v62 }
 0xb6e   :  { %7422 = vmatprep.subr.bf16.mxu0 %v12955_v15  ;;  %7463 = vmatprep.subr.bf16.mxu1 %v12956_v59  ;;  %v12966_v15 = vld [vmem:[#allocation45_spill] sm:$0xff]  ;;  %v12967_v59 = vld [vmem:[#allocation46_spill] sm:$0xff] }
 0xb71   :  { %7423 = vmatpush1.bf16.msra.mxu0 %v12957_v21  ;;  %7464 = vmatpush1.bf16.msra.mxu1 %v12958_v58  ;;  %v12968_v21 = vld [vmem:[#allocation47_spill] sm:$0xff] }
 0xb72   :  { %7424 = vmatprep.subr.bf16.mxu0 %v12959_v48  ;;  %7465 = vmatprep.subr.bf16.mxu1 %v12960_v35 }
 0xb75   :  { %7425 = vmatpush1.bf16.msra.mxu0 %v12961_v10  ;;  %7466 = vmatpush1.bf16.msra.mxu1 %v12962_v33 }
 0xb76   :  { %7426 = vmatprep.subr.bf16.mxu0 %v12963_v29  ;;  %7467 = vmatprep.subr.bf16.mxu1 %v12964_v22 }
 0xb79   :  { %7427 = vmatpush1.bf16.msra.mxu0 %v12965_v0  ;;  %7468 = vmatpush1.bf16.msra.mxu1 %v12966_v15  ;;  %v7148_v0 = vld [vmem:[#allocation2 + $0x10] sm:$0xf0]  ;;  %v7149_v15 = vld [vmem:[#allocation2 + $0x18] sm:$0xf0] }
 0xb7a   :  { %7494 = vmatprep.subr.bf16.mxu0 %v12967_v59  ;;  %7535 = vmatprep.subr.bf16.mxu1 %v12968_v21 }
 0xc0f   :  { %v7189_v58 = vpop.f32.mrb[104].mxu0  ;;  %v7230_v48 = vpop.f32.mrb[104].mxu1 }
 0xc10   :  { %v7191_v62 = vpop.f32.mrb[105].mxu0  ;;  %v7232_v35 = vpop.f32.mrb[105].mxu1  ;;  %v7327_v43 = vrot.slane %v7189_v58, 4  ;;  %v7329_v29 = vrot.slane %v7230_v48, 4 }
 0xc11   :  { %v7193_v2 = vpop.f32.mrb[106].mxu0  ;;  %v7234_v10 = vpop.f32.mrb[106].mxu1  ;;  %v7328_v1 = vrot.slane %v7191_v62, 4  ;;  %v7330_v22 = vrot.slane %v7232_v35, 4 }
 0xc12   :  { %v7194_v3 = vpop.f32.mrb[107].mxu0  ;;  %v7235_v33 = vpop.f32.mrb[107].mxu1  ;;  %v7343_v8 = vadd.f32 %v7327_v43, %v7146_v5  ;;  %v7345_v21 = vadd.f32 %v7329_v29, %v7148_v0 }
 0xc13   :  { %v7344_v10 = vadd.f32 %v7328_v1, %v7147_v28  ;;  %v7346_v3 = vadd.f32 %v7330_v22, %v7149_v15  ;;  %v7152_v33 = vld [vmem:[#allocation2 + $0x30] sm:$0xf0] }
 0xc14   :  { %v7355_v29 = vrot.slane %v7343_v8, 4 }
 0xc15   :  { %v7356_v38 = vrot.slane %v7344_v10, 4  ;;  %v7358_v28 = vrot.slane %v7346_v3, 4 }
 0xc2f   :  { %v7271_v19 = vpop.f32.mrb[108].mxu0  ;;  %v7312_v59 = vpop.f32.mrb[108].mxu1 }
 0xc30   :  { %v7331_v9 = vrot.slane %v7271_v19, 4  ;;  %v7333_v40 = vrot.slane %v7312_v59, 4  ;;  %v7273_v42 = vpop.f32.mrb[109].mxu0  ;;  %v7314_v2 = vpop.f32.mrb[109].mxu1  ;;  %v7357_v19 = vrot.slane %v7345_v21, 4 }
 0xc31   :  { %v7332_v58 = vrot.slane %v7273_v42, 4  ;;  %v7334_v48 = vrot.slane %v7314_v2, 4  ;;  %v7275_v62 = vpop.f32.mrb[110].mxu0  ;;  %v7316_v35 = vpop.f32.mrb[110].mxu1 }
 0xc32   :  { %v7347_v45 = vadd.f32 %v7331_v9, %v7150_v60  ;;  %v7349_v34 = vadd.f32 %v7333_v40, %v7152_v33  ;;  %v7276_v53 = vpop.f32.mrb[111].mxu0  ;;  %v7317_v20 = vpop.f32.mrb[111].mxu1 }
 0xc33   :  { %v7348_v5 = vadd.f32 %v7332_v58, %v7151_v46  ;;  %v7350_v43 = vadd.f32 %v7334_v48, %v7153_v16 }
 0xc34   :  { %v7367_v59 = vrot.slane %v7347_v45, 4  ;;  %v7369_v0 = vrot.slane %v7349_v34, 4 }
 0xc35   :  { %v7368_v1 = vrot.slane %v7348_v5, 4  ;;  %v7370_v15 = vrot.slane %v7350_v43, 4  ;;  %v12970_v43 = vld [vmem:[#allocation15_spill] sm:$0xff] }
 0xc36   :  { %v7375_v42 = vsel %vm77_vm1, %v7355_v29, %v7367_v59  ;;  %v7377_v40 = vsel %vm77_vm1, %v7357_v19, %v7369_v0  ;;  %v12971_v29 = vld [vmem:[#allocation16_spill] sm:$0xff]  ;;  %v12972_v19 = vld [vmem:[#allocation17_spill] sm:$0xff]  ;;  %v12973_v59 = vld [vmem:[#allocation18_spill] sm:$0xff] }
 0xc37   :  { %v9757_v9 = vmul.f32 -1.442695, %v7375_v42  ;;  %v7376_v20 = vsel %vm77_vm1, %v7356_v38, %v7368_v1  ;;  %v7378_v53 = vsel %vm77_vm1, %v7358_v28, %v7370_v15  ;;  %v12974_v0 = vld [vmem:[#allocation19_spill] sm:$0xff]  ;;  %v12975_v28 = vld [vmem:[#allocation20_spill] sm:$0xff]  ;;  %v12976_v1 = vld [vmem:[#allocation21_spill] sm:$0xff] }
 0xc38   :  { %v9758_v16 = vmul.f32 -1.442695, %v7376_v20  ;;  %v9759_v46 = vmul.f32 -1.442695, %v7378_v53  ;;  %v12977_v15 = vld [vmem:[#allocation22_spill] sm:$0xff]  ;;  %v12978_v42 = vld [vmem:[#allocation23_spill] sm:$0xff] }
 0xc39   :  { %10085 = vpow2.f32 %v9757_v9  ;;  %v12980_v9 = vld [vmem:[#allocation25_spill] sm:$0xff]  ;;  %v12981_v20 = vld [vmem:[#allocation26_spill] sm:$0xff]  ;;  %v12982_v53 = vld [vmem:[#allocation27_spill] sm:$0xff] }
 0xc3a   :  { %10087 = vpow2.f32 %v9758_v16  ;;  %v12983_v16 = vld [vmem:[#allocation28_spill] sm:$0xff] }
 0xc3b   :  { %10089 = vpow2.f32 %v9759_v46  ;;  %v12984_v46 = vld [vmem:[#allocation29_spill] sm:$0xff] }
 0xc3c   :  { %10091 = vtanh.f32 %v7377_v40  ;;  %v12979_v40 = vld [vmem:[#allocation24_spill] sm:$0xff] }
 0xc43   :  { %v10086_v34 = vpop.eup %10085 }
 0xc44   :  { %v10088_v45 = vpop.eup %10087  ;;  %v7382_v60 = vadd.f32 1.0, %v10086_v34  ;;  %v12985_v34 = vld [vmem:[#allocation30_spill] sm:$0xff] }
 0xc45   :  { %v7388_v8 = vadd.f32 1.0, %v10088_v45  ;;  %v10090_v21 = vpop.eup %10089  ;;  %v12986_v45 = vld [vmem:[#allocation31_spill] sm:$0xff] }
 0xc46   :  { %10093 = vrcp.f32 %v7382_v60  ;;  %v10092_v22 = vpop.eup %10091  ;;  %v7395_v3 = vadd.f32 1.0, %v10090_v21  ;;  %v12987_v60 = vld [vmem:[#allocation32_spill] sm:$0xff]  ;;  %v12989_v21 = vld [vmem:[#allocation34_spill] sm:$0xff] }
 0xc47   :  { %10095 = vrcp.f32 %v7388_v8  ;;  %v12988_v8 = vld [vmem:[#allocation33_spill] sm:$0xff] }
 0xc48   :  { %10097 = vrcp.f32 %v7395_v3  ;;  %v12994_v3 = vld [vmem:[#allocation39_spill] sm:$0xff] }
 0xc50   :  { %v10094_v2 = vpop.eup %10093 }
 0xc51   :  { %v10096_v10 = vpop.eup %10095  ;;  %v7399_v38 = vmul.f32 %v10094_v2, %v10092_v22  ;;  %v12990_v22 = vld [vmem:[#allocation35_spill] sm:$0xff]  ;;  %v12991_v2 = vld [vmem:[#allocation36_spill] sm:$0xff] }
 0xc52   :  { %v7398_v33 = vmul.f32 %v10096_v10, %v11992_v57  ;;  %v10098_v48 = vpop.eup %10097  ;;  %v12969_v57 = vld [vmem:[#allocation14_spill] sm:$0xff]  ;;  %v12992_v10 = vld [vmem:[#allocation37_spill] sm:$0xff] }
 0xc54   :  { %v12072_v58 = vadd.f32 %v7399_v38, %v7398_v33  ;;  %v12993_v38 = vld [vmem:[#allocation38_spill] sm:$0xff]  ;;  %v12995_v33 = vld [vmem:[#allocation40_spill] sm:$0xff] }
 0xc56   :  { %10099 = vtanh.f32 %v12072_v58 }
 0xc60   :  { %v10100_v62 = vpop.eup %10099 }
 0xc61   :  { %v7402_v35 = vmul.f32 %v10100_v62, %v10098_v48  ;;  %v12996_v48 = vld [vmem:[#allocation41_spill] sm:$0xff]  ;;  %v12997_v62 = vld [vmem:[#allocation42_spill] sm:$0xff] }
 0xc63   :  { %v7411_v5 = vpack.c.bf16 %v7402_v35, %v7402_v35  ;;  %v12998_v35 = vld [vmem:[#allocation43_spill] sm:$0xff] }
 0xc65   :  { %7445 = vmatmul.mubr.bf16.vlgmr.msra.gmra.mrb[112].mxu0 %v7411_v5  ;;  %7486 = vmatmul.mubr.bf16.vlgmr.msra.gmra.mrb[112].mxu1 %v7411_v5 }
 0xc66   :  { %7495 = vmatpush1.bf16.msra.mxu0 %v11831_v27  ;;  %7536 = vmatpush1.bf16.msra.mxu1 %v11833_v12 }
 0xc67   :  { %7496 = vmatprep.subr.bf16.mxu0 %v11837_v36  ;;  %7537 = vmatprep.subr.bf16.mxu1 %v11839_v50 }
 0xc68   :  { %7526 = vmatprep.mubr.bf16.mxu0 %v12807_v31  ;;  %7567 = vmatprep.mubr.bf16.mxu1 %v12807_v31 }
 0xc6a   :  { %7497 = vmatpush1.bf16.msra.mxu0 %v11845_v39  ;;  %7538 = vmatpush1.bf16.msra.mxu1 %v11847_v47 }
 0xc6b   :  { %7498 = vmatprep.subr.bf16.mxu0 %v11851_v26  ;;  %7539 = vmatprep.subr.bf16.mxu1 %v11853_v56 }
 0xc6e   :  { %7499 = vmatpush1.bf16.msra.mxu0 %v12939_v18  ;;  %7540 = vmatpush1.bf16.msra.mxu1 %v12940_v7 }
 0xc6f   :  { %7500 = vmatprep.subr.bf16.mxu0 %v12941_v54  ;;  %7541 = vmatprep.subr.bf16.mxu1 %v12942_v4 }
 0xc72   :  { %7501 = vmatpush1.bf16.msra.mxu0 %v12943_v6  ;;  %7542 = vmatpush1.bf16.msra.mxu1 %v12944_v24 }
 0xc73   :  { %7502 = vmatprep.subr.bf16.mxu0 %v12945_v37  ;;  %7543 = vmatprep.subr.bf16.mxu1 %v12946_v30 }
 0xc76   :  { %7503 = vmatpush1.bf16.msra.mxu0 %v11883_v11  ;;  %7544 = vmatpush1.bf16.msra.mxu1 %v11885_v14 }
 0xc77   :  { %7504 = vmatprep.subr.bf16.mxu0 %v11889_v63  ;;  %7545 = vmatprep.subr.bf16.mxu1 %v12947_v51 }
 0xc7a   :  { %7505 = vmatpush1.bf16.msra.mxu0 %v12948_v23  ;;  %7546 = vmatpush1.bf16.msra.mxu1 %v11897_v55 }
 0xc7b   :  { %7506 = vmatprep.subr.bf16.mxu0 %v11901_v13  ;;  %7547 = vmatprep.subr.bf16.mxu1 %v11903_v41 }
 0xc7e   :  { %7507 = vmatpush1.bf16.msra.mxu0 %v11907_v61  ;;  %7548 = vmatpush1.bf16.msra.mxu1 %v11909_v52 }
 0xc7f   :  { %7508 = vmatprep.subr.bf16.mxu0 %v11913_v25  ;;  %7549 = vmatprep.subr.bf16.mxu1 %v11915_v17 }
 0xc82   :  { %7509 = vmatpush1.bf16.msra.mxu0 %v11919_v49  ;;  %7550 = vmatpush1.bf16.msra.mxu1 %v11921_v32 }
 0xc83   :  { %7621 = vmatprep.subr.bf16.mxu0 %v12969_v57  ;;  %7662 = vmatprep.subr.bf16.mxu1 %v12970_v43 }
 0xc85   :  { %7527 = vmatmul.mubr.bf16.vlgmr.msra.gmra.mrb[116].mxu0 %v7411_v5  ;;  %7568 = vmatmul.mubr.bf16.vlgmr.msra.gmra.mrb[116].mxu1 %v7411_v5  ;;  %v12999_v5 = vld [vmem:[#allocation44_spill] sm:$0xff] }
 0xc86   :  { %7622 = vmatpush1.bf16.msra.mxu0 %v12971_v29  ;;  %7663 = vmatpush1.bf16.msra.mxu1 %v12972_v19 }
 0xc87   :  { %7623 = vmatprep.subr.bf16.mxu0 %v12973_v59  ;;  %7664 = vmatprep.subr.bf16.mxu1 %v12974_v0 }
 0xc88   :  { %7653 = vmatprep.mubr.bf16.mxu0 %v12807_v31  ;;  %7694 = vmatprep.mubr.bf16.mxu1 %v12807_v31 }
 0xc8a   :  { %7624 = vmatpush1.bf16.msra.mxu0 %v12975_v28  ;;  %7665 = vmatpush1.bf16.msra.mxu1 %v12976_v1 }
 0xc8b   :  { %7625 = vmatprep.subr.bf16.mxu0 %v12977_v15  ;;  %7666 = vmatprep.subr.bf16.mxu1 %v12978_v42  ;;  %v7410_v15 = vld [vmem:[#allocation2 + $0x78] sm:$0xf] }
 0xc8e   :  { %7626 = vmatpush1.bf16.msra.mxu0 %v12979_v40  ;;  %7667 = vmatpush1.bf16.msra.mxu1 %v12980_v9  ;;  %v7408_v40 = vld [vmem:[#allocation2 + $0x68] sm:$0xf] }
 0xc8f   :  { %7627 = vmatprep.subr.bf16.mxu0 %v12981_v20  ;;  %7668 = vmatprep.subr.bf16.mxu1 %v12982_v53  ;;  %v7409_v53 = vld [vmem:[#allocation2 + $0x70] sm:$0xf] }
 0xc92   :  { %7628 = vmatpush1.bf16.msra.mxu0 %v12983_v16  ;;  %7669 = vmatpush1.bf16.msra.mxu1 %v12984_v46  ;;  %v7404_v46 = vld [vmem:[#allocation2 + $0x48] sm:$0xf]  ;;  %v7407_v16 = vld [vmem:[#allocation2 + $0x60] sm:$0xf] }
 0xc93   :  { %7629 = vmatprep.subr.bf16.mxu0 %v12985_v34  ;;  %7670 = vmatprep.subr.bf16.mxu1 %v12986_v45  ;;  %v7403_v34 = vld [vmem:[#allocation2 + $0x40] sm:$0xf] }
 0xc96   :  { %7630 = vmatpush1.bf16.msra.mxu0 %v12987_v60  ;;  %7671 = vmatpush1.bf16.msra.mxu1 %v12988_v8 }
 0xc97   :  { %7631 = vmatprep.subr.bf16.mxu0 %v12989_v21  ;;  %7672 = vmatprep.subr.bf16.mxu1 %v12990_v22  ;;  %v13000_v21 = vld [vmem:[#allocation45_spill] sm:$0xff]  ;;  %v13001_v22 = vld [vmem:[#allocation46_spill] sm:$0xff] }
 0xc9a   :  { %7632 = vmatpush1.bf16.msra.mxu0 %v12991_v2  ;;  %7673 = vmatpush1.bf16.msra.mxu1 %v12992_v10  ;;  %v13002_v2 = vld [vmem:[#allocation47_spill] sm:$0xff] }
 0xc9b   :  { %7633 = vmatprep.subr.bf16.mxu0 %v12993_v38  ;;  %7674 = vmatprep.subr.bf16.mxu1 %v12994_v3 }
 0xc9e   :  { %7634 = vmatpush1.bf16.msra.mxu0 %v12995_v33  ;;  %7675 = vmatpush1.bf16.msra.mxu1 %v12996_v48 }
 0xc9f   :  { %7635 = vmatprep.subr.bf16.mxu0 %v12997_v62  ;;  %7676 = vmatprep.subr.bf16.mxu1 %v12998_v35  ;;  %v7405_v62 = vld [vmem:[#allocation2 + $0x50] sm:$0xf]  ;;  %v7406_v35 = vld [vmem:[#allocation2 + $0x58] sm:$0xf] }
 0xca2   :  { %7636 = vmatpush1.bf16.msra.mxu0 %v12999_v5  ;;  %7677 = vmatpush1.bf16.msra.mxu1 %v13000_v21 }
 0xca3   :  { %7703 = vmatprep.subr.bf16.mxu0 %v13001_v22  ;;  %7744 = vmatprep.subr.bf16.mxu1 %v13002_v2 }
 0xd38   :  { %v7446_v10 = vpop.f32.mrb[112].mxu0  ;;  %v7487_v38 = vpop.f32.mrb[112].mxu1 }
 0xd39   :  { %v7448_v8 = vpop.f32.mrb[113].mxu0  ;;  %v7489_v3 = vpop.f32.mrb[113].mxu1  ;;  %v7576_v20 = vadd.f32 %v7446_v10, %v7403_v34  ;;  %v7578_v22 = vadd.f32 %v7487_v38, %v7405_v62 }
 0xd3a   :  { %v7450_v60 = vpop.f32.mrb[114].mxu0  ;;  %v7491_v33 = vpop.f32.mrb[114].mxu1 }
 0xd3b   :  { %v7451_v45 = vpop.f32.mrb[115].mxu0  ;;  %v7492_v48 = vpop.f32.mrb[115].mxu1  ;;  %v7577_v60 = vadd.f32 %v7448_v8, %v7404_v46  ;;  %v7579_v33 = vadd.f32 %v7489_v3, %v7406_v35 }
 0xd58   :  { %v7528_v5 = vpop.f32.mrb[116].mxu0  ;;  %v7569_v21 = vpop.f32.mrb[116].mxu1 }
 0xd59   :  { %v7580_v9 = vadd.f32 %v7528_v5, %v7407_v16  ;;  %v7582_v2 = vadd.f32 %v7569_v21, %v7409_v53  ;;  %v7530_v42 = vpop.f32.mrb[117].mxu0  ;;  %v7571_v1 = vpop.f32.mrb[117].mxu1  ;;  %v13004_v5 = vld [vmem:[#allocation18_spill] sm:$0xff] }
 0xd5a   :  { %v7581_v45 = vadd.f32 %v7530_v42, %v7408_v40  ;;  %v7583_v48 = vadd.f32 %v7571_v1, %v7410_v15  ;;  %v7532_v28 = vpop.f32.mrb[118].mxu0  ;;  %v7573_v0 = vpop.f32.mrb[118].mxu1 }
 0xd5b   :  { %v7584_v59 = vsel %vm77_vm1, %v7576_v20, %v7580_v9  ;;  %v7586_v19 = vsel %vm77_vm1, %v7578_v22, %v7582_v2  ;;  %v7533_v34 = vpop.f32.mrb[119].mxu0  ;;  %v7574_v10 = vpop.f32.mrb[119].mxu1 }
 0xd5c   :  { %v9760_v16 = vmul.f32 -1.442695, %v7584_v59  ;;  %v7585_v53 = vsel %vm77_vm1, %v7577_v60, %v7581_v45  ;;  %v7587_v46 = vsel %vm77_vm1, %v7579_v33, %v7583_v48  ;;  %v13005_v60 = vld [vmem:[#allocation19_spill] sm:$0xff]  ;;  %v13006_v33 = vld [vmem:[#allocation20_spill] sm:$0xff]  ;;  %v13007_v45 = vld [vmem:[#allocation21_spill] sm:$0xff] }
 0xd5d   :  { %v9761_v8 = vmul.f32 -1.442695, %v7585_v53  ;;  %v9762_v28 = vmul.f32 -1.442695, %v7587_v46  ;;  %v13008_v48 = vld [vmem:[#allocation22_spill] sm:$0xff]  ;;  %v13009_v34 = vld [vmem:[#allocation23_spill] sm:$0xff] }
 0xd5e   :  { %10101 = vpow2.f32 %v9760_v16  ;;  %v13010_v10 = vld [vmem:[#allocation24_spill] sm:$0xff]  ;;  %v13011_v16 = vld [vmem:[#allocation25_spill] sm:$0xff]  ;;  %v13012_v53 = vld [vmem:[#allocation26_spill] sm:$0xff] }
 0xd5f   :  { %10103 = vpow2.f32 %v9761_v8  ;;  %v13013_v46 = vld [vmem:[#allocation27_spill] sm:$0xff]  ;;  %v13014_v8 = vld [vmem:[#allocation28_spill] sm:$0xff] }
 0xd60   :  { %10105 = vpow2.f32 %v9762_v28  ;;  %v13015_v28 = vld [vmem:[#allocation29_spill] sm:$0xff] }
 0xd61   :  { %10107 = vtanh.f32 %v7586_v19 }
 0xd68   :  { %v10102_v0 = vpop.eup %10101 }
 0xd69   :  { %v10104_v1 = vpop.eup %10103  ;;  %v7591_v15 = vadd.f32 1.0, %v10102_v0  ;;  %v13016_v0 = vld [vmem:[#allocation30_spill] sm:$0xff] }
 0xd6a   :  { %v7597_v42 = vadd.f32 1.0, %v10104_v1  ;;  %v10106_v40 = vpop.eup %10105  ;;  %v13017_v1 = vld [vmem:[#allocation31_spill] sm:$0xff] }
 0xd6b   :  { %10109 = vrcp.f32 %v7591_v15  ;;  %v10108_v59 = vpop.eup %10107  ;;  %v7604_v22 = vadd.f32 1.0, %v10106_v40  ;;  %v13018_v15 = vld [vmem:[#allocation32_spill] sm:$0xff]  ;;  %v13020_v40 = vld [vmem:[#allocation34_spill] sm:$0xff] }
 0xd6c   :  { %10111 = vrcp.f32 %v7597_v42  ;;  %v13019_v42 = vld [vmem:[#allocation33_spill] sm:$0xff] }
 0xd6d   :  { %10113 = vrcp.f32 %v7604_v22  ;;  %v13025_v22 = vld [vmem:[#allocation39_spill] sm:$0xff] }
 0xd75   :  { %v10110_v9 = vpop.eup %10109 }
 0xd76   :  { %v10112_v20 = vpop.eup %10111  ;;  %v7608_v21 = vmul.f32 %v10110_v9, %v10108_v59  ;;  %v13021_v59 = vld [vmem:[#allocation35_spill] sm:$0xff]  ;;  %v13022_v9 = vld [vmem:[#allocation36_spill] sm:$0xff] }
 0xd77   :  { %v7607_v2 = vmul.f32 %v10112_v20, %v12072_v58  ;;  %v10114_v3 = vpop.eup %10113  ;;  %v13003_v58 = vld [vmem:[#allocation17_spill] sm:$0xff] }
 0xd78   :  { %v13023_v20 = vld [vmem:[#allocation37_spill] sm:$0xff] }
 0xd79   :  { %v12152_v38 = vadd.f32 %v7608_v21, %v7607_v2  ;;  %v13024_v21 = vld [vmem:[#allocation38_spill] sm:$0xff]  ;;  %v13026_v2 = vld [vmem:[#allocation40_spill] sm:$0xff] }
 0xd7b   :  { %10115 = vtanh.f32 %v12152_v38 }
 0xd85   :  { %v10116_v62 = vpop.eup %10115 }
 0xd86   :  { %v7611_v35 = vmul.f32 %v10116_v62, %v10114_v3  ;;  %v13027_v3 = vld [vmem:[#allocation41_spill] sm:$0xff]  ;;  %v13028_v62 = vld [vmem:[#allocation42_spill] sm:$0xff] }
 0xd88   :  { %v7620_v19 = vpack.c.bf16 %v7611_v35, %v7611_v35  ;;  %v13029_v35 = vld [vmem:[#allocation43_spill] sm:$0xff] }
 0xd8a   :  { %7654 = vmatmul.mubr.bf16.vlgmr.msra.gmra.mrb[120].mxu0 %v7620_v19  ;;  %7695 = vmatmul.mubr.bf16.vlgmr.msra.gmra.mrb[120].mxu1 %v7620_v19 }
 0xd8b   :  { %7704 = vmatpush1.bf16.msra.mxu0 %v11831_v27  ;;  %7745 = vmatpush1.bf16.msra.mxu1 %v11833_v12 }
 0xd8c   :  { %7705 = vmatprep.subr.bf16.mxu0 %v11837_v36  ;;  %7746 = vmatprep.subr.bf16.mxu1 %v11839_v50 }
 0xd8d   :  { %7735 = vmatprep.mubr.bf16.mxu0 %v12807_v31  ;;  %7776 = vmatprep.mubr.bf16.mxu1 %v12807_v31 }
 0xd8f   :  { %7706 = vmatpush1.bf16.msra.mxu0 %v11845_v39  ;;  %7747 = vmatpush1.bf16.msra.mxu1 %v11847_v47 }
 0xd90   :  { %7707 = vmatprep.subr.bf16.mxu0 %v11851_v26  ;;  %7748 = vmatprep.subr.bf16.mxu1 %v11853_v56 }
 0xd93   :  { %7708 = vmatpush1.bf16.msra.mxu0 %v12939_v18  ;;  %7749 = vmatpush1.bf16.msra.mxu1 %v12940_v7 }
 0xd94   :  { %7709 = vmatprep.subr.bf16.mxu0 %v12941_v54  ;;  %7750 = vmatprep.subr.bf16.mxu1 %v12942_v4 }
 0xd97   :  { %7710 = vmatpush1.bf16.msra.mxu0 %v12943_v6  ;;  %7751 = vmatpush1.bf16.msra.mxu1 %v12944_v24 }
 0xd98   :  { %7711 = vmatprep.subr.bf16.mxu0 %v12945_v37  ;;  %7752 = vmatprep.subr.bf16.mxu1 %v12946_v30 }
 0xd9b   :  { %7712 = vmatpush1.bf16.msra.mxu0 %v11883_v11  ;;  %7753 = vmatpush1.bf16.msra.mxu1 %v11885_v14 }
 0xd9c   :  { %7713 = vmatprep.subr.bf16.mxu0 %v11889_v63  ;;  %7754 = vmatprep.subr.bf16.mxu1 %v12947_v51 }
 0xd9f   :  { %7714 = vmatpush1.bf16.msra.mxu0 %v12948_v23  ;;  %7755 = vmatpush1.bf16.msra.mxu1 %v11897_v55 }
 0xda0   :  { %7715 = vmatprep.subr.bf16.mxu0 %v11901_v13  ;;  %7756 = vmatprep.subr.bf16.mxu1 %v11903_v41 }
 0xda3   :  { %7716 = vmatpush1.bf16.msra.mxu0 %v11907_v61  ;;  %7757 = vmatpush1.bf16.msra.mxu1 %v11909_v52 }
 0xda4   :  { %7717 = vmatprep.subr.bf16.mxu0 %v11913_v25  ;;  %7758 = vmatprep.subr.bf16.mxu1 %v11915_v17 }
 0xda7   :  { %7718 = vmatpush1.bf16.msra.mxu0 %v11919_v49  ;;  %7759 = vmatpush1.bf16.msra.mxu1 %v11921_v32 }
 0xda8   :  { %7878 = vmatprep.subr.bf16.mxu0 %v12969_v57  ;;  %7919 = vmatprep.subr.bf16.mxu1 %v12970_v43 }
 0xdaa   :  { %7736 = vmatmul.mubr.bf16.vlgmr.msra.gmra.mrb[124].mxu0 %v7620_v19  ;;  %7777 = vmatmul.mubr.bf16.vlgmr.msra.gmra.mrb[124].mxu1 %v7620_v19  ;;  %v13030_v19 = vld [vmem:[#allocation44_spill] sm:$0xff] }
 0xdab   :  { %7879 = vmatpush1.bf16.msra.mxu0 %v12971_v29  ;;  %7920 = vmatpush1.bf16.msra.mxu1 %v13003_v58  ;;  %v7619_v58 = vld [vmem:[#allocation2 + $0x78] sm:$0xf0] }
 0xdac   :  { %7880 = vmatprep.subr.bf16.mxu0 %v13004_v5  ;;  %7921 = vmatprep.subr.bf16.mxu1 %v13005_v60  ;;  %v7617_v5 = vld [vmem:[#allocation2 + $0x68] sm:$0xf0] }
 0xdad   :  { %7910 = vmatprep.mubr.bf16.mxu0 %v12807_v31  ;;  %7951 = vmatprep.mubr.bf16.mxu1 %v12807_v31 }
 0xdaf   :  { %7881 = vmatpush1.bf16.msra.mxu0 %v13006_v33  ;;  %7922 = vmatpush1.bf16.msra.mxu1 %v13007_v45 }
 0xdb0   :  { %7882 = vmatprep.subr.bf16.mxu0 %v13008_v48  ;;  %7923 = vmatprep.subr.bf16.mxu1 %v13009_v34 }
 0xdb3   :  { %7883 = vmatpush1.bf16.msra.mxu0 %v13010_v10  ;;  %7924 = vmatpush1.bf16.msra.mxu1 %v13011_v16  ;;  %v7616_v10 = vld [vmem:[#allocation2 + $0x60] sm:$0xf0] }
 0xdb4   :  { %7884 = vmatprep.subr.bf16.mxu0 %v13012_v53  ;;  %7925 = vmatprep.subr.bf16.mxu1 %v13013_v46  ;;  %v7613_v46 = vld [vmem:[#allocation2 + $0x48] sm:$0xf0] }
 0xdb7   :  { %7885 = vmatpush1.bf16.msra.mxu0 %v13014_v8  ;;  %7926 = vmatpush1.bf16.msra.mxu1 %v13015_v28  ;;  %v7612_v8 = vld [vmem:[#allocation2 + $0x40] sm:$0xf0] }
 0xdb8   :  { %7886 = vmatprep.subr.bf16.mxu0 %v13016_v0  ;;  %7927 = vmatprep.subr.bf16.mxu1 %v13017_v1 }
 0xdbb   :  { %7887 = vmatpush1.bf16.msra.mxu0 %v13018_v15  ;;  %7928 = vmatpush1.bf16.msra.mxu1 %v13019_v42 }
 0xdbc   :  { %7888 = vmatprep.subr.bf16.mxu0 %v13020_v40  ;;  %7929 = vmatprep.subr.bf16.mxu1 %v13021_v59  ;;  %v13031_v40 = vld [vmem:[#allocation45_spill] sm:$0xff]  ;;  %v13032_v59 = vld [vmem:[#allocation46_spill] sm:$0xff] }
 0xdbf   :  { %7889 = vmatpush1.bf16.msra.mxu0 %v13022_v9  ;;  %7930 = vmatpush1.bf16.msra.mxu1 %v13023_v20  ;;  %v13033_v9 = vld [vmem:[#allocation47_spill] sm:$0xff] }
 0xdc0   :  { %7890 = vmatprep.subr.bf16.mxu0 %v13024_v21  ;;  %7931 = vmatprep.subr.bf16.mxu1 %v13025_v22 }
 0xdc3   :  { %7891 = vmatpush1.bf16.msra.mxu0 %v13026_v2  ;;  %7932 = vmatpush1.bf16.msra.mxu1 %v13027_v3 }
 0xdc4   :  { %7892 = vmatprep.subr.bf16.mxu0 %v13028_v62  ;;  %7933 = vmatprep.subr.bf16.mxu1 %v13029_v35 }
 0xdc7   :  { %7893 = vmatpush1.bf16.msra.mxu0 %v13030_v19  ;;  %7934 = vmatpush1.bf16.msra.mxu1 %v13031_v40  ;;  %v7614_v19 = vld [vmem:[#allocation2 + $0x50] sm:$0xf0]  ;;  %v7615_v40 = vld [vmem:[#allocation2 + $0x58] sm:$0xf0] }
 0xdc8   :  { %7960 = vmatprep.subr.bf16.mxu0 %v13032_v59  ;;  %8001 = vmatprep.subr.bf16.mxu1 %v13033_v9 }
 0xe5d   :  { %v7655_v20 = vpop.f32.mrb[120].mxu0  ;;  %v7696_v21 = vpop.f32.mrb[120].mxu1 }
 0xe5e   :  { %v7657_v42 = vpop.f32.mrb[121].mxu0  ;;  %v7698_v22 = vpop.f32.mrb[121].mxu1  ;;  %v7793_v0 = vrot.slane %v7655_v20, 4  ;;  %v7795_v62 = vrot.slane %v7696_v21, 4 }
 0xe5f   :  { %v7659_v15 = vpop.f32.mrb[122].mxu0  ;;  %v7700_v2 = vpop.f32.mrb[122].mxu1  ;;  %v7794_v28 = vrot.slane %v7657_v42, 4  ;;  %v7796_v35 = vrot.slane %v7698_v22, 4 }
 0xe60   :  { %v7660_v1 = vpop.f32.mrb[123].mxu0  ;;  %v7701_v3 = vpop.f32.mrb[123].mxu1  ;;  %v7809_v16 = vadd.f32 %v7793_v0, %v7612_v8  ;;  %v7811_v9 = vadd.f32 %v7795_v62, %v7614_v19 }
 0xe61   :  { %v7810_v2 = vadd.f32 %v7794_v28, %v7613_v46  ;;  %v7812_v1 = vadd.f32 %v7796_v35, %v7615_v40  ;;  %v7618_v3 = vld [vmem:[#allocation2 + $0x70] sm:$0xf0] }
 0xe62   :  { %v7821_v62 = vrot.slane %v7809_v16, 4 }
 0xe63   :  { %v7822_v57 = vrot.slane %v7810_v2, 4  ;;  %v7824_v46 = vrot.slane %v7812_v1, 4 }
 0xe7d   :  { %v7737_v53 = vpop.f32.mrb[124].mxu0  ;;  %v7778_v59 = vpop.f32.mrb[124].mxu1 }
 0xe7e   :  { %v7797_v34 = vrot.slane %v7737_v53, 4  ;;  %v7799_v48 = vrot.slane %v7778_v59, 4  ;;  %v7739_v45 = vpop.f32.mrb[125].mxu0  ;;  %v7780_v15 = vpop.f32.mrb[125].mxu1  ;;  %v7823_v53 = vrot.slane %v7811_v9, 4 }
 0xe7f   :  { %v7798_v20 = vrot.slane %v7739_v45, 4  ;;  %v7800_v21 = vrot.slane %v7780_v15, 4  ;;  %v7741_v42 = vpop.f32.mrb[126].mxu0  ;;  %v7782_v22 = vpop.f32.mrb[126].mxu1 }
 0xe80   :  { %v7813_v33 = vadd.f32 %v7797_v34, %v7616_v10  ;;  %v7815_v60 = vadd.f32 %v7799_v48, %v7618_v3  ;;  %v7742_v29 = vpop.f32.mrb[127].mxu0  ;;  %v7783_v43 = vpop.f32.mrb[127].mxu1 }
 0xe81   :  { %v7814_v8 = vadd.f32 %v7798_v20, %v7617_v5  ;;  %v7816_v0 = vadd.f32 %v7800_v21, %v7619_v58 }
 0xe82   :  { %v7833_v59 = vrot.slane %v7813_v33, 4  ;;  %v7835_v19 = vrot.slane %v7815_v60, 4 }
 0xe83   :  { %v7834_v28 = vrot.slane %v7814_v8, 4  ;;  %v7836_v40 = vrot.slane %v7816_v0, 4  ;;  %v13035_v0 = vld [vmem:[#allocation15_spill] sm:$0xff] }
 0xe84   :  { %v7841_v45 = vsel %vm77_vm1, %v7821_v62, %v7833_v59  ;;  %v7843_v48 = vsel %vm77_vm1, %v7823_v53, %v7835_v19  ;;  %v13036_v62 = vld [vmem:[#allocation16_spill] sm:$0xff]  ;;  %v13037_v53 = vld [vmem:[#allocation17_spill] sm:$0xff]  ;;  %v13038_v59 = vld [vmem:[#allocation18_spill] sm:$0xff] }
 0xe85   :  { %v9763_v34 = vmul.f32 -1.442695, %v7841_v45  ;;  %v7842_v43 = vsel %vm77_vm1, %v7822_v57, %v7834_v28  ;;  %v7844_v29 = vsel %vm77_vm1, %v7824_v46, %v7836_v40  ;;  %v13039_v19 = vld [vmem:[#allocation19_spill] sm:$0xff]  ;;  %v13040_v46 = vld [vmem:[#allocation20_spill] sm:$0xff]  ;;  %v13041_v28 = vld [vmem:[#allocation21_spill] sm:$0xff] }
 0xe86   :  { %v9764_v58 = vmul.f32 -1.442695, %v7842_v43  ;;  %v9765_v5 = vmul.f32 -1.442695, %v7844_v29  ;;  %v13042_v40 = vld [vmem:[#allocation22_spill] sm:$0xff]  ;;  %v13043_v45 = vld [vmem:[#allocation23_spill] sm:$0xff] }
 0xe87   :  { %10117 = vpow2.f32 %v9763_v34  ;;  %v13045_v34 = vld [vmem:[#allocation25_spill] sm:$0xff]  ;;  %v13046_v43 = vld [vmem:[#allocation26_spill] sm:$0xff]  ;;  %v13047_v29 = vld [vmem:[#allocation27_spill] sm:$0xff] }
 0xe88   :  { %10119 = vpow2.f32 %v9764_v58  ;;  %v13048_v58 = vld [vmem:[#allocation28_spill] sm:$0xff] }
 0xe89   :  { %10121 = vpow2.f32 %v9765_v5  ;;  %v13049_v5 = vld [vmem:[#allocation29_spill] sm:$0xff] }
 0xe8a   :  { %10123 = vtanh.f32 %v7843_v48  ;;  %v13044_v48 = vld [vmem:[#allocation24_spill] sm:$0xff] }
 0xe91   :  { %v10118_v60 = vpop.eup %10117 }
 0xe92   :  { %v10120_v33 = vpop.eup %10119  ;;  %v7848_v10 = vadd.f32 1.0, %v10118_v60  ;;  %v13050_v60 = vld [vmem:[#allocation30_spill] sm:$0xff] }
 0xe93   :  { %v7854_v16 = vadd.f32 1.0, %v10120_v33  ;;  %v10122_v9 = vpop.eup %10121  ;;  %v13051_v33 = vld [vmem:[#allocation31_spill] sm:$0xff] }
 0xe94   :  { %10125 = vrcp.f32 %v7848_v10  ;;  %v10124_v35 = vpop.eup %10123  ;;  %v7861_v1 = vadd.f32 1.0, %v10122_v9  ;;  %v13052_v10 = vld [vmem:[#allocation32_spill] sm:$0xff]  ;;  %v13054_v9 = vld [vmem:[#allocation34_spill] sm:$0xff] }
 0xe95   :  { %10127 = vrcp.f32 %v7854_v16  ;;  %v13053_v16 = vld [vmem:[#allocation33_spill] sm:$0xff] }
 0xe96   :  { %10129 = vrcp.f32 %v7861_v1  ;;  %v13059_v1 = vld [vmem:[#allocation39_spill] sm:$0xff] }
 0xe9e   :  { %v10126_v15 = vpop.eup %10125 }
 0xe9f   :  { %v10128_v2 = vpop.eup %10127  ;;  %v7865_v57 = vmul.f32 %v10126_v15, %v10124_v35  ;;  %v13055_v35 = vld [vmem:[#allocation35_spill] sm:$0xff]  ;;  %v13056_v15 = vld [vmem:[#allocation36_spill] sm:$0xff] }
 0xea0   :  { %v7864_v3 = vmul.f32 %v10128_v2, %v12152_v38  ;;  %v10130_v21 = vpop.eup %10129  ;;  %v13034_v38 = vld [vmem:[#allocation14_spill] sm:$0xff]  ;;  %v13057_v2 = vld [vmem:[#allocation37_spill] sm:$0xff] }
 0xea2   :  { %v12232_v20 = vadd.f32 %v7865_v57, %v7864_v3  ;;  %v13058_v57 = vld [vmem:[#allocation38_spill] sm:$0xff]  ;;  %v13060_v3 = vld [vmem:[#allocation40_spill] sm:$0xff] }
 0xea4   :  { %10131 = vtanh.f32 %v12232_v20 }
 0xeae   :  { %v10132_v42 = vpop.eup %10131 }
 0xeaf   :  { %v7868_v22 = vmul.f32 %v10132_v42, %v10130_v21  ;;  %v13061_v21 = vld [vmem:[#allocation41_spill] sm:$0xff]  ;;  %v13062_v42 = vld [vmem:[#allocation42_spill] sm:$0xff] }
 0xeb1   :  { %v7877_v8 = vpack.c.bf16 %v7868_v22, %v7868_v22  ;;  %v13063_v22 = vld [vmem:[#allocation43_spill] sm:$0xff] }
 0xeb3   :  { %7911 = vmatmul.mubr.bf16.vlgmr.msra.gmra.mrb[128].mxu0 %v7877_v8  ;;  %7952 = vmatmul.mubr.bf16.vlgmr.msra.gmra.mrb[128].mxu1 %v7877_v8 }
 0xeb4   :  { %7961 = vmatpush1.bf16.msra.mxu0 %v11831_v27  ;;  %8002 = vmatpush1.bf16.msra.mxu1 %v11833_v12 }
 0xeb5   :  { %7962 = vmatprep.subr.bf16.mxu0 %v11837_v36  ;;  %8003 = vmatprep.subr.bf16.mxu1 %v11839_v50 }
 0xeb6   :  { %7992 = vmatprep.mubr.bf16.mxu0 %v12807_v31  ;;  %8033 = vmatprep.mubr.bf16.mxu1 %v12807_v31 }
 0xeb8   :  { %7963 = vmatpush1.bf16.msra.mxu0 %v11845_v39  ;;  %8004 = vmatpush1.bf16.msra.mxu1 %v11847_v47 }
 0xeb9   :  { %7964 = vmatprep.subr.bf16.mxu0 %v11851_v26  ;;  %8005 = vmatprep.subr.bf16.mxu1 %v11853_v56 }
 0xebc   :  { %7965 = vmatpush1.bf16.msra.mxu0 %v12939_v18  ;;  %8006 = vmatpush1.bf16.msra.mxu1 %v12940_v7 }
 0xebd   :  { %7966 = vmatprep.subr.bf16.mxu0 %v12941_v54  ;;  %8007 = vmatprep.subr.bf16.mxu1 %v12942_v4 }
 0xec0   :  { %7967 = vmatpush1.bf16.msra.mxu0 %v12943_v6  ;;  %8008 = vmatpush1.bf16.msra.mxu1 %v12944_v24 }
 0xec1   :  { %7968 = vmatprep.subr.bf16.mxu0 %v12945_v37  ;;  %8009 = vmatprep.subr.bf16.mxu1 %v12946_v30 }
 0xec4   :  { %7969 = vmatpush1.bf16.msra.mxu0 %v11883_v11  ;;  %8010 = vmatpush1.bf16.msra.mxu1 %v11885_v14 }
 0xec5   :  { %7970 = vmatprep.subr.bf16.mxu0 %v11889_v63  ;;  %8011 = vmatprep.subr.bf16.mxu1 %v12947_v51 }
 0xec8   :  { %7971 = vmatpush1.bf16.msra.mxu0 %v12948_v23  ;;  %8012 = vmatpush1.bf16.msra.mxu1 %v11897_v55 }
 0xec9   :  { %7972 = vmatprep.subr.bf16.mxu0 %v11901_v13  ;;  %8013 = vmatprep.subr.bf16.mxu1 %v11903_v41 }
 0xecc   :  { %7973 = vmatpush1.bf16.msra.mxu0 %v11907_v61  ;;  %8014 = vmatpush1.bf16.msra.mxu1 %v11909_v52 }
 0xecd   :  { %7974 = vmatprep.subr.bf16.mxu0 %v11913_v25  ;;  %8015 = vmatprep.subr.bf16.mxu1 %v11915_v17 }
 0xed0   :  { %7975 = vmatpush1.bf16.msra.mxu0 %v11919_v49  ;;  %8016 = vmatpush1.bf16.msra.mxu1 %v11921_v32 }
 0xed1   :  { %8087 = vmatprep.subr.bf16.mxu0 %v13034_v38  ;;  %8128 = vmatprep.subr.bf16.mxu1 %v13035_v0 }
 0xed3   :  { %7993 = vmatmul.mubr.bf16.vlgmr.msra.gmra.mrb[132].mxu0 %v7877_v8  ;;  %8034 = vmatmul.mubr.bf16.vlgmr.msra.gmra.mrb[132].mxu1 %v7877_v8  ;;  %v13064_v8 = vld [vmem:[#allocation44_spill] sm:$0xff] }
 0xed4   :  { %8088 = vmatpush1.bf16.msra.mxu0 %v13036_v62  ;;  %8129 = vmatpush1.bf16.msra.mxu1 %v13037_v53 }
 0xed5   :  { %8089 = vmatprep.subr.bf16.mxu0 %v13038_v59  ;;  %8130 = vmatprep.subr.bf16.mxu1 %v13039_v19 }
 0xed6   :  { %8119 = vmatprep.mubr.bf16.mxu0 %v12807_v31  ;;  %8160 = vmatprep.mubr.bf16.mxu1 %v12807_v31 }
 0xed8   :  { %8090 = vmatpush1.bf16.msra.mxu0 %v13040_v46  ;;  %8131 = vmatpush1.bf16.msra.mxu1 %v13041_v28 }
 0xed9   :  { %8091 = vmatprep.subr.bf16.mxu0 %v13042_v40  ;;  %8132 = vmatprep.subr.bf16.mxu1 %v13043_v45  ;;  %v7876_v40 = vld [vmem:[#allocation2 + $0xb8] sm:$0xf] }
 0xedc   :  { %8092 = vmatpush1.bf16.msra.mxu0 %v13044_v48  ;;  %8133 = vmatpush1.bf16.msra.mxu1 %v13045_v34  ;;  %v7874_v48 = vld [vmem:[#allocation2 + $0xa8] sm:$0xf] }
 0xedd   :  { %8093 = vmatprep.subr.bf16.mxu0 %v13046_v43  ;;  %8134 = vmatprep.subr.bf16.mxu1 %v13047_v29  ;;  %v7875_v29 = vld [vmem:[#allocation2 + $0xb0] sm:$0xf] }
 0xee0   :  { %8094 = vmatpush1.bf16.msra.mxu0 %v13048_v58  ;;  %8135 = vmatpush1.bf16.msra.mxu1 %v13049_v5  ;;  %v7870_v5 = vld [vmem:[#allocation2 + $0x88] sm:$0xf]  ;;  %v7873_v58 = vld [vmem:[#allocation2 + $0xa0] sm:$0xf] }
 0xee1   :  { %8095 = vmatprep.subr.bf16.mxu0 %v13050_v60  ;;  %8136 = vmatprep.subr.bf16.mxu1 %v13051_v33  ;;  %v7869_v60 = vld [vmem:[#allocation2 + $0x80] sm:$0xf] }
 0xee4   :  { %8096 = vmatpush1.bf16.msra.mxu0 %v13052_v10  ;;  %8137 = vmatpush1.bf16.msra.mxu1 %v13053_v16 }
 0xee5   :  { %8097 = vmatprep.subr.bf16.mxu0 %v13054_v9  ;;  %8138 = vmatprep.subr.bf16.mxu1 %v13055_v35  ;;  %v13065_v9 = vld [vmem:[#allocation45_spill] sm:$0xff]  ;;  %v13066_v35 = vld [vmem:[#allocation46_spill] sm:$0xff] }
 0xee8   :  { %8098 = vmatpush1.bf16.msra.mxu0 %v13056_v15  ;;  %8139 = vmatpush1.bf16.msra.mxu1 %v13057_v2  ;;  %v13067_v15 = vld [vmem:[#allocation47_spill] sm:$0xff] }
 0xee9   :  { %8099 = vmatprep.subr.bf16.mxu0 %v13058_v57  ;;  %8140 = vmatprep.subr.bf16.mxu1 %v13059_v1 }
 0xeec   :  { %8100 = vmatpush1.bf16.msra.mxu0 %v13060_v3  ;;  %8141 = vmatpush1.bf16.msra.mxu1 %v13061_v21 }
 0xeed   :  { %8101 = vmatprep.subr.bf16.mxu0 %v13062_v42  ;;  %8142 = vmatprep.subr.bf16.mxu1 %v13063_v22  ;;  %v7871_v42 = vld [vmem:[#allocation2 + $0x90] sm:$0xf]  ;;  %v7872_v22 = vld [vmem:[#allocation2 + $0x98] sm:$0xf] }
 0xef0   :  { %8102 = vmatpush1.bf16.msra.mxu0 %v13064_v8  ;;  %8143 = vmatpush1.bf16.msra.mxu1 %v13065_v9 }
 0xef1   :  { %8169 = vmatprep.subr.bf16.mxu0 %v13066_v35  ;;  %8210 = vmatprep.subr.bf16.mxu1 %v13067_v15 }
 0xf86   :  { %v7912_v2 = vpop.f32.mrb[128].mxu0  ;;  %v7953_v57 = vpop.f32.mrb[128].mxu1 }
 0xf87   :  { %v7914_v16 = vpop.f32.mrb[129].mxu0  ;;  %v7955_v1 = vpop.f32.mrb[129].mxu1  ;;  %v8042_v43 = vadd.f32 %v7912_v2, %v7869_v60  ;;  %v8044_v35 = vadd.f32 %v7953_v57, %v7871_v42 }
 0xf88   :  { %v7916_v10 = vpop.f32.mrb[130].mxu0  ;;  %v7957_v3 = vpop.f32.mrb[130].mxu1 }
 0xf89   :  { %v7917_v33 = vpop.f32.mrb[131].mxu0  ;;  %v7958_v21 = vpop.f32.mrb[131].mxu1  ;;  %v8043_v10 = vadd.f32 %v7914_v16, %v7870_v5  ;;  %v8045_v3 = vadd.f32 %v7955_v1, %v7872_v22 }
 0xfa6   :  { %v7994_v8 = vpop.f32.mrb[132].mxu0  ;;  %v8035_v9 = vpop.f32.mrb[132].mxu1 }
 0xfa7   :  { %v8046_v34 = vadd.f32 %v7994_v8, %v7873_v58  ;;  %v8048_v15 = vadd.f32 %v8035_v9, %v7875_v29  ;;  %v7996_v45 = vpop.f32.mrb[133].mxu0  ;;  %v8037_v28 = vpop.f32.mrb[133].mxu1  ;;  %v13069_v8 = vld [vmem:[#allocation18_spill] sm:$0xff] }
 0xfa8   :  { %v8047_v33 = vadd.f32 %v7996_v45, %v7874_v48  ;;  %v8049_v21 = vadd.f32 %v8037_v28, %v7876_v40  ;;  %v7998_v46 = vpop.f32.mrb[134].mxu0  ;;  %v8039_v19 = vpop.f32.mrb[134].mxu1 }
 0xfa9   :  { %v8050_v59 = vsel %vm77_vm1, %v8042_v43, %v8046_v34  ;;  %v8052_v53 = vsel %vm77_vm1, %v8044_v35, %v8048_v15  ;;  %v7999_v60 = vpop.f32.mrb[135].mxu0  ;;  %v8040_v2 = vpop.f32.mrb[135].mxu1 }
 0xfaa   :  { %v9766_v58 = vmul.f32 -1.442695, %v8050_v59  ;;  %v8051_v29 = vsel %vm77_vm1, %v8043_v10, %v8047_v33  ;;  %v8053_v5 = vsel %vm77_vm1, %v8045_v3, %v8049_v21  ;;  %v13070_v10 = vld [vmem:[#allocation19_spill] sm:$0xff]  ;;  %v13071_v3 = vld [vmem:[#allocation20_spill] sm:$0xff]  ;;  %v13072_v33 = vld [vmem:[#allocation21_spill] sm:$0xff] }
 0xfab   :  { %v9767_v16 = vmul.f32 -1.442695, %v8051_v29  ;;  %v9768_v46 = vmul.f32 -1.442695, %v8053_v5  ;;  %v13073_v21 = vld [vmem:[#allocation22_spill] sm:$0xff]  ;;  %v13074_v60 = vld [vmem:[#allocation23_spill] sm:$0xff] }
 0xfac   :  { %10133 = vpow2.f32 %v9766_v58  ;;  %v13075_v2 = vld [vmem:[#allocation24_spill] sm:$0xff]  ;;  %v13076_v58 = vld [vmem:[#allocation25_spill] sm:$0xff]  ;;  %v13077_v29 = vld [vmem:[#allocation26_spill] sm:$0xff] }
 0xfad   :  { %10135 = vpow2.f32 %v9767_v16  ;;  %v13078_v5 = vld [vmem:[#allocation27_spill] sm:$0xff]  ;;  %v13079_v16 = vld [vmem:[#allocation28_spill] sm:$0xff] }
 0xfae   :  { %10137 = vpow2.f32 %v9768_v46  ;;  %v13080_v46 = vld [vmem:[#allocation29_spill] sm:$0xff] }
 0xfaf   :  { %10139 = vtanh.f32 %v8052_v53 }
 0xfb6   :  { %v10134_v19 = vpop.eup %10133 }
 0xfb7   :  { %v10136_v28 = vpop.eup %10135  ;;  %v8057_v40 = vadd.f32 1.0, %v10134_v19  ;;  %v13081_v19 = vld [vmem:[#allocation30_spill] sm:$0xff] }
 0xfb8   :  { %v8063_v45 = vadd.f32 1.0, %v10136_v28  ;;  %v10138_v48 = vpop.eup %10137  ;;  %v13082_v28 = vld [vmem:[#allocation31_spill] sm:$0xff] }
 0xfb9   :  { %10141 = vrcp.f32 %v8057_v40  ;;  %v10140_v59 = vpop.eup %10139  ;;  %v8070_v35 = vadd.f32 1.0, %v10138_v48  ;;  %v13083_v40 = vld [vmem:[#allocation32_spill] sm:$0xff]  ;;  %v13085_v48 = vld [vmem:[#allocation34_spill] sm:$0xff] }
 0xfba   :  { %10143 = vrcp.f32 %v8063_v45  ;;  %v13084_v45 = vld [vmem:[#allocation33_spill] sm:$0xff] }
 0xfbb   :  { %10145 = vrcp.f32 %v8070_v35  ;;  %v13090_v35 = vld [vmem:[#allocation39_spill] sm:$0xff] }
 0xfc3   :  { %v10142_v34 = vpop.eup %10141 }
 0xfc4   :  { %v10144_v43 = vpop.eup %10143  ;;  %v8074_v9 = vmul.f32 %v10142_v34, %v10140_v59  ;;  %v13086_v59 = vld [vmem:[#allocation35_spill] sm:$0xff]  ;;  %v13087_v34 = vld [vmem:[#allocation36_spill] sm:$0xff] }
 0xfc5   :  { %v8073_v15 = vmul.f32 %v10144_v43, %v12232_v20  ;;  %v10146_v1 = vpop.eup %10145  ;;  %v13068_v20 = vld [vmem:[#allocation17_spill] sm:$0xff] }
 0xfc6   :  { %v13088_v43 = vld [vmem:[#allocation37_spill] sm:$0xff] }
 0xfc7   :  { %v12312_v57 = vadd.f32 %v8074_v9, %v8073_v15  ;;  %v13089_v9 = vld [vmem:[#allocation38_spill] sm:$0xff]  ;;  %v13091_v15 = vld [vmem:[#allocation40_spill] sm:$0xff] }
 0xfc9   :  { %10147 = vtanh.f32 %v12312_v57 }
 0xfd3   :  { %v10148_v42 = vpop.eup %10147 }
 0xfd4   :  { %v8077_v22 = vmul.f32 %v10148_v42, %v10146_v1  ;;  %v13092_v1 = vld [vmem:[#allocation41_spill] sm:$0xff]  ;;  %v13093_v42 = vld [vmem:[#allocation42_spill] sm:$0xff] }
 0xfd6   :  { %v8086_v53 = vpack.c.bf16 %v8077_v22, %v8077_v22  ;;  %v13094_v22 = vld [vmem:[#allocation43_spill] sm:$0xff] }
 0xfd8   :  { %8120 = vmatmul.mubr.bf16.vlgmr.msra.gmra.mrb[136].mxu0 %v8086_v53  ;;  %8161 = vmatmul.mubr.bf16.vlgmr.msra.gmra.mrb[136].mxu1 %v8086_v53 }
 0xfd9   :  { %8170 = vmatpush1.bf16.msra.mxu0 %v11831_v27  ;;  %8211 = vmatpush1.bf16.msra.mxu1 %v11833_v12 }
 0xfda   :  { %8171 = vmatprep.subr.bf16.mxu0 %v11837_v36  ;;  %8212 = vmatprep.subr.bf16.mxu1 %v11839_v50 }
 0xfdb   :  { %8201 = vmatprep.mubr.bf16.mxu0 %v12807_v31  ;;  %8242 = vmatprep.mubr.bf16.mxu1 %v12807_v31 }
 0xfdd   :  { %8172 = vmatpush1.bf16.msra.mxu0 %v11845_v39  ;;  %8213 = vmatpush1.bf16.msra.mxu1 %v11847_v47 }
 0xfde   :  { %8173 = vmatprep.subr.bf16.mxu0 %v11851_v26  ;;  %8214 = vmatprep.subr.bf16.mxu1 %v11853_v56 }
 0xfe1   :  { %8174 = vmatpush1.bf16.msra.mxu0 %v12939_v18  ;;  %8215 = vmatpush1.bf16.msra.mxu1 %v12940_v7 }
 0xfe2   :  { %8175 = vmatprep.subr.bf16.mxu0 %v12941_v54  ;;  %8216 = vmatprep.subr.bf16.mxu1 %v12942_v4 }
 0xfe5   :  { %8176 = vmatpush1.bf16.msra.mxu0 %v12943_v6  ;;  %8217 = vmatpush1.bf16.msra.mxu1 %v12944_v24 }
 0xfe6   :  { %8177 = vmatprep.subr.bf16.mxu0 %v12945_v37  ;;  %8218 = vmatprep.subr.bf16.mxu1 %v12946_v30 }
 0xfe9   :  { %8178 = vmatpush1.bf16.msra.mxu0 %v11883_v11  ;;  %8219 = vmatpush1.bf16.msra.mxu1 %v11885_v14 }
 0xfea   :  { %8179 = vmatprep.subr.bf16.mxu0 %v11889_v63  ;;  %8220 = vmatprep.subr.bf16.mxu1 %v12947_v51 }
 0xfed   :  { %8180 = vmatpush1.bf16.msra.mxu0 %v12948_v23  ;;  %8221 = vmatpush1.bf16.msra.mxu1 %v11897_v55 }
 0xfee   :  { %8181 = vmatprep.subr.bf16.mxu0 %v11901_v13  ;;  %8222 = vmatprep.subr.bf16.mxu1 %v11903_v41 }
 0xff1   :  { %8182 = vmatpush1.bf16.msra.mxu0 %v11907_v61  ;;  %8223 = vmatpush1.bf16.msra.mxu1 %v11909_v52 }
 0xff2   :  { %8183 = vmatprep.subr.bf16.mxu0 %v11913_v25  ;;  %8224 = vmatprep.subr.bf16.mxu1 %v11915_v17 }
 0xff5   :  { %8184 = vmatpush1.bf16.msra.mxu0 %v11919_v49  ;;  %8225 = vmatpush1.bf16.msra.mxu1 %v11921_v32 }
 0xff6   :  { %8344 = vmatprep.subr.bf16.mxu0 %v13034_v38  ;;  %8385 = vmatprep.subr.bf16.mxu1 %v13035_v0 }
 0xff8   :  { %8202 = vmatmul.mubr.bf16.vlgmr.msra.gmra.mrb[140].mxu0 %v8086_v53  ;;  %8243 = vmatmul.mubr.bf16.vlgmr.msra.gmra.mrb[140].mxu1 %v8086_v53  ;;  %v13095_v53 = vld [vmem:[#allocation44_spill] sm:$0xff] }
 0xff9   :  { %8345 = vmatpush1.bf16.msra.mxu0 %v13036_v62  ;;  %8386 = vmatpush1.bf16.msra.mxu1 %v13068_v20  ;;  %v8085_v20 = vld [vmem:[#allocation2 + $0xb8] sm:$0xf0] }
 0xffa   :  { %8346 = vmatprep.subr.bf16.mxu0 %v13069_v8  ;;  %8387 = vmatprep.subr.bf16.mxu1 %v13070_v10  ;;  %v8083_v8 = vld [vmem:[#allocation2 + $0xa8] sm:$0xf0] }
 0xffb   :  { %8376 = vmatprep.mubr.bf16.mxu0 %v12807_v31  ;;  %8417 = vmatprep.mubr.bf16.mxu1 %v12807_v31 }
 0xffd   :  { %8347 = vmatpush1.bf16.msra.mxu0 %v13071_v3  ;;  %8388 = vmatpush1.bf16.msra.mxu1 %v13072_v33 }
 0xffe   :  { %8348 = vmatprep.subr.bf16.mxu0 %v13073_v21  ;;  %8389 = vmatprep.subr.bf16.mxu1 %v13074_v60 }
0x1001   :  { %8349 = vmatpush1.bf16.msra.mxu0 %v13075_v2  ;;  %8390 = vmatpush1.bf16.msra.mxu1 %v13076_v58  ;;  %v8082_v2 = vld [vmem:[#allocation2 + $0xa0] sm:$0xf0] }
0x1002   :  { %8350 = vmatprep.subr.bf16.mxu0 %v13077_v29  ;;  %8391 = vmatprep.subr.bf16.mxu1 %v13078_v5  ;;  %v8079_v5 = vld [vmem:[#allocation2 + $0x88] sm:$0xf0] }
0x1005   :  { %8351 = vmatpush1.bf16.msra.mxu0 %v13079_v16  ;;  %8392 = vmatpush1.bf16.msra.mxu1 %v13080_v46  ;;  %v8078_v16 = vld [vmem:[#allocation2 + $0x80] sm:$0xf0] }
0x1006   :  { %8352 = vmatprep.subr.bf16.mxu0 %v13081_v19  ;;  %8393 = vmatprep.subr.bf16.mxu1 %v13082_v28 }
0x1009   :  { %8353 = vmatpush1.bf16.msra.mxu0 %v13083_v40  ;;  %8394 = vmatpush1.bf16.msra.mxu1 %v13084_v45 }
0x100a   :  { %8354 = vmatprep.subr.bf16.mxu0 %v13085_v48  ;;  %8395 = vmatprep.subr.bf16.mxu1 %v13086_v59  ;;  %v13096_v48 = vld [vmem:[#allocation45_spill] sm:$0xff]  ;;  %v13097_v59 = vld [vmem:[#allocation46_spill] sm:$0xff] }
0x100d   :  { %8355 = vmatpush1.bf16.msra.mxu0 %v13087_v34  ;;  %8396 = vmatpush1.bf16.msra.mxu1 %v13088_v43  ;;  %v13098_v34 = vld [vmem:[#allocation47_spill] sm:$0xff] }
0x100e   :  { %8356 = vmatprep.subr.bf16.mxu0 %v13089_v9  ;;  %8397 = vmatprep.subr.bf16.mxu1 %v13090_v35 }
0x1011   :  { %8357 = vmatpush1.bf16.msra.mxu0 %v13091_v15  ;;  %8398 = vmatpush1.bf16.msra.mxu1 %v13092_v1 }
0x1012   :  { %8358 = vmatprep.subr.bf16.mxu0 %v13093_v42  ;;  %8399 = vmatprep.subr.bf16.mxu1 %v13094_v22 }
0x1015   :  { %8359 = vmatpush1.bf16.msra.mxu0 %v13095_v53  ;;  %8400 = vmatpush1.bf16.msra.mxu1 %v13096_v48  ;;  %v8080_v53 = vld [vmem:[#allocation2 + $0x90] sm:$0xf0]  ;;  %v8081_v48 = vld [vmem:[#allocation2 + $0x98] sm:$0xf0] }
0x1016   :  { %8426 = vmatprep.subr.bf16.mxu0 %v13097_v59  ;;  %8467 = vmatprep.subr.bf16.mxu1 %v13098_v34 }
0x10ab   :  { %v8121_v43 = vpop.f32.mrb[136].mxu0  ;;  %v8162_v9 = vpop.f32.mrb[136].mxu1 }
0x10ac   :  { %v8123_v45 = vpop.f32.mrb[137].mxu0  ;;  %v8164_v35 = vpop.f32.mrb[137].mxu1  ;;  %v8259_v19 = vrot.slane %v8121_v43, 4  ;;  %v8261_v42 = vrot.slane %v8162_v9, 4 }
0x10ad   :  { %v8125_v40 = vpop.f32.mrb[138].mxu0  ;;  %v8166_v15 = vpop.f32.mrb[138].mxu1  ;;  %v8260_v46 = vrot.slane %v8123_v45, 4  ;;  %v8262_v22 = vrot.slane %v8164_v35, 4 }
0x10ae   :  { %v8126_v28 = vpop.f32.mrb[139].mxu0  ;;  %v8167_v1 = vpop.f32.mrb[139].mxu1  ;;  %v8275_v58 = vadd.f32 %v8259_v19, %v8078_v16  ;;  %v8277_v34 = vadd.f32 %v8261_v42, %v8080_v53 }
0x10af   :  { %v8276_v15 = vadd.f32 %v8260_v46, %v8079_v5  ;;  %v8278_v28 = vadd.f32 %v8262_v22, %v8081_v48  ;;  %v8084_v1 = vld [vmem:[#allocation2 + $0xb0] sm:$0xf0] }
0x10b0   :  { %v8287_v42 = vrot.slane %v8275_v58, 4 }
0x10b1   :  { %v8288_v38 = vrot.slane %v8276_v15, 4  ;;  %v8290_v5 = vrot.slane %v8278_v28, 4 }
0x10cb   :  { %v8203_v29 = vpop.f32.mrb[140].mxu0  ;;  %v8244_v59 = vpop.f32.mrb[140].mxu1 }
0x10cc   :  { %v8263_v60 = vrot.slane %v8203_v29, 4  ;;  %v8265_v21 = vrot.slane %v8244_v59, 4  ;;  %v8205_v33 = vpop.f32.mrb[141].mxu0  ;;  %v8246_v40 = vpop.f32.mrb[141].mxu1  ;;  %v8289_v29 = vrot.slane %v8277_v34, 4 }
0x10cd   :  { %v8264_v43 = vrot.slane %v8205_v33, 4  ;;  %v8266_v9 = vrot.slane %v8246_v40, 4  ;;  %v8207_v45 = vpop.f32.mrb[142].mxu0  ;;  %v8248_v35 = vpop.f32.mrb[142].mxu1 }
0x10ce   :  { %v8279_v3 = vadd.f32 %v8263_v60, %v8082_v2  ;;  %v8281_v10 = vadd.f32 %v8265_v21, %v8084_v1  ;;  %v8208_v62 = vpop.f32.mrb[143].mxu0  ;;  %v8249_v0 = vpop.f32.mrb[143].mxu1 }
0x10cf   :  { %v8280_v16 = vadd.f32 %v8264_v43, %v8083_v8  ;;  %v8282_v19 = vadd.f32 %v8266_v9, %v8085_v20 }
0x10d0   :  { %v8299_v59 = vrot.slane %v8279_v3, 4  ;;  %v8301_v53 = vrot.slane %v8281_v10, 4 }
0x10d1   :  { %v8300_v46 = vrot.slane %v8280_v16, 4  ;;  %v8302_v48 = vrot.slane %v8282_v19, 4  ;;  %v13100_v19 = vld [vmem:[#allocation15_spill] sm:$0xff] }
0x10d2   :  { %v8307_v33 = vsel %vm77_vm1, %v8287_v42, %v8299_v59  ;;  %v8309_v21 = vsel %vm77_vm1, %v8289_v29, %v8301_v53  ;;  %v13101_v42 = vld [vmem:[#allocation16_spill] sm:$0xff]  ;;  %v13102_v29 = vld [vmem:[#allocation17_spill] sm:$0xff]  ;;  %v13103_v59 = vld [vmem:[#allocation18_spill] sm:$0xff] }
0x10d3   :  { %v9769_v60 = vmul.f32 -1.442695, %v8307_v33  ;;  %v8308_v0 = vsel %vm77_vm1, %v8288_v38, %v8300_v46  ;;  %v8310_v62 = vsel %vm77_vm1, %v8290_v5, %v8302_v48  ;;  %v13104_v53 = vld [vmem:[#allocation19_spill] sm:$0xff]  ;;  %v13105_v5 = vld [vmem:[#allocation20_spill] sm:$0xff]  ;;  %v13106_v46 = vld [vmem:[#allocation21_spill] sm:$0xff] }
0x10d4   :  { %v9770_v20 = vmul.f32 -1.442695, %v8308_v0  ;;  %v9771_v8 = vmul.f32 -1.442695, %v8310_v62  ;;  %v13107_v48 = vld [vmem:[#allocation22_spill] sm:$0xff]  ;;  %v13108_v33 = vld [vmem:[#allocation23_spill] sm:$0xff] }
0x10d5   :  { %10149 = vpow2.f32 %v9769_v60  ;;  %v13110_v60 = vld [vmem:[#allocation25_spill] sm:$0xff]  ;;  %v13111_v0 = vld [vmem:[#allocation26_spill] sm:$0xff]  ;;  %v13112_v62 = vld [vmem:[#allocation27_spill] sm:$0xff] }
0x10d6   :  { %10151 = vpow2.f32 %v9770_v20  ;;  %v13113_v20 = vld [vmem:[#allocation28_spill] sm:$0xff] }
0x10d7   :  { %10153 = vpow2.f32 %v9771_v8  ;;  %v13114_v8 = vld [vmem:[#allocation29_spill] sm:$0xff] }
0x10d8   :  { %10155 = vtanh.f32 %v8309_v21  ;;  %v13109_v21 = vld [vmem:[#allocation24_spill] sm:$0xff] }
0x10df   :  { %v10150_v10 = vpop.eup %10149 }
0x10e0   :  { %v10152_v3 = vpop.eup %10151  ;;  %v8314_v2 = vadd.f32 1.0, %v10150_v10  ;;  %v13115_v10 = vld [vmem:[#allocation30_spill] sm:$0xff] }
0x10e1   :  { %v8320_v58 = vadd.f32 1.0, %v10152_v3  ;;  %v10154_v34 = vpop.eup %10153  ;;  %v13116_v3 = vld [vmem:[#allocation31_spill] sm:$0xff] }
0x10e2   :  { %10157 = vrcp.f32 %v8314_v2  ;;  %v10156_v22 = vpop.eup %10155  ;;  %v8327_v28 = vadd.f32 1.0, %v10154_v34  ;;  %v13117_v2 = vld [vmem:[#allocation32_spill] sm:$0xff]  ;;  %v13119_v34 = vld [vmem:[#allocation34_spill] sm:$0xff] }
0x10e3   :  { %10159 = vrcp.f32 %v8320_v58  ;;  %v13118_v58 = vld [vmem:[#allocation33_spill] sm:$0xff] }
0x10e4   :  { %10161 = vrcp.f32 %v8327_v28  ;;  %v13124_v28 = vld [vmem:[#allocation39_spill] sm:$0xff] }
0x10ec   :  { %v10158_v40 = vpop.eup %10157 }
0x10ed   :  { %v10160_v15 = vpop.eup %10159  ;;  %v8331_v38 = vmul.f32 %v10158_v40, %v10156_v22  ;;  %v13120_v22 = vld [vmem:[#allocation35_spill] sm:$0xff]  ;;  %v13121_v40 = vld [vmem:[#allocation36_spill] sm:$0xff] }
0x10ee   :  { %v8330_v1 = vmul.f32 %v10160_v15, %v12312_v57  ;;  %v10162_v9 = vpop.eup %10161  ;;  %v13099_v57 = vld [vmem:[#allocation14_spill] sm:$0xff]  ;;  %v13122_v15 = vld [vmem:[#allocation37_spill] sm:$0xff] }
0x10f0   :  { %v12392_v43 = vadd.f32 %v8331_v38, %v8330_v1  ;;  %v13123_v38 = vld [vmem:[#allocation38_spill] sm:$0xff]  ;;  %v13125_v1 = vld [vmem:[#allocation40_spill] sm:$0xff] }
0x10f2   :  { %10163 = vtanh.f32 %v12392_v43 }
0x10fc   :  { %v10164_v45 = vpop.eup %10163 }
0x10fd   :  { %v8334_v35 = vmul.f32 %v10164_v45, %v10162_v9  ;;  %v13126_v9 = vld [vmem:[#allocation41_spill] sm:$0xff]  ;;  %v13127_v45 = vld [vmem:[#allocation42_spill] sm:$0xff] }
0x10ff   :  { %v8343_v16 = vpack.c.bf16 %v8334_v35, %v8334_v35  ;;  %v13128_v35 = vld [vmem:[#allocation43_spill] sm:$0xff] }
0x1101   :  { %8377 = vmatmul.mubr.bf16.vlgmr.msra.gmra.mrb[144].mxu0 %v8343_v16  ;;  %8418 = vmatmul.mubr.bf16.vlgmr.msra.gmra.mrb[144].mxu1 %v8343_v16 }
0x1102   :  { %8427 = vmatpush1.bf16.msra.mxu0 %v11831_v27  ;;  %8468 = vmatpush1.bf16.msra.mxu1 %v11833_v12 }
0x1103   :  { %8428 = vmatprep.subr.bf16.mxu0 %v11837_v36  ;;  %8469 = vmatprep.subr.bf16.mxu1 %v11839_v50 }
0x1104   :  { %8458 = vmatprep.mubr.bf16.mxu0 %v12807_v31  ;;  %8499 = vmatprep.mubr.bf16.mxu1 %v12807_v31 }
0x1106   :  { %8429 = vmatpush1.bf16.msra.mxu0 %v11845_v39  ;;  %8470 = vmatpush1.bf16.msra.mxu1 %v11847_v47 }
0x1107   :  { %8430 = vmatprep.subr.bf16.mxu0 %v11851_v26  ;;  %8471 = vmatprep.subr.bf16.mxu1 %v11853_v56 }
0x110a   :  { %8431 = vmatpush1.bf16.msra.mxu0 %v12939_v18  ;;  %8472 = vmatpush1.bf16.msra.mxu1 %v12940_v7 }
0x110b   :  { %8432 = vmatprep.subr.bf16.mxu0 %v12941_v54  ;;  %8473 = vmatprep.subr.bf16.mxu1 %v12942_v4 }
0x110e   :  { %8433 = vmatpush1.bf16.msra.mxu0 %v12943_v6  ;;  %8474 = vmatpush1.bf16.msra.mxu1 %v12944_v24 }
0x110f   :  { %8434 = vmatprep.subr.bf16.mxu0 %v12945_v37  ;;  %8475 = vmatprep.subr.bf16.mxu1 %v12946_v30 }
0x1112   :  { %8435 = vmatpush1.bf16.msra.mxu0 %v11883_v11  ;;  %8476 = vmatpush1.bf16.msra.mxu1 %v11885_v14 }
0x1113   :  { %8436 = vmatprep.subr.bf16.mxu0 %v11889_v63  ;;  %8477 = vmatprep.subr.bf16.mxu1 %v12947_v51 }
0x1116   :  { %8437 = vmatpush1.bf16.msra.mxu0 %v12948_v23  ;;  %8478 = vmatpush1.bf16.msra.mxu1 %v11897_v55 }
0x1117   :  { %8438 = vmatprep.subr.bf16.mxu0 %v11901_v13  ;;  %8479 = vmatprep.subr.bf16.mxu1 %v11903_v41 }
0x111a   :  { %8439 = vmatpush1.bf16.msra.mxu0 %v11907_v61  ;;  %8480 = vmatpush1.bf16.msra.mxu1 %v11909_v52 }
0x111b   :  { %8440 = vmatprep.subr.bf16.mxu0 %v11913_v25  ;;  %8481 = vmatprep.subr.bf16.mxu1 %v11915_v17 }
0x111e   :  { %8441 = vmatpush1.bf16.msra.mxu0 %v11919_v49  ;;  %8482 = vmatpush1.bf16.msra.mxu1 %v11921_v32 }
0x111f   :  { %8553 = vmatprep.subr.bf16.mxu0 %v13099_v57  ;;  %8594 = vmatprep.subr.bf16.mxu1 %v13100_v19  ;;  %v13130_v57 = vld [vmem:[#allocation45_spill] sm:$0xff]  ;;  %v13131_v19 = vld [vmem:[#allocation46_spill] sm:$0xff] }
0x1121   :  { %8459 = vmatmul.mubr.bf16.vlgmr.msra.gmra.mrb[148].mxu0 %v8343_v16  ;;  %8500 = vmatmul.mubr.bf16.vlgmr.msra.gmra.mrb[148].mxu1 %v8343_v16  ;;  %v13129_v16 = vld [vmem:[#allocation44_spill] sm:$0xff] }
0x1122   :  { %8554 = vmatpush1.bf16.msra.mxu0 %v13101_v42  ;;  %8595 = vmatpush1.bf16.msra.mxu1 %v13102_v29  ;;  %v13132_v42 = vld [vmem:[#allocation47_spill] sm:$0xff] }
0x1123   :  { %8555 = vmatprep.subr.bf16.mxu0 %v13103_v59  ;;  %8596 = vmatprep.subr.bf16.mxu1 %v13104_v53 }
0x1124   :  { %8585 = vmatprep.mubr.bf16.mxu0 %v12807_v31  ;;  %8626 = vmatprep.mubr.bf16.mxu1 %v12807_v31 }
0x1126   :  { %8556 = vmatpush1.bf16.msra.mxu0 %v13105_v5  ;;  %8597 = vmatpush1.bf16.msra.mxu1 %v13106_v46 }
0x1127   :  { %8557 = vmatprep.subr.bf16.mxu0 %v13107_v48  ;;  %8598 = vmatprep.subr.bf16.mxu1 %v13108_v33 }
0x112a   :  { %8558 = vmatpush1.bf16.msra.mxu0 %v13109_v21  ;;  %8599 = vmatpush1.bf16.msra.mxu1 %v13110_v60  ;;  %v8335_v60 = vld [vmem:[#allocation2 + $0xc0] sm:$0xf] }
0x112b   :  { %8559 = vmatprep.subr.bf16.mxu0 %v13111_v0  ;;  %8600 = vmatprep.subr.bf16.mxu1 %v13112_v62  ;;  %v8337_v0 = vld [vmem:[#allocation2 + $0xd0] sm:$0xf]  ;;  %v8336_v62 = vld [vmem:[#allocation2 + $0xc8] sm:$0xf] }
0x112e   :  { %8560 = vmatpush1.bf16.msra.mxu0 %v13113_v20  ;;  %8601 = vmatpush1.bf16.msra.mxu1 %v13114_v8  ;;  %v8338_v20 = vld [vmem:[#allocation2 + $0xd8] sm:$0xf]  ;;  %v8339_v8 = vld [vmem:[#allocation2 + $0xe0] sm:$0xf] }
0x112f   :  { %8561 = vmatprep.subr.bf16.mxu0 %v13115_v10  ;;  %8602 = vmatprep.subr.bf16.mxu1 %v13116_v3  ;;  %v8341_v3 = vld [vmem:[#allocation2 + $0xf0] sm:$0xf] }
0x1132   :  { %8562 = vmatpush1.bf16.msra.mxu0 %v13117_v2  ;;  %8603 = vmatpush1.bf16.msra.mxu1 %v13118_v58 }
0x1133   :  { %8563 = vmatprep.subr.bf16.mxu0 %v13119_v34  ;;  %8604 = vmatprep.subr.bf16.mxu1 %v13120_v22 }
0x1136   :  { %8564 = vmatpush1.bf16.msra.mxu0 %v13121_v40  ;;  %8605 = vmatpush1.bf16.msra.mxu1 %v13122_v15  ;;  %v8340_v15 = vld [vmem:[#allocation2 + $0xe8] sm:$0xf] }
0x1137   :  { %8565 = vmatprep.subr.bf16.mxu0 %v13123_v38  ;;  %8606 = vmatprep.subr.bf16.mxu1 %v13124_v28  ;;  %v8342_v28 = vld [vmem:[#allocation2 + $0xf8] sm:$0xf] }
0x113a   :  { %8566 = vmatpush1.bf16.msra.mxu0 %v13125_v1  ;;  %8607 = vmatpush1.bf16.msra.mxu1 %v13126_v9 }
0x113b   :  { %8567 = vmatprep.subr.bf16.mxu0 %v13127_v45  ;;  %8608 = vmatprep.subr.bf16.mxu1 %v13128_v35 }
0x113e   :  { %8568 = vmatpush1.bf16.msra.mxu0 %v13129_v16  ;;  %8609 = vmatpush1.bf16.msra.mxu1 %v13130_v57 }
0x113f   :  { %8635 = vmatprep.subr.bf16.mxu0 %v13131_v19  ;;  %8676 = vmatprep.subr.bf16.mxu1 %v13132_v42 }
0x11d4   :  { %v8378_v29 = vpop.f32.mrb[144].mxu0  ;;  %v8419_v59 = vpop.f32.mrb[144].mxu1 }
0x11d5   :  { %v8380_v53 = vpop.f32.mrb[145].mxu0  ;;  %v8421_v5 = vpop.f32.mrb[145].mxu1  ;;  %v8508_v58 = vadd.f32 %v8378_v29, %v8335_v60  ;;  %v8510_v34 = vadd.f32 %v8419_v59, %v8337_v0 }
0x11d6   :  { %v8382_v46 = vpop.f32.mrb[146].mxu0  ;;  %v8423_v48 = vpop.f32.mrb[146].mxu1  ;;  %v8509_v9 = vadd.f32 %v8380_v53, %v8336_v62  ;;  %v8511_v45 = vadd.f32 %v8421_v5, %v8338_v20 }
0x11d7   :  { %v8383_v33 = vpop.f32.mrb[147].mxu0  ;;  %v8424_v21 = vpop.f32.mrb[147].mxu1 }
0x11f4   :  { %v8460_v10 = vpop.f32.mrb[148].mxu0  ;;  %v8501_v2 = vpop.f32.mrb[148].mxu1 }
0x11f5   :  { %v8512_v22 = vadd.f32 %v8460_v10, %v8339_v8  ;;  %v8514_v40 = vadd.f32 %v8501_v2, %v8341_v3  ;;  %v8462_v38 = vpop.f32.mrb[149].mxu0  ;;  %v8503_v1 = vpop.f32.mrb[149].mxu1 }
0x11f6   :  { %v8513_v35 = vadd.f32 %v8462_v38, %v8340_v15  ;;  %v8515_v16 = vadd.f32 %v8503_v1, %v8342_v28  ;;  %v8464_v57 = vpop.f32.mrb[150].mxu0  ;;  %v8505_v19 = vpop.f32.mrb[150].mxu1 }
0x11f7   :  { %v8516_v42 = vsel %vm77_vm1, %v8508_v58, %v8512_v22  ;;  %v8518_v46 = vsel %vm77_vm1, %v8510_v34, %v8514_v40  ;;  %v8465_v29 = vpop.f32.mrb[151].mxu0  ;;  %v8506_v59 = vpop.f32.mrb[151].mxu1  ;;  %v8813_v19 = vld [vmem:[%s12650_s7 + $0x60] sm:$0xff] }
0x11f8   :  { %v9772_v48 = vmul.f32 -1.442695, %v8516_v42  ;;  %v8517_v33 = vsel %vm77_vm1, %v8509_v9, %v8513_v35  ;;  %v8519_v53 = vsel %vm77_vm1, %v8511_v45, %v8515_v16  ;;  %v10299_v9 = vmov 0.0   ;;  %v8827_v35 = vld [vmem:[%s12650_s7 + $0xd0] sm:$0xff]  ;;  %v8828_v16 = vld [vmem:[%s12650_s7 + $0xd8] sm:$0xff]  ;;  %v8814_v42 = vld [vmem:[%s12650_s7 + $0x68] sm:$0xff] }
0x11f9   :  { %v9773_v5 = vmul.f32 -1.442695, %v8517_v33  ;;  %v9774_v21 = vmul.f32 -1.442695, %v8519_v53  ;;  %v8829_v29 = vld [vmem:[%s12650_s7 + $0xe0] sm:$0xff]  ;;  %v8830_v59 = vld [vmem:[%s12650_s7 + $0xe8] sm:$0xff] }
0x11fa   :  { %10165 = vpow2.f32 %v9772_v48  ;;  %v9926_v48 = vpack.c.bf16 %v8814_v42, %v8813_v19  ;;  %v8815_v33 = vld [vmem:[%s12650_s7 + $0x70] sm:$0xff]  ;;  %v8816_v53 = vld [vmem:[%s12650_s7 + $0x78] sm:$0xff] }
0x11fb   :  { %10167 = vpow2.f32 %v9773_v5  ;;  %v9902_v5 = vpack.c.bf16 %v8830_v59, %v8829_v29 }
0x11fc   :  { %10169 = vpow2.f32 %v9774_v21  ;;  %v8831_v21 = vld [vmem:[%s12650_s7 + $0xf0] sm:$0xff] }
0x11fd   :  { %10171 = vtanh.f32 %v8518_v46  ;;  %v9899_v46 = vpack.c.bf16 %v8828_v16, %v8827_v35 }
0x1204   :  { %v10166_v60 = vpop.eup %10165 }
0x1205   :  { %v10168_v0 = vpop.eup %10167  ;;  %v8523_v62 = vadd.f32 1.0, %v10166_v60  ;;  %v8832_v60 = vld [vmem:[%s12650_s7 + $0xf8] sm:$0xff] }
0x1206   :  { %v8529_v20 = vadd.f32 1.0, %v10168_v0  ;;  %v10170_v8 = vpop.eup %10169  ;;  %v9929_v0 = vpack.c.bf16 %v8816_v53, %v8815_v33 }
0x1207   :  { %10173 = vrcp.f32 %v8523_v62  ;;  %v10172_v10 = vpop.eup %10171  ;;  %v8536_v34 = vadd.f32 1.0, %v10170_v8  ;;  %v9905_v62 = vpack.c.bf16 %v8832_v60, %v8831_v21 }
0x1208   :  { %10175 = vrcp.f32 %v8529_v20 }
0x1209   :  { %10177 = vrcp.f32 %v8536_v34 }
0x1211   :  { %v10174_v3 = vpop.eup %10173 }
0x1212   :  { %v10176_v2 = vpop.eup %10175  ;;  %v8540_v58 = vmul.f32 %v10174_v3, %v10172_v10 }
0x1213   :  { %v8539_v22 = vmul.f32 %v10176_v2, %v12392_v43  ;;  %v10178_v15 = vpop.eup %10177  ;;  %v8812_v43 = vld [vmem:[%s12650_s7 + $0x58] sm:$0xff] }
0x1215   :  { %v12472_v40 = vadd.f32 %v8540_v58, %v8539_v22 }
0x1217   :  { %10179 = vtanh.f32 %v12472_v40 }
0x1221   :  { %v10180_v38 = vpop.eup %10179 }
0x1222   :  { %v8543_v28 = vmul.f32 %v10180_v38, %v10178_v15 }
0x1224   :  { %v8552_v1 = vpack.c.bf16 %v8543_v28, %v8543_v28 }
0x1226   :  { %8586 = vmatmul.mubr.bf16.vlgmr.msra.gmra.mrb[152].mxu0 %v8552_v1  ;;  %8627 = vmatmul.mubr.bf16.vlgmr.msra.gmra.mrb[152].mxu1 %v8552_v1 }
0x1227   :  { %8636 = vmatpush1.bf16.msra.mxu0 %v11831_v27  ;;  %8677 = vmatpush1.bf16.msra.mxu1 %v11833_v12  ;;  %v8802_v27 = vld [vmem:[%s12650_s7 + $0x8] sm:$0xff] }
0x1228   :  { %8637 = vmatprep.subr.bf16.mxu0 %v11837_v36  ;;  %8678 = vmatprep.subr.bf16.mxu1 %v11839_v50  ;;  %v10297_v36 = vmov 0.0|0.0   ;;  %v8817_v50 = vld [vmem:[%s12650_s7 + $0x80] sm:$0xff] }
0x1229   :  { %8667 = vmatprep.mubr.bf16.mxu0 %v12807_v31  ;;  %8708 = vmatprep.mubr.bf16.mxu1 %v12807_v31  ;;  %v8801_v31 = vld [vmem:[%s12650_s7] sm:$0xff] }
0x122a   :  { %v9908_v12 = vpack.c.bf16 %v8802_v27, %v8801_v31  ;;  %v8544_v31 = vld [vmem:[#allocation2 + $0xc0] sm:$0xf0]  ;;  %v8546_v27 = vld [vmem:[#allocation2 + $0xd0] sm:$0xf0] }
0x122b   :  { %8638 = vmatpush1.bf16.msra.mxu0 %v11845_v39  ;;  %8679 = vmatpush1.bf16.msra.mxu1 %v11847_v47  ;;  %v8818_v39 = vld [vmem:[%s12650_s7 + $0x88] sm:$0xff] }
0x122c   :  { %8639 = vmatprep.subr.bf16.mxu0 %v11851_v26  ;;  %8680 = vmatprep.subr.bf16.mxu1 %v11853_v56  ;;  %v9884_v47 = vpack.c.bf16 %v8818_v39, %v8817_v50  ;;  %v8803_v26 = vld [vmem:[%s12650_s7 + $0x10] sm:$0xff]  ;;  %v8804_v56 = vld [vmem:[%s12650_s7 + $0x18] sm:$0xff] }
0x122d   :  { %v8547_v50 = vld [vmem:[#allocation2 + $0xd8] sm:$0xf0] }
0x122f   :  { %8640 = vmatpush1.bf16.msra.mxu0 %v12939_v18  ;;  %8681 = vmatpush1.bf16.msra.mxu1 %v12940_v7  ;;  %v8823_v7 = vld [vmem:[%s12650_s7 + $0xb0] sm:$0xff] }
0x1230   :  { %8641 = vmatprep.subr.bf16.mxu0 %v12941_v54  ;;  %8682 = vmatprep.subr.bf16.mxu1 %v12942_v4  ;;  %v8824_v54 = vld [vmem:[%s12650_s7 + $0xb8] sm:$0xff] }
0x1231   :  { %v9893_v4 = vpack.c.bf16 %v8824_v54, %v8823_v7  ;;  %v8549_v7 = vld [vmem:[#allocation2 + $0xe8] sm:$0xf0]  ;;  %v8551_v54 = vld [vmem:[#allocation2 + $0xf8] sm:$0xf0] }
0x1233   :  { %8642 = vmatpush1.bf16.msra.mxu0 %v12943_v6  ;;  %8683 = vmatpush1.bf16.msra.mxu1 %v12944_v24  ;;  %v8809_v6 = vld [vmem:[%s12650_s7 + $0x40] sm:$0xff]  ;;  %v8810_v24 = vld [vmem:[%s12650_s7 + $0x48] sm:$0xff] }
0x1234   :  { %8643 = vmatprep.subr.bf16.mxu0 %v12945_v37  ;;  %8684 = vmatprep.subr.bf16.mxu1 %v12946_v30  ;;  %v8825_v37 = vld [vmem:[%s12650_s7 + $0xc0] sm:$0xff]  ;;  %v9920_v30 = vpack.c.bf16 %v8810_v24, %v8809_v6 }
0x1237   :  { %8644 = vmatpush1.bf16.msra.mxu0 %v11883_v11  ;;  %8685 = vmatpush1.bf16.msra.mxu1 %v11885_v14  ;;  %v9911_v11 = vpack.c.bf16 %v8804_v56, %v8803_v26  ;;  %v8819_v14 = vld [vmem:[%s12650_s7 + $0x90] sm:$0xff]  ;;  %v8548_v56 = vld [vmem:[#allocation2 + $0xe0] sm:$0xf0] }
0x1238   :  { %8645 = vmatprep.subr.bf16.mxu0 %v11889_v63  ;;  %8686 = vmatprep.subr.bf16.mxu1 %v12947_v51  ;;  %v8820_v63 = vld [vmem:[%s12650_s7 + $0x98] sm:$0xff]  ;;  %v8826_v51 = vld [vmem:[%s12650_s7 + $0xc8] sm:$0xff] }
0x1239   :  { %v9896_v45 = vpack.c.bf16 %v8826_v51, %v8825_v37 }
0x123b   :  { %8646 = vmatpush1.bf16.msra.mxu0 %v12948_v23  ;;  %8687 = vmatpush1.bf16.msra.mxu1 %v11897_v55  ;;  %v8806_v55 = vld [vmem:[%s12650_s7 + $0x28] sm:$0xff]  ;;  %v8811_v23 = vld [vmem:[%s12650_s7 + $0x50] sm:$0xff] }
0x123c   :  { %8647 = vmatprep.subr.bf16.mxu0 %v11901_v13  ;;  %8688 = vmatprep.subr.bf16.mxu1 %v11903_v41  ;;  %v8821_v41 = vld [vmem:[%s12650_s7 + $0xa0] sm:$0xff]  ;;  %v9923_v57 = vpack.c.bf16 %v8812_v43, %v8811_v23 }
0x123f   :  { %8648 = vmatpush1.bf16.msra.mxu0 %v11907_v61  ;;  %8689 = vmatpush1.bf16.msra.mxu1 %v11909_v52  ;;  %v8822_v61 = vld [vmem:[%s12650_s7 + $0xa8] sm:$0xff] }
0x1240   :  { %8649 = vmatprep.subr.bf16.mxu0 %v11913_v25  ;;  %8690 = vmatprep.subr.bf16.mxu1 %v11915_v17  ;;  %v9890_v52 = vpack.c.bf16 %v8822_v61, %v8821_v41  ;;  %v8807_v25 = vld [vmem:[%s12650_s7 + $0x30] sm:$0xff]  ;;  %v8808_v17 = vld [vmem:[%s12650_s7 + $0x38] sm:$0xff] }
0x1241   :  { %v9917_v18 = vpack.c.bf16 %v8808_v17, %v8807_v25 }
0x1243   :  { %8650 = vmatpush1.bf16.msra.mxu0 %v11919_v49  ;;  %8691 = vmatpush1.bf16.msra.mxu1 %v11921_v32  ;;  %v9887_v49 = vpack.c.bf16 %v8820_v63, %v8819_v14  ;;  %v8805_v32 = vld [vmem:[%s12650_s7 + $0x20] sm:$0xff] }
0x1244   :  { %9907 = vmatprep.subr.bf16.mxu1 %v10297_v36  ;;  %9883 = vmatprep.subr.bf16.mxu0 %v10297_v36  ;;  %v9914_v13 = vpack.c.bf16 %v8806_v55, %v8805_v32 }
0x1246   :  { %8668 = vmatmul.mubr.bf16.vlgmr.msra.gmra.mrb[156].mxu0 %v8552_v1  ;;  %8709 = vmatmul.mubr.bf16.vlgmr.msra.gmra.mrb[156].mxu1 %v8552_v1 }
0x1247   :  { %9909 = vmatpush3.bf16.msra.mxu1 %v9908_v12  ;;  %9885 = vmatpush3.bf16.msra.mxu0 %v9884_v47  ;;  %v8545_v12 = vld [vmem:[#allocation2 + $0xc8] sm:$0xf0] }
0x1248   :  { %9910 = vmatprep.subr.bf16.mxu1 %v10297_v36  ;;  %9886 = vmatprep.subr.bf16.mxu0 %v10297_v36 }
0x1249   :  { %9880 = vmatprep.mubr.msk.f32.mxu1 %vm10298_vm2, %v10299_v9  ;;  %9845 = vmatprep.mubr.msk.f32.mxu0 %vm10298_vm2, %v10299_v9 }
0x124b   :  { %9912 = vmatpush3.bf16.msra.mxu1 %v9911_v11  ;;  %9888 = vmatpush3.bf16.msra.mxu0 %v9887_v49 }
0x124c   :  { %9913 = vmatprep.subr.bf16.mxu1 %v10297_v36  ;;  %9889 = vmatprep.subr.bf16.mxu0 %v10297_v36 }
0x124f   :  { %9915 = vmatpush3.bf16.msra.mxu1 %v9914_v13  ;;  %9891 = vmatpush3.bf16.msra.mxu0 %v9890_v52  ;;  %v8550_v13 = vld [vmem:[#allocation2 + $0xf0] sm:$0xf0] }
0x1250   :  { %9916 = vmatprep.subr.bf16.mxu1 %v10297_v36  ;;  %9892 = vmatprep.subr.bf16.mxu0 %v10297_v36 }
0x1253   :  { %9918 = vmatpush3.bf16.msra.mxu1 %v9917_v18  ;;  %9894 = vmatpush3.bf16.msra.mxu0 %v9893_v4 }
0x1254   :  { %9919 = vmatprep.subr.bf16.mxu1 %v10297_v36  ;;  %9895 = vmatprep.subr.bf16.mxu0 %v10297_v36 }
0x1257   :  { %9921 = vmatpush3.bf16.msra.mxu1 %v9920_v30  ;;  %9897 = vmatpush3.bf16.msra.mxu0 %v9896_v45 }
0x1258   :  { %9922 = vmatprep.subr.bf16.mxu1 %v10297_v36  ;;  %9898 = vmatprep.subr.bf16.mxu0 %v10297_v36 }
0x125b   :  { %9924 = vmatpush3.bf16.msra.mxu1 %v9923_v57  ;;  %9900 = vmatpush3.bf16.msra.mxu0 %v9899_v46 }
0x125c   :  { %9925 = vmatprep.subr.bf16.mxu1 %v10297_v36  ;;  %9901 = vmatprep.subr.bf16.mxu0 %v10297_v36 }
0x125f   :  { %9927 = vmatpush3.bf16.msra.mxu1 %v9926_v48  ;;  %9903 = vmatpush3.bf16.msra.mxu0 %v9902_v5 }
0x1260   :  { %9928 = vmatprep.subr.bf16.mxu1 %v10297_v36  ;;  %9904 = vmatprep.subr.bf16.mxu0 %v10297_v36 }
0x1263   :  { %9930 = vmatpush3.bf16.msra.mxu1 %v9929_v0  ;;  %9906 = vmatpush3.bf16.msra.mxu0 %v9905_v62 }
0x12f9   :  { %v8587_v20 = vpop.f32.mrb[152].mxu0  ;;  %v8628_v8 = vpop.f32.mrb[152].mxu1 }
0x12fa   :  { %v8589_v10 = vpop.f32.mrb[153].mxu0  ;;  %v8630_v3 = vpop.f32.mrb[153].mxu1  ;;  %v8725_v15 = vrot.slane %v8587_v20, 4  ;;  %v8727_v38 = vrot.slane %v8628_v8, 4 }
0x12fb   :  { %v8591_v2 = vpop.f32.mrb[154].mxu0  ;;  %v8632_v58 = vpop.f32.mrb[154].mxu1  ;;  %v8726_v28 = vrot.slane %v8589_v10, 4  ;;  %v8728_v1 = vrot.slane %v8630_v3, 4 }
0x12fc   :  { %v8592_v34 = vpop.f32.mrb[155].mxu0  ;;  %v8633_v22 = vpop.f32.mrb[155].mxu1  ;;  %v8741_v47 = vadd.f32 %v8725_v15, %v8544_v31  ;;  %v8743_v26 = vadd.f32 %v8727_v38, %v8546_v27 }
0x12fd   :  { %v8742_v32 = vadd.f32 %v8726_v28, %v8545_v12  ;;  %v8744_v55 = vadd.f32 %v8728_v1, %v8547_v50  ;;  %v9778_v1 = vld [vmem:[%s12651_s8] ss:$0 sm:$0xff] }
0x12fe   :  { %v8753_v30 = vrot.slane %v8741_v47, 4  ;;  %v8755_v51 = vrot.slane %v8743_v26, 4 }
0x12ff   :  { %v8754_v9 = vrot.slane %v8742_v32, 4  ;;  %v8756_v45 = vrot.slane %v8744_v55, 4 }
0x1319   :  { %v8669_v39 = vpop.f32.mrb[156].mxu0  ;;  %v8710_v36 = vpop.f32.mrb[156].mxu1 }
0x131a   :  { %v8729_v11 = vrot.slane %v8669_v39, 4  ;;  %v8731_v14 = vrot.slane %v8710_v36, 4  ;;  %v8671_v63 = vpop.f32.mrb[157].mxu0  ;;  %v8712_v49 = vpop.f32.mrb[157].mxu1 }
0x131b   :  { %v8730_v41 = vrot.slane %v8671_v63, 4  ;;  %v8732_v61 = vrot.slane %v8712_v49, 4  ;;  %v8673_v52 = vpop.f32.mrb[158].mxu0  ;;  %v8714_v25 = vpop.f32.mrb[158].mxu1 }
0x131c   :  { %v8745_v17 = vadd.f32 %v8729_v11, %v8548_v56  ;;  %v8747_v18 = vadd.f32 %v8731_v14, %v8550_v13  ;;  %v8674_v4 = vpop.f32.mrb[159].mxu0  ;;  %v8715_v6 = vpop.f32.mrb[159].mxu1 }
0x131d   :  { %v8746_v24 = vadd.f32 %v8730_v41, %v8549_v7  ;;  %v8748_v37 = vadd.f32 %v8732_v61, %v8551_v54 }
0x131e   :  { %v8765_v23 = vrot.slane %v8745_v17, 4  ;;  %v8767_v43 = vrot.slane %v8747_v18, 4 }
0x131f   :  { %v8766_v35 = vrot.slane %v8746_v24, 4  ;;  %v8768_v16 = vrot.slane %v8748_v37, 4 }
0x1320   :  { %v8773_v57 = vsel %vm77_vm1, %v8753_v30, %v8765_v23  ;;  %v8775_v19 = vsel %vm77_vm1, %v8755_v51, %v8767_v43 }
0x1321   :  { %v9775_v42 = vmul.f32 -1.442695, %v8773_v57  ;;  %v8774_v46 = vsel %vm77_vm1, %v8754_v9, %v8766_v35  ;;  %v8776_v29 = vsel %vm77_vm1, %v8756_v45, %v8768_v16 }
0x1322   :  { %v9776_v59 = vmul.f32 -1.442695, %v8774_v46  ;;  %v9777_v48 = vmul.f32 -1.442695, %v8776_v29 }
0x1323   :  { %10181 = vpow2.f32 %v9775_v42 }
0x1324   :  { %10183 = vpow2.f32 %v9776_v59 }
0x1325   :  { %10185 = vpow2.f32 %v9777_v48 }
0x1326   :  { %10187 = vtanh.f32 %v8775_v19 }
0x132d   :  { %v10182_v33 = vpop.eup %10181 }
0x132e   :  { %v10184_v53 = vpop.eup %10183  ;;  %v8780_v5 = vadd.f32 1.0, %v10182_v33 }
0x132f   :  { %v8786_v21 = vadd.f32 1.0, %v10184_v53  ;;  %v10186_v60 = vpop.eup %10185 }
0x1330   :  { %10189 = vrcp.f32 %v8780_v5  ;;  %v10188_v0 = vpop.eup %10187  ;;  %v8793_v10 = vadd.f32 1.0, %v10186_v60 }
0x1331   :  { %10191 = vrcp.f32 %v8786_v21 }
0x1332   :  { %10193 = vrcp.f32 %v8793_v10 }
0x133a   :  { %v10190_v62 = vpop.eup %10189 }
0x133b   :  { %v10192_v20 = vpop.eup %10191  ;;  %v8797_v8 = vmul.f32 %v10190_v62, %v10188_v0 }
0x133c   :  { %v8796_v44 = vmul.f32 %v10192_v20, %v12472_v40  ;;  %v10194_v2 = vpop.eup %10193 }
0x133e   :  { %v8798_v3 = vadd.f32 %v8797_v8, %v8796_v44 }
0x1340   :  { %10195 = vtanh.f32 %v8798_v3 }
0x134a   :  { %v10196_v58 = vpop.eup %10195 }
0x134b   :  { %v8800_v34 = vmul.f32 %v10196_v58, %v10194_v2 }
0x134d   :  { %9881 = vmatmul.mubr.f32.vlgmr.msra.gmra.mrb[160].mxu1 %v8800_v34  ;;  %v8834_v22 = vrot.slane %v8800_v34, 2 }
0x134f   :  { %9846 = vmatmul.mubr.f32.vlgmr.msra.gmra.mrb[160].mxu0 %v8834_v22 }
0x1420   :  { %v8972_v15 = vpop.f32.mrb[160].mxu1 }
0x1421   :  { %v9882_v38 = vpop.f32.mrb[161].mxu1 }
0x1422   :  { %v8902_v28 = vpop.f32.mrb[160].mxu0 }
0x1423   :  { %v8973_v31 = vadd.f32 %v8972_v15, %v8902_v28  ;;  %v9847_v40 = vpop.f32.mrb[161].mxu0 }
0x1425   :  { %v8983_v27 = vadd.f32 %v9778_v1, %v8973_v31 }
0x1427   :  { %8985 = vst.msk [vmem:[#allocation10] sm:$0x3] %vm8984_vm3, %v8983_v27 }
0x1428   :  { %10274 = shalt.err (!%p10271_p0)
}
0x1429   :  { %s10275_s5 = scalar_lea.hbm %s12652_s9, 32 }
0x142a   :  { %p10276_p1 = scmp.ne.s32.totalorder %s12652_s9, %s10275_s5  ;;  %p10279_p2 = scmp.lt.u32.totalorder %s10275_s5, %s12652_s9 }
0x142c   :  { %p10281_p3 = pnand %p10279_p2, %p10276_p1 }
0x142e   :  { %10284 = shalt.err (!%p10281_p3)
}
0x142f   :  { %8995 = dma.vmem_to_hbm [thread:$0]  %s8993_s28, 32, %s12652_s9, [#allocation6]  }
0x1430   :  { %10289 = dma.done.wait [#allocation6], 32  }
0x1431   :  { %10290 = vsyncadd [#allocation6], 4294967264 }
0x1432   :  { %8999 = vsyncpa [#allocation5], 1 }
0x1433   :  { %9000 = vsyncpa [#allocation8], 1 }
0x1434   :  { %9001 = vsyncpa [#allocation6], 1 }

</bundles_post_ra>
